<compile_context>
chip_gen: v5e
topology: v5e:2x2
jax: 0.10.0
libtpu: 0.0.40
codegen_flags: <defaults>
</compile_context>

<pallas_src>
import jax
import jax.numpy as jnp
from jax import lax
from jax.experimental import pallas as pl
from jax.experimental.pallas import tpu as pltpu

# ---- hyperparameters (downscaled from the PyTorch module for a small test) ----
N_EMBD = 64          # n_embd (384 in the original)
N_HEAD = 4           # n_head (6 in the original)
HEAD_SIZE = N_EMBD // N_HEAD
N_LAYER = 2          # n_layer (6 in the original)
CONTEXT_LEN = 16     # context_length (256 in the original)
VOCAB = 65           # numero_tokens
VOCAB_PAD = 128      # lane-dense lm_head output; sliced back to VOCAB outside
HIDDEN = 4 * N_EMBD
EPS = 1e-5
NEG_BIG = -1e30      # python float (NOT a jnp array -> no captured-const error)
BATCH_SPLITS = 1     # 1 = fully fold batch (v5e/v6e); use 2 on v7x (2 TCs/chip)


def _layernorm(x, w, b):
    mu = jnp.mean(x, axis=-1, keepdims=True)
    var = jnp.mean((x - mu) ** 2, axis=-1, keepdims=True)
    return (x - mu) * lax.rsqrt(var + EPS) * w + b


def _block(x, l, mask_bias, Bb, T,
           ln1w, ln1b, wqkv, wp, bp, ln2w, ln2b, w1, b1, w2, b2):
    """One transformer block; x is (Bb*T, C) f32, returns (Bb*T, C) f32."""
    C = N_EMBD

    # --- multi-head self attention on LN1(x) ---
    xn = _layernorm(x, ln1w[l], ln1b[l])
    # Fused Q|K|V projection (the reference's C**-0.5 scale, with C = n_embd,
    # is folded into the Q columns of wqkv at param-prep time).
    qkv = jnp.dot(xn.astype(jnp.bfloat16), wqkv[l],
                  preferred_element_type=jnp.float32)           # (N, 3C)
    q = qkv[:, 0 * C:1 * C].reshape(Bb, T, C).astype(jnp.bfloat16)
    k = qkv[:, 1 * C:2 * C].reshape(Bb, T, C).astype(jnp.bfloat16)
    v = qkv[:, 2 * C:3 * C].reshape(Bb, T, C).astype(jnp.bfloat16)

    head_outs = []
    for h in range(N_HEAD):                        # static unrolled head loop
        s = h * HEAD_SIZE
        qh = q[:, :, s:s + HEAD_SIZE]              # (Bb, T, D)
        kh = k[:, :, s:s + HEAD_SIZE]
        vh = v[:, :, s:s + HEAD_SIZE]
        # batched over the (folded) batch dim -> one einsum per head
        wei = jnp.einsum("bqd,bkd->bqk", qh, kh,
                         preferred_element_type=jnp.float32)
        wei = wei + mask_bias                      # additive causal bias
        m = jnp.max(wei, axis=-1, keepdims=True)
        e = jnp.exp(wei - m)
        inv = pl.reciprocal(jnp.sum(e, axis=-1, keepdims=True), approx=True)
        p = (e * inv).astype(jnp.bfloat16)         # softmax over keys
        head_outs.append(jnp.einsum("bqk,bkd->bqd", p, vh,
                                    preferred_element_type=jnp.float32))
    # one full-width concat instead of 16-lane masked stores into scratch
    attn = jnp.concatenate(head_outs, axis=-1).reshape(Bb * T, C)

    sa = jnp.dot(attn.astype(jnp.bfloat16), wp[l],
                 preferred_element_type=jnp.float32) + bp[l]
    x = x + sa                                     # residual (dropout = identity)

    # --- feed-forward on LN2(x) ---
    xn2 = _layernorm(x, ln2w[l], ln2b[l])
    h1 = jnp.maximum(
        jnp.dot(xn2.astype(jnp.bfloat16), w1[l],
                preferred_element_type=jnp.float32) + b1[l], 0.0)
    ff = jnp.dot(h1.astype(jnp.bfloat16), w2[l],
                 preferred_element_type=jnp.float32) + b2[l]
    return x + ff                                  # residual (dropout = identity)


# ---------------------------------------------------------------------------
# Fully fused forward kernel: all blocks + LN_f + lm_head + neuron_activations.
# One grid step processes the whole (half-)batch; everything resident in VMEM.
# ---------------------------------------------------------------------------
def fused_forward_kernel(x_ref,
                         ln1w, ln1b, wqkv, wp, bp, ln2w, ln2b,
                         w1, b1, w2, b2, lnfw, lnfb, wlm, blm,
                         logits_ref, neurons_ref):
    Bb, T, C = x_ref.shape
    x = x_ref[...].reshape(Bb * T, C)              # fold batch into rows

    # causal additive mask hoisted once (JAX does not CSE broadcast_in_dim)
    row = lax.broadcasted_iota(jnp.int32, (T, T), 0)
    col = lax.broadcasted_iota(jnp.int32, (T, T), 1)
    mask_bias = jnp.where(col <= row, 0.0, NEG_BIG).astype(jnp.float32)

    wargs = (ln1w, ln1b, wqkv, wp, bp, ln2w, ln2b, w1, b1, w2, b2)

    # fused layer stack
    for l in range(N_LAYER):
        x = _block(x, l, mask_bias, Bb, T, *wargs)

    # final LayerNorm + lm_head (lane-dense: VOCAB padded to 128)
    xn = _layernorm(x, lnfw[...], lnfb[...])
    logits = jnp.dot(xn.astype(jnp.bfloat16), wlm[...],
                     preferred_element_type=jnp.float32) + blm[...]
    logits_ref[...] = logits.reshape(Bb, T, VOCAB_PAD)

    # PyTorch quirk: neuron_activations re-applies each block to the FINAL x.
    for l in range(N_LAYER):
        neurons_ref[l] = _block(x, l, mask_bias, Bb, T, *wargs).reshape(Bb, T, C)
    # NOTE: neurons last dim is C=64 (<128) -> masked stores; the lane-dense
    # (T*C//128, 128) repack was skipped to avoid a risky in-kernel reshape
    # (output is only 16 KiB here, so the store path is not a bottleneck).


# ---------------------------------------------------------------------------
# Wrapper
# ---------------------------------------------------------------------------
_PARAM_ORDER = ("ln1_w", "ln1_b", "wqkv", "wp", "bp",
                "ln2_w", "ln2_b", "w1", "b1", "w2", "b2",
                "lnf_w", "lnf_b", "wlm", "blm")


def _full_spec(shape):
    nd = len(shape)
    return pl.BlockSpec(shape, lambda b, _nd=nd: (0,) * _nd)


def run_fused(x, params):
    B, T, C = x.shape
    assert B % BATCH_SPLITS == 0
    Bb = B // BATCH_SPLITS

    args = [x]
    in_specs = [pl.BlockSpec((Bb, T, C), lambda b: (b, 0, 0))]
    for name in _PARAM_ORDER:
        arr = params[name]
        args.append(arr)
        in_specs.append(_full_spec(arr.shape))

    return pl.pallas_call(
        fused_forward_kernel,
        out_shape=(
            jax.ShapeDtypeStruct((B, T, VOCAB_PAD), jnp.float32),
            jax.ShapeDtypeStruct((N_LAYER, B, T, C), jnp.float32),
        ),
        grid=(BATCH_SPLITS,),
        in_specs=in_specs,
        out_specs=(
            pl.BlockSpec((Bb, T, VOCAB_PAD), lambda b: (b, 0, 0)),
            pl.BlockSpec((N_LAYER, Bb, T, C), lambda b: (0, b, 0, 0)),
        ),
        compiler_params=pltpu.CompilerParams(
            dimension_semantics=("parallel",)),
        # vmem_limit_bytes not needed at this size; set it when scaling up
        # (v5e default scoped VMEM is 16 MiB, v7x physical VMEM is 64 MiB).
    )(*args)


def forward(idx, params):
    """Mirrors BigramLanguageModel.forward(idx, targets=None)."""
    B, T = idx.shape
    tok_emb = params["tok_emb"][idx]               # embedding gather (XLA glue)
    pos_emb = params["pos_emb"][:T]                # (T, C)
    x = (tok_emb + pos_emb).astype(jnp.float32)

    logits_pad, neurons_stacked = run_fused(x, params)
    logits = logits_pad[:, :, :VOCAB]              # drop lane padding
    neuron_activations = [neurons_stacked[l] for l in range(N_LAYER)]

    loss = None  # targets is None
    # TODO(synk): F.cross_entropy loss path not needed here (targets=None);
    # torch.multinomial sampling in generate() is host-side, not a kernel.
    return logits, loss, neuron_activations


# ---------------------------------------------------------------------------
# Deterministic parameter init (per-layer weights stacked; QKV fused;
# attention scale folded into Q; matmul weights in bfloat16).
# ---------------------------------------------------------------------------
def init_params(key):
    def nrm(k, shape, scale=0.02):
        return scale * jax.random.normal(k, shape, dtype=jnp.float32)

    C = N_EMBD
    keys = iter(jax.random.split(key, 4 + 9 * N_LAYER))

    params = {
        "tok_emb": nrm(next(keys), (VOCAB, C), 1.0),
        "pos_emb": nrm(next(keys), (CONTEXT_LEN, C), 1.0),
        "lnf_w": jnp.ones((1, C), jnp.float32),
        "lnf_b": jnp.zeros((1, C), jnp.float32),
    }
    wlm = nrm(next(keys), (C, VOCAB))
    blm = nrm(next(keys), (1, VOCAB))
    params["wlm"] = jnp.pad(
        wlm, ((0, 0), (0, VOCAB_PAD - VOCAB))).astype(jnp.bfloat16)
    params["blm"] = jnp.pad(blm, ((0, 0), (0, VOCAB_PAD - VOCAB)))  # f32

    # NOTE: the PyTorch Head scales by C**-0.5 with C = n_embd (not head_size),
    # matching `wei = q @ k.transpose(-2,-1) * C ** (-0.5)` in the reference.
    scale = C ** (-0.5)

    names = ("ln1_w", "ln1_b", "wqkv", "wp", "bp",
             "ln2_w", "ln2_b", "w1", "b1", "w2", "b2")
    per_layer = {n: [] for n in names}
    for _ in range(N_LAYER):
        wq = nrm(next(keys), (C, C)) * scale       # fold attention scale into Q
        wk = nrm(next(keys), (C, C))
        wv = nrm(next(keys), (C, C))
        per_layer["wqkv"].append(
            jnp.concatenate([wq, wk, wv], axis=1).astype(jnp.bfloat16))
        per_layer["ln1_w"].append(jnp.ones((1, C), jnp.float32))
        per_layer["ln1_b"].append(jnp.zeros((1, C), jnp.float32))
        per_layer["wp"].append(nrm(next(keys), (C, C)).astype(jnp.bfloat16))
        per_layer["bp"].append(nrm(next(keys), (1, C)))
        per_layer["ln2_w"].append(jnp.ones((1, C), jnp.float32))
        per_layer["ln2_b"].append(jnp.zeros((1, C), jnp.float32))
        per_layer["w1"].append(nrm(next(keys), (C, HIDDEN)).astype(jnp.bfloat16))
        per_layer["b1"].append(nrm(next(keys), (1, HIDDEN)))
        per_layer["w2"].append(nrm(next(keys), (HIDDEN, C)).astype(jnp.bfloat16))
        per_layer["b2"].append(nrm(next(keys), (1, C)))
    for n, arrs in per_layer.items():
        params[n] = jnp.stack(arrs, axis=0)        # (N_LAYER, ...)
    return params


if __name__ == "__main__":
    key = jax.random.PRNGKey(0)
    k_idx, k_params = jax.random.split(key)

    B, T = 2, CONTEXT_LEN
    idx = jax.random.randint(k_idx, (B, T), 0, VOCAB, dtype=jnp.int32)
    params = init_params(k_params)

    logits, loss, neurons = forward(idx, params)
    jax.block_until_ready(logits)
    for n in neurons:
        jax.block_until_ready(n)

    assert logits.shape == (B, T, VOCAB)
    assert loss is None
    assert len(neurons) == N_LAYER and neurons[0].shape == (B, T, N_EMBD)
    assert bool(jnp.all(jnp.isfinite(logits)))
    assert all(bool(jnp.all(jnp.isfinite(n))) for n in neurons)
    print("KERNEL_OK")
</pallas_src>

<mosaic_0001>
module attributes {stable_mosaic.version = 11 : i64} {
  func.func @fused_forward_kernel(%arg0: i32, %arg1: memref<2x16x64xf32, #tpu.memory_space<vmem>>, %arg2: memref<2x1x64xf32, #tpu.memory_space<vmem>>, %arg3: memref<2x1x64xf32, #tpu.memory_space<vmem>>, %arg4: memref<2x64x192xbf16, #tpu.memory_space<vmem>>, %arg5: memref<2x64x64xbf16, #tpu.memory_space<vmem>>, %arg6: memref<2x1x64xf32, #tpu.memory_space<vmem>>, %arg7: memref<2x1x64xf32, #tpu.memory_space<vmem>>, %arg8: memref<2x1x64xf32, #tpu.memory_space<vmem>>, %arg9: memref<2x64x256xbf16, #tpu.memory_space<vmem>>, %arg10: memref<2x1x256xf32, #tpu.memory_space<vmem>>, %arg11: memref<2x256x64xbf16, #tpu.memory_space<vmem>>, %arg12: memref<2x1x64xf32, #tpu.memory_space<vmem>>, %arg13: memref<1x64xf32, #tpu.memory_space<vmem>>, %arg14: memref<1x64xf32, #tpu.memory_space<vmem>>, %arg15: memref<64x128xbf16, #tpu.memory_space<vmem>>, %arg16: memref<1x128xf32, #tpu.memory_space<vmem>>, %arg17: memref<2x16x128xf32, #tpu.memory_space<vmem>>, %arg18: memref<2x2x16x64xf32, #tpu.memory_space<vmem>>) attributes {dimension_semantics = [#tpu.dimension_semantics<parallel>], iteration_bounds = array<i64: 1>, scalar_prefetch = 0 : i64, scratch_operands = 0 : i64, tpu.core_type = #tpu.core_type<tc>, window_params = [{transform_indices = @transform_0, window_bounds = array<i64: 2, 16, 64>}, {pipeline_mode = #tpu.pipeline_mode<synchronous>, transform_indices = @transform_1, window_bounds = array<i64: 2, 1, 64>}, {pipeline_mode = #tpu.pipeline_mode<synchronous>, transform_indices = @transform_2, window_bounds = array<i64: 2, 1, 64>}, {pipeline_mode = #tpu.pipeline_mode<synchronous>, transform_indices = @transform_3, window_bounds = array<i64: 2, 64, 192>}, {pipeline_mode = #tpu.pipeline_mode<synchronous>, transform_indices = @transform_4, window_bounds = array<i64: 2, 64, 64>}, {pipeline_mode = #tpu.pipeline_mode<synchronous>, transform_indices = @transform_5, window_bounds = array<i64: 2, 1, 64>}, {pipeline_mode = #tpu.pipeline_mode<synchronous>, transform_indices = @transform_6, window_bounds = array<i64: 2, 1, 64>}, {pipeline_mode = #tpu.pipeline_mode<synchronous>, transform_indices = @transform_7, window_bounds = array<i64: 2, 1, 64>}, {pipeline_mode = #tpu.pipeline_mode<synchronous>, transform_indices = @transform_8, window_bounds = array<i64: 2, 64, 256>}, {pipeline_mode = #tpu.pipeline_mode<synchronous>, transform_indices = @transform_9, window_bounds = array<i64: 2, 1, 256>}, {pipeline_mode = #tpu.pipeline_mode<synchronous>, transform_indices = @transform_10, window_bounds = array<i64: 2, 256, 64>}, {pipeline_mode = #tpu.pipeline_mode<synchronous>, transform_indices = @transform_11, window_bounds = array<i64: 2, 1, 64>}, {pipeline_mode = #tpu.pipeline_mode<synchronous>, transform_indices = @transform_12, window_bounds = array<i64: 1, 64>}, {pipeline_mode = #tpu.pipeline_mode<synchronous>, transform_indices = @transform_13, window_bounds = array<i64: 1, 64>}, {pipeline_mode = #tpu.pipeline_mode<synchronous>, transform_indices = @transform_14, window_bounds = array<i64: 64, 128>}, {pipeline_mode = #tpu.pipeline_mode<synchronous>, transform_indices = @transform_15, window_bounds = array<i64: 1, 128>}, {transform_indices = @transform_16, window_bounds = array<i64: 2, 16, 128>}, {transform_indices = @transform_17, window_bounds = array<i64: 2, 2, 16, 64>}]} {
    %c0 = arith.constant 0 : index
    %c0_0 = arith.constant 0 : index
    %c0_1 = arith.constant 0 : index
    %0 = vector.load %arg1[%c0, %c0_0, %c0_1] : memref<2x16x64xf32, #tpu.memory_space<vmem>>, vector<2x16x64xf32>
    %1 = vector.shape_cast %0 : vector<2x16x64xf32> to vector<32x64xf32>
    %2 = tpu.iota {dimensions = array<i32: 0>} : vector<16x16xi32>
    %3 = tpu.iota {dimensions = array<i32: 1>} : vector<16x16xi32>
    %4 = arith.cmpi sle, %3, %2 : vector<16x16xi32>
    %cst = arith.constant 0.000000e+00 : f32
    %cst_2 = arith.constant -1.000000e+30 : f32
    %5 = vector.broadcast %cst : f32 to vector<16x16xf32>
    %6 = vector.broadcast %cst_2 : f32 to vector<16x16xf32>
    %7 = arith.select %4, %5, %6 : vector<16x16xi1>, vector<16x16xf32>
    %c0_3 = arith.constant 0 : index
    %c0_4 = arith.constant 0 : index
    %c0_5 = arith.constant 0 : index
    %8 = vector.load %arg2[%c0_3, %c0_4, %c0_5] : memref<2x1x64xf32, #tpu.memory_space<vmem>>, vector<1x1x64xf32>
    %9 = vector.shape_cast %8 : vector<1x1x64xf32> to vector<1x64xf32>
    %c0_6 = arith.constant 0 : index
    %c0_7 = arith.constant 0 : index
    %c0_8 = arith.constant 0 : index
    %10 = vector.load %arg3[%c0_6, %c0_7, %c0_8] : memref<2x1x64xf32, #tpu.memory_space<vmem>>, vector<1x1x64xf32>
    %11 = vector.shape_cast %10 : vector<1x1x64xf32> to vector<1x64xf32>
    %cst_9 = arith.constant dense<0.000000e+00> : vector<32xf32>
    %12 = vector.multi_reduction <add>, %1, %cst_9 [1] : vector<32x64xf32> to vector<32xf32>
    %13 = vector.shape_cast %12 : vector<32xf32> to vector<32x1xf32>
    %cst_10 = arith.constant 6.400000e+01 : f32
    %14 = vector.broadcast %cst_10 : f32 to vector<32x1xf32>
    %15 = arith.divf %13, %14 : vector<32x1xf32>
    %16 = vector.broadcast %15 : vector<32x1xf32> to vector<32x64xf32>
    %17 = arith.subf %1, %16 : vector<32x64xf32>
    %18 = arith.mulf %17, %17 : vector<32x64xf32>
    %cst_11 = arith.constant dense<0.000000e+00> : vector<32xf32>
    %19 = vector.multi_reduction <add>, %18, %cst_11 [1] : vector<32x64xf32> to vector<32xf32>
    %20 = vector.shape_cast %19 : vector<32xf32> to vector<32x1xf32>
    %cst_12 = arith.constant 6.400000e+01 : f32
    %21 = vector.broadcast %cst_12 : f32 to vector<32x1xf32>
    %22 = arith.divf %20, %21 : vector<32x1xf32>
    %23 = vector.broadcast %15 : vector<32x1xf32> to vector<32x64xf32>
    %24 = arith.subf %1, %23 : vector<32x64xf32>
    %cst_13 = arith.constant 9.99999974E-6 : f32
    %25 = vector.broadcast %cst_13 : f32 to vector<32x1xf32>
    %26 = arith.addf %22, %25 : vector<32x1xf32>
    %27 = math.rsqrt %26 : vector<32x1xf32>
    %28 = vector.broadcast %27 : vector<32x1xf32> to vector<32x64xf32>
    %29 = arith.mulf %24, %28 : vector<32x64xf32>
    %30 = vector.broadcast %9 : vector<1x64xf32> to vector<32x64xf32>
    %31 = arith.mulf %29, %30 : vector<32x64xf32>
    %32 = vector.broadcast %11 : vector<1x64xf32> to vector<32x64xf32>
    %33 = arith.addf %31, %32 : vector<32x64xf32>
    %34 = arith.truncf %33 : vector<32x64xf32> to vector<32x64xbf16>
    %c0_14 = arith.constant 0 : index
    %c0_15 = arith.constant 0 : index
    %c0_16 = arith.constant 0 : index
    %35 = vector.load %arg4[%c0_14, %c0_15, %c0_16] : memref<2x64x192xbf16, #tpu.memory_space<vmem>>, vector<1x64x192xbf16>
    %36 = vector.shape_cast %35 : vector<1x64x192xbf16> to vector<64x192xbf16>
    %cst_17 = arith.constant dense<0.000000e+00> : vector<32x192xf32>
    %37 = tpu.matmul %34, %36, %cst_17 {dimension_numbers = #tpu.dot_dimension_numbers<[1], [0], [0], [1], [0, 0, 1, 1], [], []>} : vector<32x64xbf16>, vector<64x192xbf16>, vector<32x192xf32> -> vector<32x192xf32>
    %38 = vector.extract_strided_slice %37 {offsets = [0, 0], sizes = [32, 64], strides = [1, 1]} : vector<32x192xf32> to vector<32x64xf32>
    %39 = vector.shape_cast %38 : vector<32x64xf32> to vector<2x16x64xf32>
    %40 = arith.truncf %39 : vector<2x16x64xf32> to vector<2x16x64xbf16>
    %41 = vector.extract_strided_slice %37 {offsets = [0, 64], sizes = [32, 64], strides = [1, 1]} : vector<32x192xf32> to vector<32x64xf32>
    %42 = vector.shape_cast %41 : vector<32x64xf32> to vector<2x16x64xf32>
    %43 = arith.truncf %42 : vector<2x16x64xf32> to vector<2x16x64xbf16>
    %44 = vector.extract_strided_slice %37 {offsets = [0, 128], sizes = [32, 64], strides = [1, 1]} : vector<32x192xf32> to vector<32x64xf32>
    %45 = vector.shape_cast %44 : vector<32x64xf32> to vector<2x16x64xf32>
    %46 = arith.truncf %45 : vector<2x16x64xf32> to vector<2x16x64xbf16>
    %47 = vector.extract_strided_slice %40 {offsets = [0, 0, 0], sizes = [2, 16, 16], strides = [1, 1, 1]} : vector<2x16x64xbf16> to vector<2x16x16xbf16>
    %48 = vector.extract_strided_slice %43 {offsets = [0, 0, 0], sizes = [2, 16, 16], strides = [1, 1, 1]} : vector<2x16x64xbf16> to vector<2x16x16xbf16>
    %49 = vector.extract_strided_slice %46 {offsets = [0, 0, 0], sizes = [2, 16, 16], strides = [1, 1, 1]} : vector<2x16x64xbf16> to vector<2x16x16xbf16>
    "tpu.trace_start"() <{level = 10 : i32, message = "bqd,bkd->bqk"}> : () -> ()
    %cst_18 = arith.constant dense<0.000000e+00> : vector<2x16x16xf32>
    %50 = tpu.matmul %47, %48, %cst_18 {dimension_numbers = #tpu.dot_dimension_numbers<[2], [2], [1], [1], [0, 0, 0, 1, 1, 1], [0], [0]>} : vector<2x16x16xbf16>, vector<2x16x16xbf16>, vector<2x16x16xf32> -> vector<2x16x16xf32>
    "tpu.trace_stop"() : () -> ()
    %51 = vector.shape_cast %7 : vector<16x16xf32> to vector<1x16x16xf32>
    %52 = vector.broadcast %51 : vector<1x16x16xf32> to vector<2x16x16xf32>
    %53 = arith.addf %50, %52 : vector<2x16x16xf32>
    %cst_19 = arith.constant dense<0xFF800000> : vector<2x16xf32>
    %54 = vector.multi_reduction <maximumf>, %53, %cst_19 [2] : vector<2x16x16xf32> to vector<2x16xf32>
    %55 = vector.shape_cast %54 : vector<2x16xf32> to vector<2x16x1xf32>
    %56 = vector.broadcast %55 : vector<2x16x1xf32> to vector<2x16x16xf32>
    %57 = arith.subf %53, %56 : vector<2x16x16xf32>
    %58 = math.exp %57 : vector<2x16x16xf32>
    %cst_20 = arith.constant dense<0.000000e+00> : vector<2x16xf32>
    %59 = vector.multi_reduction <add>, %58, %cst_20 [2] : vector<2x16x16xf32> to vector<2x16xf32>
    %60 = vector.shape_cast %59 : vector<2x16xf32> to vector<2x16x1xf32>
    %61 = tpu.reciprocal %60 {approx = true} : vector<2x16x1xf32> -> vector<2x16x1xf32>
    %62 = vector.broadcast %61 : vector<2x16x1xf32> to vector<2x16x16xf32>
    %63 = arith.mulf %58, %62 : vector<2x16x16xf32>
    %64 = arith.truncf %63 : vector<2x16x16xf32> to vector<2x16x16xbf16>
    "tpu.trace_start"() <{level = 10 : i32, message = "bqk,bkd->bqd"}> : () -> ()
    %cst_21 = arith.constant dense<0.000000e+00> : vector<2x16x16xf32>
    %65 = tpu.matmul %64, %49, %cst_21 {dimension_numbers = #tpu.dot_dimension_numbers<[2], [1], [1], [2], [0, 0, 0, 1, 1, 2], [0], [0]>} : vector<2x16x16xbf16>, vector<2x16x16xbf16>, vector<2x16x16xf32> -> vector<2x16x16xf32>
    "tpu.trace_stop"() : () -> ()
    %66 = vector.extract_strided_slice %40 {offsets = [0, 0, 16], sizes = [2, 16, 16], strides = [1, 1, 1]} : vector<2x16x64xbf16> to vector<2x16x16xbf16>
    %67 = vector.extract_strided_slice %43 {offsets = [0, 0, 16], sizes = [2, 16, 16], strides = [1, 1, 1]} : vector<2x16x64xbf16> to vector<2x16x16xbf16>
    %68 = vector.extract_strided_slice %46 {offsets = [0, 0, 16], sizes = [2, 16, 16], strides = [1, 1, 1]} : vector<2x16x64xbf16> to vector<2x16x16xbf16>
    "tpu.trace_start"() <{level = 10 : i32, message = "bqd,bkd->bqk"}> : () -> ()
    %cst_22 = arith.constant dense<0.000000e+00> : vector<2x16x16xf32>
    %69 = tpu.matmul %66, %67, %cst_22 {dimension_numbers = #tpu.dot_dimension_numbers<[2], [2], [1], [1], [0, 0, 0, 1, 1, 1], [0], [0]>} : vector<2x16x16xbf16>, vector<2x16x16xbf16>, vector<2x16x16xf32> -> vector<2x16x16xf32>
    "tpu.trace_stop"() : () -> ()
    %70 = vector.shape_cast %7 : vector<16x16xf32> to vector<1x16x16xf32>
    %71 = vector.broadcast %70 : vector<1x16x16xf32> to vector<2x16x16xf32>
    %72 = arith.addf %69, %71 : vector<2x16x16xf32>
    %cst_23 = arith.constant dense<0xFF800000> : vector<2x16xf32>
    %73 = vector.multi_reduction <maximumf>, %72, %cst_23 [2] : vector<2x16x16xf32> to vector<2x16xf32>
    %74 = vector.shape_cast %73 : vector<2x16xf32> to vector<2x16x1xf32>
    %75 = vector.broadcast %74 : vector<2x16x1xf32> to vector<2x16x16xf32>
    %76 = arith.subf %72, %75 : vector<2x16x16xf32>
    %77 = math.exp %76 : vector<2x16x16xf32>
    %cst_24 = arith.constant dense<0.000000e+00> : vector<2x16xf32>
    %78 = vector.multi_reduction <add>, %77, %cst_24 [2] : vector<2x16x16xf32> to vector<2x16xf32>
    %79 = vector.shape_cast %78 : vector<2x16xf32> to vector<2x16x1xf32>
    %80 = tpu.reciprocal %79 {approx = true} : vector<2x16x1xf32> -> vector<2x16x1xf32>
    %81 = vector.broadcast %80 : vector<2x16x1xf32> to vector<2x16x16xf32>
    %82 = arith.mulf %77, %81 : vector<2x16x16xf32>
    %83 = arith.truncf %82 : vector<2x16x16xf32> to vector<2x16x16xbf16>
    "tpu.trace_start"() <{level = 10 : i32, message = "bqk,bkd->bqd"}> : () -> ()
    %cst_25 = arith.constant dense<0.000000e+00> : vector<2x16x16xf32>
    %84 = tpu.matmul %83, %68, %cst_25 {dimension_numbers = #tpu.dot_dimension_numbers<[2], [1], [1], [2], [0, 0, 0, 1, 1, 2], [0], [0]>} : vector<2x16x16xbf16>, vector<2x16x16xbf16>, vector<2x16x16xf32> -> vector<2x16x16xf32>
    "tpu.trace_stop"() : () -> ()
    %85 = vector.extract_strided_slice %40 {offsets = [0, 0, 32], sizes = [2, 16, 16], strides = [1, 1, 1]} : vector<2x16x64xbf16> to vector<2x16x16xbf16>
    %86 = vector.extract_strided_slice %43 {offsets = [0, 0, 32], sizes = [2, 16, 16], strides = [1, 1, 1]} : vector<2x16x64xbf16> to vector<2x16x16xbf16>
    %87 = vector.extract_strided_slice %46 {offsets = [0, 0, 32], sizes = [2, 16, 16], strides = [1, 1, 1]} : vector<2x16x64xbf16> to vector<2x16x16xbf16>
    "tpu.trace_start"() <{level = 10 : i32, message = "bqd,bkd->bqk"}> : () -> ()
    %cst_26 = arith.constant dense<0.000000e+00> : vector<2x16x16xf32>
    %88 = tpu.matmul %85, %86, %cst_26 {dimension_numbers = #tpu.dot_dimension_numbers<[2], [2], [1], [1], [0, 0, 0, 1, 1, 1], [0], [0]>} : vector<2x16x16xbf16>, vector<2x16x16xbf16>, vector<2x16x16xf32> -> vector<2x16x16xf32>
    "tpu.trace_stop"() : () -> ()
    %89 = vector.shape_cast %7 : vector<16x16xf32> to vector<1x16x16xf32>
    %90 = vector.broadcast %89 : vector<1x16x16xf32> to vector<2x16x16xf32>
    %91 = arith.addf %88, %90 : vector<2x16x16xf32>
    %cst_27 = arith.constant dense<0xFF800000> : vector<2x16xf32>
    %92 = vector.multi_reduction <maximumf>, %91, %cst_27 [2] : vector<2x16x16xf32> to vector<2x16xf32>
    %93 = vector.shape_cast %92 : vector<2x16xf32> to vector<2x16x1xf32>
    %94 = vector.broadcast %93 : vector<2x16x1xf32> to vector<2x16x16xf32>
    %95 = arith.subf %91, %94 : vector<2x16x16xf32>
    %96 = math.exp %95 : vector<2x16x16xf32>
    %cst_28 = arith.constant dense<0.000000e+00> : vector<2x16xf32>
    %97 = vector.multi_reduction <add>, %96, %cst_28 [2] : vector<2x16x16xf32> to vector<2x16xf32>
    %98 = vector.shape_cast %97 : vector<2x16xf32> to vector<2x16x1xf32>
    %99 = tpu.reciprocal %98 {approx = true} : vector<2x16x1xf32> -> vector<2x16x1xf32>
    %100 = vector.broadcast %99 : vector<2x16x1xf32> to vector<2x16x16xf32>
    %101 = arith.mulf %96, %100 : vector<2x16x16xf32>
    %102 = arith.truncf %101 : vector<2x16x16xf32> to vector<2x16x16xbf16>
    "tpu.trace_start"() <{level = 10 : i32, message = "bqk,bkd->bqd"}> : () -> ()
    %cst_29 = arith.constant dense<0.000000e+00> : vector<2x16x16xf32>
    %103 = tpu.matmul %102, %87, %cst_29 {dimension_numbers = #tpu.dot_dimension_numbers<[2], [1], [1], [2], [0, 0, 0, 1, 1, 2], [0], [0]>} : vector<2x16x16xbf16>, vector<2x16x16xbf16>, vector<2x16x16xf32> -> vector<2x16x16xf32>
    "tpu.trace_stop"() : () -> ()
    %104 = vector.extract_strided_slice %40 {offsets = [0, 0, 48], sizes = [2, 16, 16], strides = [1, 1, 1]} : vector<2x16x64xbf16> to vector<2x16x16xbf16>
    %105 = vector.extract_strided_slice %43 {offsets = [0, 0, 48], sizes = [2, 16, 16], strides = [1, 1, 1]} : vector<2x16x64xbf16> to vector<2x16x16xbf16>
    %106 = vector.extract_strided_slice %46 {offsets = [0, 0, 48], sizes = [2, 16, 16], strides = [1, 1, 1]} : vector<2x16x64xbf16> to vector<2x16x16xbf16>
    "tpu.trace_start"() <{level = 10 : i32, message = "bqd,bkd->bqk"}> : () -> ()
    %cst_30 = arith.constant dense<0.000000e+00> : vector<2x16x16xf32>
    %107 = tpu.matmul %104, %105, %cst_30 {dimension_numbers = #tpu.dot_dimension_numbers<[2], [2], [1], [1], [0, 0, 0, 1, 1, 1], [0], [0]>} : vector<2x16x16xbf16>, vector<2x16x16xbf16>, vector<2x16x16xf32> -> vector<2x16x16xf32>
    "tpu.trace_stop"() : () -> ()
    %108 = vector.shape_cast %7 : vector<16x16xf32> to vector<1x16x16xf32>
    %109 = vector.broadcast %108 : vector<1x16x16xf32> to vector<2x16x16xf32>
    %110 = arith.addf %107, %109 : vector<2x16x16xf32>
    %cst_31 = arith.constant dense<0xFF800000> : vector<2x16xf32>
    %111 = vector.multi_reduction <maximumf>, %110, %cst_31 [2] : vector<2x16x16xf32> to vector<2x16xf32>
    %112 = vector.shape_cast %111 : vector<2x16xf32> to vector<2x16x1xf32>
    %113 = vector.broadcast %112 : vector<2x16x1xf32> to vector<2x16x16xf32>
    %114 = arith.subf %110, %113 : vector<2x16x16xf32>
    %115 = math.exp %114 : vector<2x16x16xf32>
    %cst_32 = arith.constant dense<0.000000e+00> : vector<2x16xf32>
    %116 = vector.multi_reduction <add>, %115, %cst_32 [2] : vector<2x16x16xf32> to vector<2x16xf32>
    %117 = vector.shape_cast %116 : vector<2x16xf32> to vector<2x16x1xf32>
    %118 = tpu.reciprocal %117 {approx = true} : vector<2x16x1xf32> -> vector<2x16x1xf32>
    %119 = vector.broadcast %118 : vector<2x16x1xf32> to vector<2x16x16xf32>
    %120 = arith.mulf %115, %119 : vector<2x16x16xf32>
    %121 = arith.truncf %120 : vector<2x16x16xf32> to vector<2x16x16xbf16>
    "tpu.trace_start"() <{level = 10 : i32, message = "bqk,bkd->bqd"}> : () -> ()
    %cst_33 = arith.constant dense<0.000000e+00> : vector<2x16x16xf32>
    %122 = tpu.matmul %121, %106, %cst_33 {dimension_numbers = #tpu.dot_dimension_numbers<[2], [1], [1], [2], [0, 0, 0, 1, 1, 2], [0], [0]>} : vector<2x16x16xbf16>, vector<2x16x16xbf16>, vector<2x16x16xf32> -> vector<2x16x16xf32>
    "tpu.trace_stop"() : () -> ()
    %123 = tpu.concatenate %65, %84, %103, %122 in 2 : vector<2x16x16xf32>, vector<2x16x16xf32>, vector<2x16x16xf32>, vector<2x16x16xf32> -> vector<2x16x64xf32>
    %124 = vector.shape_cast %123 : vector<2x16x64xf32> to vector<32x64xf32>
    %125 = arith.truncf %124 : vector<32x64xf32> to vector<32x64xbf16>
    %c0_34 = arith.constant 0 : index
    %c0_35 = arith.constant 0 : index
    %c0_36 = arith.constant 0 : index
    %126 = vector.load %arg5[%c0_34, %c0_35, %c0_36] : memref<2x64x64xbf16, #tpu.memory_space<vmem>>, vector<1x64x64xbf16>
    %127 = vector.shape_cast %126 : vector<1x64x64xbf16> to vector<64x64xbf16>
    %cst_37 = arith.constant dense<0.000000e+00> : vector<32x64xf32>
    %128 = tpu.matmul %125, %127, %cst_37 {dimension_numbers = #tpu.dot_dimension_numbers<[1], [0], [0], [1], [0, 0, 1, 1], [], []>} : vector<32x64xbf16>, vector<64x64xbf16>, vector<32x64xf32> -> vector<32x64xf32>
    %c0_38 = arith.constant 0 : index
    %c0_39 = arith.constant 0 : index
    %c0_40 = arith.constant 0 : index
    %129 = vector.load %arg6[%c0_38, %c0_39, %c0_40] : memref<2x1x64xf32, #tpu.memory_space<vmem>>, vector<1x1x64xf32>
    %130 = vector.shape_cast %129 : vector<1x1x64xf32> to vector<1x64xf32>
    %131 = vector.broadcast %130 : vector<1x64xf32> to vector<32x64xf32>
    %132 = arith.addf %128, %131 : vector<32x64xf32>
    %133 = arith.addf %1, %132 : vector<32x64xf32>
    %c0_41 = arith.constant 0 : index
    %c0_42 = arith.constant 0 : index
    %c0_43 = arith.constant 0 : index
    %134 = vector.load %arg7[%c0_41, %c0_42, %c0_43] : memref<2x1x64xf32, #tpu.memory_space<vmem>>, vector<1x1x64xf32>
    %135 = vector.shape_cast %134 : vector<1x1x64xf32> to vector<1x64xf32>
    %c0_44 = arith.constant 0 : index
    %c0_45 = arith.constant 0 : index
    %c0_46 = arith.constant 0 : index
    %136 = vector.load %arg8[%c0_44, %c0_45, %c0_46] : memref<2x1x64xf32, #tpu.memory_space<vmem>>, vector<1x1x64xf32>
    %137 = vector.shape_cast %136 : vector<1x1x64xf32> to vector<1x64xf32>
    %cst_47 = arith.constant dense<0.000000e+00> : vector<32xf32>
    %138 = vector.multi_reduction <add>, %133, %cst_47 [1] : vector<32x64xf32> to vector<32xf32>
    %139 = vector.shape_cast %138 : vector<32xf32> to vector<32x1xf32>
    %cst_48 = arith.constant 6.400000e+01 : f32
    %140 = vector.broadcast %cst_48 : f32 to vector<32x1xf32>
    %141 = arith.divf %139, %140 : vector<32x1xf32>
    %142 = vector.broadcast %141 : vector<32x1xf32> to vector<32x64xf32>
    %143 = arith.subf %133, %142 : vector<32x64xf32>
    %144 = arith.mulf %143, %143 : vector<32x64xf32>
    %cst_49 = arith.constant dense<0.000000e+00> : vector<32xf32>
    %145 = vector.multi_reduction <add>, %144, %cst_49 [1] : vector<32x64xf32> to vector<32xf32>
    %146 = vector.shape_cast %145 : vector<32xf32> to vector<32x1xf32>
    %cst_50 = arith.constant 6.400000e+01 : f32
    %147 = vector.broadcast %cst_50 : f32 to vector<32x1xf32>
    %148 = arith.divf %146, %147 : vector<32x1xf32>
    %149 = vector.broadcast %141 : vector<32x1xf32> to vector<32x64xf32>
    %150 = arith.subf %133, %149 : vector<32x64xf32>
    %cst_51 = arith.constant 9.99999974E-6 : f32
    %151 = vector.broadcast %cst_51 : f32 to vector<32x1xf32>
    %152 = arith.addf %148, %151 : vector<32x1xf32>
    %153 = math.rsqrt %152 : vector<32x1xf32>
    %154 = vector.broadcast %153 : vector<32x1xf32> to vector<32x64xf32>
    %155 = arith.mulf %150, %154 : vector<32x64xf32>
    %156 = vector.broadcast %135 : vector<1x64xf32> to vector<32x64xf32>
    %157 = arith.mulf %155, %156 : vector<32x64xf32>
    %158 = vector.broadcast %137 : vector<1x64xf32> to vector<32x64xf32>
    %159 = arith.addf %157, %158 : vector<32x64xf32>
    %160 = arith.truncf %159 : vector<32x64xf32> to vector<32x64xbf16>
    %c0_52 = arith.constant 0 : index
    %c0_53 = arith.constant 0 : index
    %c0_54 = arith.constant 0 : index
    %161 = vector.load %arg9[%c0_52, %c0_53, %c0_54] : memref<2x64x256xbf16, #tpu.memory_space<vmem>>, vector<1x64x256xbf16>
    %162 = vector.shape_cast %161 : vector<1x64x256xbf16> to vector<64x256xbf16>
    %cst_55 = arith.constant dense<0.000000e+00> : vector<32x256xf32>
    %163 = tpu.matmul %160, %162, %cst_55 {dimension_numbers = #tpu.dot_dimension_numbers<[1], [0], [0], [1], [0, 0, 1, 1], [], []>} : vector<32x64xbf16>, vector<64x256xbf16>, vector<32x256xf32> -> vector<32x256xf32>
    %c0_56 = arith.constant 0 : index
    %c0_57 = arith.constant 0 : index
    %c0_58 = arith.constant 0 : index
    %164 = vector.load %arg10[%c0_56, %c0_57, %c0_58] : memref<2x1x256xf32, #tpu.memory_space<vmem>>, vector<1x1x256xf32>
    %165 = vector.shape_cast %164 : vector<1x1x256xf32> to vector<1x256xf32>
    %166 = vector.broadcast %165 : vector<1x256xf32> to vector<32x256xf32>
    %167 = arith.addf %163, %166 : vector<32x256xf32>
    %cst_59 = arith.constant 0.000000e+00 : f32
    %168 = vector.broadcast %cst_59 : f32 to vector<32x256xf32>
    %169 = arith.maximumf %167, %168 : vector<32x256xf32>
    %170 = arith.truncf %169 : vector<32x256xf32> to vector<32x256xbf16>
    %c0_60 = arith.constant 0 : index
    %c0_61 = arith.constant 0 : index
    %c0_62 = arith.constant 0 : index
    %171 = vector.load %arg11[%c0_60, %c0_61, %c0_62] : memref<2x256x64xbf16, #tpu.memory_space<vmem>>, vector<1x256x64xbf16>
    %172 = vector.shape_cast %171 : vector<1x256x64xbf16> to vector<256x64xbf16>
    %cst_63 = arith.constant dense<0.000000e+00> : vector<32x64xf32>
    %173 = tpu.matmul %170, %172, %cst_63 {dimension_numbers = #tpu.dot_dimension_numbers<[1], [0], [0], [1], [0, 0, 1, 1], [], []>} : vector<32x256xbf16>, vector<256x64xbf16>, vector<32x64xf32> -> vector<32x64xf32>
    %c0_64 = arith.constant 0 : index
    %c0_65 = arith.constant 0 : index
    %c0_66 = arith.constant 0 : index
    %174 = vector.load %arg12[%c0_64, %c0_65, %c0_66] : memref<2x1x64xf32, #tpu.memory_space<vmem>>, vector<1x1x64xf32>
    %175 = vector.shape_cast %174 : vector<1x1x64xf32> to vector<1x64xf32>
    %176 = vector.broadcast %175 : vector<1x64xf32> to vector<32x64xf32>
    %177 = arith.addf %173, %176 : vector<32x64xf32>
    %178 = arith.addf %133, %177 : vector<32x64xf32>
    %c1 = arith.constant 1 : index
    %c0_67 = arith.constant 0 : index
    %c0_68 = arith.constant 0 : index
    %179 = vector.load %arg2[%c1, %c0_67, %c0_68] : memref<2x1x64xf32, #tpu.memory_space<vmem>>, vector<1x1x64xf32>
    %180 = vector.shape_cast %179 : vector<1x1x64xf32> to vector<1x64xf32>
    %c1_69 = arith.constant 1 : index
    %c0_70 = arith.constant 0 : index
    %c0_71 = arith.constant 0 : index
    %181 = vector.load %arg3[%c1_69, %c0_70, %c0_71] : memref<2x1x64xf32, #tpu.memory_space<vmem>>, vector<1x1x64xf32>
    %182 = vector.shape_cast %181 : vector<1x1x64xf32> to vector<1x64xf32>
    %cst_72 = arith.constant dense<0.000000e+00> : vector<32xf32>
    %183 = vector.multi_reduction <add>, %178, %cst_72 [1] : vector<32x64xf32> to vector<32xf32>
    %184 = vector.shape_cast %183 : vector<32xf32> to vector<32x1xf32>
    %cst_73 = arith.constant 6.400000e+01 : f32
    %185 = vector.broadcast %cst_73 : f32 to vector<32x1xf32>
    %186 = arith.divf %184, %185 : vector<32x1xf32>
    %187 = vector.broadcast %186 : vector<32x1xf32> to vector<32x64xf32>
    %188 = arith.subf %178, %187 : vector<32x64xf32>
    %189 = arith.mulf %188, %188 : vector<32x64xf32>
    %cst_74 = arith.constant dense<0.000000e+00> : vector<32xf32>
    %190 = vector.multi_reduction <add>, %189, %cst_74 [1] : vector<32x64xf32> to vector<32xf32>
    %191 = vector.shape_cast %190 : vector<32xf32> to vector<32x1xf32>
    %cst_75 = arith.constant 6.400000e+01 : f32
    %192 = vector.broadcast %cst_75 : f32 to vector<32x1xf32>
    %193 = arith.divf %191, %192 : vector<32x1xf32>
    %194 = vector.broadcast %186 : vector<32x1xf32> to vector<32x64xf32>
    %195 = arith.subf %178, %194 : vector<32x64xf32>
    %cst_76 = arith.constant 9.99999974E-6 : f32
    %196 = vector.broadcast %cst_76 : f32 to vector<32x1xf32>
    %197 = arith.addf %193, %196 : vector<32x1xf32>
    %198 = math.rsqrt %197 : vector<32x1xf32>
    %199 = vector.broadcast %198 : vector<32x1xf32> to vector<32x64xf32>
    %200 = arith.mulf %195, %199 : vector<32x64xf32>
    %201 = vector.broadcast %180 : vector<1x64xf32> to vector<32x64xf32>
    %202 = arith.mulf %200, %201 : vector<32x64xf32>
    %203 = vector.broadcast %182 : vector<1x64xf32> to vector<32x64xf32>
    %204 = arith.addf %202, %203 : vector<32x64xf32>
    %205 = arith.truncf %204 : vector<32x64xf32> to vector<32x64xbf16>
    %c1_77 = arith.constant 1 : index
    %c0_78 = arith.constant 0 : index
    %c0_79 = arith.constant 0 : index
    %206 = vector.load %arg4[%c1_77, %c0_78, %c0_79] : memref<2x64x192xbf16, #tpu.memory_space<vmem>>, vector<1x64x192xbf16>
    %207 = vector.shape_cast %206 : vector<1x64x192xbf16> to vector<64x192xbf16>
    %cst_80 = arith.constant dense<0.000000e+00> : vector<32x192xf32>
    %208 = tpu.matmul %205, %207, %cst_80 {dimension_numbers = #tpu.dot_dimension_numbers<[1], [0], [0], [1], [0, 0, 1, 1], [], []>} : vector<32x64xbf16>, vector<64x192xbf16>, vector<32x192xf32> -> vector<32x192xf32>
    %209 = vector.extract_strided_slice %208 {offsets = [0, 0], sizes = [32, 64], strides = [1, 1]} : vector<32x192xf32> to vector<32x64xf32>
    %210 = vector.shape_cast %209 : vector<32x64xf32> to vector<2x16x64xf32>
    %211 = arith.truncf %210 : vector<2x16x64xf32> to vector<2x16x64xbf16>
    %212 = vector.extract_strided_slice %208 {offsets = [0, 64], sizes = [32, 64], strides = [1, 1]} : vector<32x192xf32> to vector<32x64xf32>
    %213 = vector.shape_cast %212 : vector<32x64xf32> to vector<2x16x64xf32>
    %214 = arith.truncf %213 : vector<2x16x64xf32> to vector<2x16x64xbf16>
    %215 = vector.extract_strided_slice %208 {offsets = [0, 128], sizes = [32, 64], strides = [1, 1]} : vector<32x192xf32> to vector<32x64xf32>
    %216 = vector.shape_cast %215 : vector<32x64xf32> to vector<2x16x64xf32>
    %217 = arith.truncf %216 : vector<2x16x64xf32> to vector<2x16x64xbf16>
    %218 = vector.extract_strided_slice %211 {offsets = [0, 0, 0], sizes = [2, 16, 16], strides = [1, 1, 1]} : vector<2x16x64xbf16> to vector<2x16x16xbf16>
    %219 = vector.extract_strided_slice %214 {offsets = [0, 0, 0], sizes = [2, 16, 16], strides = [1, 1, 1]} : vector<2x16x64xbf16> to vector<2x16x16xbf16>
    %220 = vector.extract_strided_slice %217 {offsets = [0, 0, 0], sizes = [2, 16, 16], strides = [1, 1, 1]} : vector<2x16x64xbf16> to vector<2x16x16xbf16>
    "tpu.trace_start"() <{level = 10 : i32, message = "bqd,bkd->bqk"}> : () -> ()
    %cst_81 = arith.constant dense<0.000000e+00> : vector<2x16x16xf32>
    %221 = tpu.matmul %218, %219, %cst_81 {dimension_numbers = #tpu.dot_dimension_numbers<[2], [2], [1], [1], [0, 0, 0, 1, 1, 1], [0], [0]>} : vector<2x16x16xbf16>, vector<2x16x16xbf16>, vector<2x16x16xf32> -> vector<2x16x16xf32>
    "tpu.trace_stop"() : () -> ()
    %222 = vector.shape_cast %7 : vector<16x16xf32> to vector<1x16x16xf32>
    %223 = vector.broadcast %222 : vector<1x16x16xf32> to vector<2x16x16xf32>
    %224 = arith.addf %221, %223 : vector<2x16x16xf32>
    %cst_82 = arith.constant dense<0xFF800000> : vector<2x16xf32>
    %225 = vector.multi_reduction <maximumf>, %224, %cst_82 [2] : vector<2x16x16xf32> to vector<2x16xf32>
    %226 = vector.shape_cast %225 : vector<2x16xf32> to vector<2x16x1xf32>
    %227 = vector.broadcast %226 : vector<2x16x1xf32> to vector<2x16x16xf32>
    %228 = arith.subf %224, %227 : vector<2x16x16xf32>
    %229 = math.exp %228 : vector<2x16x16xf32>
    %cst_83 = arith.constant dense<0.000000e+00> : vector<2x16xf32>
    %230 = vector.multi_reduction <add>, %229, %cst_83 [2] : vector<2x16x16xf32> to vector<2x16xf32>
    %231 = vector.shape_cast %230 : vector<2x16xf32> to vector<2x16x1xf32>
    %232 = tpu.reciprocal %231 {approx = true} : vector<2x16x1xf32> -> vector<2x16x1xf32>
    %233 = vector.broadcast %232 : vector<2x16x1xf32> to vector<2x16x16xf32>
    %234 = arith.mulf %229, %233 : vector<2x16x16xf32>
    %235 = arith.truncf %234 : vector<2x16x16xf32> to vector<2x16x16xbf16>
    "tpu.trace_start"() <{level = 10 : i32, message = "bqk,bkd->bqd"}> : () -> ()
    %cst_84 = arith.constant dense<0.000000e+00> : vector<2x16x16xf32>
    %236 = tpu.matmul %235, %220, %cst_84 {dimension_numbers = #tpu.dot_dimension_numbers<[2], [1], [1], [2], [0, 0, 0, 1, 1, 2], [0], [0]>} : vector<2x16x16xbf16>, vector<2x16x16xbf16>, vector<2x16x16xf32> -> vector<2x16x16xf32>
    "tpu.trace_stop"() : () -> ()
    %237 = vector.extract_strided_slice %211 {offsets = [0, 0, 16], sizes = [2, 16, 16], strides = [1, 1, 1]} : vector<2x16x64xbf16> to vector<2x16x16xbf16>
    %238 = vector.extract_strided_slice %214 {offsets = [0, 0, 16], sizes = [2, 16, 16], strides = [1, 1, 1]} : vector<2x16x64xbf16> to vector<2x16x16xbf16>
    %239 = vector.extract_strided_slice %217 {offsets = [0, 0, 16], sizes = [2, 16, 16], strides = [1, 1, 1]} : vector<2x16x64xbf16> to vector<2x16x16xbf16>
    "tpu.trace_start"() <{level = 10 : i32, message = "bqd,bkd->bqk"}> : () -> ()
    %cst_85 = arith.constant dense<0.000000e+00> : vector<2x16x16xf32>
    %240 = tpu.matmul %237, %238, %cst_85 {dimension_numbers = #tpu.dot_dimension_numbers<[2], [2], [1], [1], [0, 0, 0, 1, 1, 1], [0], [0]>} : vector<2x16x16xbf16>, vector<2x16x16xbf16>, vector<2x16x16xf32> -> vector<2x16x16xf32>
    "tpu.trace_stop"() : () -> ()
    %241 = vector.shape_cast %7 : vector<16x16xf32> to vector<1x16x16xf32>
    %242 = vector.broadcast %241 : vector<1x16x16xf32> to vector<2x16x16xf32>
    %243 = arith.addf %240, %242 : vector<2x16x16xf32>
    %cst_86 = arith.constant dense<0xFF800000> : vector<2x16xf32>
    %244 = vector.multi_reduction <maximumf>, %243, %cst_86 [2] : vector<2x16x16xf32> to vector<2x16xf32>
    %245 = vector.shape_cast %244 : vector<2x16xf32> to vector<2x16x1xf32>
    %246 = vector.broadcast %245 : vector<2x16x1xf32> to vector<2x16x16xf32>
    %247 = arith.subf %243, %246 : vector<2x16x16xf32>
    %248 = math.exp %247 : vector<2x16x16xf32>
    %cst_87 = arith.constant dense<0.000000e+00> : vector<2x16xf32>
    %249 = vector.multi_reduction <add>, %248, %cst_87 [2] : vector<2x16x16xf32> to vector<2x16xf32>
    %250 = vector.shape_cast %249 : vector<2x16xf32> to vector<2x16x1xf32>
    %251 = tpu.reciprocal %250 {approx = true} : vector<2x16x1xf32> -> vector<2x16x1xf32>
    %252 = vector.broadcast %251 : vector<2x16x1xf32> to vector<2x16x16xf32>
    %253 = arith.mulf %248, %252 : vector<2x16x16xf32>
    %254 = arith.truncf %253 : vector<2x16x16xf32> to vector<2x16x16xbf16>
    "tpu.trace_start"() <{level = 10 : i32, message = "bqk,bkd->bqd"}> : () -> ()
    %cst_88 = arith.constant dense<0.000000e+00> : vector<2x16x16xf32>
    %255 = tpu.matmul %254, %239, %cst_88 {dimension_numbers = #tpu.dot_dimension_numbers<[2], [1], [1], [2], [0, 0, 0, 1, 1, 2], [0], [0]>} : vector<2x16x16xbf16>, vector<2x16x16xbf16>, vector<2x16x16xf32> -> vector<2x16x16xf32>
    "tpu.trace_stop"() : () -> ()
    %256 = vector.extract_strided_slice %211 {offsets = [0, 0, 32], sizes = [2, 16, 16], strides = [1, 1, 1]} : vector<2x16x64xbf16> to vector<2x16x16xbf16>
    %257 = vector.extract_strided_slice %214 {offsets = [0, 0, 32], sizes = [2, 16, 16], strides = [1, 1, 1]} : vector<2x16x64xbf16> to vector<2x16x16xbf16>
    %258 = vector.extract_strided_slice %217 {offsets = [0, 0, 32], sizes = [2, 16, 16], strides = [1, 1, 1]} : vector<2x16x64xbf16> to vector<2x16x16xbf16>
    "tpu.trace_start"() <{level = 10 : i32, message = "bqd,bkd->bqk"}> : () -> ()
    %cst_89 = arith.constant dense<0.000000e+00> : vector<2x16x16xf32>
    %259 = tpu.matmul %256, %257, %cst_89 {dimension_numbers = #tpu.dot_dimension_numbers<[2], [2], [1], [1], [0, 0, 0, 1, 1, 1], [0], [0]>} : vector<2x16x16xbf16>, vector<2x16x16xbf16>, vector<2x16x16xf32> -> vector<2x16x16xf32>
    "tpu.trace_stop"() : () -> ()
    %260 = vector.shape_cast %7 : vector<16x16xf32> to vector<1x16x16xf32>
    %261 = vector.broadcast %260 : vector<1x16x16xf32> to vector<2x16x16xf32>
    %262 = arith.addf %259, %261 : vector<2x16x16xf32>
    %cst_90 = arith.constant dense<0xFF800000> : vector<2x16xf32>
    %263 = vector.multi_reduction <maximumf>, %262, %cst_90 [2] : vector<2x16x16xf32> to vector<2x16xf32>
    %264 = vector.shape_cast %263 : vector<2x16xf32> to vector<2x16x1xf32>
    %265 = vector.broadcast %264 : vector<2x16x1xf32> to vector<2x16x16xf32>
    %266 = arith.subf %262, %265 : vector<2x16x16xf32>
    %267 = math.exp %266 : vector<2x16x16xf32>
    %cst_91 = arith.constant dense<0.000000e+00> : vector<2x16xf32>
    %268 = vector.multi_reduction <add>, %267, %cst_91 [2] : vector<2x16x16xf32> to vector<2x16xf32>
    %269 = vector.shape_cast %268 : vector<2x16xf32> to vector<2x16x1xf32>
    %270 = tpu.reciprocal %269 {approx = true} : vector<2x16x1xf32> -> vector<2x16x1xf32>
    %271 = vector.broadcast %270 : vector<2x16x1xf32> to vector<2x16x16xf32>
    %272 = arith.mulf %267, %271 : vector<2x16x16xf32>
    %273 = arith.truncf %272 : vector<2x16x16xf32> to vector<2x16x16xbf16>
    "tpu.trace_start"() <{level = 10 : i32, message = "bqk,bkd->bqd"}> : () -> ()
    %cst_92 = arith.constant dense<0.000000e+00> : vector<2x16x16xf32>
    %274 = tpu.matmul %273, %258, %cst_92 {dimension_numbers = #tpu.dot_dimension_numbers<[2], [1], [1], [2], [0, 0, 0, 1, 1, 2], [0], [0]>} : vector<2x16x16xbf16>, vector<2x16x16xbf16>, vector<2x16x16xf32> -> vector<2x16x16xf32>
    "tpu.trace_stop"() : () -> ()
    %275 = vector.extract_strided_slice %211 {offsets = [0, 0, 48], sizes = [2, 16, 16], strides = [1, 1, 1]} : vector<2x16x64xbf16> to vector<2x16x16xbf16>
    %276 = vector.extract_strided_slice %214 {offsets = [0, 0, 48], sizes = [2, 16, 16], strides = [1, 1, 1]} : vector<2x16x64xbf16> to vector<2x16x16xbf16>
    %277 = vector.extract_strided_slice %217 {offsets = [0, 0, 48], sizes = [2, 16, 16], strides = [1, 1, 1]} : vector<2x16x64xbf16> to vector<2x16x16xbf16>
    "tpu.trace_start"() <{level = 10 : i32, message = "bqd,bkd->bqk"}> : () -> ()
    %cst_93 = arith.constant dense<0.000000e+00> : vector<2x16x16xf32>
    %278 = tpu.matmul %275, %276, %cst_93 {dimension_numbers = #tpu.dot_dimension_numbers<[2], [2], [1], [1], [0, 0, 0, 1, 1, 1], [0], [0]>} : vector<2x16x16xbf16>, vector<2x16x16xbf16>, vector<2x16x16xf32> -> vector<2x16x16xf32>
    "tpu.trace_stop"() : () -> ()
    %279 = vector.shape_cast %7 : vector<16x16xf32> to vector<1x16x16xf32>
    %280 = vector.broadcast %279 : vector<1x16x16xf32> to vector<2x16x16xf32>
    %281 = arith.addf %278, %280 : vector<2x16x16xf32>
    %cst_94 = arith.constant dense<0xFF800000> : vector<2x16xf32>
    %282 = vector.multi_reduction <maximumf>, %281, %cst_94 [2] : vector<2x16x16xf32> to vector<2x16xf32>
    %283 = vector.shape_cast %282 : vector<2x16xf32> to vector<2x16x1xf32>
    %284 = vector.broadcast %283 : vector<2x16x1xf32> to vector<2x16x16xf32>
    %285 = arith.subf %281, %284 : vector<2x16x16xf32>
    %286 = math.exp %285 : vector<2x16x16xf32>
    %cst_95 = arith.constant dense<0.000000e+00> : vector<2x16xf32>
    %287 = vector.multi_reduction <add>, %286, %cst_95 [2] : vector<2x16x16xf32> to vector<2x16xf32>
    %288 = vector.shape_cast %287 : vector<2x16xf32> to vector<2x16x1xf32>
    %289 = tpu.reciprocal %288 {approx = true} : vector<2x16x1xf32> -> vector<2x16x1xf32>
    %290 = vector.broadcast %289 : vector<2x16x1xf32> to vector<2x16x16xf32>
    %291 = arith.mulf %286, %290 : vector<2x16x16xf32>
    %292 = arith.truncf %291 : vector<2x16x16xf32> to vector<2x16x16xbf16>
    "tpu.trace_start"() <{level = 10 : i32, message = "bqk,bkd->bqd"}> : () -> ()
    %cst_96 = arith.constant dense<0.000000e+00> : vector<2x16x16xf32>
    %293 = tpu.matmul %292, %277, %cst_96 {dimension_numbers = #tpu.dot_dimension_numbers<[2], [1], [1], [2], [0, 0, 0, 1, 1, 2], [0], [0]>} : vector<2x16x16xbf16>, vector<2x16x16xbf16>, vector<2x16x16xf32> -> vector<2x16x16xf32>
    "tpu.trace_stop"() : () -> ()
    %294 = tpu.concatenate %236, %255, %274, %293 in 2 : vector<2x16x16xf32>, vector<2x16x16xf32>, vector<2x16x16xf32>, vector<2x16x16xf32> -> vector<2x16x64xf32>
    %295 = vector.shape_cast %294 : vector<2x16x64xf32> to vector<32x64xf32>
    %296 = arith.truncf %295 : vector<32x64xf32> to vector<32x64xbf16>
    %c1_97 = arith.constant 1 : index
    %c0_98 = arith.constant 0 : index
    %c0_99 = arith.constant 0 : index
    %297 = vector.load %arg5[%c1_97, %c0_98, %c0_99] : memref<2x64x64xbf16, #tpu.memory_space<vmem>>, vector<1x64x64xbf16>
    %298 = vector.shape_cast %297 : vector<1x64x64xbf16> to vector<64x64xbf16>
    %cst_100 = arith.constant dense<0.000000e+00> : vector<32x64xf32>
    %299 = tpu.matmul %296, %298, %cst_100 {dimension_numbers = #tpu.dot_dimension_numbers<[1], [0], [0], [1], [0, 0, 1, 1], [], []>} : vector<32x64xbf16>, vector<64x64xbf16>, vector<32x64xf32> -> vector<32x64xf32>
    %c1_101 = arith.constant 1 : index
    %c0_102 = arith.constant 0 : index
    %c0_103 = arith.constant 0 : index
    %300 = vector.load %arg6[%c1_101, %c0_102, %c0_103] : memref<2x1x64xf32, #tpu.memory_space<vmem>>, vector<1x1x64xf32>
    %301 = vector.shape_cast %300 : vector<1x1x64xf32> to vector<1x64xf32>
    %302 = vector.broadcast %301 : vector<1x64xf32> to vector<32x64xf32>
    %303 = arith.addf %299, %302 : vector<32x64xf32>
    %304 = arith.addf %178, %303 : vector<32x64xf32>
    %c1_104 = arith.constant 1 : index
    %c0_105 = arith.constant 0 : index
    %c0_106 = arith.constant 0 : index
    %305 = vector.load %arg7[%c1_104, %c0_105, %c0_106] : memref<2x1x64xf32, #tpu.memory_space<vmem>>, vector<1x1x64xf32>
    %306 = vector.shape_cast %305 : vector<1x1x64xf32> to vector<1x64xf32>
    %c1_107 = arith.constant 1 : index
    %c0_108 = arith.constant 0 : index
    %c0_109 = arith.constant 0 : index
    %307 = vector.load %arg8[%c1_107, %c0_108, %c0_109] : memref<2x1x64xf32, #tpu.memory_space<vmem>>, vector<1x1x64xf32>
    %308 = vector.shape_cast %307 : vector<1x1x64xf32> to vector<1x64xf32>
    %cst_110 = arith.constant dense<0.000000e+00> : vector<32xf32>
    %309 = vector.multi_reduction <add>, %304, %cst_110 [1] : vector<32x64xf32> to vector<32xf32>
    %310 = vector.shape_cast %309 : vector<32xf32> to vector<32x1xf32>
    %cst_111 = arith.constant 6.400000e+01 : f32
    %311 = vector.broadcast %cst_111 : f32 to vector<32x1xf32>
    %312 = arith.divf %310, %311 : vector<32x1xf32>
    %313 = vector.broadcast %312 : vector<32x1xf32> to vector<32x64xf32>
    %314 = arith.subf %304, %313 : vector<32x64xf32>
    %315 = arith.mulf %314, %314 : vector<32x64xf32>
    %cst_112 = arith.constant dense<0.000000e+00> : vector<32xf32>
    %316 = vector.multi_reduction <add>, %315, %cst_112 [1] : vector<32x64xf32> to vector<32xf32>
    %317 = vector.shape_cast %316 : vector<32xf32> to vector<32x1xf32>
    %cst_113 = arith.constant 6.400000e+01 : f32
    %318 = vector.broadcast %cst_113 : f32 to vector<32x1xf32>
    %319 = arith.divf %317, %318 : vector<32x1xf32>
    %320 = vector.broadcast %312 : vector<32x1xf32> to vector<32x64xf32>
    %321 = arith.subf %304, %320 : vector<32x64xf32>
    %cst_114 = arith.constant 9.99999974E-6 : f32
    %322 = vector.broadcast %cst_114 : f32 to vector<32x1xf32>
    %323 = arith.addf %319, %322 : vector<32x1xf32>
    %324 = math.rsqrt %323 : vector<32x1xf32>
    %325 = vector.broadcast %324 : vector<32x1xf32> to vector<32x64xf32>
    %326 = arith.mulf %321, %325 : vector<32x64xf32>
    %327 = vector.broadcast %306 : vector<1x64xf32> to vector<32x64xf32>
    %328 = arith.mulf %326, %327 : vector<32x64xf32>
    %329 = vector.broadcast %308 : vector<1x64xf32> to vector<32x64xf32>
    %330 = arith.addf %328, %329 : vector<32x64xf32>
    %331 = arith.truncf %330 : vector<32x64xf32> to vector<32x64xbf16>
    %c1_115 = arith.constant 1 : index
    %c0_116 = arith.constant 0 : index
    %c0_117 = arith.constant 0 : index
    %332 = vector.load %arg9[%c1_115, %c0_116, %c0_117] : memref<2x64x256xbf16, #tpu.memory_space<vmem>>, vector<1x64x256xbf16>
    %333 = vector.shape_cast %332 : vector<1x64x256xbf16> to vector<64x256xbf16>
    %cst_118 = arith.constant dense<0.000000e+00> : vector<32x256xf32>
    %334 = tpu.matmul %331, %333, %cst_118 {dimension_numbers = #tpu.dot_dimension_numbers<[1], [0], [0], [1], [0, 0, 1, 1], [], []>} : vector<32x64xbf16>, vector<64x256xbf16>, vector<32x256xf32> -> vector<32x256xf32>
    %c1_119 = arith.constant 1 : index
    %c0_120 = arith.constant 0 : index
    %c0_121 = arith.constant 0 : index
    %335 = vector.load %arg10[%c1_119, %c0_120, %c0_121] : memref<2x1x256xf32, #tpu.memory_space<vmem>>, vector<1x1x256xf32>
    %336 = vector.shape_cast %335 : vector<1x1x256xf32> to vector<1x256xf32>
    %337 = vector.broadcast %336 : vector<1x256xf32> to vector<32x256xf32>
    %338 = arith.addf %334, %337 : vector<32x256xf32>
    %cst_122 = arith.constant 0.000000e+00 : f32
    %339 = vector.broadcast %cst_122 : f32 to vector<32x256xf32>
    %340 = arith.maximumf %338, %339 : vector<32x256xf32>
    %341 = arith.truncf %340 : vector<32x256xf32> to vector<32x256xbf16>
    %c1_123 = arith.constant 1 : index
    %c0_124 = arith.constant 0 : index
    %c0_125 = arith.constant 0 : index
    %342 = vector.load %arg11[%c1_123, %c0_124, %c0_125] : memref<2x256x64xbf16, #tpu.memory_space<vmem>>, vector<1x256x64xbf16>
    %343 = vector.shape_cast %342 : vector<1x256x64xbf16> to vector<256x64xbf16>
    %cst_126 = arith.constant dense<0.000000e+00> : vector<32x64xf32>
    %344 = tpu.matmul %341, %343, %cst_126 {dimension_numbers = #tpu.dot_dimension_numbers<[1], [0], [0], [1], [0, 0, 1, 1], [], []>} : vector<32x256xbf16>, vector<256x64xbf16>, vector<32x64xf32> -> vector<32x64xf32>
    %c1_127 = arith.constant 1 : index
    %c0_128 = arith.constant 0 : index
    %c0_129 = arith.constant 0 : index
    %345 = vector.load %arg12[%c1_127, %c0_128, %c0_129] : memref<2x1x64xf32, #tpu.memory_space<vmem>>, vector<1x1x64xf32>
    %346 = vector.shape_cast %345 : vector<1x1x64xf32> to vector<1x64xf32>
    %347 = vector.broadcast %346 : vector<1x64xf32> to vector<32x64xf32>
    %348 = arith.addf %344, %347 : vector<32x64xf32>
    %349 = arith.addf %304, %348 : vector<32x64xf32>
    %c0_130 = arith.constant 0 : index
    %c0_131 = arith.constant 0 : index
    %350 = vector.load %arg13[%c0_130, %c0_131] : memref<1x64xf32, #tpu.memory_space<vmem>>, vector<1x64xf32>
    %c0_132 = arith.constant 0 : index
    %c0_133 = arith.constant 0 : index
    %351 = vector.load %arg14[%c0_132, %c0_133] : memref<1x64xf32, #tpu.memory_space<vmem>>, vector<1x64xf32>
    %cst_134 = arith.constant dense<0.000000e+00> : vector<32xf32>
    %352 = vector.multi_reduction <add>, %349, %cst_134 [1] : vector<32x64xf32> to vector<32xf32>
    %353 = vector.shape_cast %352 : vector<32xf32> to vector<32x1xf32>
    %cst_135 = arith.constant 6.400000e+01 : f32
    %354 = vector.broadcast %cst_135 : f32 to vector<32x1xf32>
    %355 = arith.divf %353, %354 : vector<32x1xf32>
    %356 = vector.broadcast %355 : vector<32x1xf32> to vector<32x64xf32>
    %357 = arith.subf %349, %356 : vector<32x64xf32>
    %358 = arith.mulf %357, %357 : vector<32x64xf32>
    %cst_136 = arith.constant dense<0.000000e+00> : vector<32xf32>
    %359 = vector.multi_reduction <add>, %358, %cst_136 [1] : vector<32x64xf32> to vector<32xf32>
    %360 = vector.shape_cast %359 : vector<32xf32> to vector<32x1xf32>
    %cst_137 = arith.constant 6.400000e+01 : f32
    %361 = vector.broadcast %cst_137 : f32 to vector<32x1xf32>
    %362 = arith.divf %360, %361 : vector<32x1xf32>
    %363 = vector.broadcast %355 : vector<32x1xf32> to vector<32x64xf32>
    %364 = arith.subf %349, %363 : vector<32x64xf32>
    %cst_138 = arith.constant 9.99999974E-6 : f32
    %365 = vector.broadcast %cst_138 : f32 to vector<32x1xf32>
    %366 = arith.addf %362, %365 : vector<32x1xf32>
    %367 = math.rsqrt %366 : vector<32x1xf32>
    %368 = vector.broadcast %367 : vector<32x1xf32> to vector<32x64xf32>
    %369 = arith.mulf %364, %368 : vector<32x64xf32>
    %370 = vector.broadcast %350 : vector<1x64xf32> to vector<32x64xf32>
    %371 = arith.mulf %369, %370 : vector<32x64xf32>
    %372 = vector.broadcast %351 : vector<1x64xf32> to vector<32x64xf32>
    %373 = arith.addf %371, %372 : vector<32x64xf32>
    %374 = arith.truncf %373 : vector<32x64xf32> to vector<32x64xbf16>
    %c0_139 = arith.constant 0 : index
    %c0_140 = arith.constant 0 : index
    %375 = vector.load %arg15[%c0_139, %c0_140] : memref<64x128xbf16, #tpu.memory_space<vmem>>, vector<64x128xbf16>
    %cst_141 = arith.constant dense<0.000000e+00> : vector<32x128xf32>
    %376 = tpu.matmul %374, %375, %cst_141 {dimension_numbers = #tpu.dot_dimension_numbers<[1], [0], [0], [1], [0, 0, 1, 1], [], []>} : vector<32x64xbf16>, vector<64x128xbf16>, vector<32x128xf32> -> vector<32x128xf32>
    %c0_142 = arith.constant 0 : index
    %c0_143 = arith.constant 0 : index
    %377 = vector.load %arg16[%c0_142, %c0_143] : memref<1x128xf32, #tpu.memory_space<vmem>>, vector<1x128xf32>
    %378 = vector.broadcast %377 : vector<1x128xf32> to vector<32x128xf32>
    %379 = arith.addf %376, %378 : vector<32x128xf32>
    %380 = vector.shape_cast %379 : vector<32x128xf32> to vector<2x16x128xf32>
    %c0_144 = arith.constant 0 : index
    %c0_145 = arith.constant 0 : index
    %c0_146 = arith.constant 0 : index
    %381 = vector.load %arg17[%c0_144, %c0_145, %c0_146] : memref<2x16x128xf32, #tpu.memory_space<vmem>>, vector<2x16x128xf32>
    tpu.vector_store %arg17[%c0_144, %c0_145, %c0_146], %380 {strides = array<i32>} : memref<2x16x128xf32, #tpu.memory_space<vmem>>, vector<2x16x128xf32>,
    %c0_147 = arith.constant 0 : index
    %c0_148 = arith.constant 0 : index
    %c0_149 = arith.constant 0 : index
    %382 = vector.load %arg2[%c0_147, %c0_148, %c0_149] : memref<2x1x64xf32, #tpu.memory_space<vmem>>, vector<1x1x64xf32>
    %383 = vector.shape_cast %382 : vector<1x1x64xf32> to vector<1x64xf32>
    %c0_150 = arith.constant 0 : index
    %c0_151 = arith.constant 0 : index
    %c0_152 = arith.constant 0 : index
    %384 = vector.load %arg3[%c0_150, %c0_151, %c0_152] : memref<2x1x64xf32, #tpu.memory_space<vmem>>, vector<1x1x64xf32>
    %385 = vector.shape_cast %384 : vector<1x1x64xf32> to vector<1x64xf32>
    %cst_153 = arith.constant dense<0.000000e+00> : vector<32xf32>
    %386 = vector.multi_reduction <add>, %349, %cst_153 [1] : vector<32x64xf32> to vector<32xf32>
    %387 = vector.shape_cast %386 : vector<32xf32> to vector<32x1xf32>
    %cst_154 = arith.constant 6.400000e+01 : f32
    %388 = vector.broadcast %cst_154 : f32 to vector<32x1xf32>
    %389 = arith.divf %387, %388 : vector<32x1xf32>
    %390 = vector.broadcast %389 : vector<32x1xf32> to vector<32x64xf32>
    %391 = arith.subf %349, %390 : vector<32x64xf32>
    %392 = arith.mulf %391, %391 : vector<32x64xf32>
    %cst_155 = arith.constant dense<0.000000e+00> : vector<32xf32>
    %393 = vector.multi_reduction <add>, %392, %cst_155 [1] : vector<32x64xf32> to vector<32xf32>
    %394 = vector.shape_cast %393 : vector<32xf32> to vector<32x1xf32>
    %cst_156 = arith.constant 6.400000e+01 : f32
    %395 = vector.broadcast %cst_156 : f32 to vector<32x1xf32>
    %396 = arith.divf %394, %395 : vector<32x1xf32>
    %397 = vector.broadcast %389 : vector<32x1xf32> to vector<32x64xf32>
    %398 = arith.subf %349, %397 : vector<32x64xf32>
    %cst_157 = arith.constant 9.99999974E-6 : f32
    %399 = vector.broadcast %cst_157 : f32 to vector<32x1xf32>
    %400 = arith.addf %396, %399 : vector<32x1xf32>
    %401 = math.rsqrt %400 : vector<32x1xf32>
    %402 = vector.broadcast %401 : vector<32x1xf32> to vector<32x64xf32>
    %403 = arith.mulf %398, %402 : vector<32x64xf32>
    %404 = vector.broadcast %383 : vector<1x64xf32> to vector<32x64xf32>
    %405 = arith.mulf %403, %404 : vector<32x64xf32>
    %406 = vector.broadcast %385 : vector<1x64xf32> to vector<32x64xf32>
    %407 = arith.addf %405, %406 : vector<32x64xf32>
    %408 = arith.truncf %407 : vector<32x64xf32> to vector<32x64xbf16>
    %c0_158 = arith.constant 0 : index
    %c0_159 = arith.constant 0 : index
    %c0_160 = arith.constant 0 : index
    %409 = vector.load %arg4[%c0_158, %c0_159, %c0_160] : memref<2x64x192xbf16, #tpu.memory_space<vmem>>, vector<1x64x192xbf16>
    %410 = vector.shape_cast %409 : vector<1x64x192xbf16> to vector<64x192xbf16>
    %cst_161 = arith.constant dense<0.000000e+00> : vector<32x192xf32>
    %411 = tpu.matmul %408, %410, %cst_161 {dimension_numbers = #tpu.dot_dimension_numbers<[1], [0], [0], [1], [0, 0, 1, 1], [], []>} : vector<32x64xbf16>, vector<64x192xbf16>, vector<32x192xf32> -> vector<32x192xf32>
    %412 = vector.extract_strided_slice %411 {offsets = [0, 0], sizes = [32, 64], strides = [1, 1]} : vector<32x192xf32> to vector<32x64xf32>
    %413 = vector.shape_cast %412 : vector<32x64xf32> to vector<2x16x64xf32>
    %414 = arith.truncf %413 : vector<2x16x64xf32> to vector<2x16x64xbf16>
    %415 = vector.extract_strided_slice %411 {offsets = [0, 64], sizes = [32, 64], strides = [1, 1]} : vector<32x192xf32> to vector<32x64xf32>
    %416 = vector.shape_cast %415 : vector<32x64xf32> to vector<2x16x64xf32>
    %417 = arith.truncf %416 : vector<2x16x64xf32> to vector<2x16x64xbf16>
    %418 = vector.extract_strided_slice %411 {offsets = [0, 128], sizes = [32, 64], strides = [1, 1]} : vector<32x192xf32> to vector<32x64xf32>
    %419 = vector.shape_cast %418 : vector<32x64xf32> to vector<2x16x64xf32>
    %420 = arith.truncf %419 : vector<2x16x64xf32> to vector<2x16x64xbf16>
    %421 = vector.extract_strided_slice %414 {offsets = [0, 0, 0], sizes = [2, 16, 16], strides = [1, 1, 1]} : vector<2x16x64xbf16> to vector<2x16x16xbf16>
    %422 = vector.extract_strided_slice %417 {offsets = [0, 0, 0], sizes = [2, 16, 16], strides = [1, 1, 1]} : vector<2x16x64xbf16> to vector<2x16x16xbf16>
    %423 = vector.extract_strided_slice %420 {offsets = [0, 0, 0], sizes = [2, 16, 16], strides = [1, 1, 1]} : vector<2x16x64xbf16> to vector<2x16x16xbf16>
    "tpu.trace_start"() <{level = 10 : i32, message = "bqd,bkd->bqk"}> : () -> ()
    %cst_162 = arith.constant dense<0.000000e+00> : vector<2x16x16xf32>
    %424 = tpu.matmul %421, %422, %cst_162 {dimension_numbers = #tpu.dot_dimension_numbers<[2], [2], [1], [1], [0, 0, 0, 1, 1, 1], [0], [0]>} : vector<2x16x16xbf16>, vector<2x16x16xbf16>, vector<2x16x16xf32> -> vector<2x16x16xf32>
    "tpu.trace_stop"() : () -> ()
    %425 = vector.shape_cast %7 : vector<16x16xf32> to vector<1x16x16xf32>
    %426 = vector.broadcast %425 : vector<1x16x16xf32> to vector<2x16x16xf32>
    %427 = arith.addf %424, %426 : vector<2x16x16xf32>
    %cst_163 = arith.constant dense<0xFF800000> : vector<2x16xf32>
    %428 = vector.multi_reduction <maximumf>, %427, %cst_163 [2] : vector<2x16x16xf32> to vector<2x16xf32>
    %429 = vector.shape_cast %428 : vector<2x16xf32> to vector<2x16x1xf32>
    %430 = vector.broadcast %429 : vector<2x16x1xf32> to vector<2x16x16xf32>
    %431 = arith.subf %427, %430 : vector<2x16x16xf32>
    %432 = math.exp %431 : vector<2x16x16xf32>
    %cst_164 = arith.constant dense<0.000000e+00> : vector<2x16xf32>
    %433 = vector.multi_reduction <add>, %432, %cst_164 [2] : vector<2x16x16xf32> to vector<2x16xf32>
    %434 = vector.shape_cast %433 : vector<2x16xf32> to vector<2x16x1xf32>
    %435 = tpu.reciprocal %434 {approx = true} : vector<2x16x1xf32> -> vector<2x16x1xf32>
    %436 = vector.broadcast %435 : vector<2x16x1xf32> to vector<2x16x16xf32>
    %437 = arith.mulf %432, %436 : vector<2x16x16xf32>
    %438 = arith.truncf %437 : vector<2x16x16xf32> to vector<2x16x16xbf16>
    "tpu.trace_start"() <{level = 10 : i32, message = "bqk,bkd->bqd"}> : () -> ()
    %cst_165 = arith.constant dense<0.000000e+00> : vector<2x16x16xf32>
    %439 = tpu.matmul %438, %423, %cst_165 {dimension_numbers = #tpu.dot_dimension_numbers<[2], [1], [1], [2], [0, 0, 0, 1, 1, 2], [0], [0]>} : vector<2x16x16xbf16>, vector<2x16x16xbf16>, vector<2x16x16xf32> -> vector<2x16x16xf32>
    "tpu.trace_stop"() : () -> ()
    %440 = vector.extract_strided_slice %414 {offsets = [0, 0, 16], sizes = [2, 16, 16], strides = [1, 1, 1]} : vector<2x16x64xbf16> to vector<2x16x16xbf16>
    %441 = vector.extract_strided_slice %417 {offsets = [0, 0, 16], sizes = [2, 16, 16], strides = [1, 1, 1]} : vector<2x16x64xbf16> to vector<2x16x16xbf16>
    %442 = vector.extract_strided_slice %420 {offsets = [0, 0, 16], sizes = [2, 16, 16], strides = [1, 1, 1]} : vector<2x16x64xbf16> to vector<2x16x16xbf16>
    "tpu.trace_start"() <{level = 10 : i32, message = "bqd,bkd->bqk"}> : () -> ()
    %cst_166 = arith.constant dense<0.000000e+00> : vector<2x16x16xf32>
    %443 = tpu.matmul %440, %441, %cst_166 {dimension_numbers = #tpu.dot_dimension_numbers<[2], [2], [1], [1], [0, 0, 0, 1, 1, 1], [0], [0]>} : vector<2x16x16xbf16>, vector<2x16x16xbf16>, vector<2x16x16xf32> -> vector<2x16x16xf32>
    "tpu.trace_stop"() : () -> ()
    %444 = vector.shape_cast %7 : vector<16x16xf32> to vector<1x16x16xf32>
    %445 = vector.broadcast %444 : vector<1x16x16xf32> to vector<2x16x16xf32>
    %446 = arith.addf %443, %445 : vector<2x16x16xf32>
    %cst_167 = arith.constant dense<0xFF800000> : vector<2x16xf32>
    %447 = vector.multi_reduction <maximumf>, %446, %cst_167 [2] : vector<2x16x16xf32> to vector<2x16xf32>
    %448 = vector.shape_cast %447 : vector<2x16xf32> to vector<2x16x1xf32>
    %449 = vector.broadcast %448 : vector<2x16x1xf32> to vector<2x16x16xf32>
    %450 = arith.subf %446, %449 : vector<2x16x16xf32>
    %451 = math.exp %450 : vector<2x16x16xf32>
    %cst_168 = arith.constant dense<0.000000e+00> : vector<2x16xf32>
    %452 = vector.multi_reduction <add>, %451, %cst_168 [2] : vector<2x16x16xf32> to vector<2x16xf32>
    %453 = vector.shape_cast %452 : vector<2x16xf32> to vector<2x16x1xf32>
    %454 = tpu.reciprocal %453 {approx = true} : vector<2x16x1xf32> -> vector<2x16x1xf32>
    %455 = vector.broadcast %454 : vector<2x16x1xf32> to vector<2x16x16xf32>
    %456 = arith.mulf %451, %455 : vector<2x16x16xf32>
    %457 = arith.truncf %456 : vector<2x16x16xf32> to vector<2x16x16xbf16>
    "tpu.trace_start"() <{level = 10 : i32, message = "bqk,bkd->bqd"}> : () -> ()
    %cst_169 = arith.constant dense<0.000000e+00> : vector<2x16x16xf32>
    %458 = tpu.matmul %457, %442, %cst_169 {dimension_numbers = #tpu.dot_dimension_numbers<[2], [1], [1], [2], [0, 0, 0, 1, 1, 2], [0], [0]>} : vector<2x16x16xbf16>, vector<2x16x16xbf16>, vector<2x16x16xf32> -> vector<2x16x16xf32>
    "tpu.trace_stop"() : () -> ()
    %459 = vector.extract_strided_slice %414 {offsets = [0, 0, 32], sizes = [2, 16, 16], strides = [1, 1, 1]} : vector<2x16x64xbf16> to vector<2x16x16xbf16>
    %460 = vector.extract_strided_slice %417 {offsets = [0, 0, 32], sizes = [2, 16, 16], strides = [1, 1, 1]} : vector<2x16x64xbf16> to vector<2x16x16xbf16>
    %461 = vector.extract_strided_slice %420 {offsets = [0, 0, 32], sizes = [2, 16, 16], strides = [1, 1, 1]} : vector<2x16x64xbf16> to vector<2x16x16xbf16>
    "tpu.trace_start"() <{level = 10 : i32, message = "bqd,bkd->bqk"}> : () -> ()
    %cst_170 = arith.constant dense<0.000000e+00> : vector<2x16x16xf32>
    %462 = tpu.matmul %459, %460, %cst_170 {dimension_numbers = #tpu.dot_dimension_numbers<[2], [2], [1], [1], [0, 0, 0, 1, 1, 1], [0], [0]>} : vector<2x16x16xbf16>, vector<2x16x16xbf16>, vector<2x16x16xf32> -> vector<2x16x16xf32>
    "tpu.trace_stop"() : () -> ()
    %463 = vector.shape_cast %7 : vector<16x16xf32> to vector<1x16x16xf32>
    %464 = vector.broadcast %463 : vector<1x16x16xf32> to vector<2x16x16xf32>
    %465 = arith.addf %462, %464 : vector<2x16x16xf32>
    %cst_171 = arith.constant dense<0xFF800000> : vector<2x16xf32>
    %466 = vector.multi_reduction <maximumf>, %465, %cst_171 [2] : vector<2x16x16xf32> to vector<2x16xf32>
    %467 = vector.shape_cast %466 : vector<2x16xf32> to vector<2x16x1xf32>
    %468 = vector.broadcast %467 : vector<2x16x1xf32> to vector<2x16x16xf32>
    %469 = arith.subf %465, %468 : vector<2x16x16xf32>
    %470 = math.exp %469 : vector<2x16x16xf32>
    %cst_172 = arith.constant dense<0.000000e+00> : vector<2x16xf32>
    %471 = vector.multi_reduction <add>, %470, %cst_172 [2] : vector<2x16x16xf32> to vector<2x16xf32>
    %472 = vector.shape_cast %471 : vector<2x16xf32> to vector<2x16x1xf32>
    %473 = tpu.reciprocal %472 {approx = true} : vector<2x16x1xf32> -> vector<2x16x1xf32>
    %474 = vector.broadcast %473 : vector<2x16x1xf32> to vector<2x16x16xf32>
    %475 = arith.mulf %470, %474 : vector<2x16x16xf32>
    %476 = arith.truncf %475 : vector<2x16x16xf32> to vector<2x16x16xbf16>
    "tpu.trace_start"() <{level = 10 : i32, message = "bqk,bkd->bqd"}> : () -> ()
    %cst_173 = arith.constant dense<0.000000e+00> : vector<2x16x16xf32>
    %477 = tpu.matmul %476, %461, %cst_173 {dimension_numbers = #tpu.dot_dimension_numbers<[2], [1], [1], [2], [0, 0, 0, 1, 1, 2], [0], [0]>} : vector<2x16x16xbf16>, vector<2x16x16xbf16>, vector<2x16x16xf32> -> vector<2x16x16xf32>
    "tpu.trace_stop"() : () -> ()
    %478 = vector.extract_strided_slice %414 {offsets = [0, 0, 48], sizes = [2, 16, 16], strides = [1, 1, 1]} : vector<2x16x64xbf16> to vector<2x16x16xbf16>
    %479 = vector.extract_strided_slice %417 {offsets = [0, 0, 48], sizes = [2, 16, 16], strides = [1, 1, 1]} : vector<2x16x64xbf16> to vector<2x16x16xbf16>
    %480 = vector.extract_strided_slice %420 {offsets = [0, 0, 48], sizes = [2, 16, 16], strides = [1, 1, 1]} : vector<2x16x64xbf16> to vector<2x16x16xbf16>
    "tpu.trace_start"() <{level = 10 : i32, message = "bqd,bkd->bqk"}> : () -> ()
    %cst_174 = arith.constant dense<0.000000e+00> : vector<2x16x16xf32>
    %481 = tpu.matmul %478, %479, %cst_174 {dimension_numbers = #tpu.dot_dimension_numbers<[2], [2], [1], [1], [0, 0, 0, 1, 1, 1], [0], [0]>} : vector<2x16x16xbf16>, vector<2x16x16xbf16>, vector<2x16x16xf32> -> vector<2x16x16xf32>
    "tpu.trace_stop"() : () -> ()
    %482 = vector.shape_cast %7 : vector<16x16xf32> to vector<1x16x16xf32>
    %483 = vector.broadcast %482 : vector<1x16x16xf32> to vector<2x16x16xf32>
    %484 = arith.addf %481, %483 : vector<2x16x16xf32>
    %cst_175 = arith.constant dense<0xFF800000> : vector<2x16xf32>
    %485 = vector.multi_reduction <maximumf>, %484, %cst_175 [2] : vector<2x16x16xf32> to vector<2x16xf32>
    %486 = vector.shape_cast %485 : vector<2x16xf32> to vector<2x16x1xf32>
    %487 = vector.broadcast %486 : vector<2x16x1xf32> to vector<2x16x16xf32>
    %488 = arith.subf %484, %487 : vector<2x16x16xf32>
    %489 = math.exp %488 : vector<2x16x16xf32>
    %cst_176 = arith.constant dense<0.000000e+00> : vector<2x16xf32>
    %490 = vector.multi_reduction <add>, %489, %cst_176 [2] : vector<2x16x16xf32> to vector<2x16xf32>
    %491 = vector.shape_cast %490 : vector<2x16xf32> to vector<2x16x1xf32>
    %492 = tpu.reciprocal %491 {approx = true} : vector<2x16x1xf32> -> vector<2x16x1xf32>
    %493 = vector.broadcast %492 : vector<2x16x1xf32> to vector<2x16x16xf32>
    %494 = arith.mulf %489, %493 : vector<2x16x16xf32>
    %495 = arith.truncf %494 : vector<2x16x16xf32> to vector<2x16x16xbf16>
    "tpu.trace_start"() <{level = 10 : i32, message = "bqk,bkd->bqd"}> : () -> ()
    %cst_177 = arith.constant dense<0.000000e+00> : vector<2x16x16xf32>
    %496 = tpu.matmul %495, %480, %cst_177 {dimension_numbers = #tpu.dot_dimension_numbers<[2], [1], [1], [2], [0, 0, 0, 1, 1, 2], [0], [0]>} : vector<2x16x16xbf16>, vector<2x16x16xbf16>, vector<2x16x16xf32> -> vector<2x16x16xf32>
    "tpu.trace_stop"() : () -> ()
    %497 = tpu.concatenate %439, %458, %477, %496 in 2 : vector<2x16x16xf32>, vector<2x16x16xf32>, vector<2x16x16xf32>, vector<2x16x16xf32> -> vector<2x16x64xf32>
    %498 = vector.shape_cast %497 : vector<2x16x64xf32> to vector<32x64xf32>
    %499 = arith.truncf %498 : vector<32x64xf32> to vector<32x64xbf16>
    %c0_178 = arith.constant 0 : index
    %c0_179 = arith.constant 0 : index
    %c0_180 = arith.constant 0 : index
    %500 = vector.load %arg5[%c0_178, %c0_179, %c0_180] : memref<2x64x64xbf16, #tpu.memory_space<vmem>>, vector<1x64x64xbf16>
    %501 = vector.shape_cast %500 : vector<1x64x64xbf16> to vector<64x64xbf16>
    %cst_181 = arith.constant dense<0.000000e+00> : vector<32x64xf32>
    %502 = tpu.matmul %499, %501, %cst_181 {dimension_numbers = #tpu.dot_dimension_numbers<[1], [0], [0], [1], [0, 0, 1, 1], [], []>} : vector<32x64xbf16>, vector<64x64xbf16>, vector<32x64xf32> -> vector<32x64xf32>
    %c0_182 = arith.constant 0 : index
    %c0_183 = arith.constant 0 : index
    %c0_184 = arith.constant 0 : index
    %503 = vector.load %arg6[%c0_182, %c0_183, %c0_184] : memref<2x1x64xf32, #tpu.memory_space<vmem>>, vector<1x1x64xf32>
    %504 = vector.shape_cast %503 : vector<1x1x64xf32> to vector<1x64xf32>
    %505 = vector.broadcast %504 : vector<1x64xf32> to vector<32x64xf32>
    %506 = arith.addf %502, %505 : vector<32x64xf32>
    %507 = arith.addf %349, %506 : vector<32x64xf32>
    %c0_185 = arith.constant 0 : index
    %c0_186 = arith.constant 0 : index
    %c0_187 = arith.constant 0 : index
    %508 = vector.load %arg7[%c0_185, %c0_186, %c0_187] : memref<2x1x64xf32, #tpu.memory_space<vmem>>, vector<1x1x64xf32>
    %509 = vector.shape_cast %508 : vector<1x1x64xf32> to vector<1x64xf32>
    %c0_188 = arith.constant 0 : index
    %c0_189 = arith.constant 0 : index
    %c0_190 = arith.constant 0 : index
    %510 = vector.load %arg8[%c0_188, %c0_189, %c0_190] : memref<2x1x64xf32, #tpu.memory_space<vmem>>, vector<1x1x64xf32>
    %511 = vector.shape_cast %510 : vector<1x1x64xf32> to vector<1x64xf32>
    %cst_191 = arith.constant dense<0.000000e+00> : vector<32xf32>
    %512 = vector.multi_reduction <add>, %507, %cst_191 [1] : vector<32x64xf32> to vector<32xf32>
    %513 = vector.shape_cast %512 : vector<32xf32> to vector<32x1xf32>
    %cst_192 = arith.constant 6.400000e+01 : f32
    %514 = vector.broadcast %cst_192 : f32 to vector<32x1xf32>
    %515 = arith.divf %513, %514 : vector<32x1xf32>
    %516 = vector.broadcast %515 : vector<32x1xf32> to vector<32x64xf32>
    %517 = arith.subf %507, %516 : vector<32x64xf32>
    %518 = arith.mulf %517, %517 : vector<32x64xf32>
    %cst_193 = arith.constant dense<0.000000e+00> : vector<32xf32>
    %519 = vector.multi_reduction <add>, %518, %cst_193 [1] : vector<32x64xf32> to vector<32xf32>
    %520 = vector.shape_cast %519 : vector<32xf32> to vector<32x1xf32>
    %cst_194 = arith.constant 6.400000e+01 : f32
    %521 = vector.broadcast %cst_194 : f32 to vector<32x1xf32>
    %522 = arith.divf %520, %521 : vector<32x1xf32>
    %523 = vector.broadcast %515 : vector<32x1xf32> to vector<32x64xf32>
    %524 = arith.subf %507, %523 : vector<32x64xf32>
    %cst_195 = arith.constant 9.99999974E-6 : f32
    %525 = vector.broadcast %cst_195 : f32 to vector<32x1xf32>
    %526 = arith.addf %522, %525 : vector<32x1xf32>
    %527 = math.rsqrt %526 : vector<32x1xf32>
    %528 = vector.broadcast %527 : vector<32x1xf32> to vector<32x64xf32>
    %529 = arith.mulf %524, %528 : vector<32x64xf32>
    %530 = vector.broadcast %509 : vector<1x64xf32> to vector<32x64xf32>
    %531 = arith.mulf %529, %530 : vector<32x64xf32>
    %532 = vector.broadcast %511 : vector<1x64xf32> to vector<32x64xf32>
    %533 = arith.addf %531, %532 : vector<32x64xf32>
    %534 = arith.truncf %533 : vector<32x64xf32> to vector<32x64xbf16>
    %c0_196 = arith.constant 0 : index
    %c0_197 = arith.constant 0 : index
    %c0_198 = arith.constant 0 : index
    %535 = vector.load %arg9[%c0_196, %c0_197, %c0_198] : memref<2x64x256xbf16, #tpu.memory_space<vmem>>, vector<1x64x256xbf16>
    %536 = vector.shape_cast %535 : vector<1x64x256xbf16> to vector<64x256xbf16>
    %cst_199 = arith.constant dense<0.000000e+00> : vector<32x256xf32>
    %537 = tpu.matmul %534, %536, %cst_199 {dimension_numbers = #tpu.dot_dimension_numbers<[1], [0], [0], [1], [0, 0, 1, 1], [], []>} : vector<32x64xbf16>, vector<64x256xbf16>, vector<32x256xf32> -> vector<32x256xf32>
    %c0_200 = arith.constant 0 : index
    %c0_201 = arith.constant 0 : index
    %c0_202 = arith.constant 0 : index
    %538 = vector.load %arg10[%c0_200, %c0_201, %c0_202] : memref<2x1x256xf32, #tpu.memory_space<vmem>>, vector<1x1x256xf32>
    %539 = vector.shape_cast %538 : vector<1x1x256xf32> to vector<1x256xf32>
    %540 = vector.broadcast %539 : vector<1x256xf32> to vector<32x256xf32>
    %541 = arith.addf %537, %540 : vector<32x256xf32>
    %cst_203 = arith.constant 0.000000e+00 : f32
    %542 = vector.broadcast %cst_203 : f32 to vector<32x256xf32>
    %543 = arith.maximumf %541, %542 : vector<32x256xf32>
    %544 = arith.truncf %543 : vector<32x256xf32> to vector<32x256xbf16>
    %c0_204 = arith.constant 0 : index
    %c0_205 = arith.constant 0 : index
    %c0_206 = arith.constant 0 : index
    %545 = vector.load %arg11[%c0_204, %c0_205, %c0_206] : memref<2x256x64xbf16, #tpu.memory_space<vmem>>, vector<1x256x64xbf16>
    %546 = vector.shape_cast %545 : vector<1x256x64xbf16> to vector<256x64xbf16>
    %cst_207 = arith.constant dense<0.000000e+00> : vector<32x64xf32>
    %547 = tpu.matmul %544, %546, %cst_207 {dimension_numbers = #tpu.dot_dimension_numbers<[1], [0], [0], [1], [0, 0, 1, 1], [], []>} : vector<32x256xbf16>, vector<256x64xbf16>, vector<32x64xf32> -> vector<32x64xf32>
    %c0_208 = arith.constant 0 : index
    %c0_209 = arith.constant 0 : index
    %c0_210 = arith.constant 0 : index
    %548 = vector.load %arg12[%c0_208, %c0_209, %c0_210] : memref<2x1x64xf32, #tpu.memory_space<vmem>>, vector<1x1x64xf32>
    %549 = vector.shape_cast %548 : vector<1x1x64xf32> to vector<1x64xf32>
    %550 = vector.broadcast %549 : vector<1x64xf32> to vector<32x64xf32>
    %551 = arith.addf %547, %550 : vector<32x64xf32>
    %552 = arith.addf %507, %551 : vector<32x64xf32>
    %553 = vector.shape_cast %552 : vector<32x64xf32> to vector<2x16x64xf32>
    %c0_211 = arith.constant 0 : index
    %c0_212 = arith.constant 0 : index
    %c0_213 = arith.constant 0 : index
    %c0_214 = arith.constant 0 : index
    %554 = vector.load %arg18[%c0_211, %c0_212, %c0_213, %c0_214] : memref<2x2x16x64xf32, #tpu.memory_space<vmem>>, vector<1x2x16x64xf32>
    %555 = vector.shape_cast %554 : vector<1x2x16x64xf32> to vector<2x16x64xf32>
    %556 = vector.shape_cast %553 : vector<2x16x64xf32> to vector<1x2x16x64xf32>
    tpu.vector_store %arg18[%c0_211, %c0_212, %c0_213, %c0_214], %556 {strides = array<i32>} : memref<2x2x16x64xf32, #tpu.memory_space<vmem>>, vector<1x2x16x64xf32>,
    %c1_215 = arith.constant 1 : index
    %c0_216 = arith.constant 0 : index
    %c0_217 = arith.constant 0 : index
    %557 = vector.load %arg2[%c1_215, %c0_216, %c0_217] : memref<2x1x64xf32, #tpu.memory_space<vmem>>, vector<1x1x64xf32>
    %558 = vector.shape_cast %557 : vector<1x1x64xf32> to vector<1x64xf32>
    %c1_218 = arith.constant 1 : index
    %c0_219 = arith.constant 0 : index
    %c0_220 = arith.constant 0 : index
    %559 = vector.load %arg3[%c1_218, %c0_219, %c0_220] : memref<2x1x64xf32, #tpu.memory_space<vmem>>, vector<1x1x64xf32>
    %560 = vector.shape_cast %559 : vector<1x1x64xf32> to vector<1x64xf32>
    %cst_221 = arith.constant dense<0.000000e+00> : vector<32xf32>
    %561 = vector.multi_reduction <add>, %349, %cst_221 [1] : vector<32x64xf32> to vector<32xf32>
    %562 = vector.shape_cast %561 : vector<32xf32> to vector<32x1xf32>
    %cst_222 = arith.constant 6.400000e+01 : f32
    %563 = vector.broadcast %cst_222 : f32 to vector<32x1xf32>
    %564 = arith.divf %562, %563 : vector<32x1xf32>
    %565 = vector.broadcast %564 : vector<32x1xf32> to vector<32x64xf32>
    %566 = arith.subf %349, %565 : vector<32x64xf32>
    %567 = arith.mulf %566, %566 : vector<32x64xf32>
    %cst_223 = arith.constant dense<0.000000e+00> : vector<32xf32>
    %568 = vector.multi_reduction <add>, %567, %cst_223 [1] : vector<32x64xf32> to vector<32xf32>
    %569 = vector.shape_cast %568 : vector<32xf32> to vector<32x1xf32>
    %cst_224 = arith.constant 6.400000e+01 : f32
    %570 = vector.broadcast %cst_224 : f32 to vector<32x1xf32>
    %571 = arith.divf %569, %570 : vector<32x1xf32>
    %572 = vector.broadcast %564 : vector<32x1xf32> to vector<32x64xf32>
    %573 = arith.subf %349, %572 : vector<32x64xf32>
    %cst_225 = arith.constant 9.99999974E-6 : f32
    %574 = vector.broadcast %cst_225 : f32 to vector<32x1xf32>
    %575 = arith.addf %571, %574 : vector<32x1xf32>
    %576 = math.rsqrt %575 : vector<32x1xf32>
    %577 = vector.broadcast %576 : vector<32x1xf32> to vector<32x64xf32>
    %578 = arith.mulf %573, %577 : vector<32x64xf32>
    %579 = vector.broadcast %558 : vector<1x64xf32> to vector<32x64xf32>
    %580 = arith.mulf %578, %579 : vector<32x64xf32>
    %581 = vector.broadcast %560 : vector<1x64xf32> to vector<32x64xf32>
    %582 = arith.addf %580, %581 : vector<32x64xf32>
    %583 = arith.truncf %582 : vector<32x64xf32> to vector<32x64xbf16>
    %c1_226 = arith.constant 1 : index
    %c0_227 = arith.constant 0 : index
    %c0_228 = arith.constant 0 : index
    %584 = vector.load %arg4[%c1_226, %c0_227, %c0_228] : memref<2x64x192xbf16, #tpu.memory_space<vmem>>, vector<1x64x192xbf16>
    %585 = vector.shape_cast %584 : vector<1x64x192xbf16> to vector<64x192xbf16>
    %cst_229 = arith.constant dense<0.000000e+00> : vector<32x192xf32>
    %586 = tpu.matmul %583, %585, %cst_229 {dimension_numbers = #tpu.dot_dimension_numbers<[1], [0], [0], [1], [0, 0, 1, 1], [], []>} : vector<32x64xbf16>, vector<64x192xbf16>, vector<32x192xf32> -> vector<32x192xf32>
    %587 = vector.extract_strided_slice %586 {offsets = [0, 0], sizes = [32, 64], strides = [1, 1]} : vector<32x192xf32> to vector<32x64xf32>
    %588 = vector.shape_cast %587 : vector<32x64xf32> to vector<2x16x64xf32>
    %589 = arith.truncf %588 : vector<2x16x64xf32> to vector<2x16x64xbf16>
    %590 = vector.extract_strided_slice %586 {offsets = [0, 64], sizes = [32, 64], strides = [1, 1]} : vector<32x192xf32> to vector<32x64xf32>
    %591 = vector.shape_cast %590 : vector<32x64xf32> to vector<2x16x64xf32>
    %592 = arith.truncf %591 : vector<2x16x64xf32> to vector<2x16x64xbf16>
    %593 = vector.extract_strided_slice %586 {offsets = [0, 128], sizes = [32, 64], strides = [1, 1]} : vector<32x192xf32> to vector<32x64xf32>
    %594 = vector.shape_cast %593 : vector<32x64xf32> to vector<2x16x64xf32>
    %595 = arith.truncf %594 : vector<2x16x64xf32> to vector<2x16x64xbf16>
    %596 = vector.extract_strided_slice %589 {offsets = [0, 0, 0], sizes = [2, 16, 16], strides = [1, 1, 1]} : vector<2x16x64xbf16> to vector<2x16x16xbf16>
    %597 = vector.extract_strided_slice %592 {offsets = [0, 0, 0], sizes = [2, 16, 16], strides = [1, 1, 1]} : vector<2x16x64xbf16> to vector<2x16x16xbf16>
    %598 = vector.extract_strided_slice %595 {offsets = [0, 0, 0], sizes = [2, 16, 16], strides = [1, 1, 1]} : vector<2x16x64xbf16> to vector<2x16x16xbf16>
    "tpu.trace_start"() <{level = 10 : i32, message = "bqd,bkd->bqk"}> : () -> ()
    %cst_230 = arith.constant dense<0.000000e+00> : vector<2x16x16xf32>
    %599 = tpu.matmul %596, %597, %cst_230 {dimension_numbers = #tpu.dot_dimension_numbers<[2], [2], [1], [1], [0, 0, 0, 1, 1, 1], [0], [0]>} : vector<2x16x16xbf16>, vector<2x16x16xbf16>, vector<2x16x16xf32> -> vector<2x16x16xf32>
    "tpu.trace_stop"() : () -> ()
    %600 = vector.shape_cast %7 : vector<16x16xf32> to vector<1x16x16xf32>
    %601 = vector.broadcast %600 : vector<1x16x16xf32> to vector<2x16x16xf32>
    %602 = arith.addf %599, %601 : vector<2x16x16xf32>
    %cst_231 = arith.constant dense<0xFF800000> : vector<2x16xf32>
    %603 = vector.multi_reduction <maximumf>, %602, %cst_231 [2] : vector<2x16x16xf32> to vector<2x16xf32>
    %604 = vector.shape_cast %603 : vector<2x16xf32> to vector<2x16x1xf32>
    %605 = vector.broadcast %604 : vector<2x16x1xf32> to vector<2x16x16xf32>
    %606 = arith.subf %602, %605 : vector<2x16x16xf32>
    %607 = math.exp %606 : vector<2x16x16xf32>
    %cst_232 = arith.constant dense<0.000000e+00> : vector<2x16xf32>
    %608 = vector.multi_reduction <add>, %607, %cst_232 [2] : vector<2x16x16xf32> to vector<2x16xf32>
    %609 = vector.shape_cast %608 : vector<2x16xf32> to vector<2x16x1xf32>
    %610 = tpu.reciprocal %609 {approx = true} : vector<2x16x1xf32> -> vector<2x16x1xf32>
    %611 = vector.broadcast %610 : vector<2x16x1xf32> to vector<2x16x16xf32>
    %612 = arith.mulf %607, %611 : vector<2x16x16xf32>
    %613 = arith.truncf %612 : vector<2x16x16xf32> to vector<2x16x16xbf16>
    "tpu.trace_start"() <{level = 10 : i32, message = "bqk,bkd->bqd"}> : () -> ()
    %cst_233 = arith.constant dense<0.000000e+00> : vector<2x16x16xf32>
    %614 = tpu.matmul %613, %598, %cst_233 {dimension_numbers = #tpu.dot_dimension_numbers<[2], [1], [1], [2], [0, 0, 0, 1, 1, 2], [0], [0]>} : vector<2x16x16xbf16>, vector<2x16x16xbf16>, vector<2x16x16xf32> -> vector<2x16x16xf32>
    "tpu.trace_stop"() : () -> ()
    %615 = vector.extract_strided_slice %589 {offsets = [0, 0, 16], sizes = [2, 16, 16], strides = [1, 1, 1]} : vector<2x16x64xbf16> to vector<2x16x16xbf16>
    %616 = vector.extract_strided_slice %592 {offsets = [0, 0, 16], sizes = [2, 16, 16], strides = [1, 1, 1]} : vector<2x16x64xbf16> to vector<2x16x16xbf16>
    %617 = vector.extract_strided_slice %595 {offsets = [0, 0, 16], sizes = [2, 16, 16], strides = [1, 1, 1]} : vector<2x16x64xbf16> to vector<2x16x16xbf16>
    "tpu.trace_start"() <{level = 10 : i32, message = "bqd,bkd->bqk"}> : () -> ()
    %cst_234 = arith.constant dense<0.000000e+00> : vector<2x16x16xf32>
    %618 = tpu.matmul %615, %616, %cst_234 {dimension_numbers = #tpu.dot_dimension_numbers<[2], [2], [1], [1], [0, 0, 0, 1, 1, 1], [0], [0]>} : vector<2x16x16xbf16>, vector<2x16x16xbf16>, vector<2x16x16xf32> -> vector<2x16x16xf32>
    "tpu.trace_stop"() : () -> ()
    %619 = vector.shape_cast %7 : vector<16x16xf32> to vector<1x16x16xf32>
    %620 = vector.broadcast %619 : vector<1x16x16xf32> to vector<2x16x16xf32>
    %621 = arith.addf %618, %620 : vector<2x16x16xf32>
    %cst_235 = arith.constant dense<0xFF800000> : vector<2x16xf32>
    %622 = vector.multi_reduction <maximumf>, %621, %cst_235 [2] : vector<2x16x16xf32> to vector<2x16xf32>
    %623 = vector.shape_cast %622 : vector<2x16xf32> to vector<2x16x1xf32>
    %624 = vector.broadcast %623 : vector<2x16x1xf32> to vector<2x16x16xf32>
    %625 = arith.subf %621, %624 : vector<2x16x16xf32>
    %626 = math.exp %625 : vector<2x16x16xf32>
    %cst_236 = arith.constant dense<0.000000e+00> : vector<2x16xf32>
    %627 = vector.multi_reduction <add>, %626, %cst_236 [2] : vector<2x16x16xf32> to vector<2x16xf32>
    %628 = vector.shape_cast %627 : vector<2x16xf32> to vector<2x16x1xf32>
    %629 = tpu.reciprocal %628 {approx = true} : vector<2x16x1xf32> -> vector<2x16x1xf32>
    %630 = vector.broadcast %629 : vector<2x16x1xf32> to vector<2x16x16xf32>
    %631 = arith.mulf %626, %630 : vector<2x16x16xf32>
    %632 = arith.truncf %631 : vector<2x16x16xf32> to vector<2x16x16xbf16>
    "tpu.trace_start"() <{level = 10 : i32, message = "bqk,bkd->bqd"}> : () -> ()
    %cst_237 = arith.constant dense<0.000000e+00> : vector<2x16x16xf32>
    %633 = tpu.matmul %632, %617, %cst_237 {dimension_numbers = #tpu.dot_dimension_numbers<[2], [1], [1], [2], [0, 0, 0, 1, 1, 2], [0], [0]>} : vector<2x16x16xbf16>, vector<2x16x16xbf16>, vector<2x16x16xf32> -> vector<2x16x16xf32>
    "tpu.trace_stop"() : () -> ()
    %634 = vector.extract_strided_slice %589 {offsets = [0, 0, 32], sizes = [2, 16, 16], strides = [1, 1, 1]} : vector<2x16x64xbf16> to vector<2x16x16xbf16>
    %635 = vector.extract_strided_slice %592 {offsets = [0, 0, 32], sizes = [2, 16, 16], strides = [1, 1, 1]} : vector<2x16x64xbf16> to vector<2x16x16xbf16>
    %636 = vector.extract_strided_slice %595 {offsets = [0, 0, 32], sizes = [2, 16, 16], strides = [1, 1, 1]} : vector<2x16x64xbf16> to vector<2x16x16xbf16>
    "tpu.trace_start"() <{level = 10 : i32, message = "bqd,bkd->bqk"}> : () -> ()
    %cst_238 = arith.constant dense<0.000000e+00> : vector<2x16x16xf32>
    %637 = tpu.matmul %634, %635, %cst_238 {dimension_numbers = #tpu.dot_dimension_numbers<[2], [2], [1], [1], [0, 0, 0, 1, 1, 1], [0], [0]>} : vector<2x16x16xbf16>, vector<2x16x16xbf16>, vector<2x16x16xf32> -> vector<2x16x16xf32>
    "tpu.trace_stop"() : () -> ()
    %638 = vector.shape_cast %7 : vector<16x16xf32> to vector<1x16x16xf32>
    %639 = vector.broadcast %638 : vector<1x16x16xf32> to vector<2x16x16xf32>
    %640 = arith.addf %637, %639 : vector<2x16x16xf32>
    %cst_239 = arith.constant dense<0xFF800000> : vector<2x16xf32>
    %641 = vector.multi_reduction <maximumf>, %640, %cst_239 [2] : vector<2x16x16xf32> to vector<2x16xf32>
    %642 = vector.shape_cast %641 : vector<2x16xf32> to vector<2x16x1xf32>
    %643 = vector.broadcast %642 : vector<2x16x1xf32> to vector<2x16x16xf32>
    %644 = arith.subf %640, %643 : vector<2x16x16xf32>
    %645 = math.exp %644 : vector<2x16x16xf32>
    %cst_240 = arith.constant dense<0.000000e+00> : vector<2x16xf32>
    %646 = vector.multi_reduction <add>, %645, %cst_240 [2] : vector<2x16x16xf32> to vector<2x16xf32>
    %647 = vector.shape_cast %646 : vector<2x16xf32> to vector<2x16x1xf32>
    %648 = tpu.reciprocal %647 {approx = true} : vector<2x16x1xf32> -> vector<2x16x1xf32>
    %649 = vector.broadcast %648 : vector<2x16x1xf32> to vector<2x16x16xf32>
    %650 = arith.mulf %645, %649 : vector<2x16x16xf32>
    %651 = arith.truncf %650 : vector<2x16x16xf32> to vector<2x16x16xbf16>
    "tpu.trace_start"() <{level = 10 : i32, message = "bqk,bkd->bqd"}> : () -> ()
    %cst_241 = arith.constant dense<0.000000e+00> : vector<2x16x16xf32>
    %652 = tpu.matmul %651, %636, %cst_241 {dimension_numbers = #tpu.dot_dimension_numbers<[2], [1], [1], [2], [0, 0, 0, 1, 1, 2], [0], [0]>} : vector<2x16x16xbf16>, vector<2x16x16xbf16>, vector<2x16x16xf32> -> vector<2x16x16xf32>
    "tpu.trace_stop"() : () -> ()
    %653 = vector.extract_strided_slice %589 {offsets = [0, 0, 48], sizes = [2, 16, 16], strides = [1, 1, 1]} : vector<2x16x64xbf16> to vector<2x16x16xbf16>
    %654 = vector.extract_strided_slice %592 {offsets = [0, 0, 48], sizes = [2, 16, 16], strides = [1, 1, 1]} : vector<2x16x64xbf16> to vector<2x16x16xbf16>
    %655 = vector.extract_strided_slice %595 {offsets = [0, 0, 48], sizes = [2, 16, 16], strides = [1, 1, 1]} : vector<2x16x64xbf16> to vector<2x16x16xbf16>
    "tpu.trace_start"() <{level = 10 : i32, message = "bqd,bkd->bqk"}> : () -> ()
    %cst_242 = arith.constant dense<0.000000e+00> : vector<2x16x16xf32>
    %656 = tpu.matmul %653, %654, %cst_242 {dimension_numbers = #tpu.dot_dimension_numbers<[2], [2], [1], [1], [0, 0, 0, 1, 1, 1], [0], [0]>} : vector<2x16x16xbf16>, vector<2x16x16xbf16>, vector<2x16x16xf32> -> vector<2x16x16xf32>
    "tpu.trace_stop"() : () -> ()
    %657 = vector.shape_cast %7 : vector<16x16xf32> to vector<1x16x16xf32>
    %658 = vector.broadcast %657 : vector<1x16x16xf32> to vector<2x16x16xf32>
    %659 = arith.addf %656, %658 : vector<2x16x16xf32>
    %cst_243 = arith.constant dense<0xFF800000> : vector<2x16xf32>
    %660 = vector.multi_reduction <maximumf>, %659, %cst_243 [2] : vector<2x16x16xf32> to vector<2x16xf32>
    %661 = vector.shape_cast %660 : vector<2x16xf32> to vector<2x16x1xf32>
    %662 = vector.broadcast %661 : vector<2x16x1xf32> to vector<2x16x16xf32>
    %663 = arith.subf %659, %662 : vector<2x16x16xf32>
    %664 = math.exp %663 : vector<2x16x16xf32>
    %cst_244 = arith.constant dense<0.000000e+00> : vector<2x16xf32>
    %665 = vector.multi_reduction <add>, %664, %cst_244 [2] : vector<2x16x16xf32> to vector<2x16xf32>
    %666 = vector.shape_cast %665 : vector<2x16xf32> to vector<2x16x1xf32>
    %667 = tpu.reciprocal %666 {approx = true} : vector<2x16x1xf32> -> vector<2x16x1xf32>
    %668 = vector.broadcast %667 : vector<2x16x1xf32> to vector<2x16x16xf32>
    %669 = arith.mulf %664, %668 : vector<2x16x16xf32>
    %670 = arith.truncf %669 : vector<2x16x16xf32> to vector<2x16x16xbf16>
    "tpu.trace_start"() <{level = 10 : i32, message = "bqk,bkd->bqd"}> : () -> ()
    %cst_245 = arith.constant dense<0.000000e+00> : vector<2x16x16xf32>
    %671 = tpu.matmul %670, %655, %cst_245 {dimension_numbers = #tpu.dot_dimension_numbers<[2], [1], [1], [2], [0, 0, 0, 1, 1, 2], [0], [0]>} : vector<2x16x16xbf16>, vector<2x16x16xbf16>, vector<2x16x16xf32> -> vector<2x16x16xf32>
    "tpu.trace_stop"() : () -> ()
    %672 = tpu.concatenate %614, %633, %652, %671 in 2 : vector<2x16x16xf32>, vector<2x16x16xf32>, vector<2x16x16xf32>, vector<2x16x16xf32> -> vector<2x16x64xf32>
    %673 = vector.shape_cast %672 : vector<2x16x64xf32> to vector<32x64xf32>
    %674 = arith.truncf %673 : vector<32x64xf32> to vector<32x64xbf16>
    %c1_246 = arith.constant 1 : index
    %c0_247 = arith.constant 0 : index
    %c0_248 = arith.constant 0 : index
    %675 = vector.load %arg5[%c1_246, %c0_247, %c0_248] : memref<2x64x64xbf16, #tpu.memory_space<vmem>>, vector<1x64x64xbf16>
    %676 = vector.shape_cast %675 : vector<1x64x64xbf16> to vector<64x64xbf16>
    %cst_249 = arith.constant dense<0.000000e+00> : vector<32x64xf32>
    %677 = tpu.matmul %674, %676, %cst_249 {dimension_numbers = #tpu.dot_dimension_numbers<[1], [0], [0], [1], [0, 0, 1, 1], [], []>} : vector<32x64xbf16>, vector<64x64xbf16>, vector<32x64xf32> -> vector<32x64xf32>
    %c1_250 = arith.constant 1 : index
    %c0_251 = arith.constant 0 : index
    %c0_252 = arith.constant 0 : index
    %678 = vector.load %arg6[%c1_250, %c0_251, %c0_252] : memref<2x1x64xf32, #tpu.memory_space<vmem>>, vector<1x1x64xf32>
    %679 = vector.shape_cast %678 : vector<1x1x64xf32> to vector<1x64xf32>
    %680 = vector.broadcast %679 : vector<1x64xf32> to vector<32x64xf32>
    %681 = arith.addf %677, %680 : vector<32x64xf32>
    %682 = arith.addf %349, %681 : vector<32x64xf32>
    %c1_253 = arith.constant 1 : index
    %c0_254 = arith.constant 0 : index
    %c0_255 = arith.constant 0 : index
    %683 = vector.load %arg7[%c1_253, %c0_254, %c0_255] : memref<2x1x64xf32, #tpu.memory_space<vmem>>, vector<1x1x64xf32>
    %684 = vector.shape_cast %683 : vector<1x1x64xf32> to vector<1x64xf32>
    %c1_256 = arith.constant 1 : index
    %c0_257 = arith.constant 0 : index
    %c0_258 = arith.constant 0 : index
    %685 = vector.load %arg8[%c1_256, %c0_257, %c0_258] : memref<2x1x64xf32, #tpu.memory_space<vmem>>, vector<1x1x64xf32>
    %686 = vector.shape_cast %685 : vector<1x1x64xf32> to vector<1x64xf32>
    %cst_259 = arith.constant dense<0.000000e+00> : vector<32xf32>
    %687 = vector.multi_reduction <add>, %682, %cst_259 [1] : vector<32x64xf32> to vector<32xf32>
    %688 = vector.shape_cast %687 : vector<32xf32> to vector<32x1xf32>
    %cst_260 = arith.constant 6.400000e+01 : f32
    %689 = vector.broadcast %cst_260 : f32 to vector<32x1xf32>
    %690 = arith.divf %688, %689 : vector<32x1xf32>
    %691 = vector.broadcast %690 : vector<32x1xf32> to vector<32x64xf32>
    %692 = arith.subf %682, %691 : vector<32x64xf32>
    %693 = arith.mulf %692, %692 : vector<32x64xf32>
    %cst_261 = arith.constant dense<0.000000e+00> : vector<32xf32>
    %694 = vector.multi_reduction <add>, %693, %cst_261 [1] : vector<32x64xf32> to vector<32xf32>
    %695 = vector.shape_cast %694 : vector<32xf32> to vector<32x1xf32>
    %cst_262 = arith.constant 6.400000e+01 : f32
    %696 = vector.broadcast %cst_262 : f32 to vector<32x1xf32>
    %697 = arith.divf %695, %696 : vector<32x1xf32>
    %698 = vector.broadcast %690 : vector<32x1xf32> to vector<32x64xf32>
    %699 = arith.subf %682, %698 : vector<32x64xf32>
    %cst_263 = arith.constant 9.99999974E-6 : f32
    %700 = vector.broadcast %cst_263 : f32 to vector<32x1xf32>
    %701 = arith.addf %697, %700 : vector<32x1xf32>
    %702 = math.rsqrt %701 : vector<32x1xf32>
    %703 = vector.broadcast %702 : vector<32x1xf32> to vector<32x64xf32>
    %704 = arith.mulf %699, %703 : vector<32x64xf32>
    %705 = vector.broadcast %684 : vector<1x64xf32> to vector<32x64xf32>
    %706 = arith.mulf %704, %705 : vector<32x64xf32>
    %707 = vector.broadcast %686 : vector<1x64xf32> to vector<32x64xf32>
    %708 = arith.addf %706, %707 : vector<32x64xf32>
    %709 = arith.truncf %708 : vector<32x64xf32> to vector<32x64xbf16>
    %c1_264 = arith.constant 1 : index
    %c0_265 = arith.constant 0 : index
    %c0_266 = arith.constant 0 : index
    %710 = vector.load %arg9[%c1_264, %c0_265, %c0_266] : memref<2x64x256xbf16, #tpu.memory_space<vmem>>, vector<1x64x256xbf16>
    %711 = vector.shape_cast %710 : vector<1x64x256xbf16> to vector<64x256xbf16>
    %cst_267 = arith.constant dense<0.000000e+00> : vector<32x256xf32>
    %712 = tpu.matmul %709, %711, %cst_267 {dimension_numbers = #tpu.dot_dimension_numbers<[1], [0], [0], [1], [0, 0, 1, 1], [], []>} : vector<32x64xbf16>, vector<64x256xbf16>, vector<32x256xf32> -> vector<32x256xf32>
    %c1_268 = arith.constant 1 : index
    %c0_269 = arith.constant 0 : index
    %c0_270 = arith.constant 0 : index
    %713 = vector.load %arg10[%c1_268, %c0_269, %c0_270] : memref<2x1x256xf32, #tpu.memory_space<vmem>>, vector<1x1x256xf32>
    %714 = vector.shape_cast %713 : vector<1x1x256xf32> to vector<1x256xf32>
    %715 = vector.broadcast %714 : vector<1x256xf32> to vector<32x256xf32>
    %716 = arith.addf %712, %715 : vector<32x256xf32>
    %cst_271 = arith.constant 0.000000e+00 : f32
    %717 = vector.broadcast %cst_271 : f32 to vector<32x256xf32>
    %718 = arith.maximumf %716, %717 : vector<32x256xf32>
    %719 = arith.truncf %718 : vector<32x256xf32> to vector<32x256xbf16>
    %c1_272 = arith.constant 1 : index
    %c0_273 = arith.constant 0 : index
    %c0_274 = arith.constant 0 : index
    %720 = vector.load %arg11[%c1_272, %c0_273, %c0_274] : memref<2x256x64xbf16, #tpu.memory_space<vmem>>, vector<1x256x64xbf16>
    %721 = vector.shape_cast %720 : vector<1x256x64xbf16> to vector<256x64xbf16>
    %cst_275 = arith.constant dense<0.000000e+00> : vector<32x64xf32>
    %722 = tpu.matmul %719, %721, %cst_275 {dimension_numbers = #tpu.dot_dimension_numbers<[1], [0], [0], [1], [0, 0, 1, 1], [], []>} : vector<32x256xbf16>, vector<256x64xbf16>, vector<32x64xf32> -> vector<32x64xf32>
    %c1_276 = arith.constant 1 : index
    %c0_277 = arith.constant 0 : index
    %c0_278 = arith.constant 0 : index
    %723 = vector.load %arg12[%c1_276, %c0_277, %c0_278] : memref<2x1x64xf32, #tpu.memory_space<vmem>>, vector<1x1x64xf32>
    %724 = vector.shape_cast %723 : vector<1x1x64xf32> to vector<1x64xf32>
    %725 = vector.broadcast %724 : vector<1x64xf32> to vector<32x64xf32>
    %726 = arith.addf %722, %725 : vector<32x64xf32>
    %727 = arith.addf %682, %726 : vector<32x64xf32>
    %728 = vector.shape_cast %727 : vector<32x64xf32> to vector<2x16x64xf32>
    %c1_279 = arith.constant 1 : index
    %c0_280 = arith.constant 0 : index
    %c0_281 = arith.constant 0 : index
    %c0_282 = arith.constant 0 : index
    %729 = vector.load %arg18[%c1_279, %c0_280, %c0_281, %c0_282] : memref<2x2x16x64xf32, #tpu.memory_space<vmem>>, vector<1x2x16x64xf32>
    %730 = vector.shape_cast %729 : vector<1x2x16x64xf32> to vector<2x16x64xf32>
    %731 = vector.shape_cast %728 : vector<2x16x64xf32> to vector<1x2x16x64xf32>
    tpu.vector_store %arg18[%c1_279, %c0_280, %c0_281, %c0_282], %731 {strides = array<i32>} : memref<2x2x16x64xf32, #tpu.memory_space<vmem>>, vector<1x2x16x64xf32>,
    return
  }
  func.func @transform_0(%arg0: i32) -> (i32, i32, i32) {
    %c0_i32 = arith.constant 0 : i32
    %c0_i32_0 = arith.constant 0 : i32
    %c0_i32_1 = arith.constant 0 : i32
    return %arg0, %c0_i32, %c0_i32_0 : i32, i32, i32
  }
  func.func @transform_1(%arg0: i32) -> (i32, i32, i32) {
    %c0_i32 = arith.constant 0 : i32
    %c0_i32_0 = arith.constant 0 : i32
    %c0_i32_1 = arith.constant 0 : i32
    %c0_i32_2 = arith.constant 0 : i32
    return %c0_i32, %c0_i32_0, %c0_i32_1 : i32, i32, i32
  }
  func.func @transform_2(%arg0: i32) -> (i32, i32, i32) {
    %c0_i32 = arith.constant 0 : i32
    %c0_i32_0 = arith.constant 0 : i32
    %c0_i32_1 = arith.constant 0 : i32
    %c0_i32_2 = arith.constant 0 : i32
    return %c0_i32, %c0_i32_0, %c0_i32_1 : i32, i32, i32
  }
  func.func @transform_3(%arg0: i32) -> (i32, i32, i32) {
    %c0_i32 = arith.constant 0 : i32
    %c0_i32_0 = arith.constant 0 : i32
    %c0_i32_1 = arith.constant 0 : i32
    %c0_i32_2 = arith.constant 0 : i32
    return %c0_i32, %c0_i32_0, %c0_i32_1 : i32, i32, i32
  }
  func.func @transform_4(%arg0: i32) -> (i32, i32, i32) {
    %c0_i32 = arith.constant 0 : i32
    %c0_i32_0 = arith.constant 0 : i32
    %c0_i32_1 = arith.constant 0 : i32
    %c0_i32_2 = arith.constant 0 : i32
    return %c0_i32, %c0_i32_0, %c0_i32_1 : i32, i32, i32
  }
  func.func @transform_5(%arg0: i32) -> (i32, i32, i32) {
    %c0_i32 = arith.constant 0 : i32
    %c0_i32_0 = arith.constant 0 : i32
    %c0_i32_1 = arith.constant 0 : i32
    %c0_i32_2 = arith.constant 0 : i32
    return %c0_i32, %c0_i32_0, %c0_i32_1 : i32, i32, i32
  }
  func.func @transform_6(%arg0: i32) -> (i32, i32, i32) {
    %c0_i32 = arith.constant 0 : i32
    %c0_i32_0 = arith.constant 0 : i32
    %c0_i32_1 = arith.constant 0 : i32
    %c0_i32_2 = arith.constant 0 : i32
    return %c0_i32, %c0_i32_0, %c0_i32_1 : i32, i32, i32
  }
  func.func @transform_7(%arg0: i32) -> (i32, i32, i32) {
    %c0_i32 = arith.constant 0 : i32
    %c0_i32_0 = arith.constant 0 : i32
    %c0_i32_1 = arith.constant 0 : i32
    %c0_i32_2 = arith.constant 0 : i32
    return %c0_i32, %c0_i32_0, %c0_i32_1 : i32, i32, i32
  }
  func.func @transform_8(%arg0: i32) -> (i32, i32, i32) {
    %c0_i32 = arith.constant 0 : i32
    %c0_i32_0 = arith.constant 0 : i32
    %c0_i32_1 = arith.constant 0 : i32
    %c0_i32_2 = arith.constant 0 : i32
    return %c0_i32, %c0_i32_0, %c0_i32_1 : i32, i32, i32
  }
  func.func @transform_9(%arg0: i32) -> (i32, i32, i32) {
    %c0_i32 = arith.constant 0 : i32
    %c0_i32_0 = arith.constant 0 : i32
    %c0_i32_1 = arith.constant 0 : i32
    %c0_i32_2 = arith.constant 0 : i32
    return %c0_i32, %c0_i32_0, %c0_i32_1 : i32, i32, i32
  }
  func.func @transform_10(%arg0: i32) -> (i32, i32, i32) {
    %c0_i32 = arith.constant 0 : i32
    %c0_i32_0 = arith.constant 0 : i32
    %c0_i32_1 = arith.constant 0 : i32
    %c0_i32_2 = arith.constant 0 : i32
    return %c0_i32, %c0_i32_0, %c0_i32_1 : i32, i32, i32
  }
  func.func @transform_11(%arg0: i32) -> (i32, i32, i32) {
    %c0_i32 = arith.constant 0 : i32
    %c0_i32_0 = arith.constant 0 : i32
    %c0_i32_1 = arith.constant 0 : i32
    %c0_i32_2 = arith.constant 0 : i32
    return %c0_i32, %c0_i32_0, %c0_i32_1 : i32, i32, i32
  }
  func.func @transform_12(%arg0: i32) -> (i32, i32) {
    %c0_i32 = arith.constant 0 : i32
    %c0_i32_0 = arith.constant 0 : i32
    %c0_i32_1 = arith.constant 0 : i32
    return %c0_i32, %c0_i32_0 : i32, i32
  }
  func.func @transform_13(%arg0: i32) -> (i32, i32) {
    %c0_i32 = arith.constant 0 : i32
    %c0_i32_0 = arith.constant 0 : i32
    %c0_i32_1 = arith.constant 0 : i32
    return %c0_i32, %c0_i32_0 : i32, i32
  }
  func.func @transform_14(%arg0: i32) -> (i32, i32) {
    %c0_i32 = arith.constant 0 : i32
    %c0_i32_0 = arith.constant 0 : i32
    %c0_i32_1 = arith.constant 0 : i32
    return %c0_i32, %c0_i32_0 : i32, i32
  }
  func.func @transform_15(%arg0: i32) -> (i32, i32) {
    %c0_i32 = arith.constant 0 : i32
    %c0_i32_0 = arith.constant 0 : i32
    %c0_i32_1 = arith.constant 0 : i32
    return %c0_i32, %c0_i32_0 : i32, i32
  }
  func.func @transform_16(%arg0: i32) -> (i32, i32, i32) {
    %c0_i32 = arith.constant 0 : i32
    %c0_i32_0 = arith.constant 0 : i32
    %c0_i32_1 = arith.constant 0 : i32
    return %arg0, %c0_i32, %c0_i32_0 : i32, i32, i32
  }
  func.func @transform_17(%arg0: i32) -> (i32, i32, i32, i32) {
    %c0_i32 = arith.constant 0 : i32
    %c0_i32_0 = arith.constant 0 : i32
    %c0_i32_1 = arith.constant 0 : i32
    %c0_i32_2 = arith.constant 0 : i32
    return %c0_i32, %arg0, %c0_i32_0, %c0_i32_1 : i32, i32, i32, i32
  }
}

</mosaic_0001>

<bundles_post_ra>
// kernel: tpu_custom_call.1
= control target key start
LH: loop header
LB: loop body
LE: loop exit
PB: predicated region body
PF: predicated region fallthrough
CT: control target
= control target key end

     0   :  { %s9379_s0 = inlined_call_operand.vmem [shape: f32[2,16,64], index: 0, kind: input, shape index: {}]   ;;  %s9380_s1 = inlined_call_operand.hbm [shape: f32[2,1,64], index: 1, kind: input, shape index: {}]   ;;  %s9381_s2 = inlined_call_operand.hbm [shape: f32[2,1,64], index: 2, kind: input, shape index: {}]   ;;  %s9382_s3 = inlined_call_operand.vmem [shape: bf16[2,64,192], index: 3, kind: input, shape index: {}]   ;;  %s9383_s4 = inlined_call_operand.vmem [shape: bf16[2,64,64], index: 4, kind: input, shape index: {}]   ;;  %s9384_s5 = inlined_call_operand.hbm [shape: f32[2,1,64], index: 5, kind: input, shape index: {}]   ;;  %s9385_s6 = inlined_call_operand.hbm [shape: f32[2,1,64], index: 6, kind: input, shape index: {}]   ;;  %s9386_s7 = inlined_call_operand.hbm [shape: f32[2,1,64], index: 7, kind: input, shape index: {}]   ;;  %s9387_s8 = inlined_call_operand.vmem [shape: bf16[2,64,256], index: 8, kind: input, shape index: {}]   ;;  %s9388_s9 = inlined_call_operand.vmem [shape: f32[2,1,256], index: 9, kind: input, shape index: {}]   ;;  %s9389_s10 = inlined_call_operand.vmem [shape: bf16[2,256,64], index: 10, kind: input, shape index: {}]   ;;  %s9390_s11 = inlined_call_operand.vmem [shape: f32[2,1,64], index: 11, kind: input, shape index: {}]   ;;  %s9391_s12 = inlined_call_operand.vmem [shape: f32[1,64], index: 12, kind: input, shape index: {}]   ;;  %s9392_s13 = inlined_call_operand.vmem [shape: f32[1,64], index: 13, kind: input, shape index: {}]   ;;  %s9393_s14 = inlined_call_operand.vmem [shape: bf16[64,128], index: 14, kind: input, shape index: {}]   ;;  %s9394_s15 = inlined_call_operand.vmem [shape: f32[1,128], index: 15, kind: input, shape index: {}]   ;;  %s9395_s16 = inlined_call_operand.hbm [shape: f32[2,16,128], index: 16, kind: output, shape index: {0}]   ;;  %s9396_s17 = inlined_call_operand.hbm [shape: f32[2,2,16,64], index: 17, kind: output, shape index: {1}]  }
   0x1   :  { %9398 = sst [smem:[#allocation19_spill]] %s9379_s0 }
   0x2   :  { %9399 = sst [smem:[#allocation20_spill]] %s9380_s1 }
   0x3   :  { %23 = vsyncpa [#allocation3], 0 }
   0x4   :  { %24 = vsyncpa [#allocation6], 0 }
   0x5   :  { %25 = vsyncpa [#allocation9], 0 }
   0x6   :  { %26 = vsyncpa [#allocation4], 0 }
   0x7   :  { %27 = vsyncpa [#allocation13], 0  ;;  %s47_s26 = sshll.u32 %s9381_s2, 4  ;;  %s7114_s27 = smov [#allocation5]   ;;  %s48_s26 = int_to_ptr.hbm [resolvable:$true] %s47_s26 }
   0x8   :  { %s49_s28 = sshll.u32 %s7114_s27, 4  ;;  %s77_s30 = sshll.u32 %s9385_s6, 4  ;;  %s50_s28 = int_to_ptr.vmem [resolvable:$true] %s49_s28  ;;  %s78_s30 = int_to_ptr.hbm [resolvable:$true] %s77_s30 }
   0x9   :  { %s7115_s18 = smov 16   ;;  %s7116_s19 = smov 1  }
   0xa   :  { %55 = dma.hbm_to_vmem [thread:$0]  %s48_s26, 32, %s50_s28, [#allocation6], %s7115_s18, %s7115_s18, %s7116_s19  }
   0xb   :  { %s7117_s1 = smov [#allocation8]   ;;  %s9400_s23 = sld [smem:[#allocation20_spill]] }
   0xc   :  { %s79_s20 = sshll.u32 %s7117_s1, 4  ;;  %s64_s6 = sshll.u32 %s9384_s5, 4  ;;  %s80_s20 = int_to_ptr.vmem [resolvable:$true] %s79_s20  ;;  %s65_s6 = int_to_ptr.hbm [resolvable:$true] %s64_s6 }
   0xd   :  { %85 = dma.hbm_to_vmem [thread:$0]  %s78_s30, 32, %s80_s20, [#allocation9], %s7115_s18, %s7115_s18, %s7116_s19  }
   0xe   :  { %s7118_s27 = smov [#allocation2]   ;;  %s7119_s26 = smov [#allocation7]  }
   0xf   :  { %s36_s29 = sshll.u32 %s7118_s27, 4  ;;  %s66_s28 = sshll.u32 %s7119_s26, 4  ;;  %s37_s29 = int_to_ptr.vmem [resolvable:$true] %s36_s29  ;;  %s67_s28 = int_to_ptr.vmem [resolvable:$true] %s66_s28 }
  0x10   :  { %s90_s21 = sshll.u32 %s9386_s7, 4  ;;  %s7120_s30 = smov [#allocation10]   ;;  %s91_s21 = int_to_ptr.hbm [resolvable:$true] %s90_s21 }
  0x11   :  { %s34_s2 = sshll.u32 %s9400_s23, 4  ;;  %s92_s5 = sshll.u32 %s7120_s30, 4  ;;  %s35_s2 = int_to_ptr.hbm [resolvable:$true] %s34_s2  ;;  %s93_s5 = int_to_ptr.vmem [resolvable:$true] %s92_s5 }
  0x12   :  { %42 = dma.hbm_to_vmem [thread:$0]  %s35_s2, 32, %s37_s29, [#allocation3], %s7115_s18, %s7115_s18, %s7116_s19  }
  0x13   :  { %72 = dma.hbm_to_vmem [thread:$0]  %s65_s6, 32, %s67_s28, [#allocation6], %s7115_s18, %s7115_s18, %s7116_s19  }
  0x14   :  { %98 = dma.hbm_to_vmem [thread:$0]  %s91_s21, 32, %s93_s5, [#allocation9], %s7115_s18, %s7115_s18, %s7116_s19  }
  0x15   :  { %7104 = dma.done.wait [#allocation3], 32  }
  0x16   :  { %7105 = vsyncadd [#allocation3], 4294967264 }
  0x17   :  { %7106 = dma.done.wait [#allocation6], 64  }
  0x18   :  { %7107 = vsyncadd [#allocation6], 4294967232 }
  0x19   :  { %7108 = dma.done.wait [#allocation9], 64  }
  0x1a   :  { %7109 = vsyncadd [#allocation9], 4294967232  ;;  %vm151_vm0 = vcmask 523264   ;;  %s9401_s22 = sld [smem:[#allocation19_spill]]  ;;  %v7121_v4 = vmov 64.0   ;;  %s7122_s25 = smov 64  }
  0x1b   :  { %6618 = vrcp.f32 %v7121_v4  ;;  %v5516_v35 = vld [vmem:[%s9382_s3 + $0x30] sm:$0xf]  ;;  %v6311_v36 = vld [vmem:[%s9382_s3 + $0x34] sm:$0xf0]  ;;  %v6310_v37 = vld [vmem:[%s9382_s3 + $0x34] sm:$0xf] }
  0x1c   :  { %v5517_v38 = vor.u32 %v6311_v36, %v5516_v35  ;;  %v5518_v39 = vld [vmem:[%s9382_s3 + $0x38] sm:$0xf0]  ;;  %v5508_v41 = vld [vmem:[%s9382_s3 + $0x20] sm:$0xf]  ;;  %v6309_v42 = vld [vmem:[%s9382_s3 + $0x24] sm:$0xf0] }
  0x1d   :  { %v5521_v40 = vor.u32 %v6310_v37, %v5518_v39  ;;  %v6308_v43 = vld [vmem:[%s9382_s3 + $0x24] sm:$0xf]  ;;  %v5509_v44 = vor.u32 %v6309_v42, %v5508_v41  ;;  %v5510_v45 = vld [vmem:[%s9382_s3 + $0x28] sm:$0xf0]  ;;  %v5500_v47 = vld [vmem:[%s9382_s3 + $0x10] sm:$0xf] }
  0x1e   :  { %321 = vmatpush.bf16.msra.mxu0 %v5517_v38  ;;  %v5513_v46 = vor.u32 %v6308_v43, %v5510_v45  ;;  %v6307_v48 = vld [vmem:[%s9382_s3 + $0x14] sm:$0xf0]  ;;  %v6306_v49 = vld [vmem:[%s9382_s3 + $0x14] sm:$0xf]  ;;  %v5502_v51 = vld [vmem:[%s9382_s3 + $0x18] sm:$0xf0] }
  0x1f   :  { %340 = vmatpush.bf16.msra.mxu1 %v5521_v40  ;;  %v5501_v50 = vor.u32 %v6307_v48, %v5500_v47  ;;  %v5492_v52 = vld [vmem:[%s9382_s3] sm:$0xf]  ;;  %v6305_v53 = vld [vmem:[%s9382_s3 + $0x4] sm:$0xf0]  ;;  %v5505_v54 = vor.u32 %v6306_v49, %v5502_v51  ;;  %v6304_v55 = vld [vmem:[%s9382_s3 + $0x4] sm:$0xf] }
  0x20   :  { %v136_v0 = vld [vmem:[%s9401_s22] sm:$0xff]  ;;  %v137_v1 = vld [vmem:[%s9401_s22 + $0x8] sm:$0xff]  ;;  %v138_v5 = vld [vmem:[%s9401_s22 + $0x10] sm:$0xff]  ;;  %v5493_v58 = vor.u32 %v6305_v53, %v5492_v52  ;;  %vm370_vm14 = vcmask 130048   ;;  %s7124_s6 = smov 112   ;;  %s7125_s27 = smov 48  }
  0x21   :  { %v152_v2 = vsel %vm151_vm0, %v136_v0, 0.0  ;;  %v155_v3 = vsel %vm151_vm0, %v137_v1, 0.0  ;;  %v158_v6 = vsel %vm151_vm0, %v138_v5, 0.0  ;;  %v6619_v7 = vpop.eup %6618  ;;  %v139_v9 = vld [vmem:[%s9401_s22 + $0x18] sm:$0xff]  ;;  %v5494_v56 = vld [vmem:[%s9382_s3 + $0x8] sm:$0xf0] }
  0x22   :  { %153 = vadd.xlane.f32.xlu0 %v152_v2  ;;  %159 = vadd.xlane.f32.xlu2 %v158_v6  ;;  %v165_v8 = vmul.f32 64.0, %v6619_v7  ;;  %v161_v10 = vsel %vm151_vm0, %v139_v9, 0.0  ;;  %vm169_vm1 = vweird.f32 %v6619_v7  ;;  %v5497_v60 = vor.u32 %v6304_v55, %v5494_v56  ;;  %s7126_s29 = smov 32   ;;  %s7127_s26 = smov 96  }
  0x23   :  { %322 = vmatpush.bf16.msra.mxu0 %v5509_v44  ;;  %341 = vmatpush.bf16.msra.mxu1 %v5513_v46  ;;  %s7128_s28 = smov 80  }
  0x24   :  { %v166_v11 = vsub.f32 1.0, %v165_v8 }
  0x26   :  { %v167_v12 = vmul.f32 %v6619_v7, %v166_v11 }
  0x27   :  { %323 = vmatpush.bf16.msra.mxu0 %v5501_v50  ;;  %342 = vmatpush.bf16.msra.mxu1 %v5505_v54 }
  0x28   :  { %v168_v13 = vadd.f32 %v6619_v7, %v167_v12 }
  0x2a   :  { %156 = vadd.xlane.f32.xlu0 %v155_v3  ;;  %162 = vadd.xlane.f32.xlu2 %v161_v10  ;;  %v7264_v14 = vsel %vm169_vm1, %v6619_v7, %v168_v13 }
  0x2b   :  { %324 = vmatpush.bf16.msra.mxu0 %v5493_v58  ;;  %343 = vmatpush.bf16.msra.mxu1 %v5497_v60 }
  0x95   :  { %v154_v15 = vpop.xlane.xlu0 %153  ;;  %v160_v25 = vpop.xlane.xlu2 %159 }
  0x96   :  { %v171_v16 = vmul.f32 %v7264_v14, %v154_v15  ;;  %v173_v27 = vmul.f32 %v7264_v14, %v160_v25  ;;  %v6591_v15 = vld [vmem:[#allocation2] ss:$0 sm:$0xff] }
  0x98   :  { %v7267_v17 = vsub.f32 %v136_v0, %v171_v16  ;;  %v7280_v29 = vsub.f32 %v138_v5, %v173_v27 }
  0x9a   :  { %v179_v18 = vmul.f32 %v7267_v17, %v7267_v17  ;;  %v181_v32 = vmul.f32 %v7280_v29, %v7280_v29 }
  0x9c   :  { %v183_v19 = vsel %vm151_vm0, %v179_v18, 0.0  ;;  %v189_v34 = vsel %vm151_vm0, %v181_v32, 0.0 }
  0x9d   :  { %184 = vadd.xlane.f32.xlu1 %v183_v19  ;;  %v157_v20 = vpop.xlane.xlu0 %156  ;;  %v163_v26 = vpop.xlane.xlu2 %162 }
  0x9e   :  { %v172_v21 = vmul.f32 %v7264_v14, %v157_v20  ;;  %v174_v28 = vmul.f32 %v7264_v14, %v163_v26 }
  0xa0   :  { %v7273_v22 = vsub.f32 %v137_v1, %v172_v21  ;;  %v7282_v30 = vsub.f32 %v139_v9, %v174_v28  ;;  %v6592_v21 = vld [vmem:[#allocation5] ss:$0 sm:$0xff] }
  0xa2   :  { %v180_v23 = vmul.f32 %v7273_v22, %v7273_v22  ;;  %v182_v31 = vmul.f32 %v7282_v30, %v7282_v30 }
  0xa4   :  { %v186_v24 = vsel %vm151_vm0, %v180_v23, 0.0  ;;  %v192_v33 = vsel %vm151_vm0, %v182_v31, 0.0 }
  0xa5   :  { %187 = vadd.xlane.f32.xlu1 %v186_v24  ;;  %193 = vadd.xlane.f32.xlu2 %v192_v33 }
  0xad   :  { %190 = vadd.xlane.f32.xlu1 %v189_v34 }
 0x110   :  { %v185_v57 = vpop.xlane.xlu1 %184 }
 0x111   :  { %v195_v59 = vmul.f32 %v185_v57, %v7264_v14 }
 0x113   :  { %v199_v61 = vadd.f32 1e-05, %v195_v59 }
 0x115   :  { %6620 = vrsqrt.f32 %v199_v61  ;;  %vm209_vm3 = vweird.f32 %v199_v61 }
 0x118   :  { %v188_v62 = vpop.xlane.xlu1 %187  ;;  %v194_v27 = vpop.xlane.xlu2 %193 }
 0x119   :  { %v196_v63 = vmul.f32 %v188_v62, %v7264_v14 }
 0x11b   :  { %v6621_v0 = vpop.eup %6620  ;;  %v200_v1 = vadd.f32 1e-05, %v196_v63 }
 0x11c   :  { %v204_v2 = vmul.f32 %v6621_v0, %v199_v61  ;;  %vm210_vm2 = vweird.f32 %v6621_v0 }
 0x11d   :  { %6622 = vrsqrt.f32 %v200_v1  ;;  %vm211_vm4 = vmor %vm209_vm3, %vm210_vm2  ;;  %vm219_vm6 = vweird.f32 %v200_v1  ;;  %vm1012_vm2 = vcmask 261120   ;;  %vm1017_vm3 = vcmask 392192  }
 0x11e   :  { %v205_v3 = vmul.f32 %v6621_v0, %v204_v2 }
 0x120   :  { %v206_v4 = vmul.f32 0.5, %v205_v3  ;;  %v191_v28 = vpop.xlane.xlu1 %190 }
 0x121   :  { %v197_v31 = vmul.f32 %v191_v28, %v7264_v14 }
 0x122   :  { %v207_v5 = vsub.f32 1.5, %v206_v4  ;;  %v140_v4 = vlaneseq }
 0x123   :  { %v6623_v6 = vpop.eup %6622  ;;  %v201_v33 = vadd.f32 1e-05, %v197_v31 }
 0x124   :  { %v208_v7 = vmul.f32 %v6621_v0, %v207_v5  ;;  %v214_v8 = vmul.f32 %v6623_v6, %v200_v1  ;;  %vm220_vm5 = vweird.f32 %v6623_v6  ;;  %v141_v5 = vshrl.u32 %v140_v4, 7 }
 0x125   :  { %vm221_vm7 = vmor %vm219_vm6, %vm220_vm5  ;;  %vm229_vm10 = vweird.f32 %v201_v33 }
 0x126   :  { %v215_v9 = vmul.f32 %v6623_v6, %v214_v8  ;;  %v212_v10 = vsel %vm211_vm4, %v6621_v0, %v208_v7  ;;  %v7123_v7 = vmov -1e+30  }
 0x127   :  { %v243_v13 = vmul.f32 %v212_v10, %v7267_v17  ;;  %v198_v17 = vmul.f32 %v194_v27, %v7264_v14 }
 0x128   :  { %v216_v11 = vmul.f32 0.5, %v215_v9  ;;  %v142_v9 = vadd.s32 8, %v141_v5 }
 0x129   :  { %v250_v20 = vmul.f32 %v6591_v15, %v243_v13  ;;  %v202_v32 = vadd.f32 1e-05, %v198_v17 }
 0x12a   :  { %v217_v12 = vsub.f32 1.5, %v216_v11 }
 0x12b   :  { %v257_v24 = vadd.f32 %v6592_v21, %v250_v20  ;;  %6624 = vrsqrt.f32 %v202_v32  ;;  %vm239_vm8 = vweird.f32 %v202_v32 }
 0x12c   :  { %v218_v16 = vmul.f32 %v6623_v6, %v217_v12  ;;  %6626 = vrsqrt.f32 %v201_v33 }
 0x12e   :  { %v222_v18 = vsel %vm221_vm7, %v6623_v6, %v218_v16  ;;  %v144_v6 = vand.u32 127, %v140_v4 }
 0x12f   :  { %v244_v19 = vmul.f32 %v222_v18, %v7273_v22 }
 0x130   :  { %vm145_vm15 = vcmp.le.s32.totalorder %v144_v6, %v141_v5  ;;  %vm146_vm1 = vcmp.le.s32.totalorder %v144_v6, %v142_v9 }
 0x131   :  { %v251_v23 = vmul.f32 %v6591_v15, %v244_v19  ;;  %v6625_v22 = vpop.eup %6624  ;;  %v7360_v8 = vsel %vm145_vm15, 0.0, %v7123_v7 }
 0x132   :  { %v6627_v34 = vpop.eup %6626  ;;  %v234_v35 = vmul.f32 %v6625_v22, %v202_v32  ;;  %vm240_vm9 = vweird.f32 %v6625_v22 }
 0x133   :  { %v258_v25 = vadd.f32 %v6592_v21, %v251_v23  ;;  %v224_v36 = vmul.f32 %v6627_v34, %v201_v33  ;;  %vm230_vm11 = vweird.f32 %v6627_v34  ;;  %vm241_vm12 = vmor %vm239_vm8, %vm240_vm9 }
 0x134   :  { %v235_v37 = vmul.f32 %v6625_v22, %v234_v35  ;;  %vm231_vm13 = vmor %vm229_vm10, %vm230_vm11 }
 0x135   :  { %v261_v26 = vpack.c.bf16 %v258_v25, %v257_v24  ;;  %v225_v38 = vmul.f32 %v6627_v34, %v224_v36 }
 0x136   :  { %v236_v39 = vmul.f32 0.5, %v235_v37 }
 0x137   :  { %5522 = vmatmul.msk.bf16.vlgmr.msra.gmra.mxu0 %vm151_vm0, %v261_v26  ;;  %5524 = vmatmul.msk.bf16.vlgmr.msra.gmra.mxu1 %vm151_vm0, %v261_v26  ;;  %v226_v40 = vmul.f32 0.5, %v225_v38 }
 0x138   :  { %v237_v41 = vsub.f32 1.5, %v236_v39 }
 0x139   :  { %v227_v42 = vsub.f32 1.5, %v226_v40 }
 0x13a   :  { %v238_v43 = vmul.f32 %v6625_v22, %v237_v41 }
 0x13b   :  { %v228_v44 = vmul.f32 %v6627_v34, %v227_v42 }
 0x13c   :  { %v242_v45 = vsel %vm241_vm12, %v6625_v22, %v238_v43 }
 0x13d   :  { %v232_v46 = vsel %vm231_vm13, %v6627_v34, %v228_v44  ;;  %v246_v47 = vmul.f32 %v242_v45, %v7282_v30 }
 0x13e   :  { %v245_v48 = vmul.f32 %v232_v46, %v7280_v29 }
 0x13f   :  { %v253_v49 = vmul.f32 %v6591_v15, %v246_v47 }
 0x140   :  { %v252_v50 = vmul.f32 %v6591_v15, %v245_v48  ;;  %v7364_v15 = vsel %vm146_vm1, 0.0, %v7123_v7 }
 0x141   :  { %v260_v51 = vadd.f32 %v6592_v21, %v253_v49 }
 0x142   :  { %v259_v52 = vadd.f32 %v6592_v21, %v252_v50 }
 0x144   :  { %v262_v53 = vpack.c.bf16 %v260_v51, %v259_v52 }
 0x147   :  { %5523 = vmatmul.msk.bf16.gmra.mxu0 %vm151_vm0, %v262_v53  ;;  %5525 = vmatmul.msk.bf16.gmra.mxu1 %vm151_vm0, %v262_v53 }
 0x1b4   :  { %v326_v54 = vpop.f32.mrf.mxu0  ;;  %v345_v29 = vpop.f32.mrf.mxu1 }
 0x1b5   :  { %v355_v55 = vpack.c.bf16 %v326_v54, %v326_v54  ;;  %v359_v62 = vpack.c.bf16 %v345_v29, %v345_v29 }
 0x1b7   :  { %v365_v58 = vunpack.c.l.b16 %v355_v55  ;;  %v473_v0 = vunpack.c.l.b16 %v359_v62 }
 0x1bc   :  { %v328_v56 = vpop.f32.mrf.mxu0  ;;  %v347_v30 = vpop.f32.mrf.mxu1 }
 0x1bd   :  { %v356_v57 = vpack.c.bf16 %v328_v56, %v328_v56  ;;  %v360_v61 = vpack.c.bf16 %v347_v30, %v347_v30 }
 0x1bf   :  { %v366_v59 = vunpack.c.l.b16 %v356_v57  ;;  %v474_v63 = vunpack.c.l.b16 %v360_v61 }
 0x1c1   :  { %v7350_v60 = vpack.c.b16 %v366_v59, %v365_v58  ;;  %v7354_v2 = vpack.c.b16 %v474_v63, %v473_v0 }
 0x1c3   :  { %368 = vrot.lane.b32.xlu0 %v7350_v60, %s7122_s25 }
 0x1c4   :  { %v331_v13 = vpop.f32.mrf.mxu0  ;;  %v350_v31 = vpop.f32.mrf.mxu1 }
 0x1c5   :  { %v357_v21 = vpack.c.bf16 %v331_v13, %v331_v13  ;;  %v361_v37 = vpack.c.bf16 %v350_v31, %v350_v31 }
 0x1c7   :  { %v393_v24 = vunpack.c.l.b16 %v357_v21  ;;  %v501_v41 = vunpack.c.l.b16 %v361_v37 }
 0x1cc   :  { %v333_v20 = vpop.f32.mrf.mxu0  ;;  %v352_v36 = vpop.f32.mrf.mxu1 }
 0x1cd   :  { %v358_v23 = vpack.c.bf16 %v333_v20, %v333_v20  ;;  %v362_v38 = vpack.c.bf16 %v352_v36, %v352_v36 }
 0x1cf   :  { %v394_v25 = vunpack.c.l.b16 %v358_v23  ;;  %v502_v42 = vunpack.c.l.b16 %v362_v38 }
 0x1d1   :  { %v7368_v26 = vpack.c.b16 %v394_v25, %v393_v24  ;;  %v7376_v44 = vpack.c.b16 %v502_v42, %v501_v41 }
 0x235   :  { %v369_v1 = vpop.permute.xlu0 %368 }
 0x236   :  { %v375_v3 = vsel %vm370_vm14, %v369_v1, 0 }
 0x237   :  { %384 = vmatpush.bf16.xpose.msra.mxu2 %v375_v3 }
 0x23e   :  { %5526 = vmatmul.msk.bf16.vlgmr.msra.gmra.mxu2 %vm370_vm14, %v7350_v60 }
 0x23f   :  { %487 = vmatpush.bf16.msrb.mxu2 %v7354_v2 }
 0x2c1   :  { %v386_v10 = vpop.f32.mrf.mxu2 }
 0x2c2   :  { %v387_v11 = vadd.f32 %v386_v10, %v7360_v8 }
 0x2c4   :  { %v418_v12 = vsel %vm370_vm14, %v387_v11, -inf }
 0x2c5   :  { %419 = vmax.xlane.f32.xlu1 %v418_v12 }
 0x2c9   :  { %v388_v16 = vpop.f32.mrf.mxu2 }
 0x2ca   :  { %v389_v18 = vadd.f32 %v388_v16, %v7364_v15 }
 0x2cc   :  { %v421_v19 = vsel %vm370_vm14, %v389_v18, -inf }
 0x2cd   :  { %422 = vmax.xlane.f32.xlu2 %v421_v19 }
 0x2de   :  { %396 = vrot.lane.b32.xlu1 %v7368_v26, %s7122_s25 }
 0x2e6   :  { %522 = vrot.lane.b32.xlu1 %v7350_v60, %s7124_s6 }
 0x338   :  { %v420_v27 = vpop.xlane.xlu1 %419 }
 0x339   :  { %v430_v28 = vsub.f32 %v387_v11, %v420_v27 }
 0x33b   :  { %v434_v17 = vmul.f32 1.442695, %v430_v28 }
 0x33d   :  { %6628 = vpow2.f32 %v434_v17 }
 0x340   :  { %v423_v32 = vpop.xlane.xlu2 %422 }
 0x341   :  { %v431_v33 = vsub.f32 %v389_v18, %v423_v32 }
 0x343   :  { %v6629_v22 = vpop.eup %6628  ;;  %v436_v34 = vmul.f32 1.442695, %v431_v33 }
 0x344   :  { %v442_v35 = vsel %vm370_vm14, %v6629_v22, 0.0 }
 0x345   :  { %6630 = vpow2.f32 %v436_v34  ;;  %443 = vadd.xlane.f32.xlu2 %v442_v35 }
 0x34b   :  { %v6631_v39 = vpop.eup %6630 }
 0x34c   :  { %v445_v40 = vsel %vm370_vm14, %v6631_v39, 0.0 }
 0x34d   :  { %446 = vadd.xlane.f32.xlu0 %v445_v40 }
 0x350   :  { %v397_v43 = vpop.permute.xlu1 %396 }
 0x351   :  { %v402_v45 = vsel %vm370_vm14, %v397_v43, 0 }
 0x352   :  { %411 = vmatpush.bf16.xpose.msra.mxu3 %v402_v45 }
 0x358   :  { %v523_v30 = vpop.permute.xlu1 %522 }
 0x359   :  { %5527 = vmatmul.msk.bf16.vlgmr.msra.gmra.mxu3 %vm370_vm14, %v7368_v26 }
 0x35a   :  { %515 = vmatpush.bf16.msrb.mxu3 %v7376_v44 }
 0x35d   :  { %524 = vrot.lane.b32.xlu2 %v7350_v60, %s7125_s27 }
 0x3b8   :  { %v444_v46 = vpop.xlane.xlu2 %443 }
 0x3b9   :  { %6632 = vrcp.f32 %v444_v46 }
 0x3bf   :  { %v6633_v49 = vpop.eup %6632 }
 0x3c0   :  { %v447_v47 = vpop.xlane.xlu0 %446  ;;  %v525_v48 = vpop.permute.xlu2 %524  ;;  %v458_v51 = vmul.f32 %v6633_v49, %v6629_v22 }
 0x3c1   :  { %6634 = vrcp.f32 %v447_v47  ;;  %v530_v50 = vsel %vm370_vm14, %v525_v48, 0 }
 0x3c2   :  { %539 = vmatpush.bf16.xpose.msra.mxu2 %v530_v50  ;;  %v462_v53 = vpack.c.bf16 %v458_v51, %v458_v51 }
 0x3c4   :  { %v468_v56 = vunpack.c.l.b16 %v462_v53 }
 0x3c7   :  { %v6635_v52 = vpop.eup %6634 }
 0x3c8   :  { %v459_v54 = vmul.f32 %v6635_v52, %v6631_v39 }
 0x3ca   :  { %v463_v55 = vpack.c.bf16 %v459_v54, %v459_v54 }
 0x3cc   :  { %v469_v57 = vunpack.c.l.b16 %v463_v55 }
 0x3ce   :  { %v470_v58 = vpack.c.b16 %v469_v57, %v468_v56 }
 0x3d0   :  { %5528 = vmatmul.msk.bf16.vlgmr.msrb.gmra.mxu2 %vm370_vm14, %v470_v58 }
 0x3dc   :  { %v413_v59 = vpop.f32.mrf.mxu3 }
 0x3dd   :  { %v414_v29 = vadd.f32 %v413_v59, %v7360_v8 }
 0x3df   :  { %v424_v61 = vsel %vm370_vm14, %v414_v29, -inf }
 0x3e0   :  { %425 = vmax.xlane.f32.xlu2 %v424_v61  ;;  %5530 = vmatmul.msk.bf16.vlgmr.msra.gmra.mxu2 %vm370_vm14, %v523_v30 }
 0x3e4   :  { %v415_v62 = vpop.f32.mrf.mxu3 }
 0x3e5   :  { %v416_v63 = vadd.f32 %v415_v62, %v7364_v15 }
 0x3e7   :  { %v427_v0 = vsel %vm370_vm14, %v416_v63, -inf }
 0x3e8   :  { %428 = vmax.xlane.f32.xlu1 %v427_v0 }
 0x3f8   :  { %548 = vrot.lane.b32.xlu2 %v7368_v26, %s7125_s27 }
 0x400   :  { %670 = vrot.lane.b32.xlu2 %v7350_v60, %s7126_s29 }
 0x401   :  { %546 = vrot.lane.b32.xlu1 %v7368_v26, %s7124_s6 }
 0x408   :  { %816 = vrot.lane.b32.xlu2 %v7350_v60, %s7115_s18 }
 0x409   :  { %668 = vrot.lane.b32.xlu1 %v7350_v60, %s7127_s26 }
 0x411   :  { %814 = vrot.lane.b32.xlu1 %v7350_v60, %s7128_s28 }
 0x453   :  { %v7403_v1 = vpop.f32.mrf.mxu2  ;;  %v426_v3 = vpop.xlane.xlu2 %425 }
 0x454   :  { %v432_v4 = vsub.f32 %v414_v29, %v426_v3 }
 0x456   :  { %v438_v5 = vmul.f32 1.442695, %v432_v4 }
 0x458   :  { %6636 = vpow2.f32 %v438_v5 }
 0x45b   :  { %v7405_v6 = vpop.f32.mrf.mxu2  ;;  %v549_v7 = vpop.permute.xlu2 %548 }
 0x45c   :  { %v554_v9 = vsel %vm370_vm14, %v549_v7, 0  ;;  %v429_v12 = vpop.xlane.xlu1 %428 }
 0x45d   :  { %563 = vmatpush.bf16.xpose.msra.mxu3 %v554_v9  ;;  %v433_v16 = vsub.f32 %v416_v63, %v429_v12 }
 0x45e   :  { %v6637_v10 = vpop.eup %6636 }
 0x45f   :  { %v448_v11 = vsel %vm370_vm14, %v6637_v10, 0.0  ;;  %v440_v19 = vmul.f32 1.442695, %v433_v16 }
 0x460   :  { %449 = vadd.xlane.f32.xlu0 %v448_v11 }
 0x461   :  { %6638 = vpow2.f32 %v440_v19 }
 0x463   :  { %v541_v13 = vpop.f32.mrf.mxu2  ;;  %v671_v55 = vpop.permute.xlu2 %670 }
 0x464   :  { %v542_v60 = vadd.f32 %v541_v13, %v7360_v8  ;;  %v676_v61 = vsel %vm370_vm14, %v671_v55, 0 }
 0x466   :  { %v570_v18 = vsel %vm370_vm14, %v542_v60, -inf }
 0x467   :  { %v6639_v24 = vpop.eup %6638 }
 0x468   :  { %571 = vmax.xlane.f32.xlu0 %v570_v18  ;;  %v451_v25 = vsel %vm370_vm14, %v6639_v24, 0.0 }
 0x46b   :  { %v543_v20 = vpop.f32.mrf.mxu2  ;;  %v817_v62 = vpop.permute.xlu2 %816 }
 0x46c   :  { %v544_v21 = vadd.f32 %v543_v20, %v7364_v15  ;;  %v822_v0 = vsel %vm370_vm14, %v817_v62, 0 }
 0x46e   :  { %v573_v23 = vsel %vm370_vm14, %v544_v21, -inf }
 0x470   :  { %574 = vmax.xlane.f32.xlu0 %v573_v23 }
 0x473   :  { %v547_v49 = vpop.permute.xlu1 %546 }
 0x478   :  { %452 = vadd.xlane.f32.xlu0 %v451_v25 }
 0x47b   :  { %v669_v5 = vpop.permute.xlu1 %668 }
 0x483   :  { %v815_v13 = vpop.permute.xlu1 %814 }
 0x4d3   :  { %v450_v27 = vpop.xlane.xlu0 %449 }
 0x4db   :  { %v572_v28 = vpop.xlane.xlu0 %571 }
 0x4dc   :  { %v582_v17 = vsub.f32 %v542_v60, %v572_v28 }
 0x4de   :  { %v586_v31 = vmul.f32 1.442695, %v582_v17 }
 0x4e0   :  { %6640 = vpow2.f32 %v586_v31 }
 0x4e1   :  { %6642 = vrcp.f32 %v450_v27 }
 0x4e3   :  { %v575_v32 = vpop.xlane.xlu0 %574 }
 0x4e4   :  { %v583_v33 = vsub.f32 %v544_v21, %v575_v32 }
 0x4e6   :  { %v6641_v22 = vpop.eup %6640  ;;  %v588_v34 = vmul.f32 1.442695, %v583_v33 }
 0x4e7   :  { %v594_v35 = vsel %vm370_vm14, %v6641_v22, 0.0  ;;  %v6643_v37 = vpop.eup %6642 }
 0x4e8   :  { %6644 = vpow2.f32 %v588_v34  ;;  %595 = vadd.xlane.f32.xlu0 %v594_v35  ;;  %v460_v39 = vmul.f32 %v6643_v37, %v6637_v10 }
 0x4ea   :  { %v464_v42 = vpack.c.bf16 %v460_v39, %v460_v39 }
 0x4eb   :  { %v453_v36 = vpop.xlane.xlu0 %452 }
 0x4ec   :  { %6646 = vrcp.f32 %v453_v36  ;;  %v496_v46 = vunpack.c.l.b16 %v464_v42 }
 0x4ee   :  { %v6645_v38 = vpop.eup %6644 }
 0x4ef   :  { %v597_v40 = vsel %vm370_vm14, %v6645_v38, 0.0 }
 0x4f0   :  { %598 = vadd.xlane.f32.xlu0 %v597_v40 }
 0x4f2   :  { %v6647_v41 = vpop.eup %6646 }
 0x4f3   :  { %v461_v43 = vmul.f32 %v6647_v41, %v6639_v24 }
 0x4f5   :  { %v465_v45 = vpack.c.bf16 %v461_v43, %v461_v43 }
 0x4f7   :  { %v497_v47 = vunpack.c.l.b16 %v465_v45 }
 0x4f9   :  { %v498_v48 = vpack.c.b16 %v497_v47, %v496_v46 }
 0x4fb   :  { %5529 = vmatmul.msk.bf16.vlgmr.msrb.gmra.mxu3 %vm370_vm14, %v498_v48 }
 0x504   :  { %623 = vrot.lane.b32.xlu0 %v7354_v2, %s7124_s6 }
 0x50b   :  { %5531 = vmatmul.msk.bf16.vlgmr.msra.gmra.mxu3 %vm370_vm14, %v547_v49 }
 0x55b   :  { %v596_v50 = vpop.xlane.xlu0 %595 }
 0x563   :  { %v599_v51 = vpop.xlane.xlu0 %598 }
 0x564   :  { %6648 = vrcp.f32 %v599_v51 }
 0x565   :  { %6650 = vrcp.f32 %v596_v50 }
 0x56a   :  { %v6649_v52 = vpop.eup %6648 }
 0x56b   :  { %v6651_v53 = vpop.eup %6650  ;;  %v611_v54 = vmul.f32 %v6649_v52, %v6645_v38 }
 0x56c   :  { %v610_v56 = vmul.f32 %v6651_v53, %v6641_v22 }
 0x56d   :  { %v615_v57 = vpack.c.bf16 %v611_v54, %v611_v54 }
 0x56e   :  { %v614_v58 = vpack.c.bf16 %v610_v56, %v610_v56 }
 0x56f   :  { %v621_v59 = vunpack.c.l.b16 %v615_v57 }
 0x570   :  { %v620_v29 = vunpack.c.l.b16 %v614_v58 }
 0x572   :  { %v622_v63 = vpack.c.b16 %v621_v59, %v620_v29 }
 0x576   :  { %v624_v30 = vpop.permute.xlu0 %623 }
 0x577   :  { %636 = vmatpush.bf16.msrb.mxu2 %v624_v30 }
 0x57a   :  { %5532 = vmatmul.msk.bf16.vlgmr.msrb.gmra.mxu2 %vm370_vm14, %v622_v63 }
 0x57b   :  { %685 = vmatpush.bf16.xpose.msra.mxu2 %v676_v61 }
 0x57e   :  { %v7423_v3 = vpop.f32.mrf.mxu3 }
 0x583   :  { %831 = vmatpush.bf16.xpose.msrb.mxu2 %v822_v0 }
 0x586   :  { %v7425_v4 = vpop.f32.mrf.mxu3 }
 0x58a   :  { %5534 = vmatmul.msk.bf16.vlgmr.msra.gmra.mxu2 %vm370_vm14, %v669_v5 }
 0x58e   :  { %v565_v7 = vpop.f32.mrf.mxu3 }
 0x58f   :  { %v566_v9 = vadd.f32 %v565_v7, %v7360_v8 }
 0x591   :  { %v576_v10 = vsel %vm370_vm14, %v566_v9, -inf }
 0x592   :  { %577 = vmax.xlane.f32.xlu2 %v576_v10 }
 0x596   :  { %v567_v11 = vpop.f32.mrf.mxu3 }
 0x597   :  { %v568_v12 = vadd.f32 %v567_v11, %v7364_v15 }
 0x599   :  { %v579_v60 = vsel %vm370_vm14, %v568_v12, -inf }
 0x59a   :  { %580 = vmax.xlane.f32.xlu0 %v579_v60  ;;  %5538 = vmatmul.msk.bf16.vlgmr.msrb.gmra.mxu2 %vm370_vm14, %v815_v13 }
 0x5aa   :  { %694 = vrot.lane.b32.xlu2 %v7368_v26, %s7126_s29 }
 0x5fd   :  { %v7435_v16 = vpop.f32.mrf.mxu2 }
 0x605   :  { %v7437_v18 = vpop.f32.mrf.mxu2  ;;  %v578_v19 = vpop.xlane.xlu2 %577 }
 0x606   :  { %v584_v20 = vsub.f32 %v566_v9, %v578_v19 }
 0x608   :  { %v590_v21 = vmul.f32 1.442695, %v584_v20 }
 0x60a   :  { %6652 = vpow2.f32 %v590_v21 }
 0x60d   :  { %v581_v23 = vpop.xlane.xlu0 %580  ;;  %v687_v25 = vpop.f32.mrf.mxu2 }
 0x60e   :  { %v585_v24 = vsub.f32 %v568_v12, %v581_v23  ;;  %v688_v35 = vadd.f32 %v687_v25, %v7360_v8  ;;  %v695_v43 = vpop.permute.xlu2 %694 }
 0x610   :  { %v7439_v27 = vpop.eup %6652  ;;  %v592_v28 = vmul.f32 1.442695, %v585_v24  ;;  %v716_v39 = vsel %vm370_vm14, %v688_v35, -inf  ;;  %v700_v24 = vsel %vm370_vm14, %v695_v43, 0 }
 0x611   :  { %v600_v17 = vsel %vm370_vm14, %v7439_v27, 0.0 }
 0x612   :  { %6654 = vpow2.f32 %v592_v28  ;;  %601 = vadd.xlane.f32.xlu0 %v600_v17  ;;  %v6471_v28 = vpack.i.bf16 %v7437_v18, %v7435_v16 }
 0x615   :  { %v689_v31 = vpop.f32.mrf.mxu2 }
 0x616   :  { %v690_v32 = vadd.f32 %v689_v31, %v7364_v15 }
 0x618   :  { %v6655_v33 = vpop.eup %6654  ;;  %v719_v22 = vsel %vm370_vm14, %v690_v32, -inf }
 0x619   :  { %v603_v34 = vsel %vm370_vm14, %v6655_v33, 0.0  ;;  %720 = vmax.xlane.f32.xlu2 %v719_v22 }
 0x61a   :  { %604 = vadd.xlane.f32.xlu1 %v603_v34 }
 0x61d   :  { %v833_v36 = vpop.f32.mrf.mxu2 }
 0x61e   :  { %v834_v37 = vadd.f32 %v833_v36, %v7360_v8 }
 0x620   :  { %v862_v38 = vsel %vm370_vm14, %v834_v37, -inf }
 0x621   :  { %863 = vmax.xlane.f32.xlu2 %v862_v38 }
 0x622   :  { %717 = vmax.xlane.f32.xlu1 %v716_v39 }
 0x625   :  { %v835_v40 = vpop.f32.mrf.mxu2 }
 0x626   :  { %v836_v41 = vadd.f32 %v835_v40, %v7364_v15 }
 0x628   :  { %v865_v42 = vsel %vm370_vm14, %v836_v41, -inf }
 0x629   :  { %866 = vmax.xlane.f32.xlu0 %v865_v42 }
 0x639   :  { %840 = vrot.lane.b32.xlu2 %v7368_v26, %s7115_s18 }
 0x63b   :  { %648 = vrot.lane.b32.xlu1 %v7376_v44, %s7124_s6 }
 0x63d   :  { %692 = vrot.lane.b32.xlu0 %v7368_v26, %s7127_s26 }
 0x641   :  { %838 = vrot.lane.b32.xlu2 %v7368_v26, %s7128_s28 }
 0x649   :  { %769 = vrot.lane.b32.xlu2 %v7354_v2, %s7127_s26 }
 0x685   :  { %v602_v49 = vpop.xlane.xlu0 %601 }
 0x68c   :  { %v721_v45 = vpop.xlane.xlu2 %720 }
 0x68d   :  { %v605_v46 = vpop.xlane.xlu1 %604  ;;  %v729_v47 = vsub.f32 %v690_v32, %v721_v45 }
 0x68f   :  { %v734_v48 = vmul.f32 1.442695, %v729_v47 }
 0x691   :  { %6656 = vpow2.f32 %v734_v48 }
 0x692   :  { %6658 = vrcp.f32 %v605_v46 }
 0x694   :  { %v864_v50 = vpop.xlane.xlu2 %863 }
 0x695   :  { %v718_v51 = vpop.xlane.xlu1 %717  ;;  %v874_v52 = vsub.f32 %v834_v37, %v864_v50 }
 0x696   :  { %v728_v53 = vsub.f32 %v688_v35, %v718_v51 }
 0x697   :  { %v6657_v54 = vpop.eup %6656  ;;  %v878_v55 = vmul.f32 1.442695, %v874_v52 }
 0x698   :  { %v732_v56 = vmul.f32 1.442695, %v728_v53  ;;  %v743_v26 = vsel %vm370_vm14, %v6657_v54, 0.0  ;;  %v6659_v29 = vpop.eup %6658 }
 0x699   :  { %6660 = vpow2.f32 %v878_v55  ;;  %744 = vadd.xlane.f32.xlu0 %v743_v26  ;;  %v613_v7 = vmul.f32 %v6659_v29, %v6655_v33 }
 0x69a   :  { %6662 = vpow2.f32 %v732_v56 }
 0x69b   :  { %6664 = vrcp.f32 %v602_v49  ;;  %v617_v12 = vpack.c.bf16 %v613_v7, %v613_v7 }
 0x69c   :  { %v867_v57 = vpop.xlane.xlu0 %866  ;;  %v841_v58 = vpop.permute.xlu2 %840 }
 0x69d   :  { %v875_v59 = vsub.f32 %v836_v41, %v867_v57  ;;  %v646_v19 = vunpack.c.l.b16 %v617_v12 }
 0x69f   :  { %v6661_v30 = vpop.eup %6660  ;;  %v880_v61 = vmul.f32 1.442695, %v875_v59 }
 0x6a0   :  { %v6663_v62 = vpop.eup %6662  ;;  %v886_v63 = vsel %vm370_vm14, %v6661_v30, 0.0 }
 0x6a1   :  { %6666 = vpow2.f32 %v880_v61  ;;  %887 = vadd.xlane.f32.xlu2 %v886_v63  ;;  %v740_v0 = vsel %vm370_vm14, %v6663_v62, 0.0  ;;  %v6665_v5 = vpop.eup %6664 }
 0x6a2   :  { %741 = vadd.xlane.f32.xlu1 %v740_v0  ;;  %v612_v10 = vmul.f32 %v6665_v5, %v7439_v27  ;;  %v846_v27 = vsel %vm370_vm14, %v841_v58, 0 }
 0x6a4   :  { %v839_v9 = vpop.permute.xlu2 %838  ;;  %v616_v60 = vpack.c.bf16 %v612_v10, %v612_v10 }
 0x6a6   :  { %v645_v23 = vunpack.c.l.b16 %v616_v60 }
 0x6a7   :  { %v6667_v11 = vpop.eup %6666 }
 0x6a8   :  { %v889_v13 = vsel %vm370_vm14, %v6667_v11, 0.0  ;;  %v647_v25 = vpack.c.b16 %v646_v19, %v645_v23 }
 0x6aa   :  { %890 = vadd.xlane.f32.xlu1 %v889_v13 }
 0x6ac   :  { %v770_v20 = vpop.permute.xlu2 %769 }
 0x6ad   :  { %v649_v21 = vpop.permute.xlu1 %648  ;;  %915 = vrot.lane.b32.xlu0 %v7354_v2, %s7128_s28  ;;  %782 = vmatpush.bf16.msrb.mxu0 %v770_v20 }
 0x6ae   :  { %661 = vmatpush.bf16.msrb.mxu3 %v649_v21 }
 0x6af   :  { %v693_v17 = vpop.permute.xlu0 %692 }
 0x6b1   :  { %5533 = vmatmul.msk.bf16.vlgmr.msrb.gmra.mxu3 %vm370_vm14, %v647_v25 }
 0x6b2   :  { %709 = vmatpush.bf16.xpose.msra.mxu3 %v700_v24 }
 0x6b9   :  { %6472 = vrot.lane.b32.xlu2 %v6471_v28, %s7115_s18 }
 0x6ba   :  { %855 = vmatpush.bf16.xpose.msrb.mxu3 %v846_v27 }
 0x6c1   :  { %5535 = vmatmul.msk.bf16.vlgmr.msra.gmra.mxu3 %vm370_vm14, %v693_v17 }
 0x6d1   :  { %5539 = vmatmul.msk.bf16.vlgmr.msrb.gmra.mxu3 %vm370_vm14, %v839_v9 }
 0x70c   :  { %v745_v2 = vpop.xlane.xlu0 %744 }
 0x70d   :  { %6668 = vrcp.f32 %v745_v2 }
 0x713   :  { %v6669_v32 = vpop.eup %6668 }
 0x714   :  { %v757_v33 = vmul.f32 %v6669_v32, %v6657_v54  ;;  %v888_v35 = vpop.xlane.xlu2 %887 }
 0x715   :  { %v742_v31 = vpop.xlane.xlu1 %741 }
 0x716   :  { %6670 = vrcp.f32 %v742_v31  ;;  %v761_v34 = vpack.c.bf16 %v757_v33, %v757_v33 }
 0x718   :  { %v767_v39 = vunpack.c.l.b16 %v761_v34  ;;  %v6315_v34 = vld [vmem:[%s9383_s4 + $0x18] sm:$0xff] }
 0x719   :  { %1070 = vmatpush.bf16.msra.mxu2 %v6315_v34 }
 0x71c   :  { %v6671_v22 = vpop.eup %6670 }
 0x71d   :  { %v756_v36 = vmul.f32 %v6671_v22, %v6663_v62  ;;  %v891_v37 = vpop.xlane.xlu1 %890 }
 0x71e   :  { %6672 = vrcp.f32 %v891_v37 }
 0x71f   :  { %v760_v16 = vpack.c.bf16 %v756_v36, %v756_v36  ;;  %v916_v18 = vpop.permute.xlu0 %915  ;;  %6674 = vrcp.f32 %v888_v35 }
 0x720   :  { %928 = vmatpush.bf16.msra.mxu0 %v916_v18  ;;  %v6313_v18 = vld [vmem:[%s9383_s4 + $0x8] sm:$0xff] }
 0x721   :  { %v766_v38 = vunpack.c.l.b16 %v760_v16  ;;  %v6314_v16 = vld [vmem:[%s9383_s4 + $0x10] sm:$0xff] }
 0x722   :  { %1071 = vmatpush.bf16.msra.mxu2 %v6314_v16 }
 0x723   :  { %v768_v40 = vpack.c.b16 %v767_v39, %v766_v38  ;;  %v6312_v38 = vld [vmem:[%s9383_s4] sm:$0xff]  ;;  %v6473_v39 = vpop.permute.xlu2 %6472 }
 0x724   :  { %v6673_v41 = vpop.eup %6672 }
 0x725   :  { %5536 = vmatmul.msk.bf16.vlgmr.msrb.gmra.mxu0 %vm370_vm14, %v768_v40  ;;  %v6675_v42 = vpop.eup %6674  ;;  %v903_v43 = vmul.f32 %v6673_v41, %v6667_v11  ;;  %v6475_v40 = vunpack.i.h.bf16 %v6473_v39  ;;  %v6474_v41 = vunpack.i.l.bf16 %v6473_v39 }
 0x726   :  { %v902_v45 = vmul.f32 %v6675_v42, %v6661_v30  ;;  %1072 = vmatpush.bf16.msra.mxu2 %v6313_v18 }
 0x727   :  { %v907_v46 = vpack.c.bf16 %v903_v43, %v903_v43 }
 0x728   :  { %v906_v47 = vpack.c.bf16 %v902_v45, %v902_v45 }
 0x729   :  { %v913_v48 = vunpack.c.l.b16 %v907_v46 }
 0x72a   :  { %v912_v49 = vunpack.c.l.b16 %v906_v47  ;;  %1073 = vmatpush.bf16.msra.mxu2 %v6312_v38  ;;  %v1009_v47 = vsel %vm370_vm14, %v7405_v6, %v6475_v40 }
 0x72c   :  { %v914_v50 = vpack.c.b16 %v913_v48, %v912_v49 }
 0x734   :  { %v7478_v51 = vpop.f32.mrf.mxu3 }
 0x735   :  { %5540 = vmatmul.msk.bf16.vlgmr.msra.gmra.mxu0 %vm370_vm14, %v914_v50 }
 0x73c   :  { %v7481_v52 = vpop.f32.mrf.mxu3 }
 0x73d   :  { %v6486_v34 = vpack.i.bf16 %v7481_v52, %v7478_v51 }
 0x744   :  { %v711_v53 = vpop.f32.mrf.mxu3 }
 0x745   :  { %v712_v54 = vadd.f32 %v711_v53, %v7360_v8 }
 0x747   :  { %v722_v55 = vsel %vm370_vm14, %v712_v54, -inf }
 0x748   :  { %723 = vmax.xlane.f32.xlu1 %v722_v55 }
 0x74c   :  { %v713_v56 = vpop.f32.mrf.mxu3 }
 0x74d   :  { %v714_v26 = vadd.f32 %v713_v56, %v7364_v15 }
 0x74f   :  { %v725_v57 = vsel %vm370_vm14, %v714_v26, -inf }
 0x750   :  { %726 = vmax.xlane.f32.xlu1 %v725_v57 }
 0x754   :  { %v857_v58 = vpop.f32.mrf.mxu3 }
 0x755   :  { %v858_v59 = vadd.f32 %v857_v58, %v7360_v8 }
 0x757   :  { %v868_v29 = vsel %vm370_vm14, %v858_v59, -inf }
 0x758   :  { %869 = vmax.xlane.f32.xlu0 %v868_v29 }
 0x75c   :  { %v859_v30 = vpop.f32.mrf.mxu3 }
 0x75d   :  { %v860_v61 = vadd.f32 %v859_v30, %v7364_v15 }
 0x75f   :  { %v871_v62 = vsel %vm370_vm14, %v860_v61, -inf }
 0x760   :  { %872 = vmax.xlane.f32.xlu1 %v871_v62 }
 0x76c   :  { %794 = vrot.lane.b32.xlu0 %v7376_v44, %s7127_s26 }
 0x7a2   :  { %v784_v63 = vpop.f32.mrf.mxu0 }
 0x7aa   :  { %v786_v0 = vpop.f32.mrf.mxu0 }
 0x7ab   :  { %v6476_v5 = vpack.i.bf16 %v786_v0, %v784_v63 }
 0x7ad   :  { %6477 = vrot.lane.b32.xlu1 %v6476_v5, %s7126_s29 }
 0x7b2   :  { %v930_v7 = vpop.f32.mrf.mxu0 }
 0x7ba   :  { %v932_v9 = vpop.f32.mrf.mxu0 }
 0x7bb   :  { %v6481_v10 = vpack.i.bf16 %v932_v9, %v930_v7  ;;  %v724_v11 = vpop.xlane.xlu1 %723 }
 0x7bc   :  { %v730_v12 = vsub.f32 %v712_v54, %v724_v11 }
 0x7bd   :  { %6482 = vrot.lane.b32.xlu2 %v6481_v10, %s7125_s27 }
 0x7be   :  { %v736_v13 = vmul.f32 1.442695, %v730_v12 }
 0x7c0   :  { %6676 = vpow2.f32 %v736_v13 }
 0x7c3   :  { %v727_v60 = vpop.xlane.xlu1 %726 }
 0x7c4   :  { %v731_v25 = vsub.f32 %v714_v26, %v727_v60 }
 0x7c6   :  { %v6677_v23 = vpop.eup %6676  ;;  %v738_v32 = vmul.f32 1.442695, %v731_v25 }
 0x7c7   :  { %v746_v2 = vsel %vm370_vm14, %v6677_v23, 0.0 }
 0x7cb   :  { %v870_v19 = vpop.xlane.xlu0 %869 }
 0x7cc   :  { %v876_v20 = vsub.f32 %v858_v59, %v870_v19 }
 0x7ce   :  { %v882_v21 = vmul.f32 1.442695, %v876_v20 }
 0x7d0   :  { %6678 = vpow2.f32 %v882_v21 }
 0x7d3   :  { %v873_v24 = vpop.xlane.xlu1 %872 }
 0x7d4   :  { %v877_v27 = vsub.f32 %v860_v61, %v873_v24 }
 0x7d6   :  { %v7495_v28 = vpop.eup %6678  ;;  %v884_v17 = vmul.f32 1.442695, %v877_v27  ;;  %v6932_v27 = vld [vmem:[%s9401_s22] sm:$0xff] }
 0x7d7   :  { %747 = vadd.xlane.f32.xlu1 %v746_v2  ;;  %v892_v31 = vsel %vm370_vm14, %v7495_v28, 0.0 }
 0x7d8   :  { %6680 = vpow2.f32 %v884_v17  ;;  %893 = vadd.xlane.f32.xlu0 %v892_v31 }
 0x7d9   :  { %6682 = vpow2.f32 %v738_v32  ;;  %v6933_v32 = vld [vmem:[%s9401_s22 + $0x8] sm:$0xff] }
 0x7de   :  { %v6681_v33 = vpop.eup %6680  ;;  %v795_v22 = vpop.permute.xlu0 %794 }
 0x7df   :  { %807 = vmatpush.bf16.msrb.mxu1 %v795_v22  ;;  %v895_v35 = vsel %vm370_vm14, %v6681_v33, 0.0  ;;  %v6683_v36 = vpop.eup %6682 }
 0x7e0   :  { %896 = vadd.xlane.f32.xlu1 %v895_v35  ;;  %v749_v37 = vsel %vm370_vm14, %v6683_v36, 0.0 }
 0x7e6   :  { %750 = vadd.xlane.f32.xlu2 %v749_v37 }
 0x7fe   :  { %940 = vrot.lane.b32.xlu2 %v7376_v44, %s7128_s28  ;;  %v1008_v44 = vsel %vm370_vm14, %v7403_v1, %v6474_v41 }
 0x817   :  { %v6483_v42 = vpop.permute.xlu2 %6482 }
 0x818   :  { %v6485_v48 = vunpack.i.h.bf16 %v6483_v42  ;;  %v6484_v49 = vunpack.i.l.bf16 %v6483_v42 }
 0x81f   :  { %v6478_v43 = vpop.permute.xlu1 %6477 }
 0x820   :  { %v6480_v45 = vunpack.i.h.bf16 %v6478_v43  ;;  %v6479_v46 = vunpack.i.l.bf16 %v6478_v43 }
 0x822   :  { %v1014_v50 = vsel %vm1012_vm2, %v1009_v47, %v6480_v45  ;;  %v1013_v53 = vsel %vm1012_vm2, %v1008_v44, %v6479_v46 }
 0x823   :  { %v1019_v54 = vsel %vm1017_vm3, %v1014_v50, %v6485_v48  ;;  %v1018_v55 = vsel %vm1017_vm3, %v1013_v53, %v6484_v49 }
 0x824   :  { %v1022_v56 = vpack.c.bf16 %v1019_v54, %v1018_v55 }
 0x826   :  { %5558 = vmatmul.msk.bf16.vlgmr.msra.gmra.mxu2 %vm151_vm0, %v1022_v56 }
 0x84a   :  { %v748_v26 = vpop.xlane.xlu1 %747 }
 0x84b   :  { %6684 = vrcp.f32 %v748_v26  ;;  %v894_v30 = vpop.xlane.xlu0 %893 }
 0x851   :  { %v6685_v6 = vpop.eup %6684 }
 0x852   :  { %v758_v58 = vmul.f32 %v6685_v6, %v6677_v23  ;;  %v7528_v23 = vld [vmem:[#allocation7] ss:$0 sm:$0xff] }
 0x853   :  { %v897_v1 = vpop.xlane.xlu1 %896 }
 0x854   :  { %v762_v29 = vpack.c.bf16 %v758_v58, %v758_v58 }
 0x856   :  { %v791_v0 = vunpack.c.l.b16 %v762_v29 }
 0x859   :  { %v751_v57 = vpop.xlane.xlu2 %750 }
 0x85a   :  { %6686 = vrcp.f32 %v751_v57 }
 0x85b   :  { %6688 = vrcp.f32 %v897_v1 }
 0x85c   :  { %6690 = vrcp.f32 %v894_v30 }
 0x860   :  { %v6687_v59 = vpop.eup %6686 }
 0x861   :  { %v759_v61 = vmul.f32 %v6687_v59, %v6683_v36  ;;  %v941_v62 = vpop.permute.xlu2 %940  ;;  %v6689_v9 = vpop.eup %6688 }
 0x862   :  { %953 = vmatpush.bf16.msra.mxu1 %v941_v62  ;;  %v6691_v10 = vpop.eup %6690  ;;  %v905_v11 = vmul.f32 %v6689_v9, %v6681_v33  ;;  %v6320_v9 = vld [vmem:[%s9387_s8 + $0x24] sm:$0xf] }
 0x863   :  { %v763_v63 = vpack.c.bf16 %v759_v61, %v759_v61  ;;  %v904_v12 = vmul.f32 %v6691_v10, %v7495_v28  ;;  %v6322_v61 = vld [vmem:[%s9387_s8 + $0x34] sm:$0xf] }
 0x864   :  { %v909_v13 = vpack.c.bf16 %v905_v11, %v905_v11  ;;  %v5580_v11 = vld [vmem:[%s9387_s8 + $0x28] sm:$0xf0] }
 0x865   :  { %v792_v5 = vunpack.c.l.b16 %v763_v63  ;;  %v908_v60 = vpack.c.bf16 %v904_v12, %v904_v12  ;;  %v5588_v63 = vld [vmem:[%s9387_s8 + $0x38] sm:$0xf0]  ;;  %v5583_v12 = vor.u32 %v6320_v9, %v5580_v11 }
 0x866   :  { %v938_v19 = vunpack.c.l.b16 %v909_v13  ;;  %v5570_v13 = vld [vmem:[%s9387_s8 + $0x10] sm:$0xf] }
 0x867   :  { %v793_v7 = vpack.c.b16 %v792_v5, %v791_v0  ;;  %v937_v20 = vunpack.c.l.b16 %v908_v60  ;;  %v5591_v0 = vor.u32 %v6322_v61, %v5588_v63  ;;  %v5578_v5 = vld [vmem:[%s9387_s8 + $0x20] sm:$0xf]  ;;  %v6319_v60 = vld [vmem:[%s9387_s8 + $0x14] sm:$0xf0]  ;;  %v6934_v63 = vld [vmem:[%s9401_s22 + $0x10] sm:$0xff] }
 0x869   :  { %5537 = vmatmul.msk.bf16.vlgmr.msrb.gmra.mxu1 %vm370_vm14, %v793_v7  ;;  %v939_v21 = vpack.c.b16 %v938_v19, %v937_v20  ;;  %1278 = vmatpush.bf16.msrb.mxu0 %v5591_v0  ;;  %v6321_v7 = vld [vmem:[%s9387_s8 + $0x24] sm:$0xf0]  ;;  %v6318_v19 = vld [vmem:[%s9387_s8 + $0x14] sm:$0xf]  ;;  %v5571_v20 = vor.u32 %v6319_v60, %v5570_v13  ;;  %v6335_v13 = vld [vmem:[%s9389_s10 + $0x58] sm:$0xff] }
 0x86a   :  { %v5579_v10 = vor.u32 %v6321_v7, %v5578_v5  ;;  %v6328_v60 = vld [vmem:[%s9389_s10 + $0x20] sm:$0xff] }
 0x86d   :  { %1279 = vmatpush.bf16.msrb.mxu0 %v5583_v12 }
 0x879   :  { %5541 = vmatmul.msk.bf16.vlgmr.msra.gmra.mxu1 %vm370_vm14, %v939_v21  ;;  %v5572_v21 = vld [vmem:[%s9387_s8 + $0x18] sm:$0xf0] }
 0x8a9   :  { %v1075_v24 = vpop.f32.mrf.mxu2 }
 0x8aa   :  { %v1076_v25 = vadd.f32 %v7528_v23, %v1075_v24  ;;  %v5575_v24 = vor.u32 %v6318_v19, %v5572_v21  ;;  %v6327_v19 = vld [vmem:[%s9389_s10 + $0x18] sm:$0xff]  ;;  %v6326_v21 = vld [vmem:[%s9389_s10 + $0x10] sm:$0xff] }
 0x8ac   :  { %v7534_v17 = vadd.f32 %v6932_v27, %v1076_v25  ;;  %1280 = vmatpush.bf16.msrb.mxu0 %v5575_v24  ;;  %v6332_v24 = vld [vmem:[%s9389_s10 + $0x40] sm:$0xff] }
 0x8ae   :  { %v1091_v28 = vsel %vm151_vm0, %v7534_v17, 0.0 }
 0x8af   :  { %1092 = vadd.xlane.f32.xlu1 %v1091_v28  ;;  %v5562_v28 = vld [vmem:[%s9387_s8] sm:$0xf] }
 0x8b1   :  { %v1077_v2 = vpop.f32.mrf.mxu2 }
 0x8b2   :  { %v1078_v31 = vadd.f32 %v7528_v23, %v1077_v2  ;;  %v6317_v2 = vld [vmem:[%s9387_s8 + $0x4] sm:$0xf0] }
 0x8b4   :  { %v7542_v33 = vadd.f32 %v6933_v32, %v1078_v31  ;;  %v6316_v31 = vld [vmem:[%s9387_s8 + $0x4] sm:$0xf]  ;;  %v5563_v32 = vor.u32 %v6317_v2, %v5562_v28  ;;  %v1203_v28 = vld [vmem:[%s9388_s9] sm:$0x3] }
 0x8b6   :  { %v1094_v22 = vsel %vm151_vm0, %v7542_v33, 0.0 }
 0x8b7   :  { %1095 = vadd.xlane.f32.xlu1 %v1094_v22  ;;  %v5564_v22 = vld [vmem:[%s9387_s8 + $0x8] sm:$0xf0] }
 0x8d0   :  { %6487 = vrot.lane.b32.xlu1 %v6486_v34, %s7115_s18 }
 0x8e6   :  { %v809_v35 = vpop.f32.mrf.mxu1 }
 0x8ee   :  { %v811_v36 = vpop.f32.mrf.mxu1 }
 0x8ef   :  { %v6491_v37 = vpack.i.bf16 %v811_v36, %v809_v35  ;;  %v5567_v35 = vor.u32 %v6316_v31, %v5564_v22  ;;  %v7703_v31 = vperm.slane %v1203_v28, 1 }
 0x8f1   :  { %6492 = vrot.lane.b32.xlu2 %v6491_v37, %s7126_s29  ;;  %1281 = vmatpush.bf16.msrb.mxu0 %v5567_v35  ;;  %v7706_v35 = vperm.slane %v1203_v28, 0 }
 0x8f6   :  { %v955_v16 = vpop.f32.mrf.mxu1 }
 0x8fe   :  { %v957_v18 = vpop.f32.mrf.mxu1 }
 0x8ff   :  { %v6496_v38 = vpack.i.bf16 %v957_v18, %v955_v16 }
 0x901   :  { %6497 = vrot.lane.b32.xlu0 %v6496_v38, %s7125_s27 }
 0x922   :  { %v1093_v39 = vpop.xlane.xlu1 %1092 }
 0x923   :  { %v1103_v40 = vmul.f32 %v1093_v39, %v7264_v14 }
 0x925   :  { %v7553_v41 = vsub.f32 %v7534_v17, %v1103_v40 }
 0x927   :  { %v1111_v51 = vmul.f32 %v7553_v41, %v7553_v41 }
 0x929   :  { %v1115_v52 = vsel %vm151_vm0, %v1111_v51, 0.0 }
 0x92a   :  { %1116 = vadd.xlane.f32.xlu2 %v1115_v52  ;;  %v1096_v42 = vpop.xlane.xlu1 %1095 }
 0x92b   :  { %v1104_v43 = vmul.f32 %v1096_v42, %v7264_v14 }
 0x92d   :  { %v7560_v45 = vsub.f32 %v7542_v33, %v1104_v43 }
 0x92f   :  { %v1112_v46 = vmul.f32 %v7560_v45, %v7560_v45 }
 0x931   :  { %v1118_v47 = vsel %vm151_vm0, %v1112_v46, 0.0 }
 0x932   :  { %1119 = vadd.xlane.f32.xlu0 %v1118_v47 }
 0x942   :  { %v6488_v44 = vpop.permute.xlu1 %6487 }
 0x943   :  { %v6490_v49 = vunpack.i.h.bf16 %v6488_v44  ;;  %v6489_v50 = vunpack.i.l.bf16 %v6488_v44 }
 0x945   :  { %v1011_v56 = vsel %vm370_vm14, %v7425_v4, %v6490_v49  ;;  %v1010_v26 = vsel %vm370_vm14, %v7423_v3, %v6489_v50  ;;  %v5586_v4 = vld [vmem:[%s9387_s8 + $0x30] sm:$0xf]  ;;  %v6323_v3 = vld [vmem:[%s9387_s8 + $0x34] sm:$0xf0]  ;;  %v7624_v49 = vld [vmem:[#allocation8] ss:$0 sm:$0xff] }
 0x946   :  { %v5587_v62 = vor.u32 %v6323_v3, %v5586_v4  ;;  %v6329_v4 = vld [vmem:[%s9389_s10 + $0x28] sm:$0xff]  ;;  %v6336_v3 = vld [vmem:[%s9389_s10 + $0x60] sm:$0xff] }
 0x948   :  { %1259 = vmatpush.bf16.msra.mxu3 %v5587_v62 }
 0x94b   :  { %v6493_v48 = vpop.permute.xlu2 %6492 }
 0x94c   :  { %v6495_v53 = vunpack.i.h.bf16 %v6493_v48  ;;  %v6494_v54 = vunpack.i.l.bf16 %v6493_v48  ;;  %1260 = vmatpush.bf16.msra.mxu3 %v5579_v10  ;;  %v6935_v10 = vld [vmem:[%s9401_s22 + $0x18] sm:$0xff] }
 0x94e   :  { %v1015_v58 = vsel %vm1012_vm2, %v1010_v26, %v6494_v54  ;;  %v1016_v1 = vsel %vm1012_vm2, %v1011_v56, %v6495_v53  ;;  %v7629_v26 = vld [vmem:[#allocation10] ss:$0 sm:$0xff] }
 0x950   :  { %1261 = vmatpush.bf16.msra.mxu3 %v5571_v20  ;;  %v6333_v20 = vld [vmem:[%s9389_s10 + $0x48] sm:$0xff] }
 0x954   :  { %1262 = vmatpush.bf16.msra.mxu3 %v5563_v32 }
 0x973   :  { %v6498_v55 = vpop.permute.xlu0 %6497 }
 0x974   :  { %v6500_v57 = vunpack.i.h.bf16 %v6498_v55  ;;  %v6499_v6 = vunpack.i.l.bf16 %v6498_v55 }
 0x976   :  { %v1020_v59 = vsel %vm1017_vm3, %v1015_v58, %v6499_v6  ;;  %v1021_v29 = vsel %vm1017_vm3, %v1016_v1, %v6500_v57 }
 0x977   :  { %v1023_v30 = vpack.c.bf16 %v1021_v29, %v1020_v59  ;;  %v6338_v59 = vld [vmem:[%s9389_s10 + $0x70] sm:$0xff] }
 0x978   :  { %v6330_v29 = vld [vmem:[%s9389_s10 + $0x30] sm:$0xff] }
 0x979   :  { %5559 = vmatmul.msk.bf16.gmra.mxu2 %vm151_vm0, %v1023_v30  ;;  %v6337_v30 = vld [vmem:[%s9389_s10 + $0x68] sm:$0xff] }
 0x99d   :  { %v1117_v25 = vpop.xlane.xlu2 %1116 }
 0x99e   :  { %v1127_v27 = vmul.f32 %v1117_v25, %v7264_v14  ;;  %v6325_v25 = vld [vmem:[%s9389_s10 + $0x8] sm:$0xff] }
 0x9a0   :  { %v1131_v34 = vadd.f32 1e-05, %v1127_v27  ;;  %v6324_v27 = vld [vmem:[%s9389_s10] sm:$0xff] }
 0x9a2   :  { %6692 = vrsqrt.f32 %v1131_v34  ;;  %vm1141_vm5 = vweird.f32 %v1131_v34 }
 0x9a5   :  { %v1120_v36 = vpop.xlane.xlu0 %1119 }
 0x9a6   :  { %v1128_v37 = vmul.f32 %v1120_v36, %v7264_v14 }
 0x9a8   :  { %v6693_v16 = vpop.eup %6692  ;;  %v1132_v18 = vadd.f32 1e-05, %v1128_v37 }
 0x9a9   :  { %v1136_v38 = vmul.f32 %v6693_v16, %v1131_v34  ;;  %vm1142_vm4 = vweird.f32 %v6693_v16 }
 0x9aa   :  { %6694 = vrsqrt.f32 %v1132_v18  ;;  %vm1143_vm6 = vmor %vm1141_vm5, %vm1142_vm4  ;;  %vm1151_vm8 = vweird.f32 %v1132_v18 }
 0x9ab   :  { %v1137_v39 = vmul.f32 %v6693_v16, %v1136_v38 }
 0x9ad   :  { %v1138_v40 = vmul.f32 0.5, %v1137_v39 }
 0x9af   :  { %v1139_v51 = vsub.f32 1.5, %v1138_v40 }
 0x9b0   :  { %v6695_v52 = vpop.eup %6694 }
 0x9b1   :  { %v1140_v42 = vmul.f32 %v6693_v16, %v1139_v51  ;;  %v1146_v43 = vmul.f32 %v6695_v52, %v1132_v18  ;;  %vm1152_vm7 = vweird.f32 %v6695_v52 }
 0x9b2   :  { %vm1153_vm9 = vmor %vm1151_vm8, %vm1152_vm7 }
 0x9b3   :  { %v1147_v46 = vmul.f32 %v6695_v52, %v1146_v43  ;;  %v1144_v47 = vsel %vm1143_vm6, %v6693_v16, %v1140_v42 }
 0x9b4   :  { %v1175_v50 = vmul.f32 %v1144_v47, %v7553_v41  ;;  %v6339_v41 = vld [vmem:[%s9389_s10 + $0x78] sm:$0xff] }
 0x9b5   :  { %v1148_v44 = vmul.f32 0.5, %v1147_v46  ;;  %1456 = vmatpush.bf16.msrb.mxu2 %v6339_v41 }
 0x9b6   :  { %v1182_v55 = vmul.f32 %v7624_v49, %v1175_v50 }
 0x9b7   :  { %v1149_v48 = vsub.f32 1.5, %v1148_v44 }
 0x9b8   :  { %v1189_v6 = vadd.f32 %v7629_v26, %v1182_v55 }
 0x9b9   :  { %v1150_v53 = vmul.f32 %v6695_v52, %v1149_v48  ;;  %1457 = vmatpush.bf16.msrb.mxu2 %v6338_v59 }
 0x9bb   :  { %v1154_v54 = vsel %vm1153_vm9, %v6695_v52, %v1150_v53 }
 0x9bc   :  { %v1176_v56 = vmul.f32 %v1154_v54, %v7560_v45  ;;  %v6331_v45 = vld [vmem:[%s9389_s10 + $0x38] sm:$0xff] }
 0x9bd   :  { %1437 = vmatpush.bf16.msrb.mxu1 %v6331_v45  ;;  %1458 = vmatpush.bf16.msrb.mxu2 %v6337_v30 }
 0x9be   :  { %v1183_v57 = vmul.f32 %v7624_v49, %v1176_v56 }
 0x9c0   :  { %v1190_v58 = vadd.f32 %v7629_v26, %v1183_v57  ;;  %v7720_v57 = vld [vmem:[%s9390_s11] ss:$0 sm:$0xff] }
 0x9c1   :  { %1438 = vmatpush.bf16.msrb.mxu1 %v6330_v29  ;;  %1459 = vmatpush.bf16.msrb.mxu2 %v6336_v3 }
 0x9c2   :  { %v1193_v1 = vpack.c.bf16 %v1190_v58, %v1189_v6 }
 0x9c4   :  { %5592 = vmatmul.msk.bf16.vlgmr.msra.gmra.mxu3 %vm151_vm0, %v1193_v1  ;;  %5594 = vmatmul.msk.bf16.vlgmr.msrb.gmra.mxu0 %vm151_vm0, %v1193_v1 }
 0x9c5   :  { %1439 = vmatpush.bf16.msrb.mxu1 %v6329_v4  ;;  %1460 = vmatpush.bf16.msrb.mxu2 %v6335_v13 }
 0x9c9   :  { %1440 = vmatpush.bf16.msrb.mxu1 %v6328_v60 }
 0x9cd   :  { %1441 = vmatpush.bf16.msrb.mxu1 %v6327_v19 }
 0x9d1   :  { %1442 = vmatpush.bf16.msrb.mxu1 %v6326_v21 }
 0x9d5   :  { %1443 = vmatpush.bf16.msrb.mxu1 %v6325_v25 }
 0x9d9   :  { %1444 = vmatpush.bf16.msrb.mxu1 %v6324_v27 }
 0x9fc   :  { %v1080_v61 = vpop.f32.mrf.mxu2 }
 0x9fd   :  { %v1081_v62 = vadd.f32 %v7528_v23, %v1080_v61 }
 0x9ff   :  { %v7661_v0 = vadd.f32 %v6934_v63, %v1081_v62 }
 0xa01   :  { %v1097_v5 = vsel %vm151_vm0, %v7661_v0, 0.0 }
 0xa02   :  { %1098 = vadd.xlane.f32.xlu1 %v1097_v5 }
 0xa04   :  { %v1082_v7 = vpop.f32.mrf.mxu2 }
 0xa05   :  { %v1083_v9 = vadd.f32 %v7528_v23, %v1082_v7  ;;  %v6334_v23 = vld [vmem:[%s9389_s10 + $0x50] sm:$0xff] }
 0xa06   :  { %1461 = vmatpush.bf16.msrb.mxu2 %v6334_v23 }
 0xa07   :  { %v7669_v11 = vadd.f32 %v6935_v10, %v1083_v9 }
 0xa09   :  { %v1100_v12 = vsel %vm151_vm0, %v7669_v11, 0.0 }
 0xa0a   :  { %1101 = vadd.xlane.f32.xlu2 %v1100_v12  ;;  %1462 = vmatpush.bf16.msrb.mxu2 %v6333_v20 }
 0xa0e   :  { %1463 = vmatpush.bf16.msrb.mxu2 %v6332_v24 }
 0xa41   :  { %v1283_v2 = vpop.f32.mrf.mxu0 }
 0xa42   :  { %v1284_v22 = vadd.f32 %v1283_v2, %v7703_v31 }
 0xa44   :  { %v1294_v37 = vmax.f32 %v1284_v22, 0.0 }
 0xa47   :  { %v1264_v32 = vpop.f32.mrf.mxu3 }
 0xa48   :  { %v1265_v18 = vadd.f32 %v1264_v32, %v7706_v35 }
 0xa49   :  { %v1285_v34 = vpop.f32.mrf.mxu0 }
 0xa4a   :  { %v1286_v36 = vadd.f32 %v1285_v34, %v7703_v31  ;;  %v1293_v51 = vmax.f32 %v1265_v18, 0.0 }
 0xa4c   :  { %v1296_v16 = vmax.f32 %v1286_v36, 0.0 }
 0xa4e   :  { %v1302_v38 = vpack.c.bf16 %v1296_v16, %v1294_v37 }
 0xa4f   :  { %v1266_v39 = vpop.f32.mrf.mxu3 }
 0xa50   :  { %v1267_v40 = vadd.f32 %v1266_v39, %v7706_v35  ;;  %1464 = vmatmul.bf16.vlgmr.msrb.gmra.mxu2 %v1302_v38 }
 0xa52   :  { %v1295_v52 = vmax.f32 %v1267_v40, 0.0 }
 0xa54   :  { %v1301_v42 = vpack.c.bf16 %v1295_v52, %v1293_v51 }
 0xa56   :  { %1445 = vmatmul.bf16.vlgmr.msrb.gmra.mxu1 %v1301_v42 }
 0xa75   :  { %v1099_v43 = vpop.xlane.xlu1 %1098 }
 0xa76   :  { %v1105_v46 = vmul.f32 %v1099_v43, %v7264_v14 }
 0xa78   :  { %v1109_v47 = vsub.f32 %v7661_v0, %v1105_v46 }
 0xa7a   :  { %v1113_v44 = vmul.f32 %v1109_v47, %v1109_v47 }
 0xa7c   :  { %v1121_v48 = vsel %vm151_vm0, %v1113_v44, 0.0 }
 0xa7d   :  { %v1102_v50 = vpop.xlane.xlu2 %1101  ;;  %1122 = vadd.xlane.f32.xlu2 %v1121_v48 }
 0xa7e   :  { %v1106_v53 = vmul.f32 %v1102_v50, %v7264_v14 }
 0xa80   :  { %v1110_v54 = vsub.f32 %v7669_v11, %v1106_v53 }
 0xa82   :  { %v1114_v55 = vmul.f32 %v1110_v54, %v1110_v54 }
 0xa84   :  { %v1124_v56 = vsel %vm151_vm0, %v1114_v55, 0.0 }
 0xa85   :  { %1125 = vadd.xlane.f32.xlu0 %v1124_v56 }
 0xad3   :  { %v1446_v6 = vpop.f32.mrf.mxu1  ;;  %v1465_v58 = vpop.f32.mrf.mxu2 }
 0xad4   :  { %v1447_v1 = vadd.f32 %v7720_v57, %v1446_v6 }
 0xad6   :  { %v1466_v41 = vadd.f32 %v1465_v58, %v1447_v1 }
 0xad8   :  { %v7724_v45 = vadd.f32 %v1466_v41, %v7534_v17 }
 0xada   :  { %v1483_v59 = vsel %vm151_vm0, %v7724_v45, 0.0 }
 0xadb   :  { %v1448_v29 = vpop.f32.mrf.mxu1  ;;  %1484 = vadd.xlane.f32.xlu2 %v1483_v59  ;;  %v1467_v4 = vpop.f32.mrf.mxu2 }
 0xadc   :  { %v1449_v30 = vadd.f32 %v7720_v57, %v1448_v29 }
 0xade   :  { %v1468_v3 = vadd.f32 %v1467_v4, %v1449_v30  ;;  %v5694_v4 = vld [vmem:[%s9382_s3 + $0x70] sm:$0xf] }
 0xae0   :  { %v7730_v61 = vadd.f32 %v1468_v3, %v7542_v33  ;;  %v6346_v3 = vld [vmem:[%s9382_s3 + $0x74] sm:$0xf] }
 0xae2   :  { %v1486_v62 = vsel %vm151_vm0, %v7730_v61, 0.0 }
 0xae3   :  { %1487 = vadd.xlane.f32.xlu1 %v1486_v62 }
 0xaf0   :  { %v1123_v63 = vpop.xlane.xlu2 %1122 }
 0xaf1   :  { %v1129_v17 = vmul.f32 %v1123_v63, %v7264_v14 }
 0xaf3   :  { %v1133_v5 = vadd.f32 1e-05, %v1129_v17  ;;  %v5686_v17 = vld [vmem:[%s9382_s3 + $0x60] sm:$0xf] }
 0xaf5   :  { %6696 = vrsqrt.f32 %v1133_v5  ;;  %vm1161_vm11 = vweird.f32 %v1133_v5 }
 0xaf8   :  { %v1126_v7 = vpop.xlane.xlu0 %1125 }
 0xaf9   :  { %v1130_v9 = vmul.f32 %v1126_v7, %v7264_v14  ;;  %v6344_v7 = vld [vmem:[%s9382_s3 + $0x64] sm:$0xf] }
 0xafb   :  { %v6697_v10 = vpop.eup %6696  ;;  %v1134_v12 = vadd.f32 1e-05, %v1130_v9 }
 0xafc   :  { %v1156_v13 = vmul.f32 %v6697_v10, %v1133_v5  ;;  %vm1162_vm10 = vweird.f32 %v6697_v10  ;;  %v6345_v5 = vld [vmem:[%s9382_s3 + $0x64] sm:$0xf0] }
 0xafd   :  { %6698 = vrsqrt.f32 %v1134_v12  ;;  %vm1163_vm12 = vmor %vm1161_vm11, %vm1162_vm10  ;;  %vm1171_vm15 = vweird.f32 %v1134_v12  ;;  %v5687_v9 = vor.u32 %v6345_v5, %v5686_v17 }
 0xafe   :  { %v1157_v60 = vmul.f32 %v6697_v10, %v1156_v13  ;;  %v5678_v13 = vld [vmem:[%s9382_s3 + $0x50] sm:$0xf] }
 0xb00   :  { %v1158_v23 = vmul.f32 0.5, %v1157_v60  ;;  %v6343_v60 = vld [vmem:[%s9382_s3 + $0x54] sm:$0xf0] }
 0xb02   :  { %v1159_v33 = vsub.f32 1.5, %v1158_v23  ;;  %v6342_v23 = vld [vmem:[%s9382_s3 + $0x54] sm:$0xf] }
 0xb03   :  { %v6699_v19 = vpop.eup %6698 }
 0xb04   :  { %v1160_v20 = vmul.f32 %v6697_v10, %v1159_v33  ;;  %v1166_v21 = vmul.f32 %v6699_v19, %v1134_v12  ;;  %vm1172_vm13 = vweird.f32 %v6699_v19  ;;  %v5679_v33 = vor.u32 %v6343_v60, %v5678_v13 }
 0xb05   :  { %vm1173_vm1 = vmor %vm1171_vm15, %vm1172_vm13 }
 0xb06   :  { %v1167_v24 = vmul.f32 %v6699_v19, %v1166_v21  ;;  %v1164_v25 = vsel %vm1163_vm12, %v6697_v10, %v1160_v20  ;;  %v5688_v10 = vld [vmem:[%s9382_s3 + $0x68] sm:$0xf0] }
 0xb07   :  { %v1177_v2 = vmul.f32 %v1164_v25, %v1109_v47  ;;  %v5691_v12 = vor.u32 %v6344_v7, %v5688_v10  ;;  %v5670_v25 = vld [vmem:[%s9382_s3 + $0x40] sm:$0xf] }
 0xb08   :  { %v1168_v27 = vmul.f32 0.5, %v1167_v24 }
 0xb09   :  { %v1184_v36 = vmul.f32 %v7624_v49, %v1177_v2 }
 0xb0a   :  { %v1169_v28 = vsub.f32 1.5, %v1168_v27  ;;  %v6341_v27 = vld [vmem:[%s9382_s3 + $0x44] sm:$0xf0] }
 0xb0b   :  { %v1191_v16 = vadd.f32 %v7629_v26, %v1184_v36  ;;  %v5671_v2 = vor.u32 %v6341_v27, %v5670_v25 }
 0xb0c   :  { %v1170_v32 = vmul.f32 %v6699_v19, %v1169_v28  ;;  %v6340_v28 = vld [vmem:[%s9382_s3 + $0x44] sm:$0xf] }
 0xb0e   :  { %v1174_v22 = vsel %vm1173_vm1, %v6699_v19, %v1170_v32  ;;  %v5680_v19 = vld [vmem:[%s9382_s3 + $0x58] sm:$0xf0]  ;;  %v5672_v32 = vld [vmem:[%s9382_s3 + $0x48] sm:$0xf0] }
 0xb0f   :  { %v1178_v34 = vmul.f32 %v1174_v22, %v1110_v54  ;;  %v5683_v20 = vor.u32 %v6342_v23, %v5680_v19 }
 0xb11   :  { %v1185_v37 = vmul.f32 %v7624_v49, %v1178_v34  ;;  %v5675_v34 = vor.u32 %v6340_v28, %v5672_v32 }
 0xb13   :  { %v1192_v18 = vadd.f32 %v7629_v26, %v1185_v37 }
 0xb15   :  { %v1194_v38 = vpack.c.bf16 %v1192_v18, %v1191_v16 }
 0xb17   :  { %5593 = vmatmul.msk.bf16.gmra.mxu3 %vm151_vm0, %v1194_v38  ;;  %5595 = vmatmul.msk.bf16.gmra.mxu0 %vm151_vm0, %v1194_v38 }
 0xb4e   :  { %v1485_v39 = vpop.xlane.xlu2 %1484 }
 0xb4f   :  { %v1495_v40 = vmul.f32 %v1485_v39, %v7264_v14 }
 0xb51   :  { %v7744_v51 = vsub.f32 %v7724_v45, %v1495_v40 }
 0xb53   :  { %v1503_v52 = vmul.f32 %v7744_v51, %v7744_v51 }
 0xb55   :  { %v1507_v49 = vsel %vm151_vm0, %v1503_v52, 0.0 }
 0xb56   :  { %1508 = vadd.xlane.f32.xlu0 %v1507_v49  ;;  %v1488_v42 = vpop.xlane.xlu1 %1487 }
 0xb57   :  { %v1496_v26 = vmul.f32 %v1488_v42, %v7264_v14 }
 0xb59   :  { %v7751_v43 = vsub.f32 %v7730_v61, %v1496_v26 }
 0xb5b   :  { %v1504_v46 = vmul.f32 %v7751_v43, %v7751_v43 }
 0xb5d   :  { %v1510_v47 = vsel %vm151_vm0, %v1504_v46, 0.0 }
 0xb5e   :  { %1511 = vadd.xlane.f32.xlu2 %v1510_v47 }
 0xb94   :  { %v1288_v44 = vpop.f32.mrf.mxu0 }
 0xb95   :  { %v1289_v50 = vadd.f32 %v1288_v44, %v7703_v31 }
 0xb97   :  { %v1298_v55 = vmax.f32 %v1289_v50, 0.0  ;;  %v7810_v50 = vld [vmem:[#allocation2 + $0x1] ss:$0 sm:$0xff] }
 0xb9a   :  { %v1269_v48 = vpop.f32.mrf.mxu3 }
 0xb9b   :  { %v1270_v6 = vadd.f32 %v1269_v48, %v7706_v35 }
 0xb9c   :  { %v1290_v53 = vpop.f32.mrf.mxu0 }
 0xb9d   :  { %v1291_v54 = vadd.f32 %v1290_v53, %v7703_v31  ;;  %v1297_v59 = vmax.f32 %v1270_v6, 0.0  ;;  %v6347_v31 = vld [vmem:[%s9382_s3 + $0x74] sm:$0xf0] }
 0xb9e   :  { %v5695_v62 = vor.u32 %v6347_v31, %v5694_v4 }
 0xb9f   :  { %v1300_v56 = vmax.f32 %v1291_v54, 0.0 }
 0xba0   :  { %1646 = vmatpush.bf16.msrb.mxu3 %v5695_v62 }
 0xba1   :  { %v1304_v58 = vpack.c.bf16 %v1300_v56, %v1298_v55 }
 0xba2   :  { %v1271_v1 = vpop.f32.mrf.mxu3 }
 0xba3   :  { %v1272_v41 = vadd.f32 %v1271_v1, %v7706_v35  ;;  %1469 = vmatmul.bf16.gmra.mxu2 %v1304_v58  ;;  %v5696_v35 = vld [vmem:[%s9382_s3 + $0x78] sm:$0xf0]  ;;  %v7815_v58 = vld [vmem:[#allocation5 + $0x1] ss:$0 sm:$0xff] }
 0xba4   :  { %v5699_v63 = vor.u32 %v6346_v3, %v5696_v35  ;;  %1647 = vmatpush.bf16.msrb.mxu3 %v5687_v9 }
 0xba5   :  { %v1299_v29 = vmax.f32 %v1272_v41, 0.0 }
 0xba6   :  { %1665 = vmatpush.bf16.msra.mxu0 %v5699_v63 }
 0xba7   :  { %v1303_v30 = vpack.c.bf16 %v1299_v29, %v1297_v59 }
 0xba8   :  { %1648 = vmatpush.bf16.msrb.mxu3 %v5679_v33 }
 0xba9   :  { %1450 = vmatmul.bf16.gmra.mxu1 %v1303_v30 }
 0xbaa   :  { %1666 = vmatpush.bf16.msra.mxu0 %v5691_v12 }
 0xbac   :  { %1649 = vmatpush.bf16.msrb.mxu3 %v5671_v2 }
 0xbae   :  { %1667 = vmatpush.bf16.msra.mxu0 %v5683_v20 }
 0xbb2   :  { %1668 = vmatpush.bf16.msra.mxu0 %v5675_v34 }
 0xbc9   :  { %v1509_v21 = vpop.xlane.xlu0 %1508 }
 0xbca   :  { %v1519_v24 = vmul.f32 %v1509_v21, %v7264_v14 }
 0xbcc   :  { %v1523_v22 = vadd.f32 1e-05, %v1519_v24 }
 0xbce   :  { %6700 = vrsqrt.f32 %v1523_v22  ;;  %vm1533_vm5 = vweird.f32 %v1523_v22 }
 0xbd1   :  { %v1512_v36 = vpop.xlane.xlu2 %1511 }
 0xbd2   :  { %v1520_v37 = vmul.f32 %v1512_v36, %v7264_v14 }
 0xbd4   :  { %v6701_v16 = vpop.eup %6700  ;;  %v1524_v18 = vadd.f32 1e-05, %v1520_v37 }
 0xbd5   :  { %v1528_v38 = vmul.f32 %v6701_v16, %v1523_v22  ;;  %vm1534_vm4 = vweird.f32 %v6701_v16 }
 0xbd6   :  { %6702 = vrsqrt.f32 %v1524_v18  ;;  %vm1535_vm6 = vmor %vm1533_vm5, %vm1534_vm4  ;;  %vm1543_vm8 = vweird.f32 %v1524_v18 }
 0xbd7   :  { %v1529_v39 = vmul.f32 %v6701_v16, %v1528_v38 }
 0xbd9   :  { %v1530_v40 = vmul.f32 0.5, %v1529_v39 }
 0xbdb   :  { %v1531_v52 = vsub.f32 1.5, %v1530_v40 }
 0xbdc   :  { %v6703_v49 = vpop.eup %6702 }
 0xbdd   :  { %v1532_v42 = vmul.f32 %v6701_v16, %v1531_v52  ;;  %v1538_v26 = vmul.f32 %v6703_v49, %v1524_v18  ;;  %vm1544_vm7 = vweird.f32 %v6703_v49 }
 0xbde   :  { %vm1545_vm9 = vmor %vm1543_vm8, %vm1544_vm7 }
 0xbdf   :  { %v1539_v46 = vmul.f32 %v6703_v49, %v1538_v26  ;;  %v1536_v47 = vsel %vm1535_vm6, %v6701_v16, %v1532_v42 }
 0xbe0   :  { %v1567_v53 = vmul.f32 %v1536_v47, %v7744_v51 }
 0xbe1   :  { %v1540_v44 = vmul.f32 0.5, %v1539_v46 }
 0xbe2   :  { %v1574_v56 = vmul.f32 %v7810_v50, %v1567_v53 }
 0xbe3   :  { %v1541_v48 = vsub.f32 1.5, %v1540_v44 }
 0xbe4   :  { %v1581_v41 = vadd.f32 %v7815_v58, %v1574_v56 }
 0xbe5   :  { %v1542_v54 = vmul.f32 %v6703_v49, %v1541_v48 }
 0xbe7   :  { %v1546_v55 = vsel %vm1545_vm9, %v6703_v49, %v1542_v54 }
 0xbe8   :  { %v1568_v6 = vmul.f32 %v1546_v55, %v7751_v43 }
 0xbea   :  { %v1575_v1 = vmul.f32 %v7810_v50, %v1568_v6 }
 0xbec   :  { %v1582_v59 = vadd.f32 %v7815_v58, %v1575_v1 }
 0xbee   :  { %v1585_v29 = vpack.c.bf16 %v1582_v59, %v1581_v41 }
 0xbf0   :  { %5700 = vmatmul.msk.bf16.vlgmr.msrb.gmra.mxu3 %vm151_vm0, %v1585_v29  ;;  %5702 = vmatmul.msk.bf16.vlgmr.msra.gmra.mxu0 %vm151_vm0, %v1585_v29 }
 0xc26   :  { %v1451_v51 = vpop.f32.mrf.mxu1  ;;  %v1470_v30 = vpop.f32.mrf.mxu2 }
 0xc27   :  { %v1452_v4 = vadd.f32 %v7720_v57, %v1451_v51 }
 0xc29   :  { %v1471_v31 = vadd.f32 %v1470_v30, %v1452_v4 }
 0xc2b   :  { %v7824_v43 = vadd.f32 %v1471_v31, %v7661_v0 }
 0xc2d   :  { %v1489_v3 = vsel %vm151_vm0, %v7824_v43, 0.0 }
 0xc2e   :  { %v1453_v62 = vpop.f32.mrf.mxu1  ;;  %1490 = vadd.xlane.f32.xlu1 %v1489_v3  ;;  %v1472_v63 = vpop.f32.mrf.mxu2 }
 0xc2f   :  { %v1454_v35 = vadd.f32 %v7720_v57, %v1453_v62 }
 0xc31   :  { %v1473_v17 = vadd.f32 %v1472_v63, %v1454_v35 }
 0xc33   :  { %v7830_v5 = vadd.f32 %v1473_v17, %v7669_v11 }
 0xc35   :  { %v1492_v7 = vsel %vm151_vm0, %v7830_v5, 0.0 }
 0xc36   :  { %1493 = vadd.xlane.f32.xlu0 %v1492_v7 }
 0xc6d   :  { %v1670_v9 = vpop.f32.mrf.mxu0 }
 0xc6e   :  { %v1684_v0 = vpack.c.bf16 %v1670_v9, %v1670_v9 }
 0xc70   :  { %v1797_v60 = vunpack.c.l.b16 %v1684_v0 }
 0xc73   :  { %v1651_v10 = vpop.f32.mrf.mxu3 }
 0xc74   :  { %v1680_v33 = vpack.c.bf16 %v1651_v10, %v1651_v10 }
 0xc75   :  { %v1672_v12 = vpop.f32.mrf.mxu0 }
 0xc76   :  { %v1685_v13 = vpack.c.bf16 %v1672_v12, %v1672_v12  ;;  %v1690_v11 = vunpack.c.l.b16 %v1680_v33 }
 0xc78   :  { %v1798_v23 = vunpack.c.l.b16 %v1685_v13 }
 0xc7a   :  { %v7834_v19 = vpack.c.b16 %v1798_v23, %v1797_v60 }
 0xc7b   :  { %v1653_v57 = vpop.f32.mrf.mxu3 }
 0xc7c   :  { %v1681_v20 = vpack.c.bf16 %v1653_v57, %v1653_v57  ;;  %1811 = vmatpush.bf16.msra.mxu3 %v7834_v19 }
 0xc7e   :  { %v1691_v21 = vunpack.c.l.b16 %v1681_v20 }
 0xc80   :  { %v1692_v24 = vpack.c.b16 %v1691_v21, %v1690_v11 }
 0xc82   :  { %1693 = vrot.lane.b32.xlu2 %v1692_v24, %s7122_s25 }
 0xc8a   :  { %1994 = vrot.lane.b32.xlu2 %v1692_v24, %s7126_s29 }
 0xc92   :  { %1992 = vrot.lane.b32.xlu2 %v1692_v24, %s7127_s26 }
 0xca1   :  { %v1491_v25 = vpop.xlane.xlu1 %1490 }
 0xca2   :  { %v1497_v27 = vmul.f32 %v1491_v25, %v7264_v14 }
 0xca4   :  { %v1501_v28 = vsub.f32 %v7824_v43, %v1497_v27 }
 0xca6   :  { %v1505_v2 = vmul.f32 %v1501_v28, %v1501_v28 }
 0xca8   :  { %v1513_v32 = vsel %vm151_vm0, %v1505_v2, 0.0 }
 0xca9   :  { %v1494_v22 = vpop.xlane.xlu0 %1493  ;;  %1514 = vadd.xlane.f32.xlu1 %v1513_v32 }
 0xcaa   :  { %v1498_v34 = vmul.f32 %v1494_v22, %v7264_v14 }
 0xcac   :  { %v1502_v36 = vsub.f32 %v7830_v5, %v1498_v34 }
 0xcae   :  { %v1506_v37 = vmul.f32 %v1502_v36, %v1502_v36 }
 0xcb0   :  { %v1516_v16 = vsel %vm151_vm0, %v1506_v37, 0.0 }
 0xcb1   :  { %1517 = vadd.xlane.f32.xlu0 %v1516_v16 }
 0xcc2   :  { %1848 = vrot.lane.b32.xlu1 %v1692_v24, %s7125_s27 }
 0xcc5   :  { %1846 = vrot.lane.b32.xlu0 %v1692_v24, %s7124_s6 }
 0xcca   :  { %2138 = vrot.lane.b32.xlu1 %v1692_v24, %s7128_s28 }
 0xccd   :  { %2140 = vrot.lane.b32.xlu0 %v1692_v24, %s7115_s18 }
 0xcdc   :  { %v1694_v18 = vpop.permute.xlu2 %1693 }
 0xcdd   :  { %v1699_v38 = vsel %vm370_vm14, %v1694_v18, 0 }
 0xcde   :  { %1708 = vmatpush.bf16.xpose.msra.mxu1 %v1699_v38 }
 0xce4   :  { %v1995_v1 = vpop.permute.xlu2 %1994 }
 0xce5   :  { %5704 = vmatmul.msk.bf16.vlgmr.msra.gmra.mxu1 %vm370_vm14, %v1692_v24  ;;  %v2000_v30 = vsel %vm370_vm14, %v1995_v1, 0 }
 0xcec   :  { %v1993_v60 = vpop.permute.xlu2 %1992 }
 0xd1c   :  { %v1515_v39 = vpop.xlane.xlu1 %1514 }
 0xd1d   :  { %v1521_v40 = vmul.f32 %v1515_v39, %v7264_v14 }
 0xd1f   :  { %v1525_v52 = vadd.f32 1e-05, %v1521_v40 }
 0xd21   :  { %6704 = vrsqrt.f32 %v1525_v52  ;;  %vm1553_vm11 = vweird.f32 %v1525_v52 }
 0xd24   :  { %v1518_v49 = vpop.xlane.xlu0 %1517 }
 0xd25   :  { %v1522_v42 = vmul.f32 %v1518_v49, %v7264_v14 }
 0xd27   :  { %v6705_v26 = vpop.eup %6704  ;;  %v1526_v46 = vadd.f32 1e-05, %v1522_v42 }
 0xd28   :  { %v1548_v47 = vmul.f32 %v6705_v26, %v1525_v52  ;;  %vm1554_vm10 = vweird.f32 %v6705_v26 }
 0xd29   :  { %6706 = vrsqrt.f32 %v1526_v46  ;;  %vm1555_vm12 = vmor %vm1553_vm11, %vm1554_vm10  ;;  %vm1563_vm15 = vweird.f32 %v1526_v46 }
 0xd2a   :  { %v1549_v44 = vmul.f32 %v6705_v26, %v1548_v47 }
 0xd2c   :  { %v1550_v48 = vmul.f32 0.5, %v1549_v44 }
 0xd2e   :  { %v1551_v53 = vsub.f32 1.5, %v1550_v48 }
 0xd2f   :  { %v6707_v54 = vpop.eup %6706 }
 0xd30   :  { %v1552_v55 = vmul.f32 %v6705_v26, %v1551_v53  ;;  %v1558_v56 = vmul.f32 %v6707_v54, %v1526_v46  ;;  %vm1564_vm13 = vweird.f32 %v6707_v54 }
 0xd31   :  { %vm1565_vm1 = vmor %vm1563_vm15, %vm1564_vm13 }
 0xd32   :  { %v1559_v6 = vmul.f32 %v6707_v54, %v1558_v56  ;;  %v1556_v41 = vsel %vm1555_vm12, %v6705_v26, %v1552_v55 }
 0xd33   :  { %v1569_v3 = vmul.f32 %v1556_v41, %v1501_v28 }
 0xd34   :  { %v1560_v59 = vmul.f32 0.5, %v1559_v6  ;;  %v1849_v29 = vpop.permute.xlu1 %1848 }
 0xd35   :  { %v1854_v51 = vsel %vm370_vm14, %v1849_v29, 0  ;;  %v1576_v17 = vmul.f32 %v7810_v50, %v1569_v3 }
 0xd36   :  { %v1561_v4 = vsub.f32 1.5, %v1560_v59  ;;  %1863 = vmatpush.bf16.xpose.msrb.mxu1 %v1854_v51 }
 0xd37   :  { %v1847_v31 = vpop.permute.xlu0 %1846  ;;  %v1583_v10 = vadd.f32 %v7815_v58, %v1576_v17 }
 0xd38   :  { %v1562_v62 = vmul.f32 %v6707_v54, %v1561_v4 }
 0xd3a   :  { %v1566_v35 = vsel %vm1565_vm1, %v6707_v54, %v1562_v62 }
 0xd3b   :  { %v1570_v63 = vmul.f32 %v1566_v35, %v1502_v36 }
 0xd3c   :  { %v2139_v23 = vpop.permute.xlu1 %2138 }
 0xd3d   :  { %5708 = vmatmul.msk.bf16.vlgmr.msrb.gmra.mxu1 %vm370_vm14, %v1847_v31  ;;  %v1577_v7 = vmul.f32 %v7810_v50, %v1570_v63 }
 0xd3e   :  { %2009 = vmatpush.bf16.xpose.msra.mxu1 %v2000_v30 }
 0xd3f   :  { %v2141_v9 = vpop.permute.xlu0 %2140  ;;  %v1584_v0 = vadd.f32 %v7815_v58, %v1577_v7 }
 0xd40   :  { %v2146_v12 = vsel %vm370_vm14, %v2141_v9, 0 }
 0xd41   :  { %v1586_v13 = vpack.c.bf16 %v1584_v0, %v1583_v10 }
 0xd43   :  { %5701 = vmatmul.msk.bf16.gmra.mxu3 %vm151_vm0, %v1586_v13  ;;  %5703 = vmatmul.msk.bf16.gmra.mxu0 %vm151_vm0, %v1586_v13 }
 0xd46   :  { %2155 = vmatpush.bf16.xpose.msrb.mxu1 %v2146_v12 }
 0xd4d   :  { %5712 = vmatmul.msk.bf16.vlgmr.msra.gmra.mxu1 %vm370_vm14, %v1993_v60 }
 0xd5d   :  { %5716 = vmatmul.msk.bf16.vlgmr.msrb.gmra.mxu1 %vm370_vm14, %v2139_v23 }
 0xd62   :  { %v1710_v50 = vpop.f32.mrf.mxu1 }
 0xd63   :  { %v1711_v52 = vadd.f32 %v1710_v50, %v7360_v8 }
 0xd65   :  { %v1742_v42 = vsel %vm370_vm14, %v1711_v52, -inf }
 0xd6a   :  { %v1712_v33 = vpop.f32.mrf.mxu1 }
 0xd6b   :  { %v1713_v57 = vadd.f32 %v1712_v33, %v7364_v15 }
 0xd6d   :  { %v1745_v58 = vsel %vm370_vm14, %v1713_v57, -inf }
 0xd6e   :  { %1746 = vmax.xlane.f32.xlu0 %v1745_v58 }
 0xdba   :  { %v1865_v18 = vpop.f32.mrf.mxu1 }
 0xdbb   :  { %v1866_v54 = vadd.f32 %v1865_v18, %v7360_v8 }
 0xdbd   :  { %v1894_v55 = vsel %vm370_vm14, %v1866_v54, -inf }
 0xdc0   :  { %v1675_v20 = vpop.f32.mrf.mxu0 }
 0xdc1   :  { %v1686_v21 = vpack.c.bf16 %v1675_v20, %v1675_v20 }
 0xdc2   :  { %v1867_v38 = vpop.f32.mrf.mxu1 }
 0xdc3   :  { %v1825_v27 = vunpack.c.l.b16 %v1686_v21  ;;  %v1868_v47 = vadd.f32 %v1867_v38, %v7364_v15 }
 0xdc5   :  { %v1897_v48 = vsel %vm370_vm14, %v1868_v47, -inf }
 0xdc6   :  { %v1656_v11 = vpop.f32.mrf.mxu3 }
 0xdc7   :  { %v1682_v2 = vpack.c.bf16 %v1656_v11, %v1656_v11 }
 0xdc8   :  { %v1677_v24 = vpop.f32.mrf.mxu0 }
 0xdc9   :  { %v1687_v25 = vpack.c.bf16 %v1677_v24, %v1677_v24  ;;  %v1717_v36 = vunpack.c.l.b16 %v1682_v2 }
 0xdca   :  { %v2011_v39 = vpop.f32.mrf.mxu1 }
 0xdcb   :  { %v1826_v28 = vunpack.c.l.b16 %v1687_v25  ;;  %v7885_v49 = vadd.f32 %v2011_v39, %v7360_v8 }
 0xdcd   :  { %v7868_v32 = vpack.c.b16 %v1826_v28, %v1825_v27  ;;  %v2040_v26 = vsel %vm370_vm14, %v7885_v49, -inf }
 0xdce   :  { %v1658_v22 = vpop.f32.mrf.mxu3 }
 0xdcf   :  { %v1683_v34 = vpack.c.bf16 %v1658_v22, %v1658_v22  ;;  %1839 = vmatpush.bf16.msrb.mxu0 %v7868_v32 }
 0xdd1   :  { %v1718_v37 = vunpack.c.l.b16 %v1683_v34 }
 0xdd2   :  { %v2013_v40 = vpop.f32.mrf.mxu1 }
 0xdd3   :  { %v7871_v16 = vpack.c.b16 %v1718_v37, %v1717_v36  ;;  %v2014_v56 = vadd.f32 %v2013_v40, %v7364_v15 }
 0xdd5   :  { %1870 = vrot.lane.b32.xlu1 %v7871_v16, %s7124_s6  ;;  %1872 = vrot.lane.b32.xlu0 %v7871_v16, %s7125_s27  ;;  %v2043_v41 = vsel %vm370_vm14, %v2014_v56, -inf }
 0xdd6   :  { %1720 = vrot.lane.b32.xlu2 %v7871_v16, %s7122_s25 }
 0xdda   :  { %v2157_v46 = vpop.f32.mrf.mxu1 }
 0xddb   :  { %v7892_v44 = vadd.f32 %v2157_v46, %v7360_v8 }
 0xddd   :  { %2018 = vrot.lane.b32.xlu1 %v7871_v16, %s7126_s29  ;;  %v2186_v53 = vsel %vm370_vm14, %v7892_v44, -inf }
 0xde1   :  { %v1747_v6 = vpop.xlane.xlu0 %1746 }
 0xde2   :  { %v1755_v1 = vsub.f32 %v1713_v57, %v1747_v6  ;;  %v2159_v59 = vpop.f32.mrf.mxu1 }
 0xde3   :  { %v7902_v51 = vadd.f32 %v2159_v59, %v7364_v15 }
 0xde4   :  { %v1760_v29 = vmul.f32 1.442695, %v1755_v1 }
 0xde5   :  { %1947 = vrot.lane.b32.xlu1 %v7834_v19, %s7124_s6  ;;  %v2189_v30 = vsel %vm370_vm14, %v7902_v51, -inf }
 0xde6   :  { %6708 = vpow2.f32 %v1760_v29 }
 0xdec   :  { %v7908_v4 = vpop.eup %6708 }
 0xded   :  { %v1769_v31 = vsel %vm370_vm14, %v7908_v4, 0.0 }
 0xdff   :  { %1743 = vmax.xlane.f32.xlu2 %v1742_v42  ;;  %2041 = vmax.xlane.f32.xlu0 %v2040_v26 }
 0xe07   :  { %1898 = vmax.xlane.f32.xlu2 %v1897_v48  ;;  %2187 = vmax.xlane.f32.xlu0 %v2186_v53 }
 0xe0f   :  { %1895 = vmax.xlane.f32.xlu1 %v1894_v55 }
 0xe17   :  { %2044 = vmax.xlane.f32.xlu1 %v2043_v41 }
 0xe1f   :  { %2164 = vrot.lane.b32.xlu2 %v7871_v16, %s7115_s18  ;;  %2190 = vmax.xlane.f32.xlu1 %v2189_v30 }
 0xe27   :  { %1770 = vadd.xlane.f32.xlu1 %v1769_v31 }
 0xe30   :  { %v1721_v3 = vpop.permute.xlu2 %1720 }
 0xe31   :  { %v1726_v62 = vsel %vm370_vm14, %v1721_v3, 0 }
 0xe32   :  { %1735 = vmatpush.bf16.xpose.msra.mxu2 %v1726_v62 }
 0xe39   :  { %5705 = vmatmul.msk.bf16.vlgmr.msra.gmra.mxu2 %vm370_vm14, %v7871_v16 }
 0xe40   :  { %2016 = vrot.lane.b32.xlu1 %v7871_v16, %s7127_s26 }
 0xe47   :  { %v1873_v35 = vpop.permute.xlu0 %1872  ;;  %v1871_v63 = vpop.permute.xlu1 %1870 }
 0xe48   :  { %v1878_v17 = vsel %vm370_vm14, %v1873_v35, 0 }
 0xe49   :  { %1887 = vmatpush.bf16.xpose.msrb.mxu2 %v1878_v17 }
 0xe4f   :  { %v2019_v7 = vpop.permute.xlu1 %2018 }
 0xe50   :  { %v2024_v9 = vsel %vm370_vm14, %v2019_v7, 0  ;;  %5709 = vmatmul.msk.bf16.vlgmr.msrb.gmra.mxu2 %vm370_vm14, %v1871_v63 }
 0xe51   :  { %2033 = vmatpush.bf16.xpose.msra.mxu2 %v2024_v9 }
 0xe57   :  { %v1948_v10 = vpop.permute.xlu1 %1947 }
 0xe58   :  { %1960 = vmatpush.bf16.msrb.mxu3 %v1948_v10 }
 0xe72   :  { %v1744_v0 = vpop.xlane.xlu2 %1743  ;;  %v2042_v58 = vpop.xlane.xlu0 %2041 }
 0xe73   :  { %v1754_v12 = vsub.f32 %v1711_v52, %v1744_v0  ;;  %v2052_v27 = vsub.f32 %v7885_v49, %v2042_v58 }
 0xe75   :  { %v1758_v13 = vmul.f32 1.442695, %v1754_v12  ;;  %v2056_v22 = vmul.f32 1.442695, %v2052_v27 }
 0xe77   :  { %6710 = vpow2.f32 %v1758_v13 }
 0xe7a   :  { %v1899_v60 = vpop.xlane.xlu2 %1898  ;;  %v2188_v46 = vpop.xlane.xlu0 %2187 }
 0xe7b   :  { %v1907_v23 = vsub.f32 %v1868_v47, %v1899_v60  ;;  %v2198_v48 = vsub.f32 %v7892_v44, %v2188_v46 }
 0xe7d   :  { %v7920_v50 = vpop.eup %6710  ;;  %v1912_v33 = vmul.f32 1.442695, %v1907_v23  ;;  %v2202_v53 = vmul.f32 1.442695, %v2198_v48 }
 0xe7e   :  { %v1766_v57 = vsel %vm370_vm14, %v7920_v50, 0.0 }
 0xe7f   :  { %6712 = vpow2.f32 %v1912_v33  ;;  %1767 = vadd.xlane.f32.xlu0 %v1766_v57 }
 0xe82   :  { %v2165_v20 = vpop.permute.xlu2 %2164  ;;  %v1896_v11 = vpop.xlane.xlu1 %1895 }
 0xe83   :  { %v2170_v21 = vsel %vm370_vm14, %v2165_v20, 0  ;;  %v1906_v24 = vsub.f32 %v1866_v54, %v1896_v11 }
 0xe84   :  { %2179 = vmatpush.bf16.xpose.msrb.mxu2 %v2170_v21 }
 0xe85   :  { %v7925_v25 = vpop.eup %6712  ;;  %v1910_v28 = vmul.f32 1.442695, %v1906_v24 }
 0xe86   :  { %v1921_v2 = vsel %vm370_vm14, %v7925_v25, 0.0 }
 0xe87   :  { %6714 = vpow2.f32 %v1910_v28  ;;  %1922 = vadd.xlane.f32.xlu0 %v1921_v2 }
 0xe88   :  { %6716 = vpow2.f32 %v2056_v22 }
 0xe8a   :  { %v2045_v34 = vpop.xlane.xlu1 %2044 }
 0xe8b   :  { %v2053_v36 = vsub.f32 %v2014_v56, %v2045_v34 }
 0xe8d   :  { %v7930_v37 = vpop.eup %6714  ;;  %v2058_v18 = vmul.f32 1.442695, %v2053_v36 }
 0xe8e   :  { %v1918_v38 = vsel %vm370_vm14, %v7930_v37, 0.0  ;;  %v7934_v39 = vpop.eup %6716 }
 0xe8f   :  { %6718 = vpow2.f32 %v2058_v18  ;;  %1919 = vadd.xlane.f32.xlu2 %v1918_v38  ;;  %v2064_v52 = vsel %vm370_vm14, %v7934_v39, 0.0 }
 0xe90   :  { %6720 = vpow2.f32 %v2202_v53 }
 0xe92   :  { %v2191_v42 = vpop.xlane.xlu1 %2190 }
 0xe95   :  { %v7936_v40 = vpop.eup %6718 }
 0xe96   :  { %v2067_v49 = vsel %vm370_vm14, %v7936_v40, 0.0  ;;  %v7950_v55 = vpop.eup %6720 }
 0xe97   :  { %2065 = vadd.xlane.f32.xlu2 %v2064_v52  ;;  %2068 = vadd.xlane.f32.xlu1 %v2067_v49  ;;  %v2210_v56 = vsel %vm370_vm14, %v7950_v55, 0.0 }
 0xe9a   :  { %v1771_v26 = vpop.xlane.xlu1 %1770 }
 0xe9b   :  { %2093 = vrot.lane.b32.xlu0 %v7834_v19, %s7127_s26 }
 0xeaf   :  { %2162 = vrot.lane.b32.xlu2 %v7871_v16, %s7128_s28  ;;  %v2199_v16 = vsub.f32 %v7902_v51, %v2191_v42 }
 0xeb0   :  { %2239 = vrot.lane.b32.xlu1 %v7834_v19, %s7128_s28 }
 0xeb1   :  { %v2204_v19 = vmul.f32 1.442695, %v2199_v16 }
 0xeb2   :  { %v2017_v47 = vpop.permute.xlu1 %2016 }
 0xeb3   :  { %5713 = vmatmul.msk.bf16.vlgmr.msra.gmra.mxu2 %vm370_vm14, %v2017_v47  ;;  %6722 = vpow2.f32 %v2204_v19 }
 0xeb4   :  { %6724 = vrcp.f32 %v1771_v26 }
 0xeb9   :  { %v7960_v59 = vpop.eup %6722 }
 0xeba   :  { %v2213_v30 = vsel %vm370_vm14, %v7960_v59, 0.0  ;;  %v6725_v7 = vpop.eup %6724 }
 0xebb   :  { %v1783_v9 = vmul.f32 %v6725_v7, %v7908_v4 }
 0xebc   :  { %v1737_v54 = vpop.f32.mrf.mxu2 }
 0xebd   :  { %v7963_v29 = vadd.f32 %v1737_v54, %v7360_v8  ;;  %v1787_v0 = vpack.c.bf16 %v1783_v9, %v1783_v9 }
 0xebf   :  { %v1748_v51 = vsel %vm370_vm14, %v7963_v29, -inf  ;;  %v1793_v23 = vunpack.c.l.b16 %v1787_v0 }
 0xec4   :  { %v1739_v6 = vpop.f32.mrf.mxu2 }
 0xec5   :  { %2211 = vadd.xlane.f32.xlu0 %v2210_v56  ;;  %v7956_v1 = vadd.f32 %v1739_v6, %v7364_v15 }
 0xec7   :  { %v1751_v44 = vsel %vm370_vm14, %v7956_v1, -inf }
 0xecd   :  { %1752 = vmax.xlane.f32.xlu0 %v1751_v44 }
 0xed3   :  { %v1889_v41 = vpop.f32.mrf.mxu2 }
 0xed4   :  { %v7970_v31 = vadd.f32 %v1889_v41, %v7360_v8 }
 0xed6   :  { %v1900_v63 = vsel %vm370_vm14, %v7970_v31, -inf }
 0xed8   :  { %2214 = vadd.xlane.f32.xlu2 %v2213_v30 }
 0xeda   :  { %1749 = vmax.xlane.f32.xlu1 %v1748_v51 }
 0xedb   :  { %v1891_v3 = vpop.f32.mrf.mxu2 }
 0xedc   :  { %v7973_v62 = vadd.f32 %v1891_v3, %v7364_v15 }
 0xede   :  { %v1903_v35 = vsel %vm370_vm14, %v7973_v62, -inf }
 0xedf   :  { %1904 = vmax.xlane.f32.xlu0 %v1903_v35 }
 0xee0   :  { %1901 = vmax.xlane.f32.xlu2 %v1900_v63 }
 0xef2   :  { %v1768_v17 = vpop.xlane.xlu0 %1767 }
 0xef3   :  { %6726 = vrcp.f32 %v1768_v17 }
 0xef9   :  { %v6727_v10 = vpop.eup %6726 }
 0xefa   :  { %v1782_v12 = vmul.f32 %v6727_v10, %v7920_v50  ;;  %v1923_v13 = vpop.xlane.xlu0 %1922 }
 0xefb   :  { %6728 = vrcp.f32 %v1923_v13 }
 0xefc   :  { %v1786_v60 = vpack.c.bf16 %v1782_v12, %v1782_v12 }
 0xefe   :  { %v1792_v33 = vunpack.c.l.b16 %v1786_v60 }
 0xf00   :  { %v1794_v57 = vpack.c.b16 %v1793_v23, %v1792_v33 }
 0xf01   :  { %v6729_v20 = vpop.eup %6728 }
 0xf02   :  { %5706 = vmatmul.msk.bf16.vlgmr.msra.gmra.mxu3 %vm370_vm14, %v1794_v57  ;;  %v1920_v58 = vpop.xlane.xlu2 %1919  ;;  %v1935_v11 = vmul.f32 %v6729_v20, %v7925_v25 }
 0xf03   :  { %6730 = vrcp.f32 %v1920_v58 }
 0xf04   :  { %v1939_v24 = vpack.c.bf16 %v1935_v11, %v1935_v11 }
 0xf06   :  { %v1945_v22 = vunpack.c.l.b16 %v1939_v24 }
 0xf09   :  { %v6731_v21 = vpop.eup %6730 }
 0xf0a   :  { %v1934_v4 = vmul.f32 %v6731_v21, %v7930_v37  ;;  %v2066_v27 = vpop.xlane.xlu2 %2065  ;;  %v2069_v28 = vpop.xlane.xlu1 %2068 }
 0xf0b   :  { %6732 = vrcp.f32 %v2066_v27 }
 0xf0c   :  { %v1938_v50 = vpack.c.bf16 %v1934_v4, %v1934_v4  ;;  %6734 = vrcp.f32 %v2069_v28 }
 0xf0d   :  { %v2094_v2 = vpop.permute.xlu0 %2093 }
 0xf0e   :  { %v1944_v34 = vunpack.c.l.b16 %v1938_v50  ;;  %2106 = vmatpush.bf16.msra.mxu3 %v2094_v2 }
 0xf10   :  { %v1946_v36 = vpack.c.b16 %v1945_v22, %v1944_v34 }
 0xf11   :  { %v6733_v18 = vpop.eup %6732 }
 0xf12   :  { %v6735_v38 = vpop.eup %6734  ;;  %v2163_v52 = vpop.permute.xlu2 %2162  ;;  %5710 = vmatmul.msk.bf16.vlgmr.msrb.gmra.mxu3 %vm370_vm14, %v1946_v36  ;;  %v2080_v25 = vmul.f32 %v6733_v18, %v7934_v39 }
 0xf13   :  { %5717 = vmatmul.msk.bf16.vlgmr.msrb.gmra.mxu2 %vm370_vm14, %v2163_v52  ;;  %v2081_v37 = vmul.f32 %v6735_v38, %v7936_v40 }
 0xf14   :  { %v2084_v49 = vpack.c.bf16 %v2080_v25, %v2080_v25 }
 0xf15   :  { %v2085_v42 = vpack.c.bf16 %v2081_v37, %v2081_v37 }
 0xf16   :  { %v2090_v26 = vunpack.c.l.b16 %v2084_v49 }
 0xf17   :  { %v2091_v46 = vunpack.c.l.b16 %v2085_v42 }
 0xf19   :  { %v2092_v47 = vpack.c.b16 %v2091_v46, %v2090_v26 }
 0xf22   :  { %5714 = vmatmul.msk.bf16.vlgmr.msra.gmra.mxu3 %vm370_vm14, %v2092_v47  ;;  %v2240_v48 = vpop.permute.xlu1 %2239 }
 0xf23   :  { %2252 = vmatpush.bf16.msrb.mxu3 %v2240_v48 }
 0xf36   :  { %v2035_v53 = vpop.f32.mrf.mxu2 }
 0xf37   :  { %v7990_v54 = vadd.f32 %v2035_v53, %v7360_v8 }
 0xf38   :  { %v2212_v16 = vpop.xlane.xlu0 %2211 }
 0xf39   :  { %v2046_v56 = vsel %vm370_vm14, %v7990_v54, -inf  ;;  %6736 = vrcp.f32 %v2212_v16 }
 0xf3a   :  { %2047 = vmax.xlane.f32.xlu2 %v2046_v56 }
 0xf3e   :  { %v2037_v39 = vpop.f32.mrf.mxu2 }
 0xf3f   :  { %v7995_v40 = vadd.f32 %v2037_v39, %v7364_v15  ;;  %v6737_v44 = vpop.eup %6736 }
 0xf40   :  { %v2226_v41 = vmul.f32 %v6737_v44, %v7950_v55  ;;  %v1753_v13 = vpop.xlane.xlu0 %1752 }
 0xf41   :  { %v2049_v6 = vsel %vm370_vm14, %v7995_v40, -inf }
 0xf42   :  { %2050 = vmax.xlane.f32.xlu0 %v2049_v6  ;;  %v2230_v51 = vpack.c.bf16 %v2226_v41, %v2226_v41 }
 0xf44   :  { %v2236_v63 = vunpack.c.l.b16 %v2230_v51 }
 0xf4b   :  { %v2215_v19 = vpop.xlane.xlu2 %2214 }
 0xf4c   :  { %6738 = vrcp.f32 %v2215_v19 }
 0xf4d   :  { %v1750_v10 = vpop.xlane.xlu1 %1749 }
 0xf4e   :  { %v1756_v12 = vsub.f32 %v7963_v29, %v1750_v10 }
 0xf50   :  { %v1762_v60 = vmul.f32 1.442695, %v1756_v12 }
 0xf52   :  { %v6739_v30 = vpop.eup %6738  ;;  %6740 = vpow2.f32 %v1762_v60  ;;  %v1905_v18 = vpop.xlane.xlu0 %1904 }
 0xf53   :  { %v2227_v3 = vmul.f32 %v6739_v30, %v7960_v59  ;;  %v1902_v55 = vpop.xlane.xlu2 %1901  ;;  %v1757_v59 = vsub.f32 %v7956_v1, %v1753_v13  ;;  %v1909_v38 = vsub.f32 %v7973_v62, %v1905_v18 }
 0xf54   :  { %v1908_v58 = vsub.f32 %v7970_v31, %v1902_v55 }
 0xf55   :  { %v2231_v35 = vpack.c.bf16 %v2227_v3, %v2227_v3  ;;  %v1764_v11 = vmul.f32 1.442695, %v1757_v59  ;;  %v1916_v52 = vmul.f32 1.442695, %v1909_v38 }
 0xf56   :  { %v1914_v21 = vmul.f32 1.442695, %v1908_v58 }
 0xf57   :  { %v2237_v17 = vunpack.c.l.b16 %v2231_v35  ;;  %6742 = vpow2.f32 %v1764_v11 }
 0xf58   :  { %v8011_v4 = vpop.eup %6740  ;;  %6744 = vpow2.f32 %v1914_v21  ;;  %v6351_v21 = vld [vmem:[%s9383_s4 + $0x38] sm:$0xff] }
 0xf59   :  { %v2238_v7 = vpack.c.b16 %v2237_v17, %v2236_v63  ;;  %v1772_v31 = vsel %vm370_vm14, %v8011_v4, 0.0  ;;  %6746 = vpow2.f32 %v1916_v52  ;;  %2394 = vmatpush.bf16.msra.mxu1 %v6351_v21 }
 0xf5b   :  { %5718 = vmatmul.msk.bf16.vlgmr.msrb.gmra.mxu3 %vm370_vm14, %v2238_v7 }
 0xf5d   :  { %v6743_v50 = vpop.eup %6742 }
 0xf5e   :  { %v8018_v2 = vpop.eup %6744  ;;  %v1775_v22 = vsel %vm370_vm14, %v6743_v50, 0.0 }
 0xf5f   :  { %v1924_v34 = vsel %vm370_vm14, %v8018_v2, 0.0  ;;  %v8025_v49 = vpop.eup %6746 }
 0xf60   :  { %v1927_v42 = vsel %vm370_vm14, %v8025_v49, 0.0 }
 0xf85   :  { %v8002_v9 = vpop.f32.mrf.mxu3 }
 0xf8d   :  { %v8004_v0 = vpop.f32.mrf.mxu3 }
 0xf95   :  { %v1962_v23 = vpop.f32.mrf.mxu3 }
 0xf96   :  { %v2181_v33 = vpop.f32.mrf.mxu2 }
 0xf97   :  { %v2182_v57 = vadd.f32 %v2181_v33, %v7360_v8 }
 0xf99   :  { %v2192_v20 = vsel %vm370_vm14, %v2182_v57, -inf }
 0xf9a   :  { %2193 = vmax.xlane.f32.xlu2 %v2192_v20 }
 0xf9d   :  { %v1964_v24 = vpop.f32.mrf.mxu3 }
 0xf9e   :  { %v2183_v29 = vpop.f32.mrf.mxu2  ;;  %v6501_v27 = vpack.i.bf16 %v1964_v24, %v1962_v23  ;;  %v6350_v24 = vld [vmem:[%s9383_s4 + $0x30] sm:$0xff] }
 0xf9f   :  { %v2184_v28 = vadd.f32 %v2183_v29, %v7364_v15  ;;  %2395 = vmatpush.bf16.msra.mxu1 %v6350_v24  ;;  %v6348_v29 = vld [vmem:[%s9383_s4 + $0x20] sm:$0xff] }
 0xfa0   :  { %6502 = vrot.lane.b32.xlu1 %v6501_v27, %s7115_s18 }
 0xfa1   :  { %v2195_v1 = vsel %vm370_vm14, %v2184_v28, -inf }
 0xfa2   :  { %2196 = vmax.xlane.f32.xlu0 %v2195_v1  ;;  %1773 = vadd.xlane.f32.xlu2 %v1772_v31 }
 0xfa5   :  { %v2108_v36 = vpop.f32.mrf.mxu3 }
 0xfaa   :  { %1776 = vadd.xlane.f32.xlu0 %v1775_v22  ;;  %1925 = vadd.xlane.f32.xlu2 %v1924_v34 }
 0xfad   :  { %v2110_v25 = vpop.f32.mrf.mxu3 }
 0xfae   :  { %v6506_v37 = vpack.i.bf16 %v2110_v25, %v2108_v36 }
 0xfb5   :  { %v2051_v26 = vpop.xlane.xlu0 %2050 }
 0xfb6   :  { %v2055_v46 = vsub.f32 %v7995_v40, %v2051_v26  ;;  %v2048_v40 = vpop.xlane.xlu2 %2047 }
 0xfb7   :  { %v2054_v6 = vsub.f32 %v7990_v54, %v2048_v40 }
 0xfb8   :  { %v2062_v47 = vmul.f32 1.442695, %v2055_v46 }
 0xfb9   :  { %v2060_v16 = vmul.f32 1.442695, %v2054_v6 }
 0xfba   :  { %6748 = vpow2.f32 %v2062_v47 }
 0xfbb   :  { %6750 = vpow2.f32 %v2060_v16 }
 0xfc0   :  { %v8032_v53 = vpop.eup %6748 }
 0xfc1   :  { %v2073_v39 = vsel %vm370_vm14, %v8032_v53, 0.0  ;;  %v8040_v35 = vpop.eup %6750 }
 0xfc2   :  { %6507 = vrot.lane.b32.xlu2 %v6506_v37, %s7126_s29  ;;  %v2070_v54 = vsel %vm370_vm14, %v8040_v35, 0.0 }
 0xfca   :  { %1928 = vadd.xlane.f32.xlu1 %v1927_v42 }
 0xfde   :  { %v2254_v48 = vpop.f32.mrf.mxu3 }
 0xfe3   :  { %2118 = vrot.lane.b32.xlu1 %v7868_v32, %s7127_s26 }
 0xfe6   :  { %v2256_v62 = vpop.f32.mrf.mxu3 }
 0xfe7   :  { %v6511_v56 = vpack.i.bf16 %v2256_v62, %v2254_v48 }
 0xfe9   :  { %6512 = vrot.lane.b32.xlu0 %v6511_v56, %s7125_s27 }
 0xfeb   :  { %2074 = vadd.xlane.f32.xlu2 %v2073_v39 }
 0xff1   :  { %1972 = vrot.lane.b32.xlu0 %v7868_v32, %s7124_s6 }
0x100d   :  { %v2194_v19 = vpop.xlane.xlu2 %2193 }
0x100e   :  { %v2200_v44 = vsub.f32 %v2182_v57, %v2194_v19 }
0x1010   :  { %v2206_v41 = vmul.f32 1.442695, %v2200_v44 }
0x1012   :  { %6752 = vpow2.f32 %v2206_v41  ;;  %v6503_v27 = vpop.permute.xlu1 %6502 }
0x1013   :  { %v6505_v22 = vunpack.i.h.bf16 %v6503_v27  ;;  %v6504_v34 = vunpack.i.l.bf16 %v6503_v27 }
0x1015   :  { %v2197_v30 = vpop.xlane.xlu0 %2196  ;;  %v1774_v51 = vpop.xlane.xlu2 %1773  ;;  %v2333_v37 = vsel %vm370_vm14, %v8004_v0, %v6505_v22  ;;  %v2332_v42 = vsel %vm370_vm14, %v8002_v9, %v6504_v34 }
0x1016   :  { %v2201_v3 = vsub.f32 %v2184_v28, %v2197_v30  ;;  %6754 = vrcp.f32 %v1774_v51 }
0x1018   :  { %v8042_v63 = vpop.eup %6752  ;;  %v2208_v17 = vmul.f32 1.442695, %v2201_v3 }
0x1019   :  { %v2216_v7 = vsel %vm370_vm14, %v8042_v63, 0.0 }
0x101a   :  { %6756 = vpow2.f32 %v2208_v17  ;;  %2217 = vadd.xlane.f32.xlu2 %v2216_v7 }
0x101b   :  { %2071 = vadd.xlane.f32.xlu0 %v2070_v54 }
0x101c   :  { %v6755_v12 = vpop.eup %6754 }
0x101d   :  { %v1777_v10 = vpop.xlane.xlu0 %1776  ;;  %v1784_v60 = vmul.f32 %v6755_v12, %v8011_v4  ;;  %v6349_v4 = vld [vmem:[%s9383_s4 + $0x28] sm:$0xff]  ;;  %v1926_v28 = vpop.xlane.xlu2 %1925 }
0x101e   :  { %6758 = vrcp.f32 %v1777_v10  ;;  %2396 = vmatpush.bf16.msra.mxu1 %v6349_v4  ;;  %v8086_v4 = vld [vmem:[#allocation7 + $0x1] ss:$0 sm:$0xff] }
0x101f   :  { %v1788_v33 = vpack.c.bf16 %v1784_v60, %v1784_v60 }
0x1020   :  { %v8048_v13 = vpop.eup %6756 }
0x1021   :  { %v2219_v55 = vsel %vm370_vm14, %v8048_v13, 0.0  ;;  %v1820_v58 = vunpack.c.l.b16 %v1788_v33 }
0x1022   :  { %2397 = vmatpush.bf16.msra.mxu1 %v6348_v29 }
0x1023   :  { %2220 = vadd.xlane.f32.xlu0 %v2219_v55 }
0x1024   :  { %v6759_v23 = vpop.eup %6758 }
0x1025   :  { %v1785_v59 = vmul.f32 %v6759_v23, %v6743_v50  ;;  %v6508_v31 = vpop.permute.xlu2 %6507 }
0x1026   :  { %v6510_v36 = vunpack.i.h.bf16 %v6508_v31  ;;  %v6509_v18 = vunpack.i.l.bf16 %v6508_v31 }
0x1027   :  { %v1789_v57 = vpack.c.bf16 %v1785_v59, %v1785_v59 }
0x1028   :  { %v2336_v47 = vsel %vm1012_vm2, %v2332_v42, %v6509_v18  ;;  %v2337_v48 = vsel %vm1012_vm2, %v2333_v37, %v6510_v36 }
0x1029   :  { %v1821_v20 = vunpack.c.l.b16 %v1789_v57 }
0x102b   :  { %v1822_v11 = vpack.c.b16 %v1821_v20, %v1820_v58 }
0x102d   :  { %5707 = vmatmul.msk.bf16.vlgmr.msrb.gmra.mxu0 %vm370_vm14, %v1822_v11 }
0x1032   :  { %2264 = vrot.lane.b32.xlu2 %v7868_v32, %s7128_s28 }
0x103d   :  { %v1929_v1 = vpop.xlane.xlu1 %1928 }
0x103e   :  { %6760 = vrcp.f32 %v1929_v1 }
0x103f   :  { %6762 = vrcp.f32 %v1926_v28 }
0x1044   :  { %v6761_v32 = vpop.eup %6760 }
0x1045   :  { %v6763_v50 = vpop.eup %6762  ;;  %v1937_v38 = vmul.f32 %v6761_v32, %v8025_v49 }
0x1046   :  { %v1936_v52 = vmul.f32 %v6763_v50, %v8018_v2 }
0x1047   :  { %v1941_v62 = vpack.c.bf16 %v1937_v38, %v1937_v38 }
0x1048   :  { %v1940_v39 = vpack.c.bf16 %v1936_v52, %v1936_v52 }
0x1049   :  { %v1970_v40 = vunpack.c.l.b16 %v1941_v62 }
0x104a   :  { %v1969_v0 = vunpack.c.l.b16 %v1940_v39 }
0x104c   :  { %v1971_v9 = vpack.c.b16 %v1970_v40, %v1969_v0 }
0x1055   :  { %v2119_v16 = vpop.permute.xlu1 %2118 }
0x105b   :  { %v6513_v25 = vpop.permute.xlu0 %6512 }
0x105c   :  { %v6515_v26 = vunpack.i.h.bf16 %v6513_v25  ;;  %v6514_v46 = vunpack.i.l.bf16 %v6513_v25 }
0x105e   :  { %v2340_v56 = vsel %vm1017_vm3, %v2336_v47, %v6514_v46  ;;  %v2341_v49 = vsel %vm1017_vm3, %v2337_v48, %v6515_v26  ;;  %v2075_v19 = vpop.xlane.xlu2 %2074 }
0x105f   :  { %v2344_v2 = vpack.c.bf16 %v2341_v49, %v2340_v56  ;;  %6764 = vrcp.f32 %v2075_v19 }
0x1061   :  { %5744 = vmatmul.msk.bf16.vlgmr.msra.gmra.mxu1 %vm151_vm0, %v2344_v2 }
0x1063   :  { %v1973_v6 = vpop.permute.xlu0 %1972 }
0x1064   :  { %1985 = vmatpush.bf16.msra.mxu0 %v1973_v6 }
0x1065   :  { %v6765_v30 = vpop.eup %6764 }
0x1066   :  { %v2083_v51 = vmul.f32 %v6765_v30, %v8032_v53 }
0x1067   :  { %5711 = vmatmul.msk.bf16.vlgmr.msra.gmra.mxu0 %vm370_vm14, %v1971_v9 }
0x1068   :  { %2131 = vmatpush.bf16.msrb.mxu0 %v2119_v16  ;;  %v2087_v7 = vpack.c.bf16 %v2083_v51, %v2083_v51 }
0x106a   :  { %v2116_v60 = vunpack.c.l.b16 %v2087_v7 }
0x108d   :  { %v2218_v44 = vpop.xlane.xlu2 %2217 }
0x108e   :  { %v2072_v41 = vpop.xlane.xlu0 %2071 }
0x108f   :  { %6766 = vrcp.f32 %v2072_v41 }
0x1095   :  { %v6767_v3 = vpop.eup %6766  ;;  %v2265_v17 = vpop.permute.xlu2 %2264 }
0x1096   :  { %v2082_v54 = vmul.f32 %v6767_v3, %v8040_v35  ;;  %v2221_v10 = vpop.xlane.xlu0 %2220  ;;  %2277 = vmatpush.bf16.msra.mxu0 %v2265_v17 }
0x1097   :  { %6768 = vrcp.f32 %v2221_v10 }
0x1098   :  { %v2086_v12 = vpack.c.bf16 %v2082_v54, %v2082_v54  ;;  %6770 = vrcp.f32 %v2218_v44 }
0x109a   :  { %v2115_v55 = vunpack.c.l.b16 %v2086_v12  ;;  %v5781_v12 = vld [vmem:[%s9387_s8 + $0x70] sm:$0xf] }
0x109c   :  { %v2117_v23 = vpack.c.b16 %v2116_v60, %v2115_v55  ;;  %v6359_v60 = vld [vmem:[%s9387_s8 + $0x74] sm:$0xf0]  ;;  %v6358_v55 = vld [vmem:[%s9387_s8 + $0x74] sm:$0xf] }
0x109d   :  { %v6769_v33 = vpop.eup %6768 }
0x109e   :  { %5715 = vmatmul.msk.bf16.vlgmr.msrb.gmra.mxu0 %vm370_vm14, %v2117_v23  ;;  %v6771_v59 = vpop.eup %6770  ;;  %v2229_v57 = vmul.f32 %v6769_v33, %v8048_v13  ;;  %v5782_v23 = vor.u32 %v6359_v60, %v5781_v12  ;;  %v5783_v33 = vld [vmem:[%s9387_s8 + $0x78] sm:$0xf0]  ;;  %v6374_v12 = vld [vmem:[%s9389_s10 + $0xf0] sm:$0xff]  ;;  %v6365_v60 = vld [vmem:[%s9389_s10 + $0xa8] sm:$0xff] }
0x109f   :  { %v2228_v53 = vmul.f32 %v6771_v59, %v8042_v63  ;;  %v5786_v59 = vor.u32 %v6358_v55, %v5783_v33  ;;  %v6373_v55 = vld [vmem:[%s9389_s10 + $0xe8] sm:$0xff]  ;;  %v6372_v33 = vld [vmem:[%s9389_s10 + $0xe0] sm:$0xff] }
0x10a0   :  { %v2233_v58 = vpack.c.bf16 %v2229_v57, %v2229_v57  ;;  %2587 = vmatpush.bf16.msra.mxu2 %v5782_v23  ;;  %v5773_v57 = vld [vmem:[%s9387_s8 + $0x60] sm:$0xf] }
0x10a1   :  { %v2232_v20 = vpack.c.bf16 %v2228_v53, %v2228_v53  ;;  %2606 = vmatpush.bf16.msra.mxu3 %v5786_v59  ;;  %v6357_v53 = vld [vmem:[%s9387_s8 + $0x64] sm:$0xf0]  ;;  %v6364_v23 = vld [vmem:[%s9389_s10 + $0xa0] sm:$0xff] }
0x10a2   :  { %v2262_v11 = vunpack.c.l.b16 %v2233_v58  ;;  %v6356_v58 = vld [vmem:[%s9387_s8 + $0x64] sm:$0xf] }
0x10a3   :  { %v2261_v35 = vunpack.c.l.b16 %v2232_v20  ;;  %v5774_v20 = vor.u32 %v6357_v53, %v5773_v57 }
0x10a5   :  { %v2263_v21 = vpack.c.b16 %v2262_v11, %v2261_v35  ;;  %v5775_v11 = vld [vmem:[%s9387_s8 + $0x68] sm:$0xf0]  ;;  %2588 = vmatpush.bf16.msra.mxu2 %v5774_v20 }
0x10a6   :  { %v5778_v35 = vor.u32 %v6356_v58, %v5775_v11 }
0x10a8   :  { %2607 = vmatpush.bf16.msra.mxu3 %v5778_v35 }
0x10aa   :  { %v1841_v24 = vpop.f32.mrf.mxu0 }
0x10ae   :  { %5719 = vmatmul.msk.bf16.vlgmr.msra.gmra.mxu0 %vm370_vm14, %v2263_v21  ;;  %v5765_v21 = vld [vmem:[%s9387_s8 + $0x50] sm:$0xf] }
0x10b2   :  { %v1843_v29 = vpop.f32.mrf.mxu0 }
0x10de   :  { %v2399_v27 = vpop.f32.mrf.mxu1 }
0x10df   :  { %v2400_v28 = vadd.f32 %v8086_v4, %v2399_v27 }
0x10e1   :  { %v8090_v1 = vadd.f32 %v2400_v28, %v7724_v45  ;;  %v5767_v28 = vld [vmem:[%s9387_s8 + $0x58] sm:$0xf0] }
0x10e3   :  { %v2417_v63 = vsel %vm151_vm0, %v8090_v1, 0.0 }
0x10e4   :  { %v1987_v13 = vpop.f32.mrf.mxu0  ;;  %2418 = vadd.xlane.f32.xlu0 %v2417_v63 }
0x10e6   :  { %v2401_v32 = vpop.f32.mrf.mxu1 }
0x10e7   :  { %v2402_v31 = vadd.f32 %v8086_v4, %v2401_v32 }
0x10e9   :  { %v8096_v50 = vadd.f32 %v2402_v31, %v7730_v61  ;;  %v5757_v31 = vld [vmem:[%s9387_s8 + $0x40] sm:$0xf] }
0x10eb   :  { %v2420_v22 = vsel %vm151_vm0, %v8096_v50, 0.0 }
0x10ec   :  { %v1989_v34 = vpop.f32.mrf.mxu0  ;;  %2421 = vadd.xlane.f32.xlu0 %v2420_v22  ;;  %v6353_v22 = vld [vmem:[%s9387_s8 + $0x44] sm:$0xf0] }
0x10ed   :  { %v6516_v36 = vpack.i.bf16 %v1989_v34, %v1987_v13  ;;  %v6352_v34 = vld [vmem:[%s9387_s8 + $0x44] sm:$0xf] }
0x10ef   :  { %6517 = vrot.lane.b32.xlu1 %v6516_v36, %s7115_s18 }
0x111b   :  { %v2133_v45 = vpop.f32.mrf.mxu0 }
0x1123   :  { %v2135_v18 = vpop.f32.mrf.mxu0 }
0x1124   :  { %v6521_v38 = vpack.i.bf16 %v2135_v18, %v2133_v45  ;;  %v5758_v45 = vor.u32 %v6353_v22, %v5757_v31  ;;  %v5759_v18 = vld [vmem:[%s9387_s8 + $0x48] sm:$0xf0] }
0x1126   :  { %6522 = vrot.lane.b32.xlu0 %v6521_v38, %s7126_s29  ;;  %v5762_v38 = vor.u32 %v6352_v34, %v5759_v18 }
0x112b   :  { %v2279_v52 = vpop.f32.mrf.mxu0 }
0x1133   :  { %v2281_v25 = vpop.f32.mrf.mxu0 }
0x1134   :  { %v6526_v37 = vpack.i.bf16 %v2281_v25, %v2279_v52 }
0x1136   :  { %6527 = vrot.lane.b32.xlu1 %v6526_v37, %s7125_s27 }
0x1157   :  { %v2419_v61 = vpop.xlane.xlu0 %2418 }
0x1158   :  { %v2429_v42 = vmul.f32 %v2419_v61, %v7264_v14 }
0x115a   :  { %v8105_v26 = vsub.f32 %v8090_v1, %v2429_v42 }
0x115c   :  { %v2437_v46 = vmul.f32 %v8105_v26, %v8105_v26 }
0x115e   :  { %v2441_v47 = vsel %vm151_vm0, %v2437_v46, 0.0 }
0x115f   :  { %2442 = vadd.xlane.f32.xlu2 %v2441_v47  ;;  %v2422_v48 = vpop.xlane.xlu0 %2421 }
0x1160   :  { %v2430_v62 = vmul.f32 %v2422_v48, %v7264_v14 }
0x1161   :  { %v6518_v2 = vpop.permute.xlu1 %6517 }
0x1162   :  { %v8112_v56 = vsub.f32 %v8096_v50, %v2430_v62  ;;  %v6520_v0 = vunpack.i.h.bf16 %v6518_v2  ;;  %v6519_v6 = vunpack.i.l.bf16 %v6518_v2 }
0x1164   :  { %v2438_v49 = vmul.f32 %v8112_v56, %v8112_v56  ;;  %v2335_v44 = vsel %vm370_vm14, %v1843_v29, %v6520_v0  ;;  %v2334_v41 = vsel %vm370_vm14, %v1841_v24, %v6519_v6  ;;  %v6355_v24 = vld [vmem:[%s9387_s8 + $0x54] sm:$0xf0]  ;;  %v6354_v29 = vld [vmem:[%s9387_s8 + $0x54] sm:$0xf] }
0x1165   :  { %v5766_v27 = vor.u32 %v6355_v24, %v5765_v21  ;;  %v5770_v13 = vor.u32 %v6354_v29, %v5767_v28  ;;  %v6363_v24 = vld [vmem:[%s9389_s10 + $0x98] sm:$0xff]  ;;  %v6361_v29 = vld [vmem:[%s9389_s10 + $0x88] sm:$0xff]  ;;  %v6360_v28 = vld [vmem:[%s9389_s10 + $0x80] sm:$0xff] }
0x1166   :  { %v2444_v39 = vsel %vm151_vm0, %v2438_v49, 0.0 }
0x1167   :  { %2445 = vadd.xlane.f32.xlu1 %v2444_v39  ;;  %2589 = vmatpush.bf16.msra.mxu2 %v5766_v27  ;;  %v6369_v27 = vld [vmem:[%s9389_s10 + $0xc8] sm:$0xff] }
0x1168   :  { %2608 = vmatpush.bf16.msra.mxu3 %v5770_v13  ;;  %v5754_v13 = vld [vmem:[%s9388_s9 + $0x2] sm:$0x3] }
0x1169   :  { %v8249_v22 = vperm.slane %v5754_v13, 0  ;;  %v8251_v34 = vperm.slane %v5754_v13, 1 }
0x116b   :  { %2590 = vmatpush.bf16.msra.mxu2 %v5758_v45 }
0x116c   :  { %2609 = vmatpush.bf16.msra.mxu3 %v5762_v38 }
0x1198   :  { %v6523_v40 = vpop.permute.xlu0 %6522 }
0x1199   :  { %v6525_v16 = vunpack.i.h.bf16 %v6523_v40  ;;  %v6524_v9 = vunpack.i.l.bf16 %v6523_v40 }
0x119b   :  { %v2338_v3 = vsel %vm1012_vm2, %v2334_v41, %v6524_v9  ;;  %v2339_v17 = vsel %vm1012_vm2, %v2335_v44, %v6525_v16  ;;  %v8174_v16 = vld [vmem:[#allocation8 + $0x1] ss:$0 sm:$0xff]  ;;  %v8177_v41 = vld [vmem:[#allocation10 + $0x1] ss:$0 sm:$0xff] }
0x11a8   :  { %v6528_v19 = vpop.permute.xlu1 %6527 }
0x11a9   :  { %v6530_v30 = vunpack.i.h.bf16 %v6528_v19  ;;  %v6529_v51 = vunpack.i.l.bf16 %v6528_v19 }
0x11ab   :  { %v2342_v7 = vsel %vm1017_vm3, %v2338_v3, %v6529_v51  ;;  %v2343_v54 = vsel %vm1017_vm3, %v2339_v17, %v6530_v30 }
0x11ac   :  { %v2345_v10 = vpack.c.bf16 %v2343_v54, %v2342_v7 }
0x11ae   :  { %5745 = vmatmul.msk.bf16.gmra.mxu1 %vm151_vm0, %v2345_v10  ;;  %v6375_v10 = vld [vmem:[%s9389_s10 + $0xf8] sm:$0xff] }
0x11af   :  { %2786 = vmatpush.bf16.msrb.mxu1 %v6375_v10 }
0x11b3   :  { %2787 = vmatpush.bf16.msrb.mxu1 %v6374_v12 }
0x11b7   :  { %2788 = vmatpush.bf16.msrb.mxu1 %v6373_v55 }
0x11bb   :  { %2789 = vmatpush.bf16.msrb.mxu1 %v6372_v33 }
0x11d2   :  { %v2443_v63 = vpop.xlane.xlu2 %2442 }
0x11d3   :  { %v2453_v32 = vmul.f32 %v2443_v63, %v7264_v14  ;;  %v6368_v63 = vld [vmem:[%s9389_s10 + $0xc0] sm:$0xff] }
0x11d5   :  { %v2457_v36 = vadd.f32 1e-05, %v2453_v32 }
0x11d7   :  { %6772 = vrsqrt.f32 %v2457_v36  ;;  %vm2467_vm5 = vweird.f32 %v2457_v36 }
0x11da   :  { %v2446_v52 = vpop.xlane.xlu1 %2445 }
0x11db   :  { %v2454_v25 = vmul.f32 %v2446_v52, %v7264_v14 }
0x11dd   :  { %v6773_v37 = vpop.eup %6772  ;;  %v2458_v61 = vadd.f32 1e-05, %v2454_v25 }
0x11de   :  { %v2462_v42 = vmul.f32 %v6773_v37, %v2457_v36  ;;  %vm2468_vm4 = vweird.f32 %v6773_v37 }
0x11df   :  { %6774 = vrsqrt.f32 %v2458_v61  ;;  %vm2469_vm6 = vmor %vm2467_vm5, %vm2468_vm4  ;;  %vm2477_vm8 = vweird.f32 %v2458_v61 }
0x11e0   :  { %v2463_v46 = vmul.f32 %v6773_v37, %v2462_v42 }
0x11e2   :  { %v2464_v47 = vmul.f32 0.5, %v2463_v46 }
0x11e4   :  { %v2465_v48 = vsub.f32 1.5, %v2464_v47 }
0x11e5   :  { %v6775_v62 = vpop.eup %6774 }
0x11e6   :  { %v2466_v49 = vmul.f32 %v6773_v37, %v2465_v48  ;;  %v2472_v39 = vmul.f32 %v6775_v62, %v2458_v61  ;;  %vm2478_vm7 = vweird.f32 %v6775_v62 }
0x11e7   :  { %vm2479_vm9 = vmor %vm2477_vm8, %vm2478_vm7 }
0x11e8   :  { %v2473_v2 = vmul.f32 %v6775_v62, %v2472_v39  ;;  %v2470_v40 = vsel %vm2469_vm6, %v6773_v37, %v2466_v49 }
0x11e9   :  { %v2501_v9 = vmul.f32 %v2470_v40, %v8105_v26  ;;  %v6367_v26 = vld [vmem:[%s9389_s10 + $0xb8] sm:$0xff] }
0x11ea   :  { %v2474_v0 = vmul.f32 0.5, %v2473_v2  ;;  %2767 = vmatpush.bf16.msrb.mxu0 %v6367_v26 }
0x11eb   :  { %v2508_v30 = vmul.f32 %v8174_v16, %v2501_v9 }
0x11ec   :  { %v2475_v6 = vsub.f32 1.5, %v2474_v0 }
0x11ed   :  { %v2515_v17 = vadd.f32 %v8177_v41, %v2508_v30  ;;  %v8266_v30 = vld [vmem:[%s9390_s11 + $0x1] ss:$0 sm:$0xff] }
0x11ee   :  { %v2476_v19 = vmul.f32 %v6775_v62, %v2475_v6 }
0x11f0   :  { %v2480_v44 = vsel %vm2479_vm9, %v6775_v62, %v2476_v19 }
0x11f1   :  { %v2502_v51 = vmul.f32 %v2480_v44, %v8112_v56  ;;  %v6366_v56 = vld [vmem:[%s9389_s10 + $0xb0] sm:$0xff] }
0x11f2   :  { %2768 = vmatpush.bf16.msrb.mxu0 %v6366_v56 }
0x11f3   :  { %v2509_v3 = vmul.f32 %v8174_v16, %v2502_v51 }
0x11f5   :  { %v2516_v7 = vadd.f32 %v8177_v41, %v2509_v3 }
0x11f6   :  { %2769 = vmatpush.bf16.msrb.mxu0 %v6365_v60 }
0x11f7   :  { %v2519_v54 = vpack.c.bf16 %v2516_v7, %v2515_v17 }
0x11f9   :  { %5787 = vmatmul.msk.bf16.vlgmr.msra.gmra.mxu2 %vm151_vm0, %v2519_v54  ;;  %5789 = vmatmul.msk.bf16.vlgmr.msra.gmra.mxu3 %vm151_vm0, %v2519_v54 }
0x11fa   :  { %2770 = vmatpush.bf16.msrb.mxu0 %v6364_v23 }
0x11fe   :  { %2771 = vmatpush.bf16.msrb.mxu0 %v6363_v24 }
0x122b   :  { %v2404_v59 = vpop.f32.mrf.mxu1 }
0x122c   :  { %v2405_v57 = vadd.f32 %v8086_v4, %v2404_v59 }
0x122e   :  { %v8212_v53 = vadd.f32 %v2405_v57, %v7824_v43  ;;  %v6371_v43 = vld [vmem:[%s9389_s10 + $0xd8] sm:$0xff] }
0x122f   :  { %2790 = vmatpush.bf16.msrb.mxu1 %v6371_v43 }
0x1230   :  { %v2423_v58 = vsel %vm151_vm0, %v8212_v53, 0.0 }
0x1231   :  { %2424 = vadd.xlane.f32.xlu0 %v2423_v58 }
0x1233   :  { %v2406_v20 = vpop.f32.mrf.mxu1 }
0x1234   :  { %v2407_v11 = vadd.f32 %v8086_v4, %v2406_v20  ;;  %v6362_v4 = vld [vmem:[%s9389_s10 + $0x90] sm:$0xff] }
0x1235   :  { %2772 = vmatpush.bf16.msrb.mxu0 %v6362_v4 }
0x1236   :  { %v8218_v35 = vadd.f32 %v2407_v11, %v7830_v5  ;;  %v6370_v5 = vld [vmem:[%s9389_s10 + $0xd0] sm:$0xff] }
0x1237   :  { %2791 = vmatpush.bf16.msrb.mxu1 %v6370_v5 }
0x1238   :  { %v2426_v21 = vsel %vm151_vm0, %v8218_v35, 0.0 }
0x1239   :  { %2427 = vadd.xlane.f32.xlu2 %v2426_v21  ;;  %2773 = vmatpush.bf16.msrb.mxu0 %v6361_v29 }
0x123b   :  { %2792 = vmatpush.bf16.msrb.mxu1 %v6369_v27 }
0x123d   :  { %2774 = vmatpush.bf16.msrb.mxu0 %v6360_v28 }
0x123f   :  { %2793 = vmatpush.bf16.msrb.mxu1 %v6368_v63 }
0x127c   :  { %v2592_v32 = vpop.f32.mrf.mxu2  ;;  %v2611_v31 = vpop.f32.mrf.mxu3 }
0x127d   :  { %v2593_v36 = vadd.f32 %v2592_v32, %v8249_v22  ;;  %v2612_v45 = vadd.f32 %v2611_v31, %v8251_v34 }
0x127f   :  { %v2621_v37 = vmax.f32 %v2593_v36, 0.0  ;;  %v2622_v61 = vmax.f32 %v2612_v45, 0.0 }
0x1284   :  { %v2594_v18 = vpop.f32.mrf.mxu2  ;;  %v2613_v38 = vpop.f32.mrf.mxu3 }
0x1285   :  { %v2595_v52 = vadd.f32 %v2594_v18, %v8249_v22  ;;  %v2614_v25 = vadd.f32 %v2613_v38, %v8251_v34 }
0x1287   :  { %v2623_v42 = vmax.f32 %v2595_v52, 0.0  ;;  %v2624_v46 = vmax.f32 %v2614_v25, 0.0 }
0x1289   :  { %v2629_v47 = vpack.c.bf16 %v2623_v42, %v2621_v37  ;;  %v2630_v48 = vpack.c.bf16 %v2624_v46, %v2622_v61 }
0x128b   :  { %2775 = vmatmul.bf16.vlgmr.msrb.gmra.mxu0 %v2629_v47  ;;  %2794 = vmatmul.bf16.vlgmr.msrb.gmra.mxu1 %v2630_v48 }
0x12a4   :  { %v2425_v62 = vpop.xlane.xlu0 %2424 }
0x12a5   :  { %v2431_v49 = vmul.f32 %v2425_v62, %v7264_v14 }
0x12a7   :  { %v2435_v39 = vsub.f32 %v8212_v53, %v2431_v49 }
0x12a9   :  { %v2439_v2 = vmul.f32 %v2435_v39, %v2435_v39 }
0x12ab   :  { %v2447_v40 = vsel %vm151_vm0, %v2439_v2, 0.0 }
0x12ac   :  { %v2428_v0 = vpop.xlane.xlu2 %2427  ;;  %2448 = vadd.xlane.f32.xlu1 %v2447_v40 }
0x12ad   :  { %v2432_v6 = vmul.f32 %v2428_v0, %v7264_v14 }
0x12af   :  { %v2436_v9 = vsub.f32 %v8218_v35, %v2432_v6 }
0x12b1   :  { %v2440_v19 = vmul.f32 %v2436_v9, %v2436_v9 }
0x12b3   :  { %v2450_v44 = vsel %vm151_vm0, %v2440_v19, 0.0 }
0x12b4   :  { %2451 = vadd.xlane.f32.xlu2 %v2450_v44 }
0x1308   :  { %v2776_v51 = vpop.f32.mrf.mxu0  ;;  %v2795_v3 = vpop.f32.mrf.mxu1 }
0x1309   :  { %v2777_v17 = vadd.f32 %v8266_v30, %v2776_v51 }
0x130b   :  { %v2796_v7 = vadd.f32 %v2795_v3, %v2777_v17 }
0x130d   :  { %v8270_v54 = vadd.f32 %v2796_v7, %v8090_v1 }
0x130f   :  { %v2811_v26 = vsel %vm151_vm0, %v8270_v54, 0.0 }
0x1310   :  { %v2778_v10 = vpop.f32.mrf.mxu0  ;;  %2812 = vadd.xlane.f32.xlu1 %v2811_v26  ;;  %v2797_v12 = vpop.f32.mrf.mxu1 }
0x1311   :  { %v2779_v56 = vadd.f32 %v8266_v30, %v2778_v10 }
0x1313   :  { %v2798_v60 = vadd.f32 %v2797_v12, %v2779_v56  ;;  %v5932_v12 = vld [vmem:[%s9382_s3 + $0x30] sm:$0xf] }
0x1315   :  { %v8276_v55 = vadd.f32 %v2798_v60, %v8096_v50  ;;  %v6387_v60 = vld [vmem:[%s9382_s3 + $0x34] sm:$0xf0] }
0x1317   :  { %v2814_v23 = vsel %vm151_vm0, %v8276_v55, 0.0 }
0x1318   :  { %2815 = vadd.xlane.f32.xlu0 %v2814_v23  ;;  %v5933_v23 = vor.u32 %v6387_v60, %v5932_v12 }
0x131a   :  { %3056 = vmatpush.bf16.msrb.mxu3 %v5933_v23 }
0x131f   :  { %v2449_v33 = vpop.xlane.xlu1 %2448 }
0x1320   :  { %v2455_v1 = vmul.f32 %v2449_v33, %v7264_v14  ;;  %v5934_v33 = vld [vmem:[%s9382_s3 + $0x38] sm:$0xf0] }
0x1322   :  { %v2459_v59 = vadd.f32 1e-05, %v2455_v1 }
0x1324   :  { %6776 = vrsqrt.f32 %v2459_v59  ;;  %vm2487_vm11 = vweird.f32 %v2459_v59 }
0x1327   :  { %v2452_v57 = vpop.xlane.xlu2 %2451 }
0x1328   :  { %v2456_v58 = vmul.f32 %v2452_v57, %v7264_v14  ;;  %v6385_v57 = vld [vmem:[%s9382_s3 + $0x24] sm:$0xf0] }
0x132a   :  { %v6777_v20 = vpop.eup %6776  ;;  %v2460_v11 = vadd.f32 1e-05, %v2456_v58  ;;  %v6384_v58 = vld [vmem:[%s9382_s3 + $0x24] sm:$0xf] }
0x132b   :  { %v2482_v21 = vmul.f32 %v6777_v20, %v2459_v59  ;;  %vm2488_vm10 = vweird.f32 %v6777_v20  ;;  %v5924_v59 = vld [vmem:[%s9382_s3 + $0x20] sm:$0xf] }
0x132c   :  { %6778 = vrsqrt.f32 %v2460_v11  ;;  %vm2489_vm12 = vmor %vm2487_vm11, %vm2488_vm10  ;;  %vm2497_vm15 = vweird.f32 %v2460_v11 }
0x132d   :  { %v2483_v24 = vmul.f32 %v6777_v20, %v2482_v21  ;;  %v5926_v21 = vld [vmem:[%s9382_s3 + $0x28] sm:$0xf0] }
0x132f   :  { %v2484_v43 = vmul.f32 0.5, %v2483_v24  ;;  %v5929_v24 = vor.u32 %v6384_v58, %v5926_v21 }
0x1331   :  { %v2485_v50 = vsub.f32 1.5, %v2484_v43  ;;  %v5916_v43 = vld [vmem:[%s9382_s3 + $0x10] sm:$0xf] }
0x1332   :  { %v6779_v4 = vpop.eup %6778 }
0x1333   :  { %v2486_v5 = vmul.f32 %v6777_v20, %v2485_v50  ;;  %v2492_v29 = vmul.f32 %v6779_v4, %v2460_v11  ;;  %vm2498_vm13 = vweird.f32 %v6779_v4  ;;  %v5925_v11 = vor.u32 %v6385_v57, %v5924_v59  ;;  %v6383_v50 = vld [vmem:[%s9382_s3 + $0x14] sm:$0xf0] }
0x1334   :  { %vm2499_vm1 = vmor %vm2497_vm15, %vm2498_vm13 }
0x1335   :  { %v2493_v27 = vmul.f32 %v6779_v4, %v2492_v29  ;;  %v2490_v28 = vsel %vm2489_vm12, %v6777_v20, %v2486_v5  ;;  %v6378_v20 = vld [vmem:[%s9393_s14 + $0x10] sm:$0xff]  ;;  %3057 = vmatpush.bf16.msrb.mxu3 %v5925_v11  ;;  %v6377_v5 = vld [vmem:[%s9393_s14 + $0x8] sm:$0xff]  ;;  %v5917_v29 = vor.u32 %v6383_v50, %v5916_v43 }
0x1336   :  { %v2503_v32 = vmul.f32 %v2490_v28, %v2435_v39 }
0x1337   :  { %v2494_v63 = vmul.f32 0.5, %v2493_v27  ;;  %v5918_v27 = vld [vmem:[%s9382_s3 + $0x18] sm:$0xf0] }
0x1338   :  { %v2510_v18 = vmul.f32 %v8174_v16, %v2503_v32  ;;  %v5908_v32 = vld [vmem:[%s9382_s3] sm:$0xf] }
0x1339   :  { %v2495_v13 = vsub.f32 1.5, %v2494_v63  ;;  %3058 = vmatpush.bf16.msrb.mxu3 %v5917_v29 }
0x133a   :  { %v2517_v52 = vadd.f32 %v8177_v41, %v2510_v18  ;;  %v6376_v18 = vld [vmem:[%s9393_s14] sm:$0xff] }
0x133b   :  { %v2496_v31 = vmul.f32 %v6779_v4, %v2495_v13 }
0x133d   :  { %v2500_v36 = vsel %vm2499_vm1, %v6779_v4, %v2496_v31  ;;  %v6382_v4 = vld [vmem:[%s9382_s3 + $0x14] sm:$0xf]  ;;  %v6381_v31 = vld [vmem:[%s9382_s3 + $0x4] sm:$0xf0] }
0x133e   :  { %v2504_v45 = vmul.f32 %v2500_v36, %v2436_v9  ;;  %v5921_v63 = vor.u32 %v6382_v4, %v5918_v27  ;;  %v6380_v36 = vld [vmem:[%s9382_s3 + $0x4] sm:$0xf] }
0x1340   :  { %v2511_v38 = vmul.f32 %v8174_v16, %v2504_v45 }
0x1342   :  { %v2518_v25 = vadd.f32 %v8177_v41, %v2511_v38  ;;  %v5909_v38 = vor.u32 %v6381_v31, %v5908_v32 }
0x1344   :  { %v2520_v37 = vpack.c.bf16 %v2518_v25, %v2517_v52  ;;  %v5910_v52 = vld [vmem:[%s9382_s3 + $0x8] sm:$0xf0]  ;;  %3059 = vmatpush.bf16.msrb.mxu3 %v5909_v38 }
0x1345   :  { %v5913_v25 = vor.u32 %v6380_v36, %v5910_v52 }
0x1346   :  { %5788 = vmatmul.msk.bf16.gmra.mxu2 %vm151_vm0, %v2520_v37  ;;  %5790 = vmatmul.msk.bf16.gmra.mxu3 %vm151_vm0, %v2520_v37 }
0x1383   :  { %v2813_v61 = vpop.xlane.xlu1 %2812 }
0x1384   :  { %v2823_v42 = vmul.f32 %v2813_v61, %v7264_v14 }
0x1386   :  { %v8290_v46 = vsub.f32 %v8270_v54, %v2823_v42 }
0x1388   :  { %v2831_v47 = vmul.f32 %v8290_v46, %v8290_v46 }
0x138a   :  { %v2835_v16 = vsel %vm151_vm0, %v2831_v47, 0.0 }
0x138b   :  { %2836 = vadd.xlane.f32.xlu2 %v2835_v16  ;;  %v2816_v48 = vpop.xlane.xlu0 %2815 }
0x138c   :  { %v2824_v41 = vmul.f32 %v2816_v48, %v7264_v14 }
0x138e   :  { %v8297_v62 = vsub.f32 %v8276_v55, %v2824_v41 }
0x1390   :  { %v2832_v49 = vmul.f32 %v8297_v62, %v8297_v62 }
0x1392   :  { %v2838_v39 = vsel %vm151_vm0, %v2832_v49, 0.0 }
0x1393   :  { %2839 = vadd.xlane.f32.xlu1 %v2838_v39 }
0x13c9   :  { %v2597_v2 = vpop.f32.mrf.mxu2  ;;  %v2616_v40 = vpop.f32.mrf.mxu3 }
0x13ca   :  { %v2598_v0 = vadd.f32 %v2597_v2, %v8249_v22  ;;  %v2617_v6 = vadd.f32 %v2616_v40, %v8251_v34 }
0x13cc   :  { %v2625_v3 = vmax.f32 %v2598_v0, 0.0  ;;  %v2626_v17 = vmax.f32 %v2617_v6, 0.0 }
0x13d1   :  { %v2599_v9 = vpop.f32.mrf.mxu2  ;;  %v2618_v19 = vpop.f32.mrf.mxu3 }
0x13d2   :  { %v2600_v44 = vadd.f32 %v2599_v9, %v8249_v22  ;;  %v2619_v51 = vadd.f32 %v2618_v19, %v8251_v34  ;;  %v6386_v22 = vld [vmem:[%s9382_s3 + $0x34] sm:$0xf]  ;;  %v6379_v34 = vld [vmem:[%s9393_s14 + $0x18] sm:$0xff]  ;;  %v8371_v19 = vld [vmem:[%s9391_s12] ss:$0 sm:$0xff] }
0x13d3   :  { %v5937_v1 = vor.u32 %v6386_v22, %v5934_v33  ;;  %2961 = vmatpush.bf16.msrb.mxu2 %v6379_v34 }
0x13d4   :  { %v2627_v7 = vmax.f32 %v2600_v44, 0.0  ;;  %v2628_v26 = vmax.f32 %v2619_v51, 0.0  ;;  %v8373_v44 = vld [vmem:[#allocation2] ss:$0 sm:$0xff] }
0x13d5   :  { %3075 = vmatpush.bf16.msra.mxu0 %v5937_v1 }
0x13d6   :  { %v2631_v10 = vpack.c.bf16 %v2627_v7, %v2625_v3  ;;  %v2632_v56 = vpack.c.bf16 %v2628_v26, %v2626_v17  ;;  %v8376_v17 = vld [vmem:[#allocation2 + $0x1] ss:$0 sm:$0xff]  ;;  %v8381_v26 = vld [vmem:[%s9392_s13] ss:$0 sm:$0xff] }
0x13d7   :  { %2962 = vmatpush.bf16.msrb.mxu2 %v6378_v20 }
0x13d8   :  { %2780 = vmatmul.bf16.gmra.mxu0 %v2631_v10  ;;  %2799 = vmatmul.bf16.gmra.mxu1 %v2632_v56  ;;  %v8383_v10 = vld [vmem:[#allocation5] ss:$0 sm:$0xff] }
0x13d9   :  { %3076 = vmatpush.bf16.msra.mxu0 %v5929_v24 }
0x13db   :  { %2963 = vmatpush.bf16.msrb.mxu2 %v6377_v5 }
0x13dd   :  { %3077 = vmatpush.bf16.msra.mxu0 %v5921_v63 }
0x13df   :  { %2964 = vmatpush.bf16.msrb.mxu2 %v6376_v18 }
0x13e1   :  { %3078 = vmatpush.bf16.msra.mxu0 %v5913_v25 }
0x13fe   :  { %v2837_v28 = vpop.xlane.xlu2 %2836 }
0x13ff   :  { %v2847_v13 = vmul.f32 %v2837_v28, %v7264_v14 }
0x1401   :  { %v2851_v45 = vadd.f32 1e-05, %v2847_v13 }
0x1403   :  { %6780 = vrsqrt.f32 %v2851_v45  ;;  %vm2861_vm5 = vweird.f32 %v2851_v45 }
0x1406   :  { %v2840_v37 = vpop.xlane.xlu1 %2839 }
0x1407   :  { %v2848_v61 = vmul.f32 %v2840_v37, %v7264_v14 }
0x1409   :  { %v6781_v42 = vpop.eup %6780  ;;  %v2852_v47 = vadd.f32 1e-05, %v2848_v61 }
0x140a   :  { %v2856_v16 = vmul.f32 %v6781_v42, %v2851_v45  ;;  %vm2862_vm4 = vweird.f32 %v6781_v42 }
0x140b   :  { %6782 = vrsqrt.f32 %v2852_v47  ;;  %vm2863_vm6 = vmor %vm2861_vm5, %vm2862_vm4  ;;  %vm2871_vm8 = vweird.f32 %v2852_v47 }
0x140c   :  { %v2857_v48 = vmul.f32 %v6781_v42, %v2856_v16 }
0x140e   :  { %v2858_v41 = vmul.f32 0.5, %v2857_v48 }
0x1410   :  { %v2859_v49 = vsub.f32 1.5, %v2858_v41 }
0x1411   :  { %v6783_v39 = vpop.eup %6782 }
0x1412   :  { %v2860_v2 = vmul.f32 %v6781_v42, %v2859_v49  ;;  %v2866_v40 = vmul.f32 %v6783_v39, %v2852_v47  ;;  %vm2872_vm7 = vweird.f32 %v6783_v39 }
0x1413   :  { %vm2873_vm9 = vmor %vm2871_vm8, %vm2872_vm7 }
0x1414   :  { %v2867_v0 = vmul.f32 %v6783_v39, %v2866_v40  ;;  %v2864_v6 = vsel %vm2863_vm6, %v6781_v42, %v2860_v2 }
0x1415   :  { %v2895_v51 = vmul.f32 %v2864_v6, %v8290_v46  ;;  %v8387_v46 = vld [vmem:[#allocation5 + $0x1] ss:$0 sm:$0xff] }
0x1416   :  { %v2868_v9 = vmul.f32 0.5, %v2867_v0 }
0x1417   :  { %v2902_v56 = vmul.f32 %v8371_v19, %v2895_v51  ;;  %v2985_v12 = vmul.f32 %v8373_v44, %v2895_v51  ;;  %v4220_v22 = vmul.f32 %v8376_v17, %v2895_v51 }
0x1418   :  { %v2869_v3 = vsub.f32 1.5, %v2868_v9 }
0x1419   :  { %v2909_v59 = vadd.f32 %v8381_v26, %v2902_v56  ;;  %v2992_v57 = vadd.f32 %v8383_v10, %v2985_v12  ;;  %v4227_v58 = vadd.f32 %v8387_v46, %v4220_v22 }
0x141a   :  { %v2870_v7 = vmul.f32 %v6783_v39, %v2869_v3 }
0x141c   :  { %v2874_v60 = vsel %vm2873_vm9, %v6783_v39, %v2870_v7 }
0x141d   :  { %v2896_v34 = vmul.f32 %v2874_v60, %v8297_v62 }
0x141f   :  { %v2903_v23 = vmul.f32 %v8371_v19, %v2896_v34  ;;  %v2986_v33 = vmul.f32 %v8373_v44, %v2896_v34  ;;  %v4221_v1 = vmul.f32 %v8376_v17, %v2896_v34 }
0x1421   :  { %v2910_v20 = vadd.f32 %v8381_v26, %v2903_v23  ;;  %v2993_v11 = vadd.f32 %v8383_v10, %v2986_v33  ;;  %v4228_v21 = vadd.f32 %v8387_v46, %v4221_v1 }
0x1423   :  { %v2913_v24 = vpack.c.bf16 %v2910_v20, %v2909_v59  ;;  %v2996_v62 = vpack.c.bf16 %v2993_v11, %v2992_v57  ;;  %v8400_v43 = vpack.c.bf16 %v4228_v21, %v4227_v58 }
0x1425   :  { %5904 = vmatmul.msk.bf16.vlgmr.msrb.gmra.mxu2 %vm151_vm0, %v2913_v24  ;;  %5938 = vmatmul.msk.bf16.vlgmr.msrb.gmra.mxu3 %vm151_vm0, %v2996_v62 }
0x1426   :  { %5940 = vmatmul.msk.bf16.vlgmr.msra.gmra.mxu0 %vm151_vm0, %v2996_v62 }
0x1455   :  { %v2781_v50 = vpop.f32.mrf.mxu0  ;;  %v2800_v4 = vpop.f32.mrf.mxu1 }
0x1456   :  { %v2782_v5 = vadd.f32 %v8266_v30, %v2781_v50 }
0x1458   :  { %v2801_v29 = vadd.f32 %v2800_v4, %v2782_v5 }
0x145a   :  { %v8407_v27 = vadd.f32 %v2801_v29, %v8212_v53  ;;  %v8420_v53 = vld [vmem:[%s9394_s15] ss:$0 sm:$0xff] }
0x145c   :  { %v2817_v28 = vsel %vm151_vm0, %v8407_v27, 0.0 }
0x145d   :  { %v2783_v63 = vpop.f32.mrf.mxu0  ;;  %2818 = vadd.xlane.f32.xlu0 %v2817_v28  ;;  %v2802_v32 = vpop.f32.mrf.mxu1 }
0x145e   :  { %v2784_v13 = vadd.f32 %v8266_v30, %v2783_v63 }
0x1460   :  { %v2803_v31 = vadd.f32 %v2802_v32, %v2784_v13 }
0x1462   :  { %v8413_v36 = vadd.f32 %v2803_v31, %v8218_v35 }
0x1464   :  { %v2820_v45 = vsel %vm151_vm0, %v8413_v36, 0.0 }
0x1465   :  { %2821 = vadd.xlane.f32.xlu2 %v2820_v45 }
0x14a3   :  { %v3080_v18 = vpop.f32.mrf.mxu0 }
0x14a4   :  { %v3094_v30 = vpack.c.bf16 %v3080_v18, %v3080_v18 }
0x14a6   :  { %v3207_v35 = vunpack.c.l.b16 %v3094_v30 }
0x14a8   :  { %v2966_v38 = vpop.f32.mrf.mxu2  ;;  %v3061_v52 = vpop.f32.mrf.mxu3 }
0x14a9   :  { %v2967_v25 = vadd.f32 %v8420_v53, %v2966_v38  ;;  %v3090_v47 = vpack.c.bf16 %v3061_v52, %v3061_v52 }
0x14ab   :  { %2976 = vst [vmem:[#allocation11] sm:$0xff] %v2967_v25  ;;  %v3082_v37 = vpop.f32.mrf.mxu0  ;;  %v3100_v2 = vunpack.c.l.b16 %v3090_v47 }
0x14ac   :  { %v3095_v61 = vpack.c.bf16 %v3082_v37, %v3082_v37 }
0x14ae   :  { %v3208_v42 = vunpack.c.l.b16 %v3095_v61 }
0x14b0   :  { %v8423_v16 = vpack.c.b16 %v3208_v42, %v3207_v35  ;;  %v2968_v48 = vpop.f32.mrf.mxu2  ;;  %v3063_v41 = vpop.f32.mrf.mxu3 }
0x14b1   :  { %v2969_v49 = vadd.f32 %v8420_v53, %v2968_v48  ;;  %v3091_v39 = vpack.c.bf16 %v3063_v41, %v3063_v41 }
0x14b2   :  { %3221 = vmatpush.bf16.msra.mxu3 %v8423_v16 }
0x14b3   :  { %2977 = vst [vmem:[#allocation11 + $0x8] sm:$0xff] %v2969_v49  ;;  %v3101_v40 = vunpack.c.l.b16 %v3091_v39 }
0x14b5   :  { %v8427_v0 = vpack.c.b16 %v3101_v40, %v3100_v2 }
0x14b7   :  { %3103 = vrot.lane.b32.xlu1 %v8427_v0, %s7122_s25 }
0x14d0   :  { %v2819_v6 = vpop.xlane.xlu0 %2818 }
0x14d1   :  { %v2825_v9 = vmul.f32 %v2819_v6, %v7264_v14 }
0x14d3   :  { %v2829_v51 = vsub.f32 %v8407_v27, %v2825_v9 }
0x14d5   :  { %v2833_v3 = vmul.f32 %v2829_v51, %v2829_v51 }
0x14d7   :  { %v2841_v7 = vsel %vm151_vm0, %v2833_v3, 0.0 }
0x14d8   :  { %v2822_v56 = vpop.xlane.xlu2 %2821  ;;  %2842 = vadd.xlane.f32.xlu0 %v2841_v7 }
0x14d9   :  { %v2826_v12 = vmul.f32 %v2822_v56, %v7264_v14 }
0x14db   :  { %v2830_v60 = vsub.f32 %v8413_v36, %v2826_v12 }
0x14dd   :  { %v2834_v22 = vmul.f32 %v2830_v60, %v2830_v60 }
0x14df   :  { %v2844_v34 = vsel %vm151_vm0, %v2834_v22, 0.0 }
0x14e0   :  { %2845 = vadd.xlane.f32.xlu2 %v2844_v34 }
0x14f8   :  { %3258 = vrot.lane.b32.xlu2 %v8427_v0, %s7125_s27 }
0x1529   :  { %v3104_v23 = vpop.permute.xlu1 %3103 }
0x152a   :  { %v3109_v33 = vsel %vm370_vm14, %v3104_v23, 0 }
0x152b   :  { %3118 = vmatpush.bf16.xpose.msra.mxu1 %v3109_v33 }
0x1532   :  { %5942 = vmatmul.msk.bf16.vlgmr.msra.gmra.mxu1 %vm370_vm14, %v8427_v0 }
0x154b   :  { %v2843_v1 = vpop.xlane.xlu0 %2842 }
0x154c   :  { %v2849_v59 = vmul.f32 %v2843_v1, %v7264_v14 }
0x154e   :  { %v2853_v57 = vadd.f32 1e-05, %v2849_v59 }
0x1550   :  { %6784 = vrsqrt.f32 %v2853_v57  ;;  %vm2881_vm11 = vweird.f32 %v2853_v57 }
0x1553   :  { %v2846_v58 = vpop.xlane.xlu2 %2845 }
0x1554   :  { %v2850_v20 = vmul.f32 %v2846_v58, %v7264_v14 }
0x1556   :  { %v6785_v11 = vpop.eup %6784  ;;  %v2854_v21 = vadd.f32 1e-05, %v2850_v20 }
0x1557   :  { %v2876_v24 = vmul.f32 %v6785_v11, %v2853_v57  ;;  %vm2882_vm10 = vweird.f32 %v6785_v11 }
0x1558   :  { %6786 = vrsqrt.f32 %v2854_v21  ;;  %vm2883_vm12 = vmor %vm2881_vm11, %vm2882_vm10  ;;  %vm2891_vm15 = vweird.f32 %v2854_v21 }
0x1559   :  { %v2877_v62 = vmul.f32 %v6785_v11, %v2876_v24 }
0x155b   :  { %v2878_v50 = vmul.f32 0.5, %v2877_v62  ;;  %v3259_v62 = vpop.permute.xlu2 %3258 }
0x155d   :  { %v2879_v4 = vsub.f32 1.5, %v2878_v50 }
0x155e   :  { %v6787_v5 = vpop.eup %6786 }
0x155f   :  { %v2880_v29 = vmul.f32 %v6785_v11, %v2879_v4  ;;  %v2886_v28 = vmul.f32 %v6787_v5, %v2854_v21  ;;  %vm2892_vm13 = vweird.f32 %v6787_v5 }
0x1560   :  { %vm2893_vm1 = vmor %vm2891_vm15, %vm2892_vm13 }
0x1561   :  { %v2887_v63 = vmul.f32 %v6787_v5, %v2886_v28  ;;  %v2884_v13 = vsel %vm2883_vm12, %v6785_v11, %v2880_v29 }
0x1562   :  { %v2897_v31 = vmul.f32 %v2884_v13, %v2829_v51 }
0x1563   :  { %v2888_v32 = vmul.f32 0.5, %v2887_v63 }
0x1564   :  { %v2904_v52 = vmul.f32 %v8371_v19, %v2897_v31  ;;  %v2987_v25 = vmul.f32 %v8373_v44, %v2897_v31  ;;  %v4222_v37 = vmul.f32 %v8376_v17, %v2897_v31 }
0x1565   :  { %v2889_v45 = vsub.f32 1.5, %v2888_v32 }
0x1566   :  { %v2911_v47 = vadd.f32 %v8381_v26, %v2904_v52  ;;  %v2994_v48 = vadd.f32 %v8383_v10, %v2987_v25  ;;  %v4229_v39 = vadd.f32 %v8387_v46, %v4222_v37 }
0x1567   :  { %v2890_v18 = vmul.f32 %v6787_v5, %v2889_v45 }
0x1569   :  { %v2894_v38 = vsel %vm2893_vm1, %v6787_v5, %v2890_v18 }
0x156a   :  { %v2898_v30 = vmul.f32 %v2894_v38, %v2830_v60  ;;  %v3264_v38 = vsel %vm370_vm14, %v3259_v62, 0 }
0x156c   :  { %v2905_v61 = vmul.f32 %v8371_v19, %v2898_v30  ;;  %v2988_v35 = vmul.f32 %v8373_v44, %v2898_v30  ;;  %v4223_v42 = vmul.f32 %v8376_v17, %v2898_v30 }
0x156e   :  { %v2912_v41 = vadd.f32 %v8381_v26, %v2905_v61  ;;  %v2995_v49 = vadd.f32 %v8383_v10, %v2988_v35  ;;  %v4230_v2 = vadd.f32 %v8387_v46, %v4223_v42 }
0x1570   :  { %v2914_v40 = vpack.c.bf16 %v2912_v41, %v2911_v47  ;;  %v2997_v6 = vpack.c.bf16 %v2995_v49, %v2994_v48  ;;  %v8456_v9 = vpack.c.bf16 %v4230_v2, %v4229_v39 }
0x1572   :  { %5905 = vmatmul.msk.bf16.gmra.mxu2 %vm151_vm0, %v2914_v40  ;;  %5939 = vmatmul.msk.bf16.gmra.mxu3 %vm151_vm0, %v2997_v6 }
0x1573   :  { %5941 = vmatmul.msk.bf16.gmra.mxu0 %vm151_vm0, %v2997_v6 }
0x15af   :  { %v3120_v19 = vpop.f32.mrf.mxu1 }
0x15b0   :  { %v3121_v44 = vadd.f32 %v3120_v19, %v7360_v8 }
0x15b2   :  { %v3152_v17 = vsel %vm370_vm14, %v3121_v44, -inf }
0x15b3   :  { %3153 = vmax.xlane.f32.xlu0 %v3152_v17 }
0x15b7   :  { %v3122_v26 = vpop.f32.mrf.mxu1 }
0x15b8   :  { %v3123_v10 = vadd.f32 %v3122_v26, %v7364_v15 }
0x15ba   :  { %v3155_v46 = vsel %vm370_vm14, %v3123_v10, -inf }
0x15bb   :  { %3156 = vmax.xlane.f32.xlu2 %v3155_v46 }
0x15d3   :  { %3404 = vrot.lane.b32.xlu2 %v8427_v0, %s7126_s29 }
0x15f0   :  { %v3085_v51 = vpop.f32.mrf.mxu0 }
0x15f1   :  { %v3096_v12 = vpack.c.bf16 %v3085_v51, %v3085_v51 }
0x15f3   :  { %v3235_v34 = vunpack.c.l.b16 %v3096_v12 }
0x15f5   :  { %v2971_v3 = vpop.f32.mrf.mxu2  ;;  %v3066_v7 = vpop.f32.mrf.mxu3 }
0x15f6   :  { %v2972_v56 = vadd.f32 %v8420_v53, %v2971_v3  ;;  %v3092_v33 = vpack.c.bf16 %v3066_v7, %v3066_v7 }
0x15f8   :  { %2978 = vst [vmem:[#allocation11 + $0x10] sm:$0xff] %v2972_v56  ;;  %v3087_v60 = vpop.f32.mrf.mxu0  ;;  %v3127_v11 = vunpack.c.l.b16 %v3092_v33 }
0x15f9   :  { %v3097_v22 = vpack.c.bf16 %v3087_v60, %v3087_v60 }
0x15fb   :  { %v3236_v23 = vunpack.c.l.b16 %v3097_v22 }
0x15fd   :  { %v8468_v1 = vpack.c.b16 %v3236_v23, %v3235_v34  ;;  %v2973_v59 = vpop.f32.mrf.mxu2  ;;  %v3068_v57 = vpop.f32.mrf.mxu3 }
0x15fe   :  { %v2974_v58 = vadd.f32 %v8420_v53, %v2973_v59  ;;  %v3093_v20 = vpack.c.bf16 %v3068_v57, %v3068_v57 }
0x15ff   :  { %3249 = vmatpush.bf16.msrb.mxu1 %v8468_v1 }
0x1600   :  { %2979 = vst [vmem:[#allocation11 + $0x18] sm:$0xff] %v2974_v58  ;;  %v3128_v21 = vunpack.c.l.b16 %v3093_v20 }
0x1602   :  { %v3129_v24 = vpack.c.b16 %v3128_v21, %v3127_v11 }
0x1604   :  { %3130 = vrot.lane.b32.xlu0 %v3129_v24, %s7122_s25 }
0x160c   :  { %3256 = vrot.lane.b32.xlu0 %v8427_v0, %s7124_s6 }
0x1614   :  { %3282 = vrot.lane.b32.xlu0 %v3129_v24, %s7125_s27 }
0x161c   :  { %3280 = vrot.lane.b32.xlu0 %v3129_v24, %s7124_s6 }
0x1624   :  { %3428 = vrot.lane.b32.xlu0 %v3129_v24, %s7126_s29 }
0x1626   :  { %v3154_v53 = vpop.xlane.xlu0 %3153 }
0x1627   :  { %v3164_v50 = vsub.f32 %v3121_v44, %v3154_v53 }
0x1629   :  { %v3168_v4 = vmul.f32 1.442695, %v3164_v50 }
0x162b   :  { %6788 = vpow2.f32 %v3168_v4 }
0x162c   :  { %3548 = vrot.lane.b32.xlu0 %v8427_v0, %s7128_s28 }
0x162e   :  { %v3157_v5 = vpop.xlane.xlu2 %3156 }
0x162f   :  { %v3165_v29 = vsub.f32 %v3123_v10, %v3157_v5 }
0x1631   :  { %v6789_v28 = vpop.eup %6788  ;;  %v3170_v63 = vmul.f32 1.442695, %v3165_v29 }
0x1632   :  { %v3176_v13 = vsel %vm370_vm14, %v6789_v28, 0.0 }
0x1633   :  { %6790 = vpow2.f32 %v3170_v63  ;;  %3177 = vadd.xlane.f32.xlu2 %v3176_v13 }
0x1634   :  { %3572 = vrot.lane.b32.xlu0 %v3129_v24, %s7128_s28 }
0x1636   :  { %v3405_v52 = vpop.permute.xlu2 %3404 }
0x1637   :  { %v3410_v30 = vsel %vm370_vm14, %v3405_v52, 0 }
0x1639   :  { %v6791_v32 = vpop.eup %6790 }
0x163a   :  { %v3179_v31 = vsel %vm370_vm14, %v6791_v32, 0.0 }
0x163b   :  { %3180 = vadd.xlane.f32.xlu1 %v3179_v31 }
0x164b   :  { %3402 = vrot.lane.b32.xlu2 %v8427_v0, %s7127_s26 }
0x1653   :  { %3426 = vrot.lane.b32.xlu2 %v3129_v24, %s7127_s26 }
0x1654   :  { %3550 = vrot.lane.b32.xlu1 %v8427_v0, %s7115_s18 }
0x165b   :  { %3574 = vrot.lane.b32.xlu2 %v3129_v24, %s7115_s18 }
0x1676   :  { %v3131_v45 = vpop.permute.xlu0 %3130 }
0x1677   :  { %v3136_v18 = vsel %vm370_vm14, %v3131_v45, 0 }
0x1678   :  { %3145 = vmatpush.bf16.xpose.msra.mxu2 %v3136_v18 }
0x167e   :  { %v3257_v25 = vpop.permute.xlu0 %3256 }
0x167f   :  { %5943 = vmatmul.msk.bf16.vlgmr.msra.gmra.mxu2 %vm370_vm14, %v3129_v24 }
0x1680   :  { %3273 = vmatpush.bf16.xpose.msrb.mxu2 %v3264_v38 }
0x1686   :  { %v3283_v37 = vpop.permute.xlu0 %3282 }
0x1687   :  { %v3288_v61 = vsel %vm370_vm14, %v3283_v37, 0 }
0x1688   :  { %3419 = vmatpush.bf16.xpose.msra.mxu2 %v3410_v30  ;;  %3297 = vmatpush.bf16.xpose.msrb.mxu3 %v3288_v61 }
0x168e   :  { %v3281_v48 = vpop.permute.xlu0 %3280 }
0x168f   :  { %5946 = vmatmul.msk.bf16.vlgmr.msrb.gmra.mxu2 %vm370_vm14, %v3257_v25 }
0x1696   :  { %v3429_v44 = vpop.permute.xlu0 %3428 }
0x1697   :  { %v3434_v26 = vsel %vm370_vm14, %v3429_v44, 0 }
0x169e   :  { %v3549_v7 = vpop.permute.xlu0 %3548 }
0x16a6   :  { %v3178_v0 = vpop.xlane.xlu2 %3177  ;;  %v3573_v12 = vpop.permute.xlu0 %3572 }
0x16a7   :  { %6792 = vrcp.f32 %v3178_v0 }
0x16ad   :  { %v6793_v47 = vpop.eup %6792 }
0x16ae   :  { %v3181_v35 = vpop.xlane.xlu1 %3180  ;;  %v3403_v42 = vpop.permute.xlu2 %3402  ;;  %v3192_v41 = vmul.f32 %v6793_v47, %v6789_v28 }
0x16af   :  { %6794 = vrcp.f32 %v3181_v35  ;;  %5950 = vmatmul.msk.bf16.vlgmr.msra.gmra.mxu2 %vm370_vm14, %v3403_v42 }
0x16b0   :  { %v3196_v39 = vpack.c.bf16 %v3192_v41, %v3192_v41 }
0x16b2   :  { %v3202_v6 = vunpack.c.l.b16 %v3196_v39 }
0x16b5   :  { %v6795_v49 = vpop.eup %6794 }
0x16b6   :  { %v3193_v2 = vmul.f32 %v6795_v49, %v6791_v32  ;;  %v3427_v10 = vpop.permute.xlu2 %3426 }
0x16b8   :  { %v3197_v40 = vpack.c.bf16 %v3193_v2, %v3193_v2 }
0x16ba   :  { %v3203_v19 = vunpack.c.l.b16 %v3197_v40 }
0x16bc   :  { %v3204_v17 = vpack.c.b16 %v3203_v19, %v3202_v6 }
0x16be   :  { %5944 = vmatmul.msk.bf16.vlgmr.msra.gmra.mxu3 %vm370_vm14, %v3204_v17  ;;  %v3575_v3 = vpop.permute.xlu2 %3574 }
0x16bf   :  { %3443 = vmatpush.bf16.xpose.msra.mxu3 %v3434_v26  ;;  %v3580_v56 = vsel %vm370_vm14, %v3575_v3, 0 }
0x16c6   :  { %v3551_v46 = vpop.permute.xlu1 %3550 }
0x16c7   :  { %v3556_v51 = vsel %vm370_vm14, %v3551_v46, 0 }
0x16c8   :  { %3565 = vmatpush.bf16.xpose.msrb.mxu2 %v3556_v51 }
0x16ce   :  { %5947 = vmatmul.msk.bf16.vlgmr.msrb.gmra.mxu3 %vm370_vm14, %v3281_v48 }
0x16cf   :  { %3589 = vmatpush.bf16.xpose.msrb.mxu3 %v3580_v56  ;;  %5954 = vmatmul.msk.bf16.vlgmr.msrb.gmra.mxu2 %vm370_vm14, %v3549_v7 }
0x16de   :  { %5951 = vmatmul.msk.bf16.vlgmr.msra.gmra.mxu3 %vm370_vm14, %v3427_v10 }
0x16ee   :  { %5955 = vmatmul.msk.bf16.vlgmr.msrb.gmra.mxu3 %vm370_vm14, %v3573_v12 }
0x1702   :  { %v3147_v60 = vpop.f32.mrf.mxu2 }
0x1703   :  { %v3148_v22 = vadd.f32 %v3147_v60, %v7360_v8 }
0x1705   :  { %v3158_v34 = vsel %vm370_vm14, %v3148_v22, -inf }
0x1706   :  { %3159 = vmax.xlane.f32.xlu2 %v3158_v34 }
0x170a   :  { %v3149_v23 = vpop.f32.mrf.mxu2 }
0x170b   :  { %v3150_v33 = vadd.f32 %v3149_v23, %v7364_v15 }
0x170d   :  { %v3161_v59 = vsel %vm370_vm14, %v3150_v33, -inf }
0x170e   :  { %3162 = vmax.xlane.f32.xlu0 %v3161_v59 }
0x1712   :  { %v3275_v57 = vpop.f32.mrf.mxu2 }
0x1713   :  { %v3276_v58 = vadd.f32 %v3275_v57, %v7360_v8 }
0x1715   :  { %v3304_v20 = vsel %vm370_vm14, %v3276_v58, -inf }
0x1716   :  { %3305 = vmax.xlane.f32.xlu1 %v3304_v20 }
0x171a   :  { %v3277_v11 = vpop.f32.mrf.mxu2 }
0x171b   :  { %v3278_v21 = vadd.f32 %v3277_v11, %v7364_v15 }
0x171d   :  { %v3307_v24 = vsel %vm370_vm14, %v3278_v21, -inf }
0x171e   :  { %3308 = vmax.xlane.f32.xlu2 %v3307_v24 }
0x1732   :  { %v3421_v62 = vpop.f32.mrf.mxu2 }
0x1733   :  { %v3422_v53 = vadd.f32 %v3421_v62, %v7360_v8 }
0x1735   :  { %v3450_v50 = vsel %vm370_vm14, %v3422_v53, -inf }
0x1736   :  { %3451 = vmax.xlane.f32.xlu1 %v3450_v50 }
0x173a   :  { %v3423_v4 = vpop.f32.mrf.mxu2 }
0x173b   :  { %v3424_v5 = vadd.f32 %v3423_v4, %v7364_v15 }
0x173d   :  { %v3453_v29 = vsel %vm370_vm14, %v3424_v5, -inf }
0x173e   :  { %3454 = vmax.xlane.f32.xlu0 %v3453_v29 }
0x1741   :  { %v8523_v32 = vpop.f32.mrf.mxu3 }
0x1749   :  { %v8530_v38 = vpop.f32.mrf.mxu3 }
0x174f   :  { %3357 = vrot.lane.b32.xlu1 %v8423_v16, %s7124_s6 }
0x1751   :  { %v3299_v52 = vpop.f32.mrf.mxu3 }
0x1752   :  { %v3567_v28 = vpop.f32.mrf.mxu2 }
0x1753   :  { %v8519_v63 = vadd.f32 %v3567_v28, %v7360_v8 }
0x1755   :  { %v3596_v13 = vsel %vm370_vm14, %v8519_v63, -inf }
0x1756   :  { %3597 = vmax.xlane.f32.xlu0 %v3596_v13 }
0x1759   :  { %v3301_v25 = vpop.f32.mrf.mxu3 }
0x175a   :  { %v3569_v31 = vpop.f32.mrf.mxu2  ;;  %v8572_v50 = vadd.f32 %v3301_v25, %v7364_v15 }
0x175b   :  { %v8526_v45 = vadd.f32 %v3569_v31, %v7364_v15 }
0x175d   :  { %v3599_v18 = vsel %vm370_vm14, %v8526_v45, -inf }
0x175e   :  { %3600 = vmax.xlane.f32.xlu2 %v3599_v18 }
0x1761   :  { %v3445_v35 = vpop.f32.mrf.mxu3 }
0x1762   :  { %v8577_v29 = vadd.f32 %v3445_v35, %v7360_v8 }
0x1764   :  { %v3456_v28 = vsel %vm370_vm14, %v8577_v29, -inf }
0x1769   :  { %v3447_v40 = vpop.f32.mrf.mxu3 }
0x176a   :  { %v8541_v44 = vadd.f32 %v3447_v40, %v7364_v15 }
0x176c   :  { %v3459_v3 = vsel %vm370_vm14, %v8541_v44, -inf }
0x1771   :  { %v3591_v7 = vpop.f32.mrf.mxu3 }
0x1772   :  { %v8550_v56 = vadd.f32 %v3591_v7, %v7360_v8 }
0x1779   :  { %v3160_v30 = vpop.xlane.xlu2 %3159 }
0x177a   :  { %v3166_v37 = vsub.f32 %v3148_v22, %v3160_v30  ;;  %v3602_v22 = vsel %vm370_vm14, %v8550_v56, -inf  ;;  %v3593_v30 = vpop.f32.mrf.mxu3 }
0x177c   :  { %v3172_v61 = vmul.f32 1.442695, %v3166_v37  ;;  %v8589_v37 = vadd.f32 %v3593_v30, %v7364_v15 }
0x177e   :  { %6796 = vpow2.f32 %v3172_v61 }
0x1781   :  { %v3163_v0 = vpop.xlane.xlu0 %3162 }
0x1782   :  { %v3167_v42 = vsub.f32 %v3150_v33, %v3163_v0 }
0x1784   :  { %v8532_v47 = vpop.eup %6796  ;;  %v3174_v48 = vmul.f32 1.442695, %v3167_v42 }
0x1785   :  { %v3182_v41 = vsel %vm370_vm14, %v8532_v47, 0.0 }
0x1786   :  { %6798 = vpow2.f32 %v3174_v48  ;;  %3183 = vadd.xlane.f32.xlu2 %v3182_v41 }
0x1789   :  { %v3306_v49 = vpop.xlane.xlu1 %3305 }
0x178a   :  { %v3316_v39 = vsub.f32 %v3276_v58, %v3306_v49 }
0x178c   :  { %v8536_v2 = vpop.eup %6798  ;;  %v3320_v6 = vmul.f32 1.442695, %v3316_v39 }
0x178d   :  { %v3185_v19 = vsel %vm370_vm14, %v8536_v2, 0.0 }
0x178e   :  { %6800 = vpow2.f32 %v3320_v6  ;;  %3186 = vadd.xlane.f32.xlu1 %v3185_v19 }
0x1791   :  { %v3309_v17 = vpop.xlane.xlu2 %3308 }
0x1792   :  { %v3317_v26 = vsub.f32 %v3278_v21, %v3309_v17  ;;  %v8563_v21 = vadd.f32 %v3299_v52, %v7360_v8 }
0x1794   :  { %v8543_v10 = vpop.eup %6800  ;;  %v3322_v46 = vmul.f32 1.442695, %v3317_v26  ;;  %v3310_v62 = vsel %vm370_vm14, %v8563_v21, -inf }
0x1795   :  { %v3328_v51 = vsel %vm370_vm14, %v8543_v10, 0.0 }
0x1796   :  { %6802 = vpow2.f32 %v3322_v46  ;;  %3329 = vadd.xlane.f32.xlu0 %v3328_v51  ;;  %3460 = vmax.xlane.f32.xlu1 %v3459_v3 }
0x179c   :  { %v8552_v12 = vpop.eup %6802 }
0x179d   :  { %v3331_v60 = vsel %vm370_vm14, %v8552_v12, 0.0 }
0x179e   :  { %3332 = vadd.xlane.f32.xlu2 %v3331_v60  ;;  %3603 = vmax.xlane.f32.xlu1 %v3602_v22 }
0x17a9   :  { %v3452_v34 = vpop.xlane.xlu1 %3451 }
0x17aa   :  { %v3462_v23 = vsub.f32 %v3422_v53, %v3452_v34 }
0x17ac   :  { %v3466_v33 = vmul.f32 1.442695, %v3462_v23 }
0x17ae   :  { %6804 = vpow2.f32 %v3466_v33 }
0x17b1   :  { %v3455_v59 = vpop.xlane.xlu0 %3454 }
0x17b2   :  { %v3463_v57 = vsub.f32 %v3424_v5, %v3455_v59  ;;  %v3313_v5 = vsel %vm370_vm14, %v8572_v50, -inf }
0x17b4   :  { %v8558_v58 = vpop.eup %6804  ;;  %v3468_v20 = vmul.f32 1.442695, %v3463_v57 }
0x17b5   :  { %v3474_v11 = vsel %vm370_vm14, %v8558_v58, 0.0 }
0x17b6   :  { %6806 = vpow2.f32 %v3468_v20  ;;  %3475 = vadd.xlane.f32.xlu0 %v3474_v11 }
0x17bc   :  { %v8565_v24 = vpop.eup %6806 }
0x17bd   :  { %v3477_v53 = vsel %vm370_vm14, %v8565_v24, 0.0 }
0x17be   :  { %3311 = vmax.xlane.f32.xlu0 %v3310_v62  ;;  %3478 = vadd.xlane.f32.xlu2 %v3477_v53 }
0x17c1   :  { %v3358_v4 = vpop.permute.xlu1 %3357 }
0x17c2   :  { %3370 = vmatpush.bf16.msrb.mxu0 %v3358_v4 }
0x17c6   :  { %3314 = vmax.xlane.f32.xlu2 %v3313_v5 }
0x17c9   :  { %v8595_v0 = vpop.xlane.xlu0 %3597 }
0x17ce   :  { %3457 = vmax.xlane.f32.xlu2 %v3456_v28 }
0x17d1   :  { %v3601_v13 = vpop.xlane.xlu2 %3600 }
0x17d2   :  { %v3609_v31 = vsub.f32 %v8526_v45, %v3601_v13  ;;  %3382 = vrot.lane.b32.xlu0 %v8468_v1, %s7124_s6  ;;  %v3605_v45 = vsel %vm370_vm14, %v8589_v37, -inf }
0x17d4   :  { %v3614_v18 = vmul.f32 1.442695, %v3609_v31 }
0x17d6   :  { %6808 = vpow2.f32 %v3614_v18 }
0x17dc   :  { %v8584_v52 = vpop.eup %6808 }
0x17dd   :  { %v3623_v25 = vsel %vm370_vm14, %v8584_v52, 0.0 }
0x17de   :  { %3624 = vadd.xlane.f32.xlu1 %v3623_v25 }
0x17f7   :  { %3528 = vrot.lane.b32.xlu1 %v8468_v1, %s7127_s26 }
0x17f9   :  { %v3184_v61 = vpop.xlane.xlu2 %3183 }
0x17fa   :  { %6810 = vrcp.f32 %v3184_v61 }
0x17fc   :  { %3606 = vmax.xlane.f32.xlu0 %v3605_v45 }
0x1800   :  { %v6811_v42 = vpop.eup %6810 }
0x1801   :  { %v3187_v35 = vpop.xlane.xlu1 %3186  ;;  %v3194_v48 = vmul.f32 %v6811_v42, %v8532_v47 }
0x1802   :  { %6812 = vrcp.f32 %v3187_v35 }
0x1803   :  { %v3198_v49 = vpack.c.bf16 %v3194_v48, %v3194_v48 }
0x1805   :  { %v3230_v19 = vunpack.c.l.b16 %v3198_v49 }
0x1808   :  { %v6813_v41 = vpop.eup %6812 }
0x1809   :  { %v3195_v39 = vmul.f32 %v6813_v41, %v8536_v2  ;;  %v3330_v40 = vpop.xlane.xlu0 %3329  ;;  %v3461_v59 = vpop.xlane.xlu1 %3460 }
0x180a   :  { %6814 = vrcp.f32 %v3330_v40 }
0x180b   :  { %v3199_v6 = vpack.c.bf16 %v3195_v39, %v3195_v39 }
0x180d   :  { %v3231_v17 = vunpack.c.l.b16 %v3199_v6 }
0x180f   :  { %v3232_v26 = vpack.c.b16 %v3231_v17, %v3230_v19 }
0x1810   :  { %v6815_v51 = vpop.eup %6814 }
0x1811   :  { %v3333_v46 = vpop.xlane.xlu2 %3332  ;;  %5945 = vmatmul.msk.bf16.vlgmr.msrb.gmra.mxu1 %vm370_vm14, %v3232_v26  ;;  %v3344_v3 = vmul.f32 %v6815_v51, %v8543_v10  ;;  %v3465_v10 = vsub.f32 %v8541_v44, %v3461_v59  ;;  %v3604_v19 = vpop.xlane.xlu1 %3603  ;;  %v3608_v26 = vsub.f32 %v8519_v63, %v8595_v0 }
0x1812   :  { %6816 = vrcp.f32 %v3333_v46  ;;  %v3610_v51 = vsub.f32 %v8550_v56, %v3604_v19 }
0x1813   :  { %v3348_v60 = vpack.c.bf16 %v3344_v3, %v3344_v3  ;;  %v3472_v5 = vmul.f32 1.442695, %v3465_v10  ;;  %v3612_v46 = vmul.f32 1.442695, %v3608_v26 }
0x1814   :  { %v3616_v3 = vmul.f32 1.442695, %v3610_v51 }
0x1815   :  { %v3354_v34 = vunpack.c.l.b16 %v3348_v60 }
0x1818   :  { %v6817_v7 = vpop.eup %6816 }
0x1819   :  { %v3345_v47 = vmul.f32 %v6817_v7, %v8552_v12 }
0x181b   :  { %v3349_v22 = vpack.c.bf16 %v3345_v47, %v3345_v47 }
0x181d   :  { %v3355_v2 = vunpack.c.l.b16 %v3349_v22 }
0x181f   :  { %v3356_v23 = vpack.c.b16 %v3355_v2, %v3354_v34 }
0x1821   :  { %5948 = vmatmul.msk.bf16.vlgmr.msrb.gmra.mxu0 %vm370_vm14, %v3356_v23 }
0x1829   :  { %v3476_v33 = vpop.xlane.xlu0 %3475 }
0x182a   :  { %6818 = vrcp.f32 %v3476_v33 }
0x1830   :  { %v6819_v11 = vpop.eup %6818 }
0x1831   :  { %v3479_v57 = vpop.xlane.xlu2 %3478  ;;  %v3312_v20 = vpop.xlane.xlu0 %3311  ;;  %v3490_v12 = vmul.f32 %v6819_v11, %v8558_v58 }
0x1832   :  { %6820 = vrcp.f32 %v3479_v57  ;;  %v3318_v62 = vsub.f32 %v8563_v21, %v3312_v20 }
0x1833   :  { %v3494_v28 = vpack.c.bf16 %v3490_v12, %v3490_v12 }
0x1834   :  { %v3324_v53 = vmul.f32 1.442695, %v3318_v62 }
0x1835   :  { %v8608_v45 = vunpack.c.l.b16 %v3494_v28 }
0x1836   :  { %6822 = vpow2.f32 %v3324_v53 }
0x1837   :  { %6824 = vpow2.f32 %v3472_v5 }
0x1838   :  { %v6821_v4 = vpop.eup %6820 }
0x1839   :  { %v3491_v13 = vmul.f32 %v6821_v4, %v8565_v24  ;;  %v3315_v31 = vpop.xlane.xlu2 %3314 }
0x183a   :  { %v3319_v18 = vsub.f32 %v8572_v50, %v3315_v31 }
0x183b   :  { %v3495_v25 = vpack.c.bf16 %v3491_v13, %v3491_v13 }
0x183c   :  { %v6823_v30 = vpop.eup %6822  ;;  %v3326_v61 = vmul.f32 1.442695, %v3319_v18 }
0x183d   :  { %v8610_v21 = vunpack.c.l.b16 %v3495_v25  ;;  %v3334_v44 = vsel %vm370_vm14, %v6823_v30, 0.0  ;;  %v8615_v24 = vpop.eup %6824 }
0x183e   :  { %6826 = vpow2.f32 %v3326_v61  ;;  %3335 = vadd.xlane.f32.xlu0 %v3334_v44  ;;  %v3483_v39 = vsel %vm370_vm14, %v8615_v24, 0.0 }
0x183f   :  { %v3502_v58 = vpack.c.b16 %v8610_v21, %v8608_v45 }
0x1841   :  { %v3458_v35 = vpop.xlane.xlu2 %3457 }
0x1842   :  { %v3464_v50 = vsub.f32 %v8577_v29, %v3458_v35 }
0x1844   :  { %v6827_v42 = vpop.eup %6826  ;;  %v3470_v48 = vmul.f32 1.442695, %v3464_v50  ;;  %v3383_v41 = vpop.permute.xlu0 %3382 }
0x1845   :  { %3395 = vmatpush.bf16.msra.mxu1 %v3383_v41  ;;  %v3337_v49 = vsel %vm370_vm14, %v6827_v42, 0.0 }
0x1846   :  { %6828 = vpow2.f32 %v3470_v48  ;;  %3338 = vadd.xlane.f32.xlu2 %v3337_v49  ;;  %3484 = vadd.xlane.f32.xlu0 %v3483_v39 }
0x1847   :  { %6830 = vpow2.f32 %v3612_v46 }
0x1848   :  { %6832 = vpow2.f32 %v3616_v3 }
0x184c   :  { %v6829_v40 = vpop.eup %6828 }
0x184d   :  { %v3480_v6 = vsel %vm370_vm14, %v6829_v40, 0.0  ;;  %v6831_v60 = vpop.eup %6830 }
0x184e   :  { %3481 = vadd.xlane.f32.xlu1 %v3480_v6 }
0x1851   :  { %v3625_v29 = vpop.xlane.xlu1 %3624 }
0x185a   :  { %3649 = vrot.lane.b32.xlu0 %v8423_v16, %s7128_s28 }
0x185e   :  { %3503 = vrot.lane.b32.xlu2 %v8423_v16, %s7127_s26  ;;  %v3620_v16 = vsel %vm370_vm14, %v6831_v60, 0.0 }
0x1867   :  { %3674 = vrot.lane.b32.xlu1 %v8468_v1, %s7128_s28  ;;  %v8633_v1 = vpop.eup %6832 }
0x1868   :  { %v3626_v63 = vsel %vm370_vm14, %v8633_v1, 0.0 }
0x1869   :  { %v3529_v17 = vpop.permute.xlu1 %3528 }
0x186a   :  { %3541 = vmatpush.bf16.msrb.mxu1 %v3529_v17 }
0x186f   :  { %v3607_v7 = vpop.xlane.xlu0 %3606 }
0x1870   :  { %v3611_v47 = vsub.f32 %v8589_v37, %v3607_v7 }
0x1872   :  { %v3618_v22 = vmul.f32 1.442695, %v3611_v47 }
0x1874   :  { %6834 = vpow2.f32 %v3618_v22 }
0x187a   :  { %v8637_v0 = vpop.eup %6834 }
0x187b   :  { %v3629_v56 = vsel %vm370_vm14, %v8637_v0, 0.0 }
0x1887   :  { %3621 = vadd.xlane.f32.xlu2 %v3620_v16 }
0x188f   :  { %3627 = vadd.xlane.f32.xlu2 %v3626_v63  ;;  %v3251_v63 = vpop.f32.mrf.mxu1 }
0x1897   :  { %3630 = vadd.xlane.f32.xlu2 %v3629_v56  ;;  %v3253_v56 = vpop.f32.mrf.mxu1 }
0x189e   :  { %v3372_v34 = vpop.f32.mrf.mxu0 }
0x18a6   :  { %v3374_v2 = vpop.f32.mrf.mxu0 }
0x18a7   :  { %v6531_v37 = vpack.i.bf16 %v3374_v2, %v3372_v34 }
0x18a9   :  { %6532 = vrot.lane.b32.xlu0 %v6531_v37, %s7115_s18 }
0x18b1   :  { %v3336_v23 = vpop.xlane.xlu0 %3335 }
0x18b2   :  { %6836 = vrcp.f32 %v3336_v23 }
0x18b8   :  { %v6837_v59 = vpop.eup %6836 }
0x18b9   :  { %v3339_v33 = vpop.xlane.xlu2 %3338  ;;  %v3346_v57 = vmul.f32 %v6837_v59, %v6823_v30  ;;  %v3485_v11 = vpop.xlane.xlu0 %3484 }
0x18ba   :  { %6838 = vrcp.f32 %v3339_v33 }
0x18bb   :  { %v3350_v62 = vpack.c.bf16 %v3346_v57, %v3346_v57 }
0x18bd   :  { %v3379_v5 = vunpack.c.l.b16 %v3350_v62 }
0x18c0   :  { %v6839_v20 = vpop.eup %6838 }
0x18c1   :  { %v3347_v10 = vmul.f32 %v6839_v20, %v6827_v42  ;;  %v3482_v53 = vpop.xlane.xlu1 %3481  ;;  %v3504_v12 = vpop.permute.xlu2 %3503 }
0x18c2   :  { %6840 = vrcp.f32 %v3482_v53  ;;  %3516 = vmatpush.bf16.msra.mxu0 %v3504_v12 }
0x18c3   :  { %v3351_v4 = vpack.c.bf16 %v3347_v10, %v3347_v10  ;;  %6842 = vrcp.f32 %v3485_v11 }
0x18c4   :  { %6844 = vrcp.f32 %v3625_v29 }
0x18c5   :  { %v3380_v28 = vunpack.c.l.b16 %v3351_v4  ;;  %5952 = vmatmul.msk.bf16.vlgmr.msra.gmra.mxu0 %vm370_vm14, %v3502_v58  ;;  %v6391_v4 = vld [vmem:[%s9383_s4 + $0x18] sm:$0xff] }
0x18c6   :  { %3802 = vmatpush.bf16.msra.mxu2 %v6391_v4 }
0x18c7   :  { %v3381_v13 = vpack.c.b16 %v3380_v28, %v3379_v5  ;;  %v6390_v5 = vld [vmem:[%s9383_s4 + $0x10] sm:$0xff]  ;;  %v6389_v28 = vld [vmem:[%s9383_s4 + $0x8] sm:$0xff] }
0x18c8   :  { %v6841_v31 = vpop.eup %6840 }
0x18c9   :  { %5949 = vmatmul.msk.bf16.vlgmr.msra.gmra.mxu1 %vm370_vm14, %v3381_v13  ;;  %v6843_v18 = vpop.eup %6842  ;;  %v3492_v25 = vmul.f32 %v6841_v31, %v6829_v40  ;;  %v6388_v13 = vld [vmem:[%s9383_s4] sm:$0xff] }
0x18ca   :  { %v3493_v61 = vmul.f32 %v6843_v18, %v8615_v24  ;;  %v6845_v21 = vpop.eup %6844  ;;  %3803 = vmatpush.bf16.msra.mxu2 %v6390_v5 }
0x18cb   :  { %v3496_v44 = vpack.c.bf16 %v3492_v25, %v3492_v25  ;;  %v3637_v58 = vmul.f32 %v6845_v21, %v8584_v52 }
0x18cc   :  { %v3650_v30 = vpop.permute.xlu0 %3649  ;;  %v3497_v35 = vpack.c.bf16 %v3493_v61, %v3493_v61 }
0x18cd   :  { %3662 = vmatpush.bf16.msrb.mxu0 %v3650_v30  ;;  %v3525_v50 = vunpack.c.l.b16 %v3496_v44  ;;  %v3641_v39 = vpack.c.bf16 %v3637_v58, %v3637_v58 }
0x18ce   :  { %v3526_v42 = vunpack.c.l.b16 %v3497_v35  ;;  %3804 = vmatpush.bf16.msra.mxu2 %v6389_v28 }
0x18cf   :  { %v3647_v19 = vunpack.c.l.b16 %v3641_v39 }
0x18d0   :  { %v3527_v48 = vpack.c.b16 %v3526_v42, %v3525_v50 }
0x18d2   :  { %3805 = vmatpush.bf16.msra.mxu2 %v6388_v13 }
0x18d9   :  { %v3675_v41 = vpop.permute.xlu1 %3674  ;;  %5953 = vmatmul.msk.bf16.vlgmr.msrb.gmra.mxu1 %vm370_vm14, %v3527_v48 }
0x18da   :  { %3687 = vmatpush.bf16.msra.mxu1 %v3675_v41 }
0x18fa   :  { %v3622_v45 = vpop.xlane.xlu2 %3621 }
0x18fb   :  { %6846 = vrcp.f32 %v3622_v45 }
0x1901   :  { %v6847_v49 = vpop.eup %6846 }
0x1902   :  { %v3636_v40 = vmul.f32 %v6847_v49, %v6831_v60  ;;  %v3628_v24 = vpop.xlane.xlu2 %3627 }
0x1903   :  { %6848 = vrcp.f32 %v3628_v24 }
0x1904   :  { %v3640_v6 = vpack.c.bf16 %v3636_v40, %v3636_v40 }
0x1906   :  { %v3646_v17 = vunpack.c.l.b16 %v3640_v6 }
0x1908   :  { %v3648_v26 = vpack.c.b16 %v3647_v19, %v3646_v17 }
0x1909   :  { %v6849_v51 = vpop.eup %6848 }
0x190a   :  { %v3631_v46 = vpop.xlane.xlu2 %3630  ;;  %5956 = vmatmul.msk.bf16.vlgmr.msrb.gmra.mxu0 %vm370_vm14, %v3648_v26  ;;  %v3638_v29 = vmul.f32 %v6849_v51, %v8633_v1 }
0x190b   :  { %6850 = vrcp.f32 %v3631_v46 }
0x190c   :  { %v3642_v7 = vpack.c.bf16 %v3638_v29, %v3638_v29 }
0x190e   :  { %v3671_v16 = vunpack.c.l.b16 %v3642_v7 }
0x1911   :  { %v6851_v3 = vpop.eup %6850 }
0x1912   :  { %v3639_v52 = vmul.f32 %v6851_v3, %v8637_v0 }
0x1914   :  { %v3643_v47 = vpack.c.bf16 %v3639_v52, %v3639_v52 }
0x1916   :  { %v3672_v60 = vunpack.c.l.b16 %v3643_v47 }
0x1918   :  { %v3673_v22 = vpack.c.b16 %v3672_v60, %v3671_v16  ;;  %v6610_v60 = vld [vmem:[#allocation7] ss:$0 sm:$0xff] }
0x191a   :  { %5957 = vmatmul.msk.bf16.vlgmr.msra.gmra.mxu1 %vm370_vm14, %v3673_v22 }
0x191b   :  { %v6533_v31 = vpop.permute.xlu0 %6532 }
0x191c   :  { %v6535_v25 = vunpack.i.h.bf16 %v6533_v31  ;;  %v6534_v30 = vunpack.i.l.bf16 %v6533_v31 }
0x191e   :  { %v3743_v50 = vsel %vm370_vm14, %v8530_v38, %v6535_v25  ;;  %v3742_v42 = vsel %vm370_vm14, %v8523_v32, %v6534_v30 }
0x1942   :  { %v3518_v34 = vpop.f32.mrf.mxu0 }
0x1946   :  { %v3397_v2 = vpop.f32.mrf.mxu1 }
0x194a   :  { %v3520_v37 = vpop.f32.mrf.mxu0 }
0x194b   :  { %v6536_v23 = vpack.i.bf16 %v3520_v37, %v3518_v34 }
0x194d   :  { %6537 = vrot.lane.b32.xlu2 %v6536_v23, %s7126_s29 }
0x194e   :  { %v3399_v33 = vpop.f32.mrf.mxu1 }
0x194f   :  { %v6546_v1 = vpack.i.bf16 %v3399_v33, %v3397_v2 }
0x1951   :  { %6547 = vrot.lane.b32.xlu0 %v6546_v1, %s7115_s18 }
0x1956   :  { %v3543_v59 = vpop.f32.mrf.mxu1 }
0x195e   :  { %v3545_v57 = vpop.f32.mrf.mxu1 }
0x195f   :  { %v6551_v10 = vpack.i.bf16 %v3545_v57, %v3543_v59 }
0x1987   :  { %v3664_v0 = vpop.f32.mrf.mxu0 }
0x198f   :  { %v3666_v20 = vpop.f32.mrf.mxu0 }
0x1990   :  { %v6541_v11 = vpack.i.bf16 %v3666_v20, %v3664_v0 }
0x1992   :  { %6542 = vrot.lane.b32.xlu1 %v6541_v11, %s7125_s27 }
0x1997   :  { %v3689_v62 = vpop.f32.mrf.mxu1 }
0x199a   :  { %6552 = vrot.lane.b32.xlu1 %v6551_v10, %s7126_s29 }
0x199f   :  { %v3691_v53 = vpop.f32.mrf.mxu1 }
0x19a0   :  { %v6556_v12 = vpack.i.bf16 %v3691_v53, %v3689_v62 }
0x19a2   :  { %6557 = vrot.lane.b32.xlu0 %v6556_v12, %s7125_s27 }
0x19a7   :  { %v6538_v18 = vpop.permute.xlu2 %6537 }
0x19a8   :  { %v6540_v61 = vunpack.i.h.bf16 %v6538_v18  ;;  %v6539_v44 = vunpack.i.l.bf16 %v6538_v18 }
0x19aa   :  { %v3746_v45 = vsel %vm1012_vm2, %v3742_v42, %v6539_v44  ;;  %v3747_v21 = vsel %vm1012_vm2, %v3743_v50, %v6540_v61 }
0x19c3   :  { %v6548_v40 = vpop.permute.xlu0 %6547 }
0x19c4   :  { %v6550_v6 = vunpack.i.h.bf16 %v6548_v40  ;;  %v6549_v38 = vunpack.i.l.bf16 %v6548_v40  ;;  %v6398_v40 = vld [vmem:[%s9387_s8 + $0x34] sm:$0xf] }
0x19c6   :  { %v3745_v26 = vsel %vm370_vm14, %v3253_v56, %v6550_v6  ;;  %v3744_v46 = vsel %vm370_vm14, %v3251_v63, %v6549_v38  ;;  %v6004_v6 = vld [vmem:[%s9387_s8 + $0x38] sm:$0xf0] }
0x19c7   :  { %v6007_v38 = vor.u32 %v6398_v40, %v6004_v6  ;;  %v6421_v40 = vld [vmem:[%s9382_s3 + $0x64] sm:$0xf0] }
0x19c9   :  { %4010 = vmatpush.bf16.msra.mxu0 %v6007_v38 }
0x1a04   :  { %v6543_v35 = vpop.permute.xlu1 %6542 }
0x1a05   :  { %v6545_v48 = vunpack.i.h.bf16 %v6543_v35  ;;  %v6544_v41 = vunpack.i.l.bf16 %v6543_v35 }
0x1a07   :  { %v3750_v58 = vsel %vm1017_vm3, %v3746_v45, %v6544_v41  ;;  %v3751_v49 = vsel %vm1017_vm3, %v3747_v21, %v6545_v48 }
0x1a08   :  { %v3754_v39 = vpack.c.bf16 %v3751_v49, %v3750_v58  ;;  %v6002_v49 = vld [vmem:[%s9387_s8 + $0x30] sm:$0xf] }
0x1a0a   :  { %5974 = vmatmul.msk.bf16.vlgmr.msra.gmra.mxu2 %vm151_vm0, %v3754_v39  ;;  %v6399_v39 = vld [vmem:[%s9387_s8 + $0x34] sm:$0xf0] }
0x1a0c   :  { %v6553_v24 = vpop.permute.xlu1 %6552 }
0x1a0d   :  { %v6555_v19 = vunpack.i.h.bf16 %v6553_v24  ;;  %v6554_v17 = vunpack.i.l.bf16 %v6553_v24  ;;  %v6003_v24 = vor.u32 %v6399_v39, %v6002_v49  ;;  %v6112_v49 = vld [vmem:[%s9382_s3 + $0x78] sm:$0xf0]  ;;  %v6102_v39 = vld [vmem:[%s9382_s3 + $0x60] sm:$0xf] }
0x1a0f   :  { %v3748_v3 = vsel %vm1012_vm2, %v3744_v46, %v6554_v17  ;;  %v3749_v7 = vsel %vm1012_vm2, %v3745_v26, %v6555_v19  ;;  %3991 = vmatpush.bf16.msra.mxu3 %v6003_v24  ;;  %v5994_v19 = vld [vmem:[%s9387_s8 + $0x20] sm:$0xf]  ;;  %v6397_v17 = vld [vmem:[%s9387_s8 + $0x24] sm:$0xf0]  ;;  %v5996_v46 = vld [vmem:[%s9387_s8 + $0x28] sm:$0xf0] }
0x1a10   :  { %v5995_v26 = vor.u32 %v6397_v17, %v5994_v19  ;;  %v6420_v17 = vld [vmem:[%s9382_s3 + $0x64] sm:$0xf] }
0x1a13   :  { %3992 = vmatpush.bf16.msra.mxu3 %v5995_v26  ;;  %v8819_v26 = vld [vmem:[#allocation8] ss:$0 sm:$0xff] }
0x1a14   :  { %v6558_v32 = vpop.permute.xlu0 %6557 }
0x1a15   :  { %v6560_v51 = vunpack.i.h.bf16 %v6558_v32  ;;  %v6559_v29 = vunpack.i.l.bf16 %v6558_v32  ;;  %v6396_v32 = vld [vmem:[%s9387_s8 + $0x24] sm:$0xf] }
0x1a17   :  { %v3752_v52 = vsel %vm1017_vm3, %v3748_v3, %v6559_v29  ;;  %v3753_v47 = vsel %vm1017_vm3, %v3749_v7, %v6560_v51  ;;  %v5999_v51 = vor.u32 %v6396_v32, %v5996_v46  ;;  %v5986_v29 = vld [vmem:[%s9387_s8 + $0x10] sm:$0xf]  ;;  %v6395_v3 = vld [vmem:[%s9387_s8 + $0x14] sm:$0xf0]  ;;  %v6394_v7 = vld [vmem:[%s9387_s8 + $0x14] sm:$0xf] }
0x1a18   :  { %v3755_v16 = vpack.c.bf16 %v3753_v47, %v3752_v52  ;;  %v5987_v52 = vor.u32 %v6395_v3, %v5986_v29  ;;  %v5988_v47 = vld [vmem:[%s9387_s8 + $0x18] sm:$0xf0]  ;;  %v6104_v32 = vld [vmem:[%s9382_s3 + $0x68] sm:$0xf0] }
0x1a19   :  { %4011 = vmatpush.bf16.msra.mxu0 %v5999_v51  ;;  %v6103_v51 = vor.u32 %v6421_v40, %v6102_v39  ;;  %v6107_v3 = vor.u32 %v6420_v17, %v6104_v32 }
0x1a1a   :  { %5975 = vmatmul.msk.bf16.gmra.mxu2 %vm151_vm0, %v3755_v16  ;;  %3993 = vmatpush.bf16.msra.mxu3 %v5987_v52  ;;  %v6419_v52 = vld [vmem:[%s9382_s3 + $0x54] sm:$0xf0] }
0x1a8d   :  { %v3807_v22 = vpop.f32.mrf.mxu2 }
0x1a8e   :  { %v3808_v34 = vadd.f32 %v6610_v60, %v3807_v22 }
0x1a90   :  { %v8688_v56 = vadd.f32 %v3808_v34, %v8270_v54  ;;  %v5978_v34 = vld [vmem:[%s9387_s8] sm:$0xf] }
0x1a92   :  { %v3823_v63 = vsel %vm151_vm0, %v8688_v56, 0.0 }
0x1a93   :  { %3824 = vadd.xlane.f32.xlu1 %v3823_v63  ;;  %v6393_v63 = vld [vmem:[%s9387_s8 + $0x4] sm:$0xf0] }
0x1a95   :  { %v3809_v2 = vpop.f32.mrf.mxu2 }
0x1a96   :  { %v3810_v37 = vadd.f32 %v6610_v60, %v3809_v2  ;;  %v6392_v2 = vld [vmem:[%s9387_s8 + $0x4] sm:$0xf] }
0x1a98   :  { %v8693_v23 = vadd.f32 %v3810_v37, %v8276_v55 }
0x1a9a   :  { %v3826_v33 = vsel %vm151_vm0, %v8693_v23, 0.0 }
0x1a9b   :  { %3827 = vadd.xlane.f32.xlu0 %v3826_v33  ;;  %v5979_v33 = vor.u32 %v6393_v63, %v5978_v34  ;;  %v6096_v34 = vld [vmem:[%s9382_s3 + $0x58] sm:$0xf0] }
0x1a9d   :  { %v3812_v1 = vpop.f32.mrf.mxu2  ;;  %3994 = vmatpush.bf16.msra.mxu3 %v5979_v33 }
0x1a9e   :  { %v3813_v59 = vadd.f32 %v6610_v60, %v3812_v1  ;;  %v5980_v1 = vld [vmem:[%s9387_s8 + $0x8] sm:$0xf0] }
0x1aa0   :  { %v8698_v0 = vadd.f32 %v3813_v59, %v8407_v27  ;;  %v5983_v59 = vor.u32 %v6392_v2, %v5980_v1 }
0x1aa2   :  { %v3829_v57 = vsel %vm151_vm0, %v8698_v0, 0.0 }
0x1aa3   :  { %3830 = vadd.xlane.f32.xlu2 %v3829_v57 }
0x1aa5   :  { %v3814_v20 = vpop.f32.mrf.mxu2 }
0x1aa6   :  { %v3815_v11 = vadd.f32 %v6610_v60, %v3814_v20  ;;  %v5991_v60 = vor.u32 %v6394_v7, %v5988_v47  ;;  %v6094_v7 = vld [vmem:[%s9382_s3 + $0x50] sm:$0xf] }
0x1aa8   :  { %v8703_v62 = vadd.f32 %v3815_v11, %v8413_v36  ;;  %4012 = vmatpush.bf16.msra.mxu0 %v5991_v60 }
0x1aaa   :  { %v3832_v10 = vsel %vm151_vm0, %v8703_v62, 0.0 }
0x1aab   :  { %3833 = vadd.xlane.f32.xlu1 %v3832_v10 }
0x1aac   :  { %4013 = vmatpush.bf16.msra.mxu0 %v5983_v59  ;;  %v6086_v59 = vld [vmem:[%s9382_s3 + $0x40] sm:$0xf] }
0x1b06   :  { %v3825_v53 = vpop.xlane.xlu1 %3824 }
0x1b07   :  { %v3835_v12 = vmul.f32 %v3825_v53, %v7264_v14 }
0x1b09   :  { %v8709_v4 = vsub.f32 %v8688_v56, %v3835_v12 }
0x1b0b   :  { %v3843_v5 = vmul.f32 %v8709_v4, %v8709_v4 }
0x1b0d   :  { %v3847_v28 = vsel %vm151_vm0, %v3843_v5, 0.0 }
0x1b0e   :  { %v3828_v13 = vpop.xlane.xlu0 %3827  ;;  %3848 = vadd.xlane.f32.xlu0 %v3847_v28 }
0x1b0f   :  { %v3836_v31 = vmul.f32 %v3828_v13, %v7264_v14 }
0x1b11   :  { %v8716_v18 = vsub.f32 %v8693_v23, %v3836_v31 }
0x1b13   :  { %v3844_v25 = vmul.f32 %v8716_v18, %v8716_v18 }
0x1b15   :  { %v3850_v30 = vsel %vm151_vm0, %v3844_v25, 0.0 }
0x1b16   :  { %v3831_v61 = vpop.xlane.xlu2 %3830  ;;  %3851 = vadd.xlane.f32.xlu2 %v3850_v30 }
0x1b17   :  { %v3837_v44 = vmul.f32 %v3831_v61, %v7264_v14 }
0x1b19   :  { %v8723_v35 = vsub.f32 %v8698_v0, %v3837_v44 }
0x1b1b   :  { %v3845_v50 = vmul.f32 %v8723_v35, %v8723_v35 }
0x1b1d   :  { %v3853_v42 = vsel %vm151_vm0, %v3845_v50, 0.0 }
0x1b1e   :  { %3854 = vadd.xlane.f32.xlu1 %v3853_v42  ;;  %v3834_v48 = vpop.xlane.xlu1 %3833 }
0x1b1f   :  { %v3838_v41 = vmul.f32 %v3834_v48, %v7264_v14  ;;  %v6110_v48 = vld [vmem:[%s9382_s3 + $0x70] sm:$0xf] }
0x1b21   :  { %v8730_v45 = vsub.f32 %v8703_v62, %v3838_v41  ;;  %v6423_v41 = vld [vmem:[%s9382_s3 + $0x74] sm:$0xf0] }
0x1b23   :  { %v3846_v21 = vmul.f32 %v8730_v45, %v8730_v45 }
0x1b25   :  { %v3856_v58 = vsel %vm151_vm0, %v3846_v21, 0.0  ;;  %v6422_v21 = vld [vmem:[%s9382_s3 + $0x74] sm:$0xf] }
0x1b26   :  { %3857 = vadd.xlane.f32.xlu0 %v3856_v58  ;;  %v6111_v58 = vor.u32 %v6423_v41, %v6110_v48  ;;  %v6115_v19 = vor.u32 %v6422_v21, %v6112_v49 }
0x1b28   :  { %4291 = vmatpush.bf16.msrb.mxu3 %v6111_v58  ;;  %4310 = vmatpush.bf16.msrb.mxu0 %v6115_v19 }
0x1b2c   :  { %4292 = vmatpush.bf16.msrb.mxu3 %v6103_v51  ;;  %4311 = vmatpush.bf16.msrb.mxu0 %v6107_v3  ;;  %v6413_v51 = vld [vmem:[%s9389_s10 + $0x68] sm:$0xff]  ;;  %v6412_v3 = vld [vmem:[%s9389_s10 + $0x60] sm:$0xff] }
0x1b81   :  { %v3849_v16 = vpop.xlane.xlu0 %3848 }
0x1b82   :  { %v3859_v22 = vmul.f32 %v3849_v16, %v7264_v14 }
0x1b84   :  { %v3863_v37 = vadd.f32 1e-05, %v3859_v22  ;;  %v6418_v22 = vld [vmem:[%s9382_s3 + $0x54] sm:$0xf] }
0x1b86   :  { %6852 = vrsqrt.f32 %v3863_v37  ;;  %vm3873_vm5 = vweird.f32 %v3863_v37 }
0x1b89   :  { %v3852_v57 = vpop.xlane.xlu2 %3851 }
0x1b8a   :  { %v3860_v20 = vmul.f32 %v3852_v57, %v7264_v14  ;;  %v6417_v57 = vld [vmem:[%s9382_s3 + $0x44] sm:$0xf0] }
0x1b8c   :  { %v6853_v11 = vpop.eup %6852  ;;  %v3864_v10 = vadd.f32 1e-05, %v3860_v20  ;;  %v6612_v20 = vld [vmem:[#allocation10] ss:$0 sm:$0xff] }
0x1b8d   :  { %v3868_v53 = vmul.f32 %v6853_v11, %v3863_v37  ;;  %vm3874_vm4 = vweird.f32 %v6853_v11  ;;  %v6095_v37 = vor.u32 %v6419_v52, %v6094_v7  ;;  %v6411_v7 = vld [vmem:[%s9389_s10 + $0x58] sm:$0xff]  ;;  %v6404_v52 = vld [vmem:[%s9389_s10 + $0x20] sm:$0xff] }
0x1b8e   :  { %6854 = vrsqrt.f32 %v3864_v10  ;;  %vm8788_vm6 = vmor %vm3873_vm5, %vm3874_vm4  ;;  %vm3883_vm8 = vweird.f32 %v3864_v10 }
0x1b8f   :  { %v3869_v12 = vmul.f32 %v6853_v11, %v3868_v53  ;;  %v6416_v53 = vld [vmem:[%s9382_s3 + $0x44] sm:$0xf]  ;;  %4293 = vmatpush.bf16.msrb.mxu3 %v6095_v37 }
0x1b91   :  { %v3870_v5 = vmul.f32 0.5, %v3869_v12  ;;  %v3855_v28 = vpop.xlane.xlu1 %3854  ;;  %v6088_v12 = vld [vmem:[%s9382_s3 + $0x48] sm:$0xf0]  ;;  %s5457_s3 = sshll.u32 %s9395_s16, 4  ;;  %s5458_s3 = int_to_ptr.hbm [resolvable:$true] %s5457_s3 }
0x1b92   :  { %v3861_v13 = vmul.f32 %v3855_v28, %v7264_v14 }
0x1b93   :  { %v3871_v31 = vsub.f32 1.5, %v3870_v5 }
0x1b94   :  { %v6855_v25 = vpop.eup %6854  ;;  %v8786_v30 = vadd.f32 1e-05, %v3861_v13  ;;  %v6087_v13 = vor.u32 %v6417_v57, %v6086_v59 }
0x1b95   :  { %v3872_v61 = vmul.f32 %v6853_v11, %v3871_v31  ;;  %v3878_v44 = vmul.f32 %v6855_v25, %v3864_v10  ;;  %vm3884_vm7 = vweird.f32 %v6855_v25 }
0x1b96   :  { %6856 = vrsqrt.f32 %v8786_v30  ;;  %vm3885_vm9 = vmor %vm3883_vm8, %vm3884_vm7  ;;  %4294 = vmatpush.bf16.msrb.mxu3 %v6087_v13  ;;  %vm3893_vm11 = vweird.f32 %v8786_v30 }
0x1b97   :  { %v3879_v42 = vmul.f32 %v6855_v25, %v3878_v44  ;;  %v3876_v24 = vsel %vm8788_vm6, %v6853_v11, %v3872_v61 }
0x1b98   :  { %v3907_v16 = vmul.f32 %v3876_v24, %v8709_v4  ;;  %v6099_v4 = vor.u32 %v6418_v22, %v6096_v34  ;;  %v6401_v22 = vld [vmem:[%s9389_s10 + $0x8] sm:$0xff]  ;;  %v6400_v34 = vld [vmem:[%s9389_s10] sm:$0xff] }
0x1b99   :  { %v3880_v6 = vmul.f32 0.5, %v3879_v42  ;;  %v3858_v38 = vpop.xlane.xlu0 %3857 }
0x1b9a   :  { %v3862_v46 = vmul.f32 %v3858_v38, %v7264_v14  ;;  %v3914_v11 = vmul.f32 %v8819_v26, %v3907_v16  ;;  %4312 = vmatpush.bf16.msrb.mxu0 %v6099_v4  ;;  %v6402_v16 = vld [vmem:[%s9389_s10 + $0x10] sm:$0xff] }
0x1b9b   :  { %v3881_v29 = vsub.f32 1.5, %v3880_v6 }
0x1b9c   :  { %v6857_v47 = vpop.eup %6856  ;;  %v3866_v60 = vadd.f32 1e-05, %v3862_v46  ;;  %v3921_v44 = vadd.f32 %v6612_v20, %v3914_v11  ;;  %v6407_v46 = vld [vmem:[%s9389_s10 + $0x38] sm:$0xff] }
0x1b9d   :  { %v3882_v63 = vmul.f32 %v6855_v25, %v3881_v29  ;;  %v3888_v2 = vmul.f32 %v6857_v47, %v8786_v30  ;;  %vm3894_vm10 = vweird.f32 %v6857_v47  ;;  %4169 = vmatpush.bf16.msrb.mxu1 %v6407_v46  ;;  %v6405_v29 = vld [vmem:[%s9389_s10 + $0x28] sm:$0xff] }
0x1b9e   :  { %6858 = vrsqrt.f32 %v3866_v60  ;;  %vm3895_vm12 = vmor %vm3893_vm11, %vm3894_vm10  ;;  %vm3903_vm15 = vweird.f32 %v3866_v60 }
0x1b9f   :  { %v3886_v33 = vsel %vm3885_vm9, %v6855_v25, %v3882_v63  ;;  %v3889_v1 = vmul.f32 %v6857_v47, %v3888_v2  ;;  %v6091_v25 = vor.u32 %v6416_v53, %v6088_v12  ;;  %v3935_v63 = vld [vmem:[%s9388_s9] sm:$0x3] }
0x1ba0   :  { %v3908_v10 = vmul.f32 %v3886_v33, %v8716_v18  ;;  %v3938_v37 = vperm.slane %v3935_v63, 1  ;;  %v3937_v59 = vperm.slane %v3935_v63, 0 }
0x1ba1   :  { %v3890_v5 = vmul.f32 0.5, %v3889_v1  ;;  %4313 = vmatpush.bf16.msrb.mxu0 %v6091_v25 }
0x1ba2   :  { %v3915_v28 = vmul.f32 %v8819_v26, %v3908_v10 }
0x1ba3   :  { %v3891_v31 = vsub.f32 1.5, %v3890_v5 }
0x1ba4   :  { %v6859_v61 = vpop.eup %6858  ;;  %v3922_v50 = vadd.f32 %v6612_v20, %v3915_v28 }
0x1ba5   :  { %v3892_v18 = vmul.f32 %v6857_v47, %v3891_v31  ;;  %v3898_v42 = vmul.f32 %v6859_v61, %v3866_v60  ;;  %vm3904_vm13 = vweird.f32 %v6859_v61  ;;  %v6408_v60 = vld [vmem:[%s9389_s10 + $0x40] sm:$0xff] }
0x1ba6   :  { %v3925_v48 = vpack.c.bf16 %v3922_v50, %v3921_v44  ;;  %vm3905_vm1 = vmor %vm3903_vm15, %vm3904_vm13 }
0x1ba7   :  { %v3899_v41 = vmul.f32 %v6859_v61, %v3898_v42  ;;  %v3896_v21 = vsel %vm3895_vm12, %v6857_v47, %v3892_v18  ;;  %v6403_v47 = vld [vmem:[%s9389_s10 + $0x18] sm:$0xff] }
0x1ba8   :  { %6008 = vmatmul.msk.bf16.vlgmr.msra.gmra.mxu3 %vm151_vm0, %v3925_v48  ;;  %6010 = vmatmul.msk.bf16.vlgmr.msra.gmra.mxu0 %vm151_vm0, %v3925_v48  ;;  %v3909_v39 = vmul.f32 %v3896_v21, %v8723_v35  ;;  %v6415_v35 = vld [vmem:[%s9389_s10 + $0x78] sm:$0xff] }
0x1ba9   :  { %v3900_v58 = vmul.f32 0.5, %v3899_v41  ;;  %4188 = vmatpush.bf16.msrb.mxu2 %v6415_v35 }
0x1baa   :  { %v3916_v30 = vmul.f32 %v8819_v26, %v3909_v39 }
0x1bab   :  { %v3901_v49 = vsub.f32 1.5, %v3900_v58 }
0x1bac   :  { %v3923_v19 = vadd.f32 %v6612_v20, %v3916_v30 }
0x1bad   :  { %v3902_v40 = vmul.f32 %v6859_v61, %v3901_v49 }
0x1baf   :  { %v3906_v24 = vsel %vm3905_vm1, %v6859_v61, %v3902_v40 }
0x1bb0   :  { %v3910_v6 = vmul.f32 %v3906_v24, %v8730_v45  ;;  %v6414_v45 = vld [vmem:[%s9389_s10 + $0x70] sm:$0xff] }
0x1bb1   :  { %4189 = vmatpush.bf16.msrb.mxu2 %v6414_v45 }
0x1bb2   :  { %v3917_v38 = vmul.f32 %v8819_v26, %v3910_v6  ;;  %v6406_v26 = vld [vmem:[%s9389_s10 + $0x30] sm:$0xff] }
0x1bb3   :  { %4170 = vmatpush.bf16.msrb.mxu1 %v6406_v26 }
0x1bb4   :  { %v3924_v17 = vadd.f32 %v6612_v20, %v3917_v38 }
0x1bb5   :  { %4190 = vmatpush.bf16.msrb.mxu2 %v6413_v51 }
0x1bb6   :  { %v3926_v32 = vpack.c.bf16 %v3924_v17, %v3923_v19 }
0x1bb7   :  { %4171 = vmatpush.bf16.msrb.mxu1 %v6405_v29 }
0x1bb8   :  { %6009 = vmatmul.msk.bf16.gmra.mxu3 %vm151_vm0, %v3926_v32  ;;  %6011 = vmatmul.msk.bf16.gmra.mxu0 %vm151_vm0, %v3926_v32 }
0x1bb9   :  { %4191 = vmatpush.bf16.msrb.mxu2 %v6412_v3 }
0x1bbb   :  { %4172 = vmatpush.bf16.msrb.mxu1 %v6404_v52 }
0x1bbd   :  { %4192 = vmatpush.bf16.msrb.mxu2 %v6411_v7 }
0x1bbf   :  { %4173 = vmatpush.bf16.msrb.mxu1 %v6403_v47 }
0x1bc3   :  { %4174 = vmatpush.bf16.msrb.mxu1 %v6402_v16 }
0x1bc7   :  { %4175 = vmatpush.bf16.msrb.mxu1 %v6401_v22 }
0x1bc8   :  { %6116 = vmatmul.msk.bf16.vlgmr.msrb.gmra.mxu3 %vm151_vm0, %v8400_v43  ;;  %6118 = vmatmul.msk.bf16.vlgmr.msrb.gmra.mxu0 %vm151_vm0, %v8400_v43  ;;  %v6410_v43 = vld [vmem:[%s9389_s10 + $0x50] sm:$0xff] }
0x1bc9   :  { %4193 = vmatpush.bf16.msrb.mxu2 %v6410_v43 }
0x1bcb   :  { %4176 = vmatpush.bf16.msrb.mxu1 %v6400_v34 }
0x1bd8   :  { %6117 = vmatmul.msk.bf16.gmra.mxu3 %vm151_vm0, %v8456_v9  ;;  %6119 = vmatmul.msk.bf16.gmra.mxu0 %vm151_vm0, %v8456_v9  ;;  %v6409_v9 = vld [vmem:[%s9389_s10 + $0x48] sm:$0xff] }
0x1bd9   :  { %4194 = vmatpush.bf16.msrb.mxu2 %v6409_v9 }
0x1bdd   :  { %4195 = vmatpush.bf16.msrb.mxu2 %v6408_v60 }
0x1c25   :  { %v4015_v2 = vpop.f32.mrf.mxu0 }
0x1c26   :  { %v4016_v1 = vadd.f32 %v4015_v2, %v3938_v37 }
0x1c28   :  { %v4026_v20 = vmax.f32 %v4016_v1, 0.0 }
0x1c2b   :  { %v3996_v33 = vpop.f32.mrf.mxu3 }
0x1c2c   :  { %v3997_v10 = vadd.f32 %v3996_v33, %v3937_v59 }
0x1c2d   :  { %v4017_v4 = vpop.f32.mrf.mxu0 }
0x1c2e   :  { %v4018_v57 = vadd.f32 %v4017_v4, %v3938_v37  ;;  %v4025_v13 = vmax.f32 %v3997_v10, 0.0 }
0x1c30   :  { %v4028_v11 = vmax.f32 %v4018_v57, 0.0  ;;  %v6613_v57 = vld [vmem:[%s9390_s11] ss:$0 sm:$0xff] }
0x1c32   :  { %v4034_v53 = vpack.c.bf16 %v4028_v11, %v4026_v20 }
0x1c33   :  { %v3998_v12 = vpop.f32.mrf.mxu3 }
0x1c34   :  { %v3999_v5 = vadd.f32 %v3998_v12, %v3937_v59  ;;  %4196 = vmatmul.bf16.vlgmr.msrb.gmra.mxu2 %v4034_v53 }
0x1c35   :  { %v4020_v28 = vpop.f32.mrf.mxu0 }
0x1c36   :  { %v4027_v31 = vmax.f32 %v3999_v5, 0.0  ;;  %v4021_v44 = vadd.f32 %v4020_v28, %v3938_v37 }
0x1c38   :  { %v4033_v25 = vpack.c.bf16 %v4027_v31, %v4025_v13  ;;  %v4030_v42 = vmax.f32 %v4021_v44, 0.0 }
0x1c3a   :  { %4177 = vmatmul.bf16.vlgmr.msrb.gmra.mxu1 %v4033_v25 }
0x1c3b   :  { %v4001_v61 = vpop.f32.mrf.mxu3 }
0x1c3c   :  { %v4002_v41 = vadd.f32 %v4001_v61, %v3937_v59 }
0x1c3d   :  { %v4022_v50 = vpop.f32.mrf.mxu0 }
0x1c3e   :  { %v4023_v18 = vadd.f32 %v4022_v50, %v3938_v37  ;;  %v4029_v40 = vmax.f32 %v4002_v41, 0.0 }
0x1c40   :  { %v4032_v48 = vmax.f32 %v4023_v18, 0.0 }
0x1c42   :  { %v4036_v21 = vpack.c.bf16 %v4032_v48, %v4030_v42 }
0x1c43   :  { %v4003_v58 = vpop.f32.mrf.mxu3 }
0x1c44   :  { %v4004_v49 = vadd.f32 %v4003_v58, %v3937_v59  ;;  %4201 = vmatmul.bf16.gmra.mxu2 %v4036_v21 }
0x1c45   :  { %v4315_v39 = vpop.f32.mrf.mxu0 }
0x1c46   :  { %v4031_v24 = vmax.f32 %v4004_v49, 0.0  ;;  %v4329_v38 = vpack.c.bf16 %v4315_v39, %v4315_v39 }
0x1c48   :  { %v4035_v6 = vpack.c.bf16 %v4031_v24, %v4029_v40  ;;  %v4442_v32 = vunpack.c.l.b16 %v4329_v38 }
0x1c4a   :  { %4182 = vmatmul.bf16.gmra.mxu1 %v4035_v6 }
0x1c4b   :  { %v4296_v30 = vpop.f32.mrf.mxu3 }
0x1c4c   :  { %v4325_v46 = vpack.c.bf16 %v4296_v30, %v4296_v30 }
0x1c4d   :  { %v4317_v19 = vpop.f32.mrf.mxu0 }
0x1c4e   :  { %v4330_v17 = vpack.c.bf16 %v4317_v19, %v4317_v19  ;;  %v4335_v3 = vunpack.c.l.b16 %v4325_v46 }
0x1c50   :  { %v4443_v35 = vunpack.c.l.b16 %v4330_v17 }
0x1c52   :  { %v8919_v45 = vpack.c.b16 %v4443_v35, %v4442_v32 }
0x1c53   :  { %v4298_v26 = vpop.f32.mrf.mxu3 }
0x1c54   :  { %v4326_v51 = vpack.c.bf16 %v4298_v26, %v4298_v26  ;;  %4456 = vmatpush.bf16.msra.mxu3 %v8919_v45 }
0x1c55   :  { %v4320_v29 = vpop.f32.mrf.mxu0 }
0x1c56   :  { %v4336_v7 = vunpack.c.l.b16 %v4326_v51  ;;  %v4331_v47 = vpack.c.bf16 %v4320_v29, %v4320_v29 }
0x1c58   :  { %v4337_v52 = vpack.c.b16 %v4336_v7, %v4335_v3  ;;  %v4470_v60 = vunpack.c.l.b16 %v4331_v47 }
0x1c5a   :  { %4493 = vrot.lane.b32.xlu0 %v4337_v52, %s7125_s27  ;;  %4338 = vrot.lane.b32.xlu2 %v4337_v52, %s7122_s25 }
0x1c5b   :  { %v4301_v43 = vpop.f32.mrf.mxu3 }
0x1c5c   :  { %v4327_v34 = vpack.c.bf16 %v4301_v43, %v4301_v43 }
0x1c5d   :  { %v4322_v9 = vpop.f32.mrf.mxu0 }
0x1c5e   :  { %v4332_v16 = vpack.c.bf16 %v4322_v9, %v4322_v9  ;;  %v4362_v33 = vunpack.c.l.b16 %v4327_v34 }
0x1c60   :  { %v4471_v22 = vunpack.c.l.b16 %v4332_v16 }
0x1c62   :  { %v8924_v63 = vpack.c.b16 %v4471_v22, %v4470_v60  ;;  %4491 = vrot.lane.b32.xlu2 %v4337_v52, %s7124_s6 }
0x1c63   :  { %v4303_v2 = vpop.f32.mrf.mxu3 }
0x1c64   :  { %v4328_v37 = vpack.c.bf16 %v4303_v2, %v4303_v2  ;;  %4484 = vmatpush.bf16.msra.mxu0 %v8924_v63 }
0x1c66   :  { %v4363_v1 = vunpack.c.l.b16 %v4328_v37 }
0x1c68   :  { %v4364_v4 = vpack.c.b16 %v4363_v1, %v4362_v33 }
0x1c6a   :  { %4515 = vrot.lane.b32.xlu2 %v4364_v4, %s7124_s6  ;;  %4517 = vrot.lane.b32.xlu0 %v4364_v4, %s7125_s27 }
0x1c6b   :  { %4365 = vrot.lane.b32.xlu1 %v4364_v4, %s7122_s25 }
0x1c72   :  { %4785 = vrot.lane.b32.xlu2 %v4337_v52, %s7115_s18  ;;  %4637 = vrot.lane.b32.xlu0 %v4337_v52, %s7127_s26 }
0x1c73   :  { %4639 = vrot.lane.b32.xlu1 %v4337_v52, %s7126_s29 }
0x1c7a   :  { %4809 = vrot.lane.b32.xlu2 %v4364_v4, %s7115_s18  ;;  %4661 = vrot.lane.b32.xlu0 %v4364_v4, %s7127_s26 }
0x1c7b   :  { %4663 = vrot.lane.b32.xlu1 %v4364_v4, %s7126_s29 }
0x1c82   :  { %4807 = vrot.lane.b32.xlu0 %v4364_v4, %s7128_s28 }
0x1c83   :  { %4783 = vrot.lane.b32.xlu1 %v4337_v52, %s7128_s28 }
0x1c8a   :  { %4738 = vrot.lane.b32.xlu0 %v8919_v45, %s7127_s26 }
0x1cb4   :  { %v4339_v59 = vpop.permute.xlu2 %4338 }
0x1cb5   :  { %v4344_v20 = vsel %vm370_vm14, %v4339_v59, 0 }
0x1cb6   :  { %4353 = vmatpush.bf16.xpose.msra.mxu1 %v4344_v20 }
0x1cb7   :  { %v4178_v11 = vpop.f32.mrf.mxu1  ;;  %v4197_v10 = vpop.f32.mrf.mxu2 }
0x1cb8   :  { %v4179_v53 = vadd.f32 %v6613_v57, %v4178_v11 }
0x1cba   :  { %v4198_v12 = vadd.f32 %v4197_v10, %v4179_v53 }
0x1cbc   :  { %v4207_v5 = vadd.f32 %v4198_v12, %v8688_v56  ;;  %v4492_v58 = vpop.permute.xlu2 %4491 }
0x1cbd   :  { %6120 = vmatmul.msk.bf16.vlgmr.msra.gmra.mxu1 %vm370_vm14, %v4337_v52 }
0x1cbe   :  { %4211 = vst.msk [vmem:[#allocation12] sm:$0xff] %vm151_vm0, %v4207_v5 }
0x1cbf   :  { %v4180_v28 = vpop.f32.mrf.mxu1  ;;  %v4199_v13 = vpop.f32.mrf.mxu2 }
0x1cc0   :  { %v4181_v31 = vadd.f32 %v6613_v57, %v4180_v28 }
0x1cc2   :  { %v4200_v25 = vadd.f32 %v4199_v13, %v4181_v31 }
0x1cc4   :  { %v4208_v61 = vadd.f32 %v4200_v25, %v8693_v23  ;;  %v4516_v24 = vpop.permute.xlu2 %4515 }
0x1cc6   :  { %4212 = vst.msk [vmem:[#allocation12 + $0x8] sm:$0xff] %vm151_vm0, %v4208_v61 }
0x1cc7   :  { %v4183_v44 = vpop.f32.mrf.mxu1  ;;  %v4202_v50 = vpop.f32.mrf.mxu2 }
0x1cc8   :  { %v4184_v18 = vadd.f32 %v6613_v57, %v4183_v44 }
0x1cca   :  { %v4203_v42 = vadd.f32 %v4202_v50, %v4184_v18 }
0x1ccc   :  { %v4209_v48 = vadd.f32 %v4203_v42, %v8698_v0  ;;  %v4494_v41 = vpop.permute.xlu0 %4493  ;;  %v4786_v19 = vpop.permute.xlu2 %4785 }
0x1ccd   :  { %v4499_v56 = vsel %vm370_vm14, %v4494_v41, 0 }
0x1cce   :  { %4213 = vst.msk [vmem:[#allocation12 + $0x10] sm:$0xff] %vm151_vm0, %v4209_v48  ;;  %4508 = vmatpush.bf16.xpose.msrb.mxu1 %v4499_v56 }
0x1ccf   :  { %v4185_v21 = vpop.f32.mrf.mxu1  ;;  %v4204_v39 = vpop.f32.mrf.mxu2 }
0x1cd0   :  { %v4186_v49 = vadd.f32 %v6613_v57, %v4185_v21 }
0x1cd2   :  { %v4205_v40 = vadd.f32 %v4204_v39, %v4186_v49 }
0x1cd4   :  { %v4210_v23 = vadd.f32 %v4205_v40, %v8703_v62  ;;  %v4791_v62 = vsel %vm370_vm14, %v4786_v19, 0  ;;  %v4810_v51 = vpop.permute.xlu2 %4809 }
0x1cd5   :  { %6124 = vmatmul.msk.bf16.vlgmr.msrb.gmra.mxu1 %vm370_vm14, %v4492_v58  ;;  %v4815_v29 = vsel %vm370_vm14, %v4810_v51, 0 }
0x1cd6   :  { %4214 = vst.msk [vmem:[#allocation12 + $0x18] sm:$0xff] %vm151_vm0, %v4210_v23 }
0x1cdc   :  { %v4518_v6 = vpop.permute.xlu0 %4517 }
0x1cdd   :  { %v4523_v0 = vsel %vm370_vm14, %v4518_v6, 0  ;;  %v4366_v30 = vpop.permute.xlu1 %4365 }
0x1cde   :  { %v4371_v38 = vsel %vm370_vm14, %v4366_v30, 0 }
0x1cdf   :  { %4380 = vmatpush.bf16.xpose.msra.mxu2 %v4371_v38 }
0x1ce4   :  { %v4638_v35 = vpop.permute.xlu0 %4637 }
0x1ce5   :  { %v4640_v17 = vpop.permute.xlu1 %4639 }
0x1ce6   :  { %v4645_v32 = vsel %vm370_vm14, %v4640_v17, 0  ;;  %6121 = vmatmul.msk.bf16.vlgmr.msra.gmra.mxu2 %vm370_vm14, %v4364_v4 }
0x1ce7   :  { %4532 = vmatpush.bf16.xpose.msrb.mxu2 %v4523_v0  ;;  %4654 = vmatpush.bf16.xpose.msra.mxu1 %v4645_v32 }
0x1cec   :  { %v4662_v7 = vpop.permute.xlu0 %4661 }
0x1ced   :  { %v4664_v46 = vpop.permute.xlu1 %4663 }
0x1cee   :  { %v4669_v26 = vsel %vm370_vm14, %v4664_v46, 0  ;;  %6128 = vmatmul.msk.bf16.vlgmr.msra.gmra.mxu1 %vm370_vm14, %v4638_v35 }
0x1cef   :  { %4800 = vmatpush.bf16.xpose.msrb.mxu1 %v4791_v62  ;;  %4678 = vmatpush.bf16.xpose.msra.mxu2 %v4669_v26 }
0x1cf4   :  { %v4808_v52 = vpop.permute.xlu0 %4807 }
0x1cf5   :  { %v4784_v3 = vpop.permute.xlu1 %4783 }
0x1cf6   :  { %6125 = vmatmul.msk.bf16.vlgmr.msrb.gmra.mxu2 %vm370_vm14, %v4516_v24 }
0x1cf7   :  { %4824 = vmatpush.bf16.xpose.msrb.mxu2 %v4815_v29 }
0x1cfe   :  { %6132 = vmatmul.msk.bf16.vlgmr.msrb.gmra.mxu1 %vm370_vm14, %v4784_v3 }
0x1d06   :  { %6129 = vmatmul.msk.bf16.vlgmr.msra.gmra.mxu2 %vm370_vm14, %v4662_v7 }
0x1d16   :  { %6133 = vmatmul.msk.bf16.vlgmr.msrb.gmra.mxu2 %vm370_vm14, %v4808_v52 }
0x1d3a   :  { %v4355_v43 = vpop.f32.mrf.mxu1 }
0x1d3b   :  { %v8969_v47 = vadd.f32 %v4355_v43, %v7360_v8 }
0x1d3d   :  { %v4387_v9 = vsel %vm370_vm14, %v8969_v47, -inf }
0x1d3e   :  { %4388 = vmax.xlane.f32.xlu1 %v4387_v9 }
0x1d42   :  { %v4357_v16 = vpop.f32.mrf.mxu1 }
0x1d43   :  { %v8974_v60 = vadd.f32 %v4357_v16, %v7364_v15 }
0x1d45   :  { %v4390_v22 = vsel %vm370_vm14, %v8974_v60, -inf }
0x1d46   :  { %4391 = vmax.xlane.f32.xlu2 %v4390_v22 }
0x1d52   :  { %v4510_v34 = vpop.f32.mrf.mxu1 }
0x1d53   :  { %v8979_v2 = vadd.f32 %v4510_v34, %v7360_v8 }
0x1d55   :  { %v4539_v37 = vsel %vm370_vm14, %v8979_v2, -inf }
0x1d56   :  { %4540 = vmax.xlane.f32.xlu0 %v4539_v37 }
0x1d5a   :  { %v4512_v33 = vpop.f32.mrf.mxu1 }
0x1d5b   :  { %v8984_v1 = vadd.f32 %v4512_v33, %v7364_v15 }
0x1d5d   :  { %v4542_v4 = vsel %vm370_vm14, %v8984_v1, -inf }
0x1d5e   :  { %4592 = vrot.lane.b32.xlu2 %v8919_v45, %s7124_s6  ;;  %4543 = vmax.xlane.f32.xlu1 %v4542_v4 }
0x1d69   :  { %v4382_v59 = vpop.f32.mrf.mxu2 }
0x1d6a   :  { %v9006_v61 = vadd.f32 %v4382_v59, %v7360_v8 }
0x1d6b   :  { %v4656_v57 = vpop.f32.mrf.mxu1 }
0x1d6c   :  { %v8991_v20 = vadd.f32 %v4656_v57, %v7360_v8  ;;  %v4393_v42 = vsel %vm370_vm14, %v9006_v61, -inf }
0x1d6e   :  { %v4685_v11 = vsel %vm370_vm14, %v8991_v20, -inf }
0x1d6f   :  { %4686 = vmax.xlane.f32.xlu1 %v4685_v11 }
0x1d71   :  { %v4384_v10 = vpop.f32.mrf.mxu2 }
0x1d72   :  { %v8996_v53 = vadd.f32 %v4384_v10, %v7364_v15 }
0x1d73   :  { %v4658_v5 = vpop.f32.mrf.mxu1 }
0x1d74   :  { %v4396_v12 = vsel %vm370_vm14, %v8996_v53, -inf  ;;  %v9016_v41 = vadd.f32 %v4658_v5, %v7364_v15 }
0x1d75   :  { %4397 = vmax.xlane.f32.xlu0 %v4396_v12 }
0x1d76   :  { %v4688_v49 = vsel %vm370_vm14, %v9016_v41, -inf }
0x1d79   :  { %v4534_v28 = vpop.f32.mrf.mxu2 }
0x1d7a   :  { %v9001_v13 = vadd.f32 %v4534_v28, %v7360_v8 }
0x1d7b   :  { %v4802_v50 = vpop.f32.mrf.mxu1 }
0x1d7c   :  { %v4545_v31 = vsel %vm370_vm14, %v9001_v13, -inf  ;;  %v9029_v23 = vadd.f32 %v4802_v50, %v7360_v8 }
0x1d7d   :  { %4546 = vmax.xlane.f32.xlu0 %v4545_v31 }
0x1d7e   :  { %v4831_v30 = vsel %vm370_vm14, %v9029_v23, -inf }
0x1d81   :  { %v4536_v25 = vpop.f32.mrf.mxu2 }
0x1d82   :  { %v9009_v44 = vadd.f32 %v4536_v25, %v7364_v15 }
0x1d83   :  { %v4804_v58 = vpop.f32.mrf.mxu1 }
0x1d84   :  { %v4548_v18 = vsel %vm370_vm14, %v9009_v44, -inf  ;;  %v9026_v39 = vadd.f32 %v4804_v58, %v7364_v15 }
0x1d85   :  { %4549 = vmax.xlane.f32.xlu1 %v4548_v18 }
0x1d86   :  { %v4834_v6 = vsel %vm370_vm14, %v9026_v39, -inf }
0x1d87   :  { %4394 = vmax.xlane.f32.xlu2 %v4393_v42 }
0x1d89   :  { %v4680_v48 = vpop.f32.mrf.mxu2 }
0x1d8a   :  { %v9019_v56 = vadd.f32 %v4680_v48, %v7360_v8 }
0x1d8c   :  { %v4691_v21 = vsel %vm370_vm14, %v9019_v56, -inf }
0x1d8d   :  { %4692 = vmax.xlane.f32.xlu0 %v4691_v21 }
0x1d8f   :  { %4689 = vmax.xlane.f32.xlu2 %v4688_v49 }
0x1d91   :  { %v4682_v40 = vpop.f32.mrf.mxu2 }
0x1d92   :  { %v9032_v24 = vadd.f32 %v4682_v40, %v7364_v15 }
0x1d94   :  { %v4694_v0 = vsel %vm370_vm14, %v9032_v24, -inf }
0x1d95   :  { %4835 = vmax.xlane.f32.xlu0 %v4834_v6  ;;  %4695 = vmax.xlane.f32.xlu1 %v4694_v0 }
0x1d97   :  { %4832 = vmax.xlane.f32.xlu2 %v4831_v30 }
0x1d99   :  { %v4826_v38 = vpop.f32.mrf.mxu2 }
0x1d9a   :  { %v9041_v19 = vadd.f32 %v4826_v38, %v7360_v8 }
0x1d9c   :  { %v4837_v17 = vsel %vm370_vm14, %v9041_v19, -inf }
0x1d9d   :  { %4838 = vmax.xlane.f32.xlu1 %v4837_v17 }
0x1da1   :  { %v4828_v32 = vpop.f32.mrf.mxu2 }
0x1da2   :  { %v9046_v62 = vadd.f32 %v4828_v32, %v7364_v15  ;;  %v9056_v15 = vpop.permute.xlu0 %4738 }
0x1da4   :  { %v4840_v35 = vsel %vm370_vm14, %v9046_v62, -inf }
0x1da5   :  { %4841 = vmax.xlane.f32.xlu2 %v4840_v35 }
0x1db1   :  { %v4389_v46 = vpop.xlane.xlu1 %4388 }
0x1db2   :  { %v4399_v26 = vsub.f32 %v8969_v47, %v4389_v46 }
0x1db4   :  { %v4403_v51 = vmul.f32 1.442695, %v4399_v26 }
0x1db6   :  { %6860 = vpow2.f32 %v4403_v51 }
0x1db9   :  { %v4392_v29 = vpop.xlane.xlu2 %4391 }
0x1dba   :  { %v4400_v8 = vsub.f32 %v8974_v60, %v4392_v29 }
0x1dbc   :  { %v9052_v3 = vpop.eup %6860  ;;  %v4405_v7 = vmul.f32 1.442695, %v4400_v8 }
0x1dbd   :  { %v4411_v52 = vsel %vm370_vm14, %v9052_v3, 0.0 }
0x1dbe   :  { %6862 = vpow2.f32 %v4405_v7  ;;  %4412 = vadd.xlane.f32.xlu1 %v4411_v52 }
0x1dc1   :  { %v4593_v43 = vpop.permute.xlu2 %4592 }
0x1dc2   :  { %4605 = vmatpush.bf16.msrb.mxu3 %v4593_v43 }
0x1dc4   :  { %v9058_v9 = vpop.eup %6862 }
0x1dc5   :  { %v4414_v47 = vsel %vm370_vm14, %v9058_v9, 0.0 }
0x1dc6   :  { %4415 = vadd.xlane.f32.xlu2 %v4414_v47 }
0x1dc9   :  { %v4541_v16 = vpop.xlane.xlu0 %4540 }
0x1dca   :  { %v4551_v60 = vsub.f32 %v8979_v2, %v4541_v16 }
0x1dcc   :  { %v4555_v22 = vmul.f32 1.442695, %v4551_v60 }
0x1dce   :  { %6864 = vpow2.f32 %v4555_v22 }
0x1dd1   :  { %v4544_v59 = vpop.xlane.xlu1 %4543 }
0x1dd2   :  { %v4552_v28 = vsub.f32 %v8984_v1, %v4544_v59 }
0x1dd4   :  { %v9063_v34 = vpop.eup %6864  ;;  %v4557_v18 = vmul.f32 1.442695, %v4552_v28 }
0x1dd5   :  { %v4563_v37 = vsel %vm370_vm14, %v9063_v34, 0.0 }
0x1dd6   :  { %4564 = vadd.xlane.f32.xlu2 %v4563_v37 }
0x1dd7   :  { %4617 = vrot.lane.b32.xlu1 %v8924_v63, %s7124_s6  ;;  %s7130_s6 = smov 128  }
0x1de2   :  { %v4687_v10 = vpop.xlane.xlu1 %4686 }
0x1de3   :  { %v4697_v48 = vsub.f32 %v8991_v20, %v4687_v10 }
0x1de5   :  { %v4701_v40 = vmul.f32 1.442695, %v4697_v48 }
0x1de8   :  { %v4398_v33 = vpop.xlane.xlu0 %4397 }
0x1de9   :  { %v4402_v4 = vsub.f32 %v8996_v53, %v4398_v33 }
0x1deb   :  { %v4409_v57 = vmul.f32 1.442695, %v4402_v4 }
0x1ded   :  { %6866 = vpow2.f32 %v4409_v57 }
0x1df0   :  { %v4547_v11 = vpop.xlane.xlu0 %4546 }
0x1df3   :  { %v9071_v5 = vpop.eup %6866 }
0x1df4   :  { %v4420_v50 = vsel %vm370_vm14, %v9071_v5, 0.0 }
0x1df8   :  { %v4550_v53 = vpop.xlane.xlu1 %4549 }
0x1dfa   :  { %v4395_v2 = vpop.xlane.xlu2 %4394 }
0x1dfb   :  { %v4401_v12 = vsub.f32 %v9006_v61, %v4395_v2  ;;  %v4554_v61 = vsub.f32 %v9009_v44, %v4550_v53  ;;  %v4553_v44 = vsub.f32 %v9001_v13, %v4547_v11 }
0x1dfd   :  { %v4407_v31 = vmul.f32 1.442695, %v4401_v12  ;;  %v4561_v6 = vmul.f32 1.442695, %v4554_v61 }
0x1dff   :  { %6868 = vpow2.f32 %v4407_v31 }
0x1e00   :  { %v4693_v25 = vpop.xlane.xlu0 %4692  ;;  %6870 = vpow2.f32 %v4557_v18 }
0x1e01   :  { %4421 = vadd.xlane.f32.xlu1 %v4420_v50 }
0x1e02   :  { %v4690_v42 = vpop.xlane.xlu2 %4689 }
0x1e03   :  { %v4698_v21 = vsub.f32 %v9016_v41, %v4690_v42 }
0x1e05   :  { %v9079_v58 = vpop.eup %6868  ;;  %v4703_v1 = vmul.f32 1.442695, %v4698_v21 }
0x1e06   :  { %v4417_v49 = vsel %vm370_vm14, %v9079_v58, 0.0  ;;  %v9084_v20 = vpop.eup %6870 }
0x1e07   :  { %6872 = vpow2.f32 %v4703_v1  ;;  %4418 = vadd.xlane.f32.xlu0 %v4417_v49  ;;  %v4566_v46 = vsel %vm370_vm14, %v9084_v20, 0.0 }
0x1e08   :  { %v4836_v0 = vpop.xlane.xlu0 %4835  ;;  %6874 = vpow2.f32 %v4701_v40  ;;  %v4696_v13 = vpop.xlane.xlu1 %4695 }
0x1e09   :  { %v4844_v30 = vsub.f32 %v9026_v39, %v4836_v0  ;;  %6876 = vpow2.f32 %v4561_v6  ;;  %v4559_v39 = vmul.f32 1.442695, %v4553_v44  ;;  %v4700_v52 = vsub.f32 %v9032_v24, %v4696_v13 }
0x1e0a   :  { %v4833_v38 = vpop.xlane.xlu2 %4832 }
0x1e0b   :  { %v4849_v41 = vmul.f32 1.442695, %v4844_v30  ;;  %v4843_v32 = vsub.f32 %v9029_v23, %v4833_v38  ;;  %v4699_v23 = vsub.f32 %v9019_v56, %v4693_v25  ;;  %v4707_v60 = vmul.f32 1.442695, %v4700_v52 }
0x1e0d   :  { %v9087_v17 = vpop.eup %6872  ;;  %6878 = vpow2.f32 %v4849_v41  ;;  %v4847_v51 = vmul.f32 1.442695, %v4843_v32  ;;  %v4705_v16 = vmul.f32 1.442695, %v4699_v23 }
0x1e0e   :  { %v4712_v35 = vsel %vm370_vm14, %v9087_v17, 0.0  ;;  %v9094_v26 = vpop.eup %6874  ;;  %6880 = vpow2.f32 %v4559_v39 }
0x1e0f   :  { %4713 = vadd.xlane.f32.xlu1 %v4712_v35  ;;  %4567 = vadd.xlane.f32.xlu0 %v4566_v46  ;;  %v9096_v29 = vpop.eup %6876  ;;  %6882 = vpow2.f32 %v4847_v51  ;;  %v4709_v43 = vsel %vm370_vm14, %v9094_v26, 0.0 }
0x1e10   :  { %v4572_v47 = vsel %vm370_vm14, %v9096_v29, 0.0  ;;  %6884 = vpow2.f32 %v4705_v16  ;;  %v4839_v2 = vpop.xlane.xlu1 %4838 }
0x1e11   :  { %6886 = vpow2.f32 %v4707_v60 }
0x1e13   :  { %v9098_v8 = vpop.eup %6878 }
0x1e14   :  { %v4858_v7 = vsel %vm370_vm14, %v9098_v8, 0.0  ;;  %v9108_v22 = vpop.eup %6880 }
0x1e15   :  { %4859 = vadd.xlane.f32.xlu2 %v4858_v7  ;;  %v9110_v37 = vpop.eup %6882  ;;  %v4569_v33 = vsel %vm370_vm14, %v9108_v22, 0.0 }
0x1e16   :  { %v4855_v4 = vsel %vm370_vm14, %v9110_v37, 0.0  ;;  %v9117_v57 = vpop.eup %6884 }
0x1e17   :  { %4710 = vadd.xlane.f32.xlu0 %v4709_v43  ;;  %4573 = vadd.xlane.f32.xlu1 %v4572_v47  ;;  %v9119_v11 = vpop.eup %6886  ;;  %v4715_v10 = vsel %vm370_vm14, %v9117_v57, 0.0 }
0x1e18   :  { %v4842_v56 = vpop.xlane.xlu2 %4841 }
0x1e19   :  { %v4846_v24 = vsub.f32 %v9046_v62, %v4842_v56  ;;  %v4718_v62 = vsel %vm370_vm14, %v9119_v11, 0.0 }
0x1e1b   :  { %v4853_v59 = vmul.f32 1.442695, %v4846_v24 }
0x1e1d   :  { %6888 = vpow2.f32 %v4853_v59 }
0x1e1f   :  { %4570 = vadd.xlane.f32.xlu0 %v4569_v33  ;;  %4856 = vadd.xlane.f32.xlu1 %v4855_v4 }
0x1e23   :  { %v9125_v12 = vpop.eup %6888 }
0x1e24   :  { %v4864_v28 = vsel %vm370_vm14, %v9125_v12, 0.0 }
0x1e27   :  { %4716 = vadd.xlane.f32.xlu0 %v4715_v10  ;;  %4719 = vadd.xlane.f32.xlu1 %v4718_v62 }
0x1e2d   :  { %4884 = vrot.lane.b32.xlu2 %v8919_v45, %s7128_s28  ;;  %v4845_v45 = vsub.f32 %v9041_v19, %v4839_v2 }
0x1e2f   :  { %4865 = vadd.xlane.f32.xlu1 %v4864_v28  ;;  %v4851_v40 = vmul.f32 1.442695, %v4845_v45 }
0x1e31   :  { %v4413_v31 = vpop.xlane.xlu1 %4412 }
0x1e32   :  { %6890 = vrcp.f32 %v4413_v31 }
0x1e38   :  { %v6891_v50 = vpop.eup %6890 }
0x1e39   :  { %v4416_v25 = vpop.xlane.xlu2 %4415  ;;  %v4427_v18 = vmul.f32 %v6891_v50, %v9052_v3 }
0x1e3a   :  { %6892 = vrcp.f32 %v4416_v25 }
0x1e3b   :  { %4763 = vrot.lane.b32.xlu0 %v8924_v63, %s7127_s26  ;;  %v4431_v42 = vpack.c.bf16 %v4427_v18, %v4427_v18  ;;  %6894 = vpow2.f32 %v4851_v40  ;;  %s7131_s26 = smov 8  }
0x1e3d   :  { %v4437_v61 = vunpack.c.l.b16 %v4431_v42 }
0x1e40   :  { %v6893_v53 = vpop.eup %6892 }
0x1e41   :  { %v4428_v48 = vmul.f32 %v6893_v53, %v9058_v9  ;;  %v9140_v3 = vpop.eup %6894 }
0x1e42   :  { %v4861_v9 = vsel %vm370_vm14, %v9140_v3, 0.0 }
0x1e43   :  { %v4432_v21 = vpack.c.bf16 %v4428_v48, %v4428_v48  ;;  %4909 = vrot.lane.b32.xlu0 %v8924_v63, %s7128_s28 }
0x1e45   :  { %v4438_v1 = vunpack.c.l.b16 %v4432_v21 }
0x1e47   :  { %v4439_v49 = vpack.c.b16 %v4438_v1, %v4437_v61 }
0x1e49   :  { %6122 = vmatmul.msk.bf16.vlgmr.msra.gmra.mxu3 %vm370_vm14, %v4439_v49  ;;  %v4618_v6 = vpop.permute.xlu1 %4617  ;;  %v4565_v19 = vpop.xlane.xlu2 %4564 }
0x1e4a   :  { %4751 = vmatpush.bf16.msra.mxu3 %v9056_v15  ;;  %4630 = vmatpush.bf16.msrb.mxu0 %v4618_v6 }
0x1e56   :  { %4862 = vadd.xlane.f32.xlu2 %v4861_v9 }
0x1e74   :  { %v4422_v63 = vpop.xlane.xlu1 %4421 }
0x1e75   :  { %6896 = vrcp.f32 %v4422_v63 }
0x1e7a   :  { %v4419_v0 = vpop.xlane.xlu0 %4418 }
0x1e7b   :  { %v6897_v30 = vpop.eup %6896  ;;  %6898 = vrcp.f32 %v4419_v0 }
0x1e7c   :  { %6900 = vrcp.f32 %v4565_v19  ;;  %v4430_v38 = vmul.f32 %v6897_v30, %v9071_v5 }
0x1e7e   :  { %v4434_v44 = vpack.c.bf16 %v4430_v38, %v4430_v38 }
0x1e80   :  { %v4466_v13 = vunpack.c.l.b16 %v4434_v44 }
0x1e81   :  { %v6899_v41 = vpop.eup %6898 }
0x1e82   :  { %v4429_v15 = vmul.f32 %v6899_v41, %v9079_v58  ;;  %v4568_v32 = vpop.xlane.xlu0 %4567  ;;  %v4714_v35 = vpop.xlane.xlu1 %4713 }
0x1e83   :  { %v6901_v46 = vpop.eup %6900  ;;  %6902 = vrcp.f32 %v4568_v32 }
0x1e84   :  { %v4433_v39 = vpack.c.bf16 %v4429_v15, %v4429_v15  ;;  %v4579_v51 = vmul.f32 %v6901_v46, %v9063_v34 }
0x1e86   :  { %v4465_v23 = vunpack.c.l.b16 %v4433_v39  ;;  %v4583_v47 = vpack.c.bf16 %v4579_v51, %v4579_v51 }
0x1e88   :  { %v4467_v7 = vpack.c.b16 %v4466_v13, %v4465_v23  ;;  %v4860_v52 = vpop.xlane.xlu2 %4859  ;;  %v4589_v56 = vunpack.c.l.b16 %v4583_v47 }
0x1e89   :  { %v6903_v43 = vpop.eup %6902 }
0x1e8a   :  { %v4580_v16 = vmul.f32 %v6903_v43, %v9084_v20  ;;  %v4711_v5 = vpop.xlane.xlu0 %4710  ;;  %6123 = vmatmul.msk.bf16.vlgmr.msra.gmra.mxu0 %vm370_vm14, %v4467_v7  ;;  %v4574_v60 = vpop.xlane.xlu1 %4573 }
0x1e8b   :  { %6904 = vrcp.f32 %v4711_v5 }
0x1e8c   :  { %v4584_v58 = vpack.c.bf16 %v4580_v16, %v4580_v16  ;;  %6906 = vrcp.f32 %v4714_v35 }
0x1e8d   :  { %6908 = vrcp.f32 %v4574_v60 }
0x1e8e   :  { %v4590_v24 = vunpack.c.l.b16 %v4584_v58 }
0x1e90   :  { %v4591_v33 = vpack.c.b16 %v4590_v24, %v4589_v56  ;;  %v4885_v4 = vpop.permute.xlu2 %4884 }
0x1e91   :  { %v6905_v34 = vpop.eup %6904 }
0x1e92   :  { %v6907_v59 = vpop.eup %6906  ;;  %v4571_v10 = vpop.xlane.xlu0 %4570  ;;  %6126 = vmatmul.msk.bf16.vlgmr.msrb.gmra.mxu3 %vm370_vm14, %v4591_v33  ;;  %v4725_v20 = vmul.f32 %v6905_v34, %v9094_v26 }
0x1e93   :  { %v4857_v62 = vpop.xlane.xlu1 %4856  ;;  %v6909_v2 = vpop.eup %6908  ;;  %6910 = vrcp.f32 %v4571_v10  ;;  %4897 = vmatpush.bf16.msrb.mxu3 %v4885_v4  ;;  %v4726_v28 = vmul.f32 %v6907_v59, %v9087_v17 }
0x1e94   :  { %v4582_v31 = vmul.f32 %v6909_v2, %v9096_v29  ;;  %v4729_v25 = vpack.c.bf16 %v4725_v20, %v4725_v20  ;;  %6912 = vrcp.f32 %v4857_v62 }
0x1e95   :  { %v4730_v18 = vpack.c.bf16 %v4726_v28, %v4726_v28 }
0x1e96   :  { %v4586_v53 = vpack.c.bf16 %v4582_v31, %v4582_v31  ;;  %v4735_v45 = vunpack.c.l.b16 %v4729_v25 }
0x1e97   :  { %v4736_v1 = vunpack.c.l.b16 %v4730_v18 }
0x1e98   :  { %v4615_v26 = vunpack.c.l.b16 %v4586_v53 }
0x1e99   :  { %v6911_v50 = vpop.eup %6910  ;;  %v4737_v40 = vpack.c.b16 %v4736_v1, %v4735_v45  ;;  %v6426_v1 = vld [vmem:[%s9383_s4 + $0x30] sm:$0xff] }
0x1e9a   :  { %v4581_v42 = vmul.f32 %v6911_v50, %v9108_v22  ;;  %v4717_v48 = vpop.xlane.xlu0 %4716  ;;  %v6913_v17 = vpop.eup %6912 }
0x1e9b   :  { %v4720_v21 = vpop.xlane.xlu1 %4719  ;;  %6914 = vrcp.f32 %v4717_v48  ;;  %v4871_v63 = vmul.f32 %v6913_v17, %v9110_v37 }
0x1e9c   :  { %v4585_v61 = vpack.c.bf16 %v4581_v42, %v4581_v42  ;;  %6916 = vrcp.f32 %v4720_v21 }
0x1e9d   :  { %6918 = vrcp.f32 %v4860_v52  ;;  %v4875_v38 = vpack.c.bf16 %v4871_v63, %v4871_v63 }
0x1e9e   :  { %v4614_v49 = vunpack.c.l.b16 %v4585_v61  ;;  %v6427_v61 = vld [vmem:[%s9383_s4 + $0x38] sm:$0xff] }
0x1e9f   :  { %v4881_v32 = vunpack.c.l.b16 %v4875_v38  ;;  %5037 = vmatpush.bf16.msra.mxu1 %v6427_v61 }
0x1ea0   :  { %v4616_v29 = vpack.c.b16 %v4615_v26, %v4614_v49  ;;  %v6425_v26 = vld [vmem:[%s9383_s4 + $0x28] sm:$0xff]  ;;  %v6424_v49 = vld [vmem:[%s9383_s4 + $0x20] sm:$0xff] }
0x1ea1   :  { %v6915_v6 = vpop.eup %6914 }
0x1ea2   :  { %v6917_v9 = vpop.eup %6916  ;;  %6127 = vmatmul.msk.bf16.vlgmr.msrb.gmra.mxu0 %vm370_vm14, %v4616_v29  ;;  %6130 = vmatmul.msk.bf16.vlgmr.msra.gmra.mxu3 %vm370_vm14, %v4737_v40  ;;  %v4727_v19 = vmul.f32 %v6915_v6, %v9117_v57 }
0x1ea3   :  { %v6919_v22 = vpop.eup %6918  ;;  %v4728_v0 = vmul.f32 %v6917_v9, %v9119_v11  ;;  %v4866_v57 = vpop.xlane.xlu1 %4865  ;;  %5038 = vmatpush.bf16.msra.mxu1 %v6426_v1 }
0x1ea4   :  { %v4872_v30 = vmul.f32 %v6919_v22, %v9098_v8  ;;  %v4731_v41 = vpack.c.bf16 %v4727_v19, %v4727_v19  ;;  %6920 = vrcp.f32 %v4866_v57 }
0x1ea5   :  { %v4732_v44 = vpack.c.bf16 %v4728_v0, %v4728_v0 }
0x1ea6   :  { %v4876_v15 = vpack.c.bf16 %v4872_v30, %v4872_v30  ;;  %v4760_v35 = vunpack.c.l.b16 %v4731_v41 }
0x1ea7   :  { %v4761_v46 = vunpack.c.l.b16 %v4732_v44  ;;  %5039 = vmatpush.bf16.msra.mxu1 %v6425_v26 }
0x1ea8   :  { %v4882_v51 = vunpack.c.l.b16 %v4876_v15 }
0x1ea9   :  { %v4762_v23 = vpack.c.b16 %v4761_v46, %v4760_v35 }
0x1eaa   :  { %v4883_v13 = vpack.c.b16 %v4882_v51, %v4881_v32  ;;  %v6921_v11 = vpop.eup %6920 }
0x1eab   :  { %v4874_v7 = vmul.f32 %v6921_v11, %v9125_v12  ;;  %5040 = vmatpush.bf16.msra.mxu1 %v6424_v49 }
0x1ead   :  { %v4764_v39 = vpop.permute.xlu0 %4763  ;;  %v4878_v43 = vpack.c.bf16 %v4874_v7, %v4874_v7 }
0x1eae   :  { %4776 = vmatpush.bf16.msra.mxu0 %v4764_v39 }
0x1eaf   :  { %v4907_v5 = vunpack.c.l.b16 %v4878_v43 }
0x1eb2   :  { %6131 = vmatmul.msk.bf16.vlgmr.msra.gmra.mxu0 %vm370_vm14, %v4762_v23  ;;  %6134 = vmatmul.msk.bf16.vlgmr.msrb.gmra.mxu3 %vm370_vm14, %v4883_v13 }
0x1eb5   :  { %v4910_v37 = vpop.permute.xlu0 %4909 }
0x1eb6   :  { %4922 = vmatpush.bf16.msrb.mxu0 %v4910_v37 }
0x1ec9   :  { %v4863_v8 = vpop.xlane.xlu2 %4862 }
0x1eca   :  { %6922 = vrcp.f32 %v4863_v8 }
0x1ecc   :  { %v4458_v56 = vpop.f32.mrf.mxu3 }
0x1ed0   :  { %v6923_v52 = vpop.eup %6922 }
0x1ed1   :  { %v4873_v47 = vmul.f32 %v6923_v52, %v9140_v3 }
0x1ed3   :  { %v4877_v16 = vpack.c.bf16 %v4873_v47, %v4873_v47 }
0x1ed4   :  { %v4460_v24 = vpop.f32.mrf.mxu3 }
0x1ed5   :  { %v4906_v60 = vunpack.c.l.b16 %v4877_v16 }
0x1ed7   :  { %v4908_v58 = vpack.c.b16 %v4907_v5, %v4906_v60 }
0x1ed9   :  { %6135 = vmatmul.msk.bf16.vlgmr.msrb.gmra.mxu0 %vm370_vm14, %v4908_v58  ;;  %v6614_v58 = vld [vmem:[#allocation7 + $0x1] ss:$0 sm:$0xff] }
0x1f07   :  { %v4486_v33 = vpop.f32.mrf.mxu0 }
0x1f0f   :  { %v4488_v4 = vpop.f32.mrf.mxu0 }
0x1f15   :  { %v4607_v34 = vpop.f32.mrf.mxu3 }
0x1f1d   :  { %v4609_v59 = vpop.f32.mrf.mxu3 }
0x1f1e   :  { %v6561_v10 = vpack.i.bf16 %v4609_v59, %v4607_v34 }
0x1f1f   :  { %v4632_v62 = vpop.f32.mrf.mxu0 }
0x1f20   :  { %6562 = vrot.lane.b32.xlu1 %v6561_v10, %s7115_s18 }
0x1f25   :  { %v4753_v12 = vpop.f32.mrf.mxu3 }
0x1f27   :  { %v4634_v2 = vpop.f32.mrf.mxu0 }
0x1f28   :  { %v6576_v42 = vpack.i.bf16 %v4634_v2, %v4632_v62 }
0x1f2d   :  { %v4755_v20 = vpop.f32.mrf.mxu3 }
0x1f2e   :  { %v6566_v3 = vpack.i.bf16 %v4755_v20, %v4753_v12 }
0x1f2f   :  { %v4778_v28 = vpop.f32.mrf.mxu0 }
0x1f30   :  { %6567 = vrot.lane.b32.xlu0 %v6566_v3, %s7126_s29 }
0x1f35   :  { %v4899_v31 = vpop.f32.mrf.mxu3 }
0x1f37   :  { %v4780_v25 = vpop.f32.mrf.mxu0 }
0x1f38   :  { %v6581_v50 = vpack.i.bf16 %v4780_v25, %v4778_v28 }
0x1f3a   :  { %6582 = vrot.lane.b32.xlu2 %v6581_v50, %s7126_s29 }
0x1f3d   :  { %v4901_v18 = vpop.f32.mrf.mxu3 }
0x1f3e   :  { %v6571_v53 = vpack.i.bf16 %v4901_v18, %v4899_v31 }
0x1f40   :  { %6572 = vrot.lane.b32.xlu0 %v6571_v53, %s7125_s27 }
0x1f48   :  { %6577 = vrot.lane.b32.xlu0 %v6576_v42, %s7115_s18  ;;  %s5470_s18 = sshll.u32 %s9396_s17, 4  ;;  %s5471_s18 = int_to_ptr.hbm [resolvable:$true] %s5470_s18 }
0x1f56   :  { %v4924_v48 = vpop.f32.mrf.mxu0 }
0x1f5e   :  { %v4926_v21 = vpop.f32.mrf.mxu0 }
0x1f5f   :  { %v6586_v45 = vpack.i.bf16 %v4926_v21, %v4924_v48 }
0x1f61   :  { %6587 = vrot.lane.b32.xlu1 %v6586_v45, %s7125_s27 }
0x1f92   :  { %v6563_v40 = vpop.permute.xlu1 %6562 }
0x1f93   :  { %v6565_v29 = vunpack.i.h.bf16 %v6563_v40  ;;  %v6564_v6 = vunpack.i.l.bf16 %v6563_v40 }
0x1f94   :  { %v6583_v13 = vpop.permute.xlu2 %6582 }
0x1f95   :  { %v4978_v19 = vsel %vm370_vm14, %v4460_v24, %v6565_v29  ;;  %v4977_v0 = vsel %vm370_vm14, %v4458_v56, %v6564_v6  ;;  %v6585_v57 = vunpack.i.h.bf16 %v6583_v13  ;;  %v6584_v8 = vunpack.i.l.bf16 %v6583_v13  ;;  %v6431_v13 = vld [vmem:[%s9387_s8 + $0x54] sm:$0xf0] }
0x1fa2   :  { %v6568_v17 = vpop.permute.xlu0 %6567 }
0x1fa3   :  { %v6570_v9 = vunpack.i.h.bf16 %v6568_v17  ;;  %v6569_v22 = vunpack.i.l.bf16 %v6568_v17 }
0x1fa5   :  { %v4981_v41 = vsel %vm1012_vm2, %v4977_v0, %v6569_v22  ;;  %v4982_v44 = vsel %vm1012_vm2, %v4978_v19, %v6570_v9  ;;  %v6435_v19 = vld [vmem:[%s9387_s8 + $0x74] sm:$0xf0]  ;;  %v6434_v0 = vld [vmem:[%s9387_s8 + $0x74] sm:$0xf] }
0x1fb2   :  { %v6573_v63 = vpop.permute.xlu0 %6572 }
0x1fb3   :  { %v6575_v30 = vunpack.i.h.bf16 %v6573_v63  ;;  %v6574_v38 = vunpack.i.l.bf16 %v6573_v63  ;;  %v6197_v63 = vld [vmem:[%s9387_s8 + $0x70] sm:$0xf] }
0x1fb5   :  { %v4985_v15 = vsel %vm1017_vm3, %v4981_v41, %v6574_v38  ;;  %v4986_v32 = vsel %vm1017_vm3, %v4982_v44, %v6575_v30  ;;  %v6198_v30 = vor.u32 %v6435_v19, %v6197_v63  ;;  %v6199_v38 = vld [vmem:[%s9387_s8 + $0x78] sm:$0xf0]  ;;  %v6189_v44 = vld [vmem:[%s9387_s8 + $0x60] sm:$0xf] }
0x1fb6   :  { %v4989_v35 = vpack.c.bf16 %v4986_v32, %v4985_v15  ;;  %v6202_v41 = vor.u32 %v6434_v0, %v6199_v38  ;;  %v6433_v15 = vld [vmem:[%s9387_s8 + $0x64] sm:$0xf0]  ;;  %v6432_v32 = vld [vmem:[%s9387_s8 + $0x64] sm:$0xf]  ;;  %v6450_v38 = vld [vmem:[%s9389_s10 + $0xf0] sm:$0xff] }
0x1fb7   :  { %5226 = vmatpush.bf16.msra.mxu2 %v6198_v30  ;;  %v6442_v30 = vld [vmem:[%s9389_s10 + $0xb0] sm:$0xff] }
0x1fb8   :  { %6160 = vmatmul.msk.bf16.vlgmr.msra.gmra.mxu1 %vm151_vm0, %v4989_v35  ;;  %5245 = vmatpush.bf16.msra.mxu3 %v6202_v41  ;;  %v6190_v35 = vor.u32 %v6433_v15, %v6189_v44 }
0x1fba   :  { %v6578_v46 = vpop.permute.xlu0 %6577 }
0x1fbb   :  { %v6580_v39 = vunpack.i.h.bf16 %v6578_v46  ;;  %v6579_v51 = vunpack.i.l.bf16 %v6578_v46  ;;  %v6191_v46 = vld [vmem:[%s9387_s8 + $0x68] sm:$0xf0]  ;;  %5227 = vmatpush.bf16.msra.mxu2 %v6190_v35 }
0x1fbd   :  { %v4980_v23 = vsel %vm370_vm14, %v4488_v4, %v6580_v39  ;;  %v4979_v37 = vsel %vm370_vm14, %v4486_v33, %v6579_v51  ;;  %v6194_v39 = vor.u32 %v6432_v32, %v6191_v46  ;;  %v6181_v51 = vld [vmem:[%s9387_s8 + $0x50] sm:$0xf]  ;;  %v6449_v32 = vld [vmem:[%s9389_s10 + $0xe8] sm:$0xff] }
0x1fbe   :  { %v4983_v43 = vsel %vm1012_vm2, %v4979_v37, %v6584_v8  ;;  %v4984_v47 = vsel %vm1012_vm2, %v4980_v23, %v6585_v57  ;;  %v6430_v23 = vld [vmem:[%s9387_s8 + $0x54] sm:$0xf]  ;;  %v6182_v57 = vor.u32 %v6431_v13, %v6181_v51  ;;  %v6183_v8 = vld [vmem:[%s9387_s8 + $0x58] sm:$0xf0]  ;;  %v6448_v51 = vld [vmem:[%s9389_s10 + $0xe0] sm:$0xff] }
0x1fbf   :  { %5246 = vmatpush.bf16.msra.mxu3 %v6194_v39  ;;  %v6440_v39 = vld [vmem:[%s9389_s10 + $0xa0] sm:$0xff] }
0x1fc0   :  { %5228 = vmatpush.bf16.msra.mxu2 %v6182_v57 }
0x1fd3   :  { %v6588_v11 = vpop.permute.xlu1 %6587 }
0x1fd4   :  { %v6590_v7 = vunpack.i.h.bf16 %v6588_v11  ;;  %v6589_v52 = vunpack.i.l.bf16 %v6588_v11 }
0x1fd6   :  { %v4988_v16 = vsel %vm1017_vm3, %v4984_v47, %v6590_v7  ;;  %v4987_v5 = vsel %vm1017_vm3, %v4983_v43, %v6589_v52  ;;  %v6186_v7 = vor.u32 %v6430_v23, %v6183_v8  ;;  %v6173_v43 = vld [vmem:[%s9387_s8 + $0x40] sm:$0xf]  ;;  %v6429_v47 = vld [vmem:[%s9387_s8 + $0x44] sm:$0xf0] }
0x1fd7   :  { %v4990_v60 = vpack.c.bf16 %v4988_v16, %v4987_v5  ;;  %v6174_v16 = vor.u32 %v6429_v47, %v6173_v43  ;;  %v6428_v5 = vld [vmem:[%s9387_s8 + $0x44] sm:$0xf] }
0x1fd8   :  { %5247 = vmatpush.bf16.msra.mxu3 %v6186_v7 }
0x1fd9   :  { %6161 = vmatmul.msk.bf16.gmra.mxu1 %vm151_vm0, %v4990_v60  ;;  %v6175_v60 = vld [vmem:[%s9387_s8 + $0x48] sm:$0xf0]  ;;  %5229 = vmatpush.bf16.msra.mxu2 %v6174_v16 }
0x2035   :  { %v5042_v56 = vpop.f32.mrf.mxu1 }
0x2036   :  { %v5043_v24 = vadd.f32 %v6614_v58, %v5042_v56 }
0x2038   :  { %v9198_v33 = vadd.f32 %v5043_v24, %v8270_v54 }
0x203a   :  { %v5058_v34 = vsel %vm151_vm0, %v9198_v33, 0.0 }
0x203b   :  { %5059 = vadd.xlane.f32.xlu0 %v5058_v34 }
0x203d   :  { %v5044_v4 = vpop.f32.mrf.mxu1 }
0x203e   :  { %v5045_v59 = vadd.f32 %v6614_v58, %v5044_v4 }
0x2040   :  { %v9203_v10 = vadd.f32 %v5045_v59, %v8276_v55 }
0x2042   :  { %v5061_v62 = vsel %vm151_vm0, %v9203_v10, 0.0 }
0x2043   :  { %5062 = vadd.xlane.f32.xlu1 %v5061_v62 }
0x2056   :  { %v5047_v12 = vpop.f32.mrf.mxu1 }
0x2057   :  { %v5048_v2 = vadd.f32 %v6614_v58, %v5047_v12 }
0x2059   :  { %v9208_v20 = vadd.f32 %v5048_v2, %v8407_v27 }
0x205b   :  { %v5064_v54 = vsel %vm151_vm0, %v9208_v20, 0.0 }
0x205c   :  { %5065 = vadd.xlane.f32.xlu2 %v5064_v54 }
0x205e   :  { %v5049_v3 = vpop.f32.mrf.mxu1 }
0x205f   :  { %v5050_v28 = vadd.f32 %v6614_v58, %v5049_v3  ;;  %v6178_v58 = vor.u32 %v6428_v5, %v6175_v60 }
0x2061   :  { %v9213_v31 = vadd.f32 %v5050_v28, %v8413_v36  ;;  %5248 = vmatpush.bf16.msra.mxu3 %v6178_v58 }
0x2063   :  { %v5067_v55 = vsel %vm151_vm0, %v9213_v31, 0.0 }
0x2064   :  { %5068 = vadd.xlane.f32.xlu0 %v5067_v55 }
0x20ae   :  { %v5060_v25 = vpop.xlane.xlu0 %5059 }
0x20af   :  { %v5070_v50 = vmul.f32 %v5060_v25, %v7264_v14 }
0x20b1   :  { %v9219_v18 = vsub.f32 %v9198_v33, %v5070_v50 }
0x20b3   :  { %v5078_v27 = vmul.f32 %v9219_v18, %v9219_v18 }
0x20b5   :  { %v5082_v53 = vsel %vm151_vm0, %v5078_v27, 0.0 }
0x20b6   :  { %v5063_v42 = vpop.xlane.xlu1 %5062  ;;  %5083 = vadd.xlane.f32.xlu1 %v5082_v53  ;;  %v6615_v53 = vld [vmem:[#allocation8 + $0x1] ss:$0 sm:$0xff] }
0x20b7   :  { %v5071_v36 = vmul.f32 %v5063_v42, %v7264_v14 }
0x20b9   :  { %v9226_v48 = vsub.f32 %v9203_v10, %v5071_v36 }
0x20bb   :  { %v5079_v21 = vmul.f32 %v9226_v48, %v9226_v48 }
0x20bd   :  { %v5085_v45 = vsel %vm151_vm0, %v5079_v21, 0.0 }
0x20be   :  { %5086 = vadd.xlane.f32.xlu0 %v5085_v45  ;;  %v6616_v45 = vld [vmem:[#allocation10 + $0x1] ss:$0 sm:$0xff] }
0x20cf   :  { %v5066_v61 = vpop.xlane.xlu2 %5065 }
0x20d0   :  { %v5072_v1 = vmul.f32 %v5066_v61, %v7264_v14 }
0x20d2   :  { %v9233_v26 = vsub.f32 %v9208_v20, %v5072_v1 }
0x20d4   :  { %v5080_v49 = vmul.f32 %v9233_v26, %v9233_v26 }
0x20d6   :  { %v5088_v17 = vsel %vm151_vm0, %v5080_v49, 0.0 }
0x20d7   :  { %5089 = vadd.xlane.f32.xlu1 %v5088_v17  ;;  %v5069_v40 = vpop.xlane.xlu0 %5068 }
0x20d8   :  { %v5073_v29 = vmul.f32 %v5069_v40, %v7264_v14 }
0x20da   :  { %v9240_v6 = vsub.f32 %v9213_v31, %v5073_v29 }
0x20dc   :  { %v5081_v9 = vmul.f32 %v9240_v6, %v9240_v6 }
0x20de   :  { %v5091_v22 = vsel %vm151_vm0, %v5081_v9, 0.0 }
0x20df   :  { %5092 = vadd.xlane.f32.xlu0 %v5091_v22 }
0x2129   :  { %v5084_v37 = vpop.xlane.xlu1 %5083 }
0x212a   :  { %v5094_v11 = vmul.f32 %v5084_v37, %v7264_v14 }
0x212c   :  { %v5098_v52 = vadd.f32 1e-05, %v5094_v11 }
0x212e   :  { %6924 = vrsqrt.f32 %v5098_v52  ;;  %vm5108_vm2 = vweird.f32 %v5098_v52 }
0x2131   :  { %v5087_v56 = vpop.xlane.xlu0 %5086 }
0x2132   :  { %v5095_v24 = vmul.f32 %v5087_v56, %v7264_v14 }
0x2134   :  { %v6925_v34 = vpop.eup %6924  ;;  %v5099_v4 = vadd.f32 1e-05, %v5095_v24 }
0x2135   :  { %v5103_v59 = vmul.f32 %v6925_v34, %v5098_v52  ;;  %vm5109_vm14 = vweird.f32 %v6925_v34 }
0x2136   :  { %6926 = vrsqrt.f32 %v5099_v4  ;;  %vm5110_vm3 = vmor %vm5108_vm2, %vm5109_vm14  ;;  %vm5118_vm5 = vweird.f32 %v5099_v4 }
0x2137   :  { %v5104_v62 = vmul.f32 %v6925_v34, %v5103_v59  ;;  %v6446_v59 = vld [vmem:[%s9389_s10 + $0xd0] sm:$0xff] }
0x2139   :  { %v5105_v12 = vmul.f32 0.5, %v5104_v62  ;;  %v6437_v62 = vld [vmem:[%s9389_s10 + $0x88] sm:$0xff] }
0x213b   :  { %v5106_v2 = vsub.f32 1.5, %v5105_v12  ;;  %v6445_v12 = vld [vmem:[%s9389_s10 + $0xc8] sm:$0xff] }
0x213c   :  { %v6927_v54 = vpop.eup %6926 }
0x213d   :  { %v5107_v3 = vmul.f32 %v6925_v34, %v5106_v2  ;;  %v5113_v28 = vmul.f32 %v6927_v54, %v5099_v4  ;;  %vm5119_vm4 = vweird.f32 %v6927_v54  ;;  %v6439_v4 = vld [vmem:[%s9389_s10 + $0x98] sm:$0xff]  ;;  %v6436_v2 = vld [vmem:[%s9389_s10 + $0x80] sm:$0xff] }
0x213e   :  { %vm5120_vm6 = vmor %vm5118_vm5, %vm5119_vm4 }
0x213f   :  { %v5114_v55 = vmul.f32 %v6927_v54, %v5113_v28  ;;  %v5111_v25 = vsel %vm5110_vm3, %v6925_v34, %v5107_v3  ;;  %v6170_v3 = vld [vmem:[%s9388_s9 + $0x2] sm:$0x3]  ;;  %s7129_s9 = smov [#allocation11]  }
0x2140   :  { %v5142_v42 = vmul.f32 %v5111_v25, %v9219_v18  ;;  %v6443_v18 = vld [vmem:[%s9389_s10 + $0xb8] sm:$0xff]  ;;  %v5172_v25 = vperm.slane %v6170_v3, 0 }
0x2141   :  { %v5115_v50 = vmul.f32 0.5, %v5114_v55  ;;  %5404 = vmatpush.bf16.msra.mxu0 %v6443_v18 }
0x2142   :  { %v5149_v61 = vmul.f32 %v6615_v53, %v5142_v42 }
0x2143   :  { %v5116_v27 = vsub.f32 1.5, %v5115_v50  ;;  %v5173_v50 = vperm.slane %v6170_v3, 1 }
0x2144   :  { %v5156_v29 = vadd.f32 %v6616_v45, %v5149_v61 }
0x2145   :  { %v5117_v36 = vmul.f32 %v6927_v54, %v5116_v27  ;;  %5405 = vmatpush.bf16.msra.mxu0 %v6442_v30 }
0x2147   :  { %v5121_v21 = vsel %vm5120_vm6, %v6927_v54, %v5117_v36  ;;  %v6444_v54 = vld [vmem:[%s9389_s10 + $0xc0] sm:$0xff] }
0x2148   :  { %v5143_v1 = vmul.f32 %v5121_v21, %v9226_v48  ;;  %v6451_v48 = vld [vmem:[%s9389_s10 + $0xf8] sm:$0xff] }
0x2149   :  { %5423 = vmatpush.bf16.msrb.mxu1 %v6451_v48 }
0x214a   :  { %v5150_v49 = vmul.f32 %v6615_v53, %v5143_v1  ;;  %v5090_v17 = vpop.xlane.xlu1 %5089 }
0x214b   :  { %v5096_v40 = vmul.f32 %v5090_v17, %v7264_v14 }
0x214c   :  { %v5157_v9 = vadd.f32 %v6616_v45, %v5150_v49 }
0x214d   :  { %v5100_v22 = vadd.f32 1e-05, %v5096_v40  ;;  %5424 = vmatpush.bf16.msrb.mxu1 %v6450_v38 }
0x214e   :  { %v5160_v63 = vpack.c.bf16 %v5157_v9, %v5156_v29 }
0x214f   :  { %6928 = vrsqrt.f32 %v5100_v22  ;;  %vm5128_vm8 = vweird.f32 %v5100_v22 }
0x2150   :  { %6203 = vmatmul.msk.bf16.vlgmr.msra.gmra.mxu2 %vm151_vm0, %v5160_v63  ;;  %6205 = vmatmul.msk.bf16.vlgmr.msra.gmra.mxu3 %vm151_vm0, %v5160_v63 }
0x2151   :  { %5425 = vmatpush.bf16.msrb.mxu1 %v6449_v32 }
0x2152   :  { %v5093_v19 = vpop.xlane.xlu0 %5092 }
0x2153   :  { %v5097_v0 = vmul.f32 %v5093_v19, %v7264_v14  ;;  %v6441_v14 = vld [vmem:[%s9389_s10 + $0xa8] sm:$0xff] }
0x2154   :  { %5406 = vmatpush.bf16.msra.mxu0 %v6441_v14 }
0x2155   :  { %v6929_v41 = vpop.eup %6928  ;;  %v5101_v44 = vadd.f32 1e-05, %v5097_v0  ;;  %5426 = vmatpush.bf16.msrb.mxu1 %v6448_v51 }
0x2156   :  { %v5123_v15 = vmul.f32 %v6929_v41, %v5100_v22  ;;  %vm5129_vm7 = vweird.f32 %v6929_v41 }
0x2157   :  { %6930 = vrsqrt.f32 %v5101_v44  ;;  %vm5130_vm9 = vmor %vm5128_vm8, %vm5129_vm7  ;;  %vm5138_vm11 = vweird.f32 %v5101_v44 }
0x2158   :  { %v5124_v35 = vmul.f32 %v6929_v41, %v5123_v15  ;;  %5407 = vmatpush.bf16.msra.mxu0 %v6440_v39 }
0x215a   :  { %v5125_v46 = vmul.f32 0.5, %v5124_v35  ;;  %v6617_v35 = vld [vmem:[%s9390_s11 + $0x1] ss:$0 sm:$0xff]  ;;  %s7132_s11 = smov [#allocation12]  }
0x215b   :  { %s5468_s16 = sshll.u32 %s7132_s11, 4  ;;  %s5469_s16 = int_to_ptr.vmem [resolvable:$true] %s5468_s16 }
0x215c   :  { %v5126_v13 = vsub.f32 1.5, %v5125_v46  ;;  %5408 = vmatpush.bf16.msra.mxu0 %v6439_v4 }
0x215d   :  { %v6931_v23 = vpop.eup %6930 }
0x215e   :  { %v5127_v37 = vmul.f32 %v6929_v41, %v5126_v13  ;;  %v5133_v57 = vmul.f32 %v6931_v23, %v5101_v44  ;;  %vm5139_vm10 = vweird.f32 %v6931_v23 }
0x215f   :  { %vm5140_vm12 = vmor %vm5138_vm11, %vm5139_vm10 }
0x2160   :  { %v5134_v8 = vmul.f32 %v6931_v23, %v5133_v57  ;;  %v5131_v11 = vsel %vm5130_vm9, %v6929_v41, %v5127_v37 }
0x2161   :  { %v5144_v43 = vmul.f32 %v5131_v11, %v9233_v26  ;;  %v6447_v26 = vld [vmem:[%s9389_s10 + $0xd8] sm:$0xff] }
0x2162   :  { %v5135_v7 = vmul.f32 0.5, %v5134_v8  ;;  %5427 = vmatpush.bf16.msrb.mxu1 %v6447_v26 }
0x2163   :  { %v5151_v60 = vmul.f32 %v6615_v53, %v5144_v43 }
0x2164   :  { %v5136_v52 = vsub.f32 1.5, %v5135_v7 }
0x2165   :  { %v5158_v56 = vadd.f32 %v6616_v45, %v5151_v60 }
0x2166   :  { %v5137_v47 = vmul.f32 %v6931_v23, %v5136_v52  ;;  %5428 = vmatpush.bf16.msrb.mxu1 %v6446_v59 }
0x2168   :  { %v5141_v16 = vsel %vm5140_vm12, %v6931_v23, %v5137_v47 }
0x2169   :  { %v5145_v5 = vmul.f32 %v5141_v16, %v9240_v6  ;;  %v6438_v6 = vld [vmem:[%s9389_s10 + $0x90] sm:$0xff]  ;;  %s5455_s10 = sshll.u32 %s7129_s9, 4  ;;  %s5456_s10 = int_to_ptr.vmem [resolvable:$true] %s5455_s10 }
0x216a   :  { %5409 = vmatpush.bf16.msra.mxu0 %v6438_v6  ;;  %5429 = vmatpush.bf16.msrb.mxu1 %v6445_v12  ;;  %5463 = dma.vmem_to_hbm [thread:$0]  %s5456_s10, 512, %s5458_s3, [#allocation4], %s7130_s6, %s7130_s6, %s7131_s26  }
0x216b   :  { %v5152_v58 = vmul.f32 %v6615_v53, %v5145_v5 }
0x216d   :  { %v5159_v24 = vadd.f32 %v6616_v45, %v5152_v58 }
0x216e   :  { %5410 = vmatpush.bf16.msra.mxu0 %v6437_v62  ;;  %5430 = vmatpush.bf16.msrb.mxu1 %v6444_v54 }
0x216f   :  { %v5161_v34 = vpack.c.bf16 %v5159_v24, %v5158_v56 }
0x2171   :  { %6204 = vmatmul.msk.bf16.gmra.mxu2 %vm151_vm0, %v5161_v34  ;;  %6206 = vmatmul.msk.bf16.gmra.mxu3 %vm151_vm0, %v5161_v34 }
0x2172   :  { %5411 = vmatpush.bf16.msra.mxu0 %v6436_v2 }
0x21d3   :  { %v5231_v28 = vpop.f32.mrf.mxu2  ;;  %v5250_v55 = vpop.f32.mrf.mxu3 }
0x21d4   :  { %v5232_v27 = vadd.f32 %v5231_v28, %v5172_v25  ;;  %v5251_v53 = vadd.f32 %v5250_v55, %v5173_v50 }
0x21d6   :  { %v5260_v61 = vmax.f32 %v5232_v27, 0.0  ;;  %v5261_v1 = vmax.f32 %v5251_v53, 0.0 }
0x21db   :  { %v5233_v42 = vpop.f32.mrf.mxu2  ;;  %v5252_v36 = vpop.f32.mrf.mxu3 }
0x21dc   :  { %v5234_v21 = vadd.f32 %v5233_v42, %v5172_v25  ;;  %v5253_v45 = vadd.f32 %v5252_v36, %v5173_v50 }
0x21de   :  { %v5262_v49 = vmax.f32 %v5234_v21, 0.0  ;;  %v5263_v17 = vmax.f32 %v5253_v45, 0.0 }
0x21e0   :  { %v5268_v40 = vpack.c.bf16 %v5262_v49, %v5260_v61  ;;  %v5269_v29 = vpack.c.bf16 %v5263_v17, %v5261_v1 }
0x21e2   :  { %5412 = vmatmul.bf16.vlgmr.msra.gmra.mxu0 %v5268_v40  ;;  %5431 = vmatmul.bf16.vlgmr.msrb.gmra.mxu1 %v5269_v29 }
0x21f4   :  { %v5236_v9 = vpop.f32.mrf.mxu2  ;;  %v5255_v22 = vpop.f32.mrf.mxu3 }
0x21f5   :  { %v5237_v63 = vadd.f32 %v5236_v9, %v5172_v25  ;;  %v5256_v18 = vadd.f32 %v5255_v22, %v5173_v50 }
0x21f7   :  { %v5264_v38 = vmax.f32 %v5237_v63, 0.0  ;;  %v5265_v41 = vmax.f32 %v5256_v18, 0.0 }
0x21fc   :  { %v5238_v48 = vpop.f32.mrf.mxu2  ;;  %v5257_v19 = vpop.f32.mrf.mxu3 }
0x21fd   :  { %v5239_v0 = vadd.f32 %v5238_v48, %v5172_v25  ;;  %v5258_v30 = vadd.f32 %v5257_v19, %v5173_v50 }
0x21ff   :  { %v5266_v44 = vmax.f32 %v5239_v0, 0.0  ;;  %v5267_v15 = vmax.f32 %v5258_v30, 0.0 }
0x2201   :  { %v5270_v14 = vpack.c.bf16 %v5266_v44, %v5264_v38  ;;  %v5271_v32 = vpack.c.bf16 %v5267_v15, %v5265_v41 }
0x2203   :  { %5417 = vmatmul.bf16.gmra.mxu0 %v5270_v14  ;;  %5436 = vmatmul.bf16.gmra.mxu1 %v5271_v32 }
0x225f   :  { %v5413_v46 = vpop.f32.mrf.mxu0  ;;  %v5432_v39 = vpop.f32.mrf.mxu1 }
0x2260   :  { %v5414_v51 = vadd.f32 %v6617_v35, %v5413_v46 }
0x2262   :  { %v5433_v13 = vadd.f32 %v5432_v39, %v5414_v51 }
0x2264   :  { %v5442_v23 = vadd.f32 %v5433_v13, %v9198_v33 }
0x2266   :  { %5447 = vst.msk [vmem:[#allocation12 + $0x20] sm:$0xff] %vm151_vm0, %v5442_v23 }
0x2267   :  { %v5415_v37 = vpop.f32.mrf.mxu0  ;;  %v5434_v8 = vpop.f32.mrf.mxu1 }
0x2268   :  { %v5416_v57 = vadd.f32 %v6617_v35, %v5415_v37 }
0x226a   :  { %v5435_v11 = vadd.f32 %v5434_v8, %v5416_v57 }
0x226c   :  { %v5443_v7 = vadd.f32 %v5435_v11, %v9203_v10 }
0x226e   :  { %5448 = vst.msk [vmem:[#allocation12 + $0x28] sm:$0xff] %vm151_vm0, %v5443_v7 }
0x2280   :  { %v5418_v52 = vpop.f32.mrf.mxu0  ;;  %v5437_v43 = vpop.f32.mrf.mxu1 }
0x2281   :  { %v5419_v47 = vadd.f32 %v6617_v35, %v5418_v52 }
0x2283   :  { %v5438_v16 = vadd.f32 %v5437_v43, %v5419_v47 }
0x2285   :  { %v5444_v5 = vadd.f32 %v5438_v16, %v9208_v20 }
0x2287   :  { %5449 = vst.msk [vmem:[#allocation12 + $0x30] sm:$0xff] %vm151_vm0, %v5444_v5 }
0x2288   :  { %v5420_v60 = vpop.f32.mrf.mxu0  ;;  %v5439_v58 = vpop.f32.mrf.mxu1 }
0x2289   :  { %v5421_v33 = vadd.f32 %v6617_v35, %v5420_v60 }
0x228b   :  { %v5440_v10 = vadd.f32 %v5439_v58, %v5421_v33 }
0x228d   :  { %v5445_v56 = vadd.f32 %v5440_v10, %v9213_v31 }
0x228f   :  { %5450 = vst.msk [vmem:[#allocation12 + $0x38] sm:$0xff] %vm151_vm0, %v5445_v56 }
0x2290   :  { %5476 = dma.vmem_to_hbm [thread:$0]  %s5469_s16, 1024, %s5471_s18, [#allocation13], %s7130_s6, %s7130_s6, %s7131_s26  }
0x2291   :  { %7110 = dma.done.wait [#allocation4], 512  }
0x2292   :  { %7111 = vsyncadd [#allocation4], 4294966784 }
0x2293   :  { %7112 = dma.done.wait [#allocation13], 1024  }
0x2294   :  { %7113 = vsyncadd [#allocation13], 4294966272 }
0x2295   :  { %5485 = vsyncpa [#allocation3], 1 }
0x2296   :  { %5486 = vsyncpa [#allocation6], 1 }
0x2297   :  { %5487 = vsyncpa [#allocation9], 1 }
0x2298   :  { %5488 = vsyncpa [#allocation4], 1 }
0x2299   :  { %5489 = vsyncpa [#allocation13], 1 }

</bundles_post_ra>
